<compile_context>
chip_gen: v7x
topology: tpu7x:2x2x1
jax: 0.10.0
libtpu: 0.0.40
codegen_flags: <defaults>
</compile_context>

<pallas_src>
import math
import functools

import jax
import jax.numpy as jnp
from jax import lax
from jax.experimental import pallas as pl
from jax.experimental.pallas import tpu as pltpu

NEG_SLOPE = 0.2          # leaky_relu negative_slope (module default)
EPS = 1e-6
_NEG_INF = -1e30
_VMEM_LIMIT = 48 * 1024 * 1024


# ---------------------------------------------------------------------------
# Kernel A: projection fc(feat) -> feat_src, attention logits, global min.
#   grid = (N // TM,)
#   fs  [N, H*F] = feat @ W                          (bf16 MXU, f32 accumulate)
#   elT [H, N]   : elT[h, j] = sum_f fs[j, h*F+f] * attn_l[h, f]
#   er  [N, H]   : er[j, h]  = sum_f fs[j, h*F+f] * attn_r[h, f]
#   mu  (1, 1)   = min(fs)   (running min across tiles)
# ---------------------------------------------------------------------------
def _proj_kernel(x_ref, w_ref, al_ref, ar_ref, fs_ref, elT_ref, er_ref, mu_ref):
    y = jnp.dot(x_ref[...], w_ref[...], preferred_element_type=jnp.float32)
    fs_ref[...] = y

    # Per-head logits for all heads at once via block-diagonal weight matrices
    # built in the wrapper (AL/AR are [H*F, H]); one small MXU matmul each.
    elT_ref[...] = lax.dot_general(al_ref[...], y, (((0,), (1,)), ((), ())),
                                   preferred_element_type=jnp.float32)
    er_ref[...] = jnp.dot(y, ar_ref[...], preferred_element_type=jnp.float32)

    tile_min = jnp.min(y, keepdims=True)                    # (1, 1)

    @pl.when(pl.program_id(0) == 0)
    def _():
        mu_ref[...] = tile_min

    @pl.when(pl.program_id(0) > 0)
    def _():
        mu_ref[...] = jnp.minimum(mu_ref[...], tile_min)


# ---------------------------------------------------------------------------
# Kernel B: pre_f = (feat_src - mu + eps) ** p, lane-dense over [N, H*F].
# Emitted as bf16: only ever consumed as the RHS of an MXU matmul.
# ---------------------------------------------------------------------------
def _pre_f_kernel(p_ref, mu_ref, fs_ref, o_ref):
    p = p_ref[0, 0]
    mu = mu_ref[0, 0]
    x = fs_ref[...] - mu + EPS              # > 0 by construction (mu = min fs)
    o_ref[...] = jnp.exp(p * jnp.log(x)).astype(jnp.bfloat16)


# ---------------------------------------------------------------------------
# Kernel C: per-destination-tile GAT attention + power-mean aggregation.
#   grid = (N // TM,)   (tiles are independent -> "parallel" / v7x megacore)
# ---------------------------------------------------------------------------
def _attn_kernel(invp_ref, mu_ref, elT_ref, er_ref, adj_ref, pre_ref, bias_ref,
                 o_ref, *, num_heads, out_feats):
    inv_p = invp_ref[0, 0]
    mu = mu_ref[0, 0]
    mask = adj_ref[...] != 0                      # [TM, N]  int8 -> bool
    er_all = er_ref[...]                          # [TM, H]  f32

    for h in range(num_heads):                    # unrolled; H small & static
        lo = h * out_feats
        hi = lo + out_feats
        el_row = elT_ref[h:h + 1, :]              # [1, N]   source logits
        er_col = er_all[:, h:h + 1]               # [TM, 1]  destination logits

        # e[dst, src] = leaky_relu(el[src] + er[dst])    (u_add_v + leaky_relu)
        e = er_col + el_row
        e = jnp.where(e > 0, e, NEG_SLOPE * e)

        # edge_softmax with deferred normalization: exp(masked - rowmax) is
        # exactly 0 on non-edges (underflow) and never overflows; a single
        # [TM,1] reciprocal replaces the [TM,N] divide.
        masked = jnp.where(mask, e, _NEG_INF)
        m = jnp.max(masked, axis=1, keepdims=True)            # [TM, 1]
        w = jnp.exp(masked - m)                                # [TM, N] f32
        # row_sum >= 1 always (the max position contributes exp(0) = 1).
        inv_sum = pl.reciprocal(jnp.sum(w, axis=1, keepdims=True), approx=True)

        # aggregation: sum_src softmax(e) * pre_f   (bf16 MXU, f32 accumulate)
        agg = jnp.dot(w.astype(jnp.bfloat16), pre_ref[:, lo:hi],
                      preferred_element_type=jnp.float32)      # [TM, F]
        pre_rst = agg * inv_sum

        rst = jnp.exp(inv_p * jnp.log(pre_rst + EPS)) + mu     # ** (1/p) + mu
        o_ref[:, lo:hi] = rst + bias_ref[:, lo:hi]


# ---------------------------------------------------------------------------
# Wrapper (glue: scalar prep, logit weight matrices, adjacency compaction).
# ---------------------------------------------------------------------------
@functools.partial(jax.jit, static_argnames=("num_heads", "out_feats"))
def gat_conv_g(feat, W, attn_l, attn_r, adj, p_raw, s_f, bias, *,
               num_heads, out_feats):
    N, Din = feat.shape
    H, F = num_heads, out_feats
    HF = H * F

    # Destination-row tile: 128 keeps adjacency blocks (TM, N) bounded and
    # pipelined; fall back to whole-array blocks for small / ragged N.
    # TODO(synk): pad N for large graphs whose N is not a multiple of 128.
    TM = 128 if N % 128 == 0 else N
    nblk = N // TM

    cp_arb = pltpu.CompilerParams(dimension_semantics=("arbitrary",),
                                  vmem_limit_bytes=_VMEM_LIMIT)
    cp_par = pltpu.CompilerParams(dimension_semantics=("parallel",),
                                  vmem_limit_bytes=_VMEM_LIMIT)
    smem = pl.BlockSpec(memory_space=pltpu.MemorySpace.SMEM)

    # scalar prep: p = sigmoid(p_raw) + s_f ; attention kernel only needs 1/p.
    # TODO(synk): tensor-valued p (per-element broadcast) not supported; scalar p only.
    p_eff = (jax.nn.sigmoid(p_raw) + s_f).astype(jnp.float32).reshape(1, 1)
    inv_p = (1.0 / p_eff).astype(jnp.float32)

    # bf16 MXU feeds (all accumulation stays f32 in-kernel).
    feat_bf = feat.astype(jnp.bfloat16)
    W_bf = W.astype(jnp.bfloat16)

    # Block-diagonal logit weights: AL[h*F + f, h] = attn_l[h, f].
    eyeH = jnp.eye(H, dtype=jnp.float32)
    AL = jnp.einsum("hf,hk->hfk", attn_l.astype(jnp.float32), eyeH).reshape(HF, H)
    AR = jnp.einsum("hf,hk->hfk", attn_r.astype(jnp.float32), eyeH).reshape(HF, H)

    # Compact adjacency mask: 4x less HBM/VMEM than f32.
    # TODO(synk): zero-in-degree rows get uniform attention instead of DGL's
    # error; add self-loops (as the test does) or pre-check in the wrapper.
    adj_mask = (adj > 0).astype(jnp.int8)
    bias2 = bias.reshape(1, HF).astype(jnp.float32)

    fs, elT, er, mu = pl.pallas_call(
        _proj_kernel,
        grid=(nblk,),
        in_specs=[pl.BlockSpec((TM, Din), lambda i: (i, 0)),
                  pl.BlockSpec((Din, HF), lambda i: (0, 0)),
                  pl.BlockSpec((HF, H), lambda i: (0, 0)),
                  pl.BlockSpec((HF, H), lambda i: (0, 0))],
        out_specs=(pl.BlockSpec((TM, HF), lambda i: (i, 0)),
                   pl.BlockSpec((H, TM), lambda i: (0, i)),
                   pl.BlockSpec((TM, H), lambda i: (i, 0)),
                   pl.BlockSpec((1, 1), lambda i: (0, 0))),     # running min
        out_shape=(jax.ShapeDtypeStruct((N, HF), jnp.float32),
                   jax.ShapeDtypeStruct((H, N), jnp.float32),
                   jax.ShapeDtypeStruct((N, H), jnp.float32),
                   jax.ShapeDtypeStruct((1, 1), jnp.float32)),
        compiler_params=cp_arb,       # mu accumulates across node tiles
    )(feat_bf, W_bf, AL, AR)

    pre_f = pl.pallas_call(
        _pre_f_kernel,
        grid=(nblk,),
        in_specs=[smem, smem, pl.BlockSpec((TM, HF), lambda i: (i, 0))],
        out_specs=pl.BlockSpec((TM, HF), lambda i: (i, 0)),
        out_shape=jax.ShapeDtypeStruct((N, HF), jnp.bfloat16),
        compiler_params=cp_par,
    )(p_eff, mu, fs)

    attn_kernel = functools.partial(_attn_kernel, num_heads=H, out_feats=F)
    rst = pl.pallas_call(
        attn_kernel,
        grid=(nblk,),
        in_specs=[smem,                                        # 1/p
                  smem,                                        # mu
                  pl.BlockSpec((H, N), lambda m: (0, 0)),      # elT (resident)
                  pl.BlockSpec((TM, H), lambda m: (m, 0)),     # er (dst tile)
                  pl.BlockSpec((TM, N), lambda m: (m, 0)),     # adjacency rows
                  pl.BlockSpec((N, HF), lambda m: (0, 0)),     # pre_f (resident)
                  pl.BlockSpec((1, HF), lambda m: (0, 0))],    # bias
        out_specs=pl.BlockSpec((TM, HF), lambda m: (m, 0)),
        out_shape=jax.ShapeDtypeStruct((N, HF), jnp.float32),
        compiler_params=cp_par,
    )(inv_p, mu, elT, er, adj_mask, pre_f, bias2)

    return rst, fs, mu


# ---------------------------------------------------------------------------
# Pure-JAX f32 reference for the attention/aggregation part (verification).
# ---------------------------------------------------------------------------
def reference_from_projection(fs, mu, attn_l, attn_r, adj, p_eff, bias, H, F):
    N = fs.shape[0]
    fs3 = fs.reshape(N, H, F)
    el = jnp.sum(fs3 * attn_l.reshape(1, H, F), axis=-1)       # [N, H] (src)
    er = jnp.sum(fs3 * attn_r.reshape(1, H, F), axis=-1)       # [N, H] (dst)
    e = er[:, None, :] + el[None, :, :]                        # [dst, src, H]
    e = jnp.where(e > 0, e, NEG_SLOPE * e)
    mask = (adj > 0)[:, :, None]
    masked = jnp.where(mask, e, _NEG_INF)
    m = jnp.max(masked, axis=1, keepdims=True)
    w = jnp.where(mask, jnp.exp(e - m), 0.0)
    a = w / jnp.sum(w, axis=1, keepdims=True)
    pre_f = (fs3 - mu + EPS) ** p_eff
    agg = jnp.einsum("dsh,shf->dhf", a, pre_f)
    rst = (agg + EPS) ** (1.0 / p_eff) + mu
    rst = rst + bias.reshape(1, H, F)
    return rst.reshape(N, H * F)


if __name__ == "__main__":
    # Small shapes consistent with the module: N nodes, in_feats, heads, out_feats.
    # N = 256 with TM = 128 exercises the multi-tile path of every kernel.
    N, Din, H, F = 256, 16, 4, 32

    key = jax.random.PRNGKey(0)
    k_w, k_al, k_ar, k_feat, k_adj = jax.random.split(key, 5)

    gain = math.sqrt(2.0)   # calculate_gain('relu')
    # fc.weight is (out_feats*num_heads, in_feats) in torch -> stored [Din, H*F].
    W = (gain * math.sqrt(2.0 / (Din + H * F))) * jax.random.normal(
        k_w, (Din, H * F), jnp.float32)
    attn_l = (gain * math.sqrt(2.0 / (1 + F))) * jax.random.normal(
        k_al, (H, F), jnp.float32)           # torch shape (1, H, F)
    attn_r = (gain * math.sqrt(2.0 / (1 + F))) * jax.random.normal(
        k_ar, (H, F), jnp.float32)
    bias = jnp.zeros((H * F,), jnp.float32)  # nn.init.constant_(bias, 0)

    feat = jax.random.normal(k_feat, (N, Din), jnp.float32)
    # Dense adjacency adj[dst, src]; self-loops so no node has 0 in-degree
    # (the module raises for 0-in-degree graphs).
    adj = (jax.random.uniform(k_adj, (N, N)) < 0.1).astype(jnp.float32)
    adj = jnp.maximum(adj, jnp.eye(N, dtype=jnp.float32))

    # forward(graph, feat, p, s_f): p is a learnable scalar, s_f a scalar shift.
    p_raw = jnp.float32(0.5)
    s_f = jnp.float32(1.0)

    rst, fs, mu = gat_conv_g(feat, W, attn_l, attn_r, adj, p_raw, s_f, bias,
                             num_heads=H, out_feats=F)
    rst = jax.block_until_ready(rst)

    # Checks: projection (bf16 MXU) vs f32, global min, and full attention path.
    fs_ref = jnp.dot(feat, W)
    assert rst.shape == (N, H * F)
    assert jnp.allclose(fs, fs_ref, rtol=2e-2, atol=2e-2), "projection mismatch"
    assert jnp.allclose(mu[0, 0], jnp.min(fs), rtol=1e-5, atol=1e-5), "mu mismatch"

    p_eff = jax.nn.sigmoid(p_raw) + s_f
    ref = reference_from_projection(fs, mu[0, 0], attn_l, attn_r, adj,
                                    p_eff, bias, H, F)
    assert jnp.allclose(rst, ref, rtol=3e-2, atol=3e-2), "mismatch vs reference"
    print("KERNEL_OK")
</pallas_src>

<mosaic_0001>
module attributes {stable_mosaic.version = 11 : i64} {
  func.func @_proj_kernel(%arg0: i32, %arg1: memref<128x16xbf16, #tpu.memory_space<vmem>>, %arg2: memref<16x128xbf16, #tpu.memory_space<vmem>>, %arg3: memref<128x4xf32, #tpu.memory_space<vmem>>, %arg4: memref<128x4xf32, #tpu.memory_space<vmem>>, %arg5: memref<128x128xf32, #tpu.memory_space<vmem>>, %arg6: memref<4x128xf32, #tpu.memory_space<vmem>>, %arg7: memref<128x4xf32, #tpu.memory_space<vmem>>, %arg8: memref<1x1xf32, #tpu.memory_space<vmem>>) attributes {dimension_semantics = [#tpu.dimension_semantics<arbitrary>], iteration_bounds = array<i64: 2>, scalar_prefetch = 0 : i64, scratch_operands = 0 : i64, tpu.core_type = #tpu.core_type<tc>, window_params = [{transform_indices = @transform_0, window_bounds = array<i64: 128, 16>}, {pipeline_mode = #tpu.pipeline_mode<synchronous>, transform_indices = @transform_1, window_bounds = array<i64: 16, 128>}, {pipeline_mode = #tpu.pipeline_mode<synchronous>, transform_indices = @transform_2, window_bounds = array<i64: 128, 4>}, {pipeline_mode = #tpu.pipeline_mode<synchronous>, transform_indices = @transform_3, window_bounds = array<i64: 128, 4>}, {transform_indices = @transform_4, window_bounds = array<i64: 128, 128>}, {transform_indices = @transform_5, window_bounds = array<i64: 4, 128>}, {transform_indices = @transform_6, window_bounds = array<i64: 128, 4>}, {pipeline_mode = #tpu.pipeline_mode<synchronous>, transform_indices = @transform_7, window_bounds = array<i64: 1, 1>}]} {
    %c0 = arith.constant 0 : index
    %c0_0 = arith.constant 0 : index
    %0 = vector.load %arg1[%c0, %c0_0] : memref<128x16xbf16, #tpu.memory_space<vmem>>, vector<128x16xbf16>
    %c0_1 = arith.constant 0 : index
    %c0_2 = arith.constant 0 : index
    %1 = vector.load %arg2[%c0_1, %c0_2] : memref<16x128xbf16, #tpu.memory_space<vmem>>, vector<16x128xbf16>
    %cst = arith.constant dense<0.000000e+00> : vector<128x128xf32>
    %2 = tpu.matmul %0, %1, %cst {dimension_numbers = #tpu.dot_dimension_numbers<[1], [0], [0], [1], [0, 0, 1, 1], [], []>} : vector<128x16xbf16>, vector<16x128xbf16>, vector<128x128xf32> -> vector<128x128xf32>
    %c0_3 = arith.constant 0 : index
    %c0_4 = arith.constant 0 : index
    %3 = vector.load %arg5[%c0_3, %c0_4] : memref<128x128xf32, #tpu.memory_space<vmem>>, vector<128x128xf32>
    tpu.vector_store %arg5[%c0_3, %c0_4], %2 {strides = array<i32>} : memref<128x128xf32, #tpu.memory_space<vmem>>, vector<128x128xf32>,
    %c0_5 = arith.constant 0 : index
    %c0_6 = arith.constant 0 : index
    %4 = vector.load %arg3[%c0_5, %c0_6] : memref<128x4xf32, #tpu.memory_space<vmem>>, vector<128x4xf32>
    %cst_7 = arith.constant dense<0.000000e+00> : vector<4x128xf32>
    %5 = tpu.matmul %4, %2, %cst_7 {dimension_numbers = #tpu.dot_dimension_numbers<[0], [1], [1], [0], [0, 1, 1, 0], [], []>} : vector<128x4xf32>, vector<128x128xf32>, vector<4x128xf32> -> vector<4x128xf32>
    %c0_8 = arith.constant 0 : index
    %c0_9 = arith.constant 0 : index
    %6 = vector.load %arg6[%c0_8, %c0_9] : memref<4x128xf32, #tpu.memory_space<vmem>>, vector<4x128xf32>
    tpu.vector_store %arg6[%c0_8, %c0_9], %5 {strides = array<i32>} : memref<4x128xf32, #tpu.memory_space<vmem>>, vector<4x128xf32>,
    %c0_10 = arith.constant 0 : index
    %c0_11 = arith.constant 0 : index
    %7 = vector.load %arg4[%c0_10, %c0_11] : memref<128x4xf32, #tpu.memory_space<vmem>>, vector<128x4xf32>
    %cst_12 = arith.constant dense<0.000000e+00> : vector<128x4xf32>
    %8 = tpu.matmul %2, %7, %cst_12 {dimension_numbers = #tpu.dot_dimension_numbers<[1], [0], [0], [1], [0, 0, 1, 1], [], []>} : vector<128x128xf32>, vector<128x4xf32>, vector<128x4xf32> -> vector<128x4xf32>
    %c0_13 = arith.constant 0 : index
    %c0_14 = arith.constant 0 : index
    %9 = vector.load %arg7[%c0_13, %c0_14] : memref<128x4xf32, #tpu.memory_space<vmem>>, vector<128x4xf32>
    tpu.vector_store %arg7[%c0_13, %c0_14], %8 {strides = array<i32>} : memref<128x4xf32, #tpu.memory_space<vmem>>, vector<128x4xf32>,
    %10 = vector.shape_cast %2 : vector<128x128xf32> to vector<1x128x128xf32>
    %cst_15 = arith.constant dense<0x7F800000> : vector<1xf32>
    %11 = vector.multi_reduction <minimumf>, %10, %cst_15 [1, 2] : vector<1x128x128xf32> to vector<1xf32>
    %12 = vector.shape_cast %11 : vector<1xf32> to vector<1x1x1xf32>
    %13 = vector.extract %12[0, 0, 0] : f32 from vector<1x1x1xf32>
    %14 = vector.broadcast %13 : f32 to vector<1x1xf32>
    %c0_i32 = arith.constant 0 : i32
    %15 = arith.cmpi eq, %arg0, %c0_i32 : i32
    %16 = arith.extui %15 : i1 to i32
    %c0_i32_16 = arith.constant 0 : i32
    %17 = arith.cmpi ne, %16, %c0_i32_16 : i32
    scf.if %17 {
      %c0_19 = arith.constant 0 : index
      %c0_20 = arith.constant 0 : index
      %21 = vector.load %arg8[%c0_19, %c0_20] : memref<1x1xf32, #tpu.memory_space<vmem>>, vector<1x1xf32>
      tpu.vector_store %arg8[%c0_19, %c0_20], %14 {strides = array<i32>} : memref<1x1xf32, #tpu.memory_space<vmem>>, vector<1x1xf32>,
    } else {
    }
    %c0_i32_17 = arith.constant 0 : i32
    %18 = arith.cmpi sgt, %arg0, %c0_i32_17 : i32
    %19 = arith.extui %18 : i1 to i32
    %c0_i32_18 = arith.constant 0 : i32
    %20 = arith.cmpi ne, %19, %c0_i32_18 : i32
    scf.if %20 {
      %c0_19 = arith.constant 0 : index
      %c0_20 = arith.constant 0 : index
      %21 = vector.load %arg8[%c0_19, %c0_20] : memref<1x1xf32, #tpu.memory_space<vmem>>, vector<1x1xf32>
      %22 = arith.minimumf %21, %14 : vector<1x1xf32>
      %c0_21 = arith.constant 0 : index
      %c0_22 = arith.constant 0 : index
      %23 = vector.load %arg8[%c0_21, %c0_22] : memref<1x1xf32, #tpu.memory_space<vmem>>, vector<1x1xf32>
      tpu.vector_store %arg8[%c0_21, %c0_22], %22 {strides = array<i32>} : memref<1x1xf32, #tpu.memory_space<vmem>>, vector<1x1xf32>,
    } else {
    }
    return
  }
  func.func @transform_0(%arg0: i32) -> (i32, i32) {
    %c0_i32 = arith.constant 0 : i32
    %c0_i32_0 = arith.constant 0 : i32
    return %arg0, %c0_i32 : i32, i32
  }
  func.func @transform_1(%arg0: i32) -> (i32, i32) {
    %c0_i32 = arith.constant 0 : i32
    %c0_i32_0 = arith.constant 0 : i32
    %c0_i32_1 = arith.constant 0 : i32
    return %c0_i32, %c0_i32_0 : i32, i32
  }
  func.func @transform_2(%arg0: i32) -> (i32, i32) {
    %c0_i32 = arith.constant 0 : i32
    %c0_i32_0 = arith.constant 0 : i32
    %c0_i32_1 = arith.constant 0 : i32
    return %c0_i32, %c0_i32_0 : i32, i32
  }
  func.func @transform_3(%arg0: i32) -> (i32, i32) {
    %c0_i32 = arith.constant 0 : i32
    %c0_i32_0 = arith.constant 0 : i32
    %c0_i32_1 = arith.constant 0 : i32
    return %c0_i32, %c0_i32_0 : i32, i32
  }
  func.func @transform_4(%arg0: i32) -> (i32, i32) {
    %c0_i32 = arith.constant 0 : i32
    %c0_i32_0 = arith.constant 0 : i32
    return %arg0, %c0_i32 : i32, i32
  }
  func.func @transform_5(%arg0: i32) -> (i32, i32) {
    %c0_i32 = arith.constant 0 : i32
    %c0_i32_0 = arith.constant 0 : i32
    return %c0_i32, %arg0 : i32, i32
  }
  func.func @transform_6(%arg0: i32) -> (i32, i32) {
    %c0_i32 = arith.constant 0 : i32
    %c0_i32_0 = arith.constant 0 : i32
    return %arg0, %c0_i32 : i32, i32
  }
  func.func @transform_7(%arg0: i32) -> (i32, i32) {
    %c0_i32 = arith.constant 0 : i32
    %c0_i32_0 = arith.constant 0 : i32
    %c0_i32_1 = arith.constant 0 : i32
    return %c0_i32, %c0_i32_0 : i32, i32
  }
}

module attributes {stable_mosaic.version = 11 : i64} {
  func.func @_pre_f_kernel(%arg0: i32, %arg1: memref<1x1xf32, #tpu.memory_space<smem>>, %arg2: memref<1x1xf32, #tpu.memory_space<smem>>, %arg3: memref<128x128xf32, #tpu.memory_space<vmem>>, %arg4: memref<128x128xbf16, #tpu.memory_space<vmem>>) attributes {dimension_semantics = [#tpu.dimension_semantics<parallel>], iteration_bounds = array<i64: 2>, scalar_prefetch = 0 : i64, scratch_operands = 0 : i64, tpu.core_type = #tpu.core_type<tc>, window_params = [{transform_indices = @transform_0, window_bounds = array<i64: 1, 1>}, {transform_indices = @transform_1, window_bounds = array<i64: 1, 1>}, {transform_indices = @transform_2, window_bounds = array<i64: 128, 128>}, {transform_indices = @transform_3, window_bounds = array<i64: 128, 128>}]} {
    %c0 = arith.constant 0 : index
    %c0_0 = arith.constant 0 : index
    %0 = memref.load %arg1[%c0, %c0_0] : memref<1x1xf32, #tpu.memory_space<smem>>
    %c0_1 = arith.constant 0 : index
    %c0_2 = arith.constant 0 : index
    %1 = memref.load %arg2[%c0_1, %c0_2] : memref<1x1xf32, #tpu.memory_space<smem>>
    %c0_3 = arith.constant 0 : index
    %c0_4 = arith.constant 0 : index
    %2 = vector.load %arg3[%c0_3, %c0_4] : memref<128x128xf32, #tpu.memory_space<vmem>>, vector<128x128xf32>
    %3 = vector.broadcast %1 : f32 to vector<128x128xf32>
    %4 = arith.subf %2, %3 : vector<128x128xf32>
    %cst = arith.constant 9.99999997E-7 : f32
    %5 = vector.broadcast %cst : f32 to vector<128x128xf32>
    %6 = arith.addf %4, %5 : vector<128x128xf32>
    %7 = math.log %6 : vector<128x128xf32>
    %8 = vector.broadcast %0 : f32 to vector<128x128xf32>
    %9 = arith.mulf %8, %7 : vector<128x128xf32>
    %10 = math.exp %9 : vector<128x128xf32>
    %11 = arith.truncf %10 : vector<128x128xf32> to vector<128x128xbf16>
    %c0_5 = arith.constant 0 : index
    %c0_6 = arith.constant 0 : index
    %12 = vector.load %arg4[%c0_5, %c0_6] : memref<128x128xbf16, #tpu.memory_space<vmem>>, vector<128x128xbf16>
    tpu.vector_store %arg4[%c0_5, %c0_6], %11 {strides = array<i32>} : memref<128x128xbf16, #tpu.memory_space<vmem>>, vector<128x128xbf16>,
    return
  }
  func.func @transform_0(%arg0: i32) -> (i32, i32) {
    %c0_i32 = arith.constant 0 : i32
    %c0_i32_0 = arith.constant 0 : i32
    %c0_i32_1 = arith.constant 0 : i32
    return %c0_i32, %c0_i32_0 : i32, i32
  }
  func.func @transform_1(%arg0: i32) -> (i32, i32) {
    %c0_i32 = arith.constant 0 : i32
    %c0_i32_0 = arith.constant 0 : i32
    %c0_i32_1 = arith.constant 0 : i32
    return %c0_i32, %c0_i32_0 : i32, i32
  }
  func.func @transform_2(%arg0: i32) -> (i32, i32) {
    %c0_i32 = arith.constant 0 : i32
    %c0_i32_0 = arith.constant 0 : i32
    return %arg0, %c0_i32 : i32, i32
  }
  func.func @transform_3(%arg0: i32) -> (i32, i32) {
    %c0_i32 = arith.constant 0 : i32
    %c0_i32_0 = arith.constant 0 : i32
    return %arg0, %c0_i32 : i32, i32
  }
}

module attributes {stable_mosaic.version = 11 : i64} {
  func.func @_attn_kernel(%arg0: i32, %arg1: memref<1x1xf32, #tpu.memory_space<smem>>, %arg2: memref<1x1xf32, #tpu.memory_space<smem>>, %arg3: memref<4x256xf32, #tpu.memory_space<vmem>>, %arg4: memref<128x4xf32, #tpu.memory_space<vmem>>, %arg5: memref<128x256xi8, #tpu.memory_space<vmem>>, %arg6: memref<256x128xbf16, #tpu.memory_space<vmem>>, %arg7: memref<1x128xf32, #tpu.memory_space<vmem>>, %arg8: memref<128x128xf32, #tpu.memory_space<vmem>>) attributes {dimension_semantics = [#tpu.dimension_semantics<parallel>], iteration_bounds = array<i64: 2>, scalar_prefetch = 0 : i64, scratch_operands = 0 : i64, tpu.core_type = #tpu.core_type<tc>, window_params = [{transform_indices = @transform_0, window_bounds = array<i64: 1, 1>}, {transform_indices = @transform_1, window_bounds = array<i64: 1, 1>}, {pipeline_mode = #tpu.pipeline_mode<synchronous>, transform_indices = @transform_2, window_bounds = array<i64: 4, 256>}, {transform_indices = @transform_3, window_bounds = array<i64: 128, 4>}, {transform_indices = @transform_4, window_bounds = array<i64: 128, 256>}, {pipeline_mode = #tpu.pipeline_mode<synchronous>, transform_indices = @transform_5, window_bounds = array<i64: 256, 128>}, {pipeline_mode = #tpu.pipeline_mode<synchronous>, transform_indices = @transform_6, window_bounds = array<i64: 1, 128>}, {transform_indices = @transform_7, window_bounds = array<i64: 128, 128>}]} {
    %c0 = arith.constant 0 : index
    %c0_0 = arith.constant 0 : index
    %0 = memref.load %arg1[%c0, %c0_0] : memref<1x1xf32, #tpu.memory_space<smem>>
    %c0_1 = arith.constant 0 : index
    %c0_2 = arith.constant 0 : index
    %1 = memref.load %arg2[%c0_1, %c0_2] : memref<1x1xf32, #tpu.memory_space<smem>>
    %c0_3 = arith.constant 0 : index
    %c0_4 = arith.constant 0 : index
    %2 = vector.load %arg5[%c0_3, %c0_4] : memref<128x256xi8, #tpu.memory_space<vmem>>, vector<128x256xi8>
    %c0_i8 = arith.constant 0 : i8
    %3 = vector.broadcast %c0_i8 : i8 to vector<128x256xi8>
    %4 = arith.cmpi ne, %2, %3 : vector<128x256xi8>
    %c0_5 = arith.constant 0 : index
    %c0_6 = arith.constant 0 : index
    %5 = vector.load %arg4[%c0_5, %c0_6] : memref<128x4xf32, #tpu.memory_space<vmem>>, vector<128x4xf32>
    %c0_7 = arith.constant 0 : index
    %c0_8 = arith.constant 0 : index
    %6 = vector.load %arg3[%c0_7, %c0_8] : memref<4x256xf32, #tpu.memory_space<vmem>>, vector<1x256xf32>
    %7 = vector.extract_strided_slice %5 {offsets = [0, 0], sizes = [128, 1], strides = [1, 1]} : vector<128x4xf32> to vector<128x1xf32>
    %8 = vector.broadcast %7 : vector<128x1xf32> to vector<128x256xf32>
    %9 = vector.broadcast %6 : vector<1x256xf32> to vector<128x256xf32>
    %10 = arith.addf %8, %9 : vector<128x256xf32>
    %cst = arith.constant 0.000000e+00 : f32
    %11 = vector.broadcast %cst : f32 to vector<128x256xf32>
    %12 = arith.cmpf ogt, %10, %11 : vector<128x256xf32>
    %cst_9 = arith.constant 2.000000e-01 : f32
    %13 = vector.broadcast %cst_9 : f32 to vector<128x256xf32>
    %14 = arith.mulf %13, %10 : vector<128x256xf32>
    %15 = arith.select %12, %10, %14 : vector<128x256xi1>, vector<128x256xf32>
    %cst_10 = arith.constant -1.000000e+30 : f32
    %16 = vector.broadcast %cst_10 : f32 to vector<128x256xf32>
    %17 = arith.select %4, %15, %16 : vector<128x256xi1>, vector<128x256xf32>
    %cst_11 = arith.constant dense<0xFF800000> : vector<128xf32>
    %18 = vector.multi_reduction <maximumf>, %17, %cst_11 [1] : vector<128x256xf32> to vector<128xf32>
    %19 = vector.shape_cast %18 : vector<128xf32> to vector<128x1xf32>
    %20 = vector.broadcast %19 : vector<128x1xf32> to vector<128x256xf32>
    %21 = arith.subf %17, %20 : vector<128x256xf32>
    %22 = math.exp %21 : vector<128x256xf32>
    %cst_12 = arith.constant dense<0.000000e+00> : vector<128xf32>
    %23 = vector.multi_reduction <add>, %22, %cst_12 [1] : vector<128x256xf32> to vector<128xf32>
    %24 = vector.shape_cast %23 : vector<128xf32> to vector<128x1xf32>
    %25 = tpu.reciprocal %24 {approx = true} : vector<128x1xf32> -> vector<128x1xf32>
    %26 = arith.truncf %22 : vector<128x256xf32> to vector<128x256xbf16>
    %c0_13 = arith.constant 0 : index
    %c0_14 = arith.constant 0 : index
    %27 = vector.load %arg6[%c0_13, %c0_14] : memref<256x128xbf16, #tpu.memory_space<vmem>>, vector<256x32xbf16>
    %cst_15 = arith.constant dense<0.000000e+00> : vector<128x32xf32>
    %28 = tpu.matmul %26, %27, %cst_15 {dimension_numbers = #tpu.dot_dimension_numbers<[1], [0], [0], [1], [0, 0, 1, 1], [], []>} : vector<128x256xbf16>, vector<256x32xbf16>, vector<128x32xf32> -> vector<128x32xf32>
    %29 = vector.broadcast %25 : vector<128x1xf32> to vector<128x32xf32>
    %30 = arith.mulf %28, %29 : vector<128x32xf32>
    %cst_16 = arith.constant 9.99999997E-7 : f32
    %31 = vector.broadcast %cst_16 : f32 to vector<128x32xf32>
    %32 = arith.addf %30, %31 : vector<128x32xf32>
    %33 = math.log %32 : vector<128x32xf32>
    %34 = vector.broadcast %0 : f32 to vector<128x32xf32>
    %35 = arith.mulf %34, %33 : vector<128x32xf32>
    %36 = math.exp %35 : vector<128x32xf32>
    %37 = vector.broadcast %1 : f32 to vector<128x32xf32>
    %38 = arith.addf %36, %37 : vector<128x32xf32>
    %c0_17 = arith.constant 0 : index
    %c0_18 = arith.constant 0 : index
    %39 = vector.load %arg7[%c0_17, %c0_18] : memref<1x128xf32, #tpu.memory_space<vmem>>, vector<1x32xf32>
    %40 = vector.broadcast %39 : vector<1x32xf32> to vector<128x32xf32>
    %41 = arith.addf %38, %40 : vector<128x32xf32>
    %c0_19 = arith.constant 0 : index
    %c0_20 = arith.constant 0 : index
    %42 = vector.load %arg8[%c0_19, %c0_20] : memref<128x128xf32, #tpu.memory_space<vmem>>, vector<128x32xf32>
    tpu.vector_store %arg8[%c0_19, %c0_20], %41 {strides = array<i32>} : memref<128x128xf32, #tpu.memory_space<vmem>>, vector<128x32xf32>,
    %c1 = arith.constant 1 : index
    %c0_21 = arith.constant 0 : index
    %43 = vector.load %arg3[%c1, %c0_21] : memref<4x256xf32, #tpu.memory_space<vmem>>, vector<1x256xf32>
    %44 = vector.extract_strided_slice %5 {offsets = [0, 1], sizes = [128, 1], strides = [1, 1]} : vector<128x4xf32> to vector<128x1xf32>
    %45 = vector.broadcast %44 : vector<128x1xf32> to vector<128x256xf32>
    %46 = vector.broadcast %43 : vector<1x256xf32> to vector<128x256xf32>
    %47 = arith.addf %45, %46 : vector<128x256xf32>
    %cst_22 = arith.constant 0.000000e+00 : f32
    %48 = vector.broadcast %cst_22 : f32 to vector<128x256xf32>
    %49 = arith.cmpf ogt, %47, %48 : vector<128x256xf32>
    %cst_23 = arith.constant 2.000000e-01 : f32
    %50 = vector.broadcast %cst_23 : f32 to vector<128x256xf32>
    %51 = arith.mulf %50, %47 : vector<128x256xf32>
    %52 = arith.select %49, %47, %51 : vector<128x256xi1>, vector<128x256xf32>
    %cst_24 = arith.constant -1.000000e+30 : f32
    %53 = vector.broadcast %cst_24 : f32 to vector<128x256xf32>
    %54 = arith.select %4, %52, %53 : vector<128x256xi1>, vector<128x256xf32>
    %cst_25 = arith.constant dense<0xFF800000> : vector<128xf32>
    %55 = vector.multi_reduction <maximumf>, %54, %cst_25 [1] : vector<128x256xf32> to vector<128xf32>
    %56 = vector.shape_cast %55 : vector<128xf32> to vector<128x1xf32>
    %57 = vector.broadcast %56 : vector<128x1xf32> to vector<128x256xf32>
    %58 = arith.subf %54, %57 : vector<128x256xf32>
    %59 = math.exp %58 : vector<128x256xf32>
    %cst_26 = arith.constant dense<0.000000e+00> : vector<128xf32>
    %60 = vector.multi_reduction <add>, %59, %cst_26 [1] : vector<128x256xf32> to vector<128xf32>
    %61 = vector.shape_cast %60 : vector<128xf32> to vector<128x1xf32>
    %62 = tpu.reciprocal %61 {approx = true} : vector<128x1xf32> -> vector<128x1xf32>
    %63 = arith.truncf %59 : vector<128x256xf32> to vector<128x256xbf16>
    %c0_27 = arith.constant 0 : index
    %c32 = arith.constant 32 : index
    %64 = vector.load %arg6[%c0_27, %c32] : memref<256x128xbf16, #tpu.memory_space<vmem>>, vector<256x32xbf16>
    %cst_28 = arith.constant dense<0.000000e+00> : vector<128x32xf32>
    %65 = tpu.matmul %63, %64, %cst_28 {dimension_numbers = #tpu.dot_dimension_numbers<[1], [0], [0], [1], [0, 0, 1, 1], [], []>} : vector<128x256xbf16>, vector<256x32xbf16>, vector<128x32xf32> -> vector<128x32xf32>
    %66 = vector.broadcast %62 : vector<128x1xf32> to vector<128x32xf32>
    %67 = arith.mulf %65, %66 : vector<128x32xf32>
    %cst_29 = arith.constant 9.99999997E-7 : f32
    %68 = vector.broadcast %cst_29 : f32 to vector<128x32xf32>
    %69 = arith.addf %67, %68 : vector<128x32xf32>
    %70 = math.log %69 : vector<128x32xf32>
    %71 = vector.broadcast %0 : f32 to vector<128x32xf32>
    %72 = arith.mulf %71, %70 : vector<128x32xf32>
    %73 = math.exp %72 : vector<128x32xf32>
    %74 = vector.broadcast %1 : f32 to vector<128x32xf32>
    %75 = arith.addf %73, %74 : vector<128x32xf32>
    %c0_30 = arith.constant 0 : index
    %c32_31 = arith.constant 32 : index
    %76 = vector.load %arg7[%c0_30, %c32_31] : memref<1x128xf32, #tpu.memory_space<vmem>>, vector<1x32xf32>
    %77 = vector.broadcast %76 : vector<1x32xf32> to vector<128x32xf32>
    %78 = arith.addf %75, %77 : vector<128x32xf32>
    %c0_32 = arith.constant 0 : index
    %c32_33 = arith.constant 32 : index
    %79 = vector.load %arg8[%c0_32, %c32_33] : memref<128x128xf32, #tpu.memory_space<vmem>>, vector<128x32xf32>
    tpu.vector_store %arg8[%c0_32, %c32_33], %78 {strides = array<i32>} : memref<128x128xf32, #tpu.memory_space<vmem>>, vector<128x32xf32>,
    %c2 = arith.constant 2 : index
    %c0_34 = arith.constant 0 : index
    %80 = vector.load %arg3[%c2, %c0_34] : memref<4x256xf32, #tpu.memory_space<vmem>>, vector<1x256xf32>
    %81 = vector.extract_strided_slice %5 {offsets = [0, 2], sizes = [128, 1], strides = [1, 1]} : vector<128x4xf32> to vector<128x1xf32>
    %82 = vector.broadcast %81 : vector<128x1xf32> to vector<128x256xf32>
    %83 = vector.broadcast %80 : vector<1x256xf32> to vector<128x256xf32>
    %84 = arith.addf %82, %83 : vector<128x256xf32>
    %cst_35 = arith.constant 0.000000e+00 : f32
    %85 = vector.broadcast %cst_35 : f32 to vector<128x256xf32>
    %86 = arith.cmpf ogt, %84, %85 : vector<128x256xf32>
    %cst_36 = arith.constant 2.000000e-01 : f32
    %87 = vector.broadcast %cst_36 : f32 to vector<128x256xf32>
    %88 = arith.mulf %87, %84 : vector<128x256xf32>
    %89 = arith.select %86, %84, %88 : vector<128x256xi1>, vector<128x256xf32>
    %cst_37 = arith.constant -1.000000e+30 : f32
    %90 = vector.broadcast %cst_37 : f32 to vector<128x256xf32>
    %91 = arith.select %4, %89, %90 : vector<128x256xi1>, vector<128x256xf32>
    %cst_38 = arith.constant dense<0xFF800000> : vector<128xf32>
    %92 = vector.multi_reduction <maximumf>, %91, %cst_38 [1] : vector<128x256xf32> to vector<128xf32>
    %93 = vector.shape_cast %92 : vector<128xf32> to vector<128x1xf32>
    %94 = vector.broadcast %93 : vector<128x1xf32> to vector<128x256xf32>
    %95 = arith.subf %91, %94 : vector<128x256xf32>
    %96 = math.exp %95 : vector<128x256xf32>
    %cst_39 = arith.constant dense<0.000000e+00> : vector<128xf32>
    %97 = vector.multi_reduction <add>, %96, %cst_39 [1] : vector<128x256xf32> to vector<128xf32>
    %98 = vector.shape_cast %97 : vector<128xf32> to vector<128x1xf32>
    %99 = tpu.reciprocal %98 {approx = true} : vector<128x1xf32> -> vector<128x1xf32>
    %100 = arith.truncf %96 : vector<128x256xf32> to vector<128x256xbf16>
    %c0_40 = arith.constant 0 : index
    %c64 = arith.constant 64 : index
    %101 = vector.load %arg6[%c0_40, %c64] : memref<256x128xbf16, #tpu.memory_space<vmem>>, vector<256x32xbf16>
    %cst_41 = arith.constant dense<0.000000e+00> : vector<128x32xf32>
    %102 = tpu.matmul %100, %101, %cst_41 {dimension_numbers = #tpu.dot_dimension_numbers<[1], [0], [0], [1], [0, 0, 1, 1], [], []>} : vector<128x256xbf16>, vector<256x32xbf16>, vector<128x32xf32> -> vector<128x32xf32>
    %103 = vector.broadcast %99 : vector<128x1xf32> to vector<128x32xf32>
    %104 = arith.mulf %102, %103 : vector<128x32xf32>
    %cst_42 = arith.constant 9.99999997E-7 : f32
    %105 = vector.broadcast %cst_42 : f32 to vector<128x32xf32>
    %106 = arith.addf %104, %105 : vector<128x32xf32>
    %107 = math.log %106 : vector<128x32xf32>
    %108 = vector.broadcast %0 : f32 to vector<128x32xf32>
    %109 = arith.mulf %108, %107 : vector<128x32xf32>
    %110 = math.exp %109 : vector<128x32xf32>
    %111 = vector.broadcast %1 : f32 to vector<128x32xf32>
    %112 = arith.addf %110, %111 : vector<128x32xf32>
    %c0_43 = arith.constant 0 : index
    %c64_44 = arith.constant 64 : index
    %113 = vector.load %arg7[%c0_43, %c64_44] : memref<1x128xf32, #tpu.memory_space<vmem>>, vector<1x32xf32>
    %114 = vector.broadcast %113 : vector<1x32xf32> to vector<128x32xf32>
    %115 = arith.addf %112, %114 : vector<128x32xf32>
    %c0_45 = arith.constant 0 : index
    %c64_46 = arith.constant 64 : index
    %116 = vector.load %arg8[%c0_45, %c64_46] : memref<128x128xf32, #tpu.memory_space<vmem>>, vector<128x32xf32>
    tpu.vector_store %arg8[%c0_45, %c64_46], %115 {strides = array<i32>} : memref<128x128xf32, #tpu.memory_space<vmem>>, vector<128x32xf32>,
    %c3 = arith.constant 3 : index
    %c0_47 = arith.constant 0 : index
    %117 = vector.load %arg3[%c3, %c0_47] : memref<4x256xf32, #tpu.memory_space<vmem>>, vector<1x256xf32>
    %118 = vector.extract_strided_slice %5 {offsets = [0, 3], sizes = [128, 1], strides = [1, 1]} : vector<128x4xf32> to vector<128x1xf32>
    %119 = vector.broadcast %118 : vector<128x1xf32> to vector<128x256xf32>
    %120 = vector.broadcast %117 : vector<1x256xf32> to vector<128x256xf32>
    %121 = arith.addf %119, %120 : vector<128x256xf32>
    %cst_48 = arith.constant 0.000000e+00 : f32
    %122 = vector.broadcast %cst_48 : f32 to vector<128x256xf32>
    %123 = arith.cmpf ogt, %121, %122 : vector<128x256xf32>
    %cst_49 = arith.constant 2.000000e-01 : f32
    %124 = vector.broadcast %cst_49 : f32 to vector<128x256xf32>
    %125 = arith.mulf %124, %121 : vector<128x256xf32>
    %126 = arith.select %123, %121, %125 : vector<128x256xi1>, vector<128x256xf32>
    %cst_50 = arith.constant -1.000000e+30 : f32
    %127 = vector.broadcast %cst_50 : f32 to vector<128x256xf32>
    %128 = arith.select %4, %126, %127 : vector<128x256xi1>, vector<128x256xf32>
    %cst_51 = arith.constant dense<0xFF800000> : vector<128xf32>
    %129 = vector.multi_reduction <maximumf>, %128, %cst_51 [1] : vector<128x256xf32> to vector<128xf32>
    %130 = vector.shape_cast %129 : vector<128xf32> to vector<128x1xf32>
    %131 = vector.broadcast %130 : vector<128x1xf32> to vector<128x256xf32>
    %132 = arith.subf %128, %131 : vector<128x256xf32>
    %133 = math.exp %132 : vector<128x256xf32>
    %cst_52 = arith.constant dense<0.000000e+00> : vector<128xf32>
    %134 = vector.multi_reduction <add>, %133, %cst_52 [1] : vector<128x256xf32> to vector<128xf32>
    %135 = vector.shape_cast %134 : vector<128xf32> to vector<128x1xf32>
    %136 = tpu.reciprocal %135 {approx = true} : vector<128x1xf32> -> vector<128x1xf32>
    %137 = arith.truncf %133 : vector<128x256xf32> to vector<128x256xbf16>
    %c0_53 = arith.constant 0 : index
    %c96 = arith.constant 96 : index
    %138 = vector.load %arg6[%c0_53, %c96] : memref<256x128xbf16, #tpu.memory_space<vmem>>, vector<256x32xbf16>
    %cst_54 = arith.constant dense<0.000000e+00> : vector<128x32xf32>
    %139 = tpu.matmul %137, %138, %cst_54 {dimension_numbers = #tpu.dot_dimension_numbers<[1], [0], [0], [1], [0, 0, 1, 1], [], []>} : vector<128x256xbf16>, vector<256x32xbf16>, vector<128x32xf32> -> vector<128x32xf32>
    %140 = vector.broadcast %136 : vector<128x1xf32> to vector<128x32xf32>
    %141 = arith.mulf %139, %140 : vector<128x32xf32>
    %cst_55 = arith.constant 9.99999997E-7 : f32
    %142 = vector.broadcast %cst_55 : f32 to vector<128x32xf32>
    %143 = arith.addf %141, %142 : vector<128x32xf32>
    %144 = math.log %143 : vector<128x32xf32>
    %145 = vector.broadcast %0 : f32 to vector<128x32xf32>
    %146 = arith.mulf %145, %144 : vector<128x32xf32>
    %147 = math.exp %146 : vector<128x32xf32>
    %148 = vector.broadcast %1 : f32 to vector<128x32xf32>
    %149 = arith.addf %147, %148 : vector<128x32xf32>
    %c0_56 = arith.constant 0 : index
    %c96_57 = arith.constant 96 : index
    %150 = vector.load %arg7[%c0_56, %c96_57] : memref<1x128xf32, #tpu.memory_space<vmem>>, vector<1x32xf32>
    %151 = vector.broadcast %150 : vector<1x32xf32> to vector<128x32xf32>
    %152 = arith.addf %149, %151 : vector<128x32xf32>
    %c0_58 = arith.constant 0 : index
    %c96_59 = arith.constant 96 : index
    %153 = vector.load %arg8[%c0_58, %c96_59] : memref<128x128xf32, #tpu.memory_space<vmem>>, vector<128x32xf32>
    tpu.vector_store %arg8[%c0_58, %c96_59], %152 {strides = array<i32>} : memref<128x128xf32, #tpu.memory_space<vmem>>, vector<128x32xf32>,
    return
  }
  func.func @transform_0(%arg0: i32) -> (i32, i32) {
    %c0_i32 = arith.constant 0 : i32
    %c0_i32_0 = arith.constant 0 : i32
    %c0_i32_1 = arith.constant 0 : i32
    return %c0_i32, %c0_i32_0 : i32, i32
  }
  func.func @transform_1(%arg0: i32) -> (i32, i32) {
    %c0_i32 = arith.constant 0 : i32
    %c0_i32_0 = arith.constant 0 : i32
    %c0_i32_1 = arith.constant 0 : i32
    return %c0_i32, %c0_i32_0 : i32, i32
  }
  func.func @transform_2(%arg0: i32) -> (i32, i32) {
    %c0_i32 = arith.constant 0 : i32
    %c0_i32_0 = arith.constant 0 : i32
    %c0_i32_1 = arith.constant 0 : i32
    return %c0_i32, %c0_i32_0 : i32, i32
  }
  func.func @transform_3(%arg0: i32) -> (i32, i32) {
    %c0_i32 = arith.constant 0 : i32
    %c0_i32_0 = arith.constant 0 : i32
    return %arg0, %c0_i32 : i32, i32
  }
  func.func @transform_4(%arg0: i32) -> (i32, i32) {
    %c0_i32 = arith.constant 0 : i32
    %c0_i32_0 = arith.constant 0 : i32
    return %arg0, %c0_i32 : i32, i32
  }
  func.func @transform_5(%arg0: i32) -> (i32, i32) {
    %c0_i32 = arith.constant 0 : i32
    %c0_i32_0 = arith.constant 0 : i32
    %c0_i32_1 = arith.constant 0 : i32
    return %c0_i32, %c0_i32_0 : i32, i32
  }
  func.func @transform_6(%arg0: i32) -> (i32, i32) {
    %c0_i32 = arith.constant 0 : i32
    %c0_i32_0 = arith.constant 0 : i32
    %c0_i32_1 = arith.constant 0 : i32
    return %c0_i32, %c0_i32_0 : i32, i32
  }
  func.func @transform_7(%arg0: i32) -> (i32, i32) {
    %c0_i32 = arith.constant 0 : i32
    %c0_i32_0 = arith.constant 0 : i32
    return %arg0, %c0_i32 : i32, i32
  }
}

</mosaic_0001>

<bundles_post_ra>
// kernel: gat_conv_g.4
= control target key start
LH: loop header
LB: loop body
LE: loop exit
PB: predicated region body
PF: predicated region fallthrough
CT: control target
= control target key end

     0   :  { %s640_s16 = smov 0   ;;  %s725_s0 = inlined_call_operand.<no memory space> [shape: f32[1,1], index: 0, kind: input, shape index: {}]   ;;  %s726_s1 = inlined_call_operand.<no memory space> [shape: f32[1,1], index: 1, kind: input, shape index: {}]   ;;  %s727_s2 = inlined_call_operand.vmem [shape: f32[256,128], index: 2, kind: input, shape index: {}]   ;;  %s728_s3 = inlined_call_operand.vmem [shape: bf16[256,128], index: 3, kind: output, shape index: {}]  }
   0x1   :  { %8 = sst [smem:[#allocation2]] %s725_s0 }
   0x2   :  { %9 = sst [smem:[#allocation3]] %s726_s1 }
   0x3 LB: > { %s444_s17 = sadd.s32 4294967295, %s612_s16   ;;  %p448_p0 = scmp.ge.s32.totalorder %s612_s16, 1  ;;  %s612_s16 = sphi %s640_s16, %s15_s16  }
   0x4   : > { %p140_p1 = scmp.lt.s32.totalorder %s612_s16, 3 }
   0x6   : > { %p141_p2 = pnand %p448_p0, %p140_p1 }
   0x7   : > { %s449_s0 = sshll.u32 (!%p141_p2), %s444_s17, 4  ;;  %s177_s18 = sld [smem:[#allocation3]] (!%p141_p2) }
   0x8   : > { %144 = sbr.rel (%p141_p2) target bundleno = 69 (0x45), region = 32  ;;  %p165_p3 = scmp.lt.s32.totalorder (!%p141_p2), %s449_s0, 31 }
   0x9   : > { %s176_s22 = sld [smem:[#allocation2]] (!%p141_p2) }
   0xd   : > { %v658_v2 = vstv (!%p141_p2), %s177_s18 }
   0xf   : > { %s730_s0 = smov (!%p165_p3, %s449_s0), 31  ;;  %v690_v48 = vstv %s176_s22 }
  0x10   : > { %s450_s1 = sshll.u32 %s730_s0, 3  ;;  %s452_s23 = sshll.u32 %s730_s0, 2 }
  0x11   : > { %s654_s21 = scalar_lea.vmem %s727_s2, %s450_s1  ;;  %s711_s26 = scalar_lea.vmem %s728_s3, %s452_s23 }
  0x12   : > { %v178_v0 = vld [vmem:[%s654_s21] sm:$0xff]  ;;  %v179_v1 = vld [vmem:[%s654_s21 + $0x8] sm:$0xff]  ;;  %v180_v3 = vld [vmem:[%s654_s21 + $0x10] sm:$0xff] }
  0x13   : > { %v195_v4 = vsub.f32 %v178_v0, %v658_v2  ;;  %v196_v5 = vsub.f32 %v179_v1, %v658_v2  ;;  %v181_v6 = vld [vmem:[%s654_s21 + $0x18] sm:$0xff]  ;;  %v197_v7 = vsub.f32 %v180_v3, %v658_v2  ;;  %v182_v8 = vld [vmem:[%s654_s21 + $0x20] sm:$0xff]  ;;  %v183_v9 = vld [vmem:[%s654_s21 + $0x28] sm:$0xff] }
  0x14   : > { %v198_v10 = vsub.f32 %v181_v6, %v658_v2  ;;  %v199_v11 = vsub.f32 %v182_v8, %v658_v2  ;;  %v200_v12 = vsub.f32 %v183_v9, %v658_v2  ;;  %v184_v13 = vld [vmem:[%s654_s21 + $0x30] sm:$0xff]  ;;  %v185_v14 = vld [vmem:[%s654_s21 + $0x38] sm:$0xff]  ;;  %v186_v15 = vld [vmem:[%s654_s21 + $0x40] sm:$0xff] }
  0x15   : > { %v211_v16 = vadd.f32 1e-06, %v195_v4  ;;  %v212_v17 = vadd.f32 1e-06, %v196_v5  ;;  %v213_v18 = vadd.f32 1e-06, %v197_v7  ;;  %v201_v19 = vsub.f32 %v184_v13, %v658_v2 }
  0x16   : > { %v214_v20 = vadd.f32 1e-06, %v198_v10  ;;  %v202_v21 = vsub.f32 %v185_v14, %v658_v2  ;;  %v215_v22 = vadd.f32 1e-06, %v199_v11  ;;  %v187_v23 = vld [vmem:[%s654_s21 + $0x48] sm:$0xff]  ;;  %v203_v24 = vsub.f32 %v186_v15, %v658_v2  ;;  %v188_v25 = vld [vmem:[%s654_s21 + $0x50] sm:$0xff] }
  0x17   : > { %542 = vlog2.f32 %v211_v16  ;;  %v189_v26 = vld [vmem:[%s654_s21 + $0x58] sm:$0xff]  ;;  %v216_v27 = vadd.f32 1e-06, %v200_v12  ;;  %v204_v28 = vsub.f32 %v187_v23, %v658_v2  ;;  %v190_v29 = vld [vmem:[%s654_s21 + $0x60] sm:$0xff]  ;;  %v217_v30 = vadd.f32 1e-06, %v201_v19 }
  0x18   : > { %544 = vlog2.f32 %v212_v17  ;;  %v205_v31 = vsub.f32 %v188_v25, %v658_v2  ;;  %v191_v32 = vld [vmem:[%s654_s21 + $0x68] sm:$0xff]  ;;  %v218_v33 = vadd.f32 1e-06, %v202_v21  ;;  %v206_v34 = vsub.f32 %v189_v26, %v658_v2  ;;  %v192_v35 = vld [vmem:[%s654_s21 + $0x70] sm:$0xff]  ;;  %v193_v38 = vld [vmem:[%s654_s21 + $0x78] sm:$0xff] }
  0x19   : > { %546 = vlog2.f32 %v213_v18  ;;  %v219_v36 = vadd.f32 1e-06, %v203_v24  ;;  %v207_v37 = vsub.f32 %v190_v29, %v658_v2  ;;  %v220_v39 = vadd.f32 1e-06, %v204_v28 }
  0x1a   : > { %548 = vlog2.f32 %v214_v20  ;;  %v208_v40 = vsub.f32 %v191_v32, %v658_v2  ;;  %v221_v41 = vadd.f32 1e-06, %v205_v31  ;;  %v209_v42 = vsub.f32 %v192_v35, %v658_v2 }
  0x1b   : > { %550 = vlog2.f32 %v215_v22  ;;  %v222_v43 = vadd.f32 1e-06, %v206_v34  ;;  %v210_v44 = vsub.f32 %v193_v38, %v658_v2  ;;  %v223_v45 = vadd.f32 1e-06, %v207_v37 }
  0x1c   : > { %552 = vlog2.f32 %v216_v27  ;;  %v224_v46 = vadd.f32 1e-06, %v208_v40  ;;  %v225_v49 = vadd.f32 1e-06, %v209_v42 }
  0x1d   : > { %554 = vlog2.f32 %v217_v30  ;;  %v226_v52 = vadd.f32 1e-06, %v210_v44 }
  0x1e   : > { %556 = vlog2.f32 %v218_v33 }
  0x1f   : > { %558 = vlog2.f32 %v219_v36 }
  0x20   : > { %560 = vlog2.f32 %v220_v39 }
  0x21   : > { %v543_v47 = vpop.eup %542  ;;  %562 = vlog2.f32 %v221_v41 }
  0x22   : > { %v545_v50 = vpop.eup %544  ;;  %v228_v51 = vmul.f32 0.6931472, %v543_v47  ;;  %564 = vlog2.f32 %v222_v43 }
  0x23   : > { %v547_v53 = vpop.eup %546  ;;  %v230_v54 = vmul.f32 0.6931472, %v545_v50  ;;  %566 = vlog2.f32 %v223_v45 }
  0x24   : > { %v549_v55 = vpop.eup %548  ;;  %v260_v56 = vmul.f32 %v690_v48, %v228_v51  ;;  %v232_v57 = vmul.f32 0.6931472, %v547_v53  ;;  %568 = vlog2.f32 %v224_v46 }
  0x25   : > { %v551_v58 = vpop.eup %550  ;;  %v261_v59 = vmul.f32 %v690_v48, %v230_v54  ;;  %v234_v60 = vmul.f32 0.6931472, %v549_v55  ;;  %570 = vlog2.f32 %v225_v49 }
  0x26   : > { %v553_v61 = vpop.eup %552  ;;  %v276_v62 = vmul.f32 1.442695, %v260_v56  ;;  %v262_v63 = vmul.f32 %v690_v48, %v232_v57  ;;  %v236_v0 = vmul.f32 0.6931472, %v551_v58  ;;  %572 = vlog2.f32 %v226_v52 }
  0x27   : > { %v555_v1 = vpop.eup %554  ;;  %v278_v2 = vmul.f32 1.442695, %v261_v59  ;;  %v263_v3 = vmul.f32 %v690_v48, %v234_v60  ;;  %v238_v4 = vmul.f32 0.6931472, %v553_v61 }
  0x28   : > { %v557_v5 = vpop.eup %556  ;;  %574 = vpow2.f32 %v276_v62  ;;  %v280_v6 = vmul.f32 1.442695, %v262_v63  ;;  %v264_v7 = vmul.f32 %v690_v48, %v236_v0  ;;  %v240_v8 = vmul.f32 0.6931472, %v555_v1 }
  0x29   : > { %v559_v9 = vpop.eup %558  ;;  %576 = vpow2.f32 %v278_v2  ;;  %v282_v10 = vmul.f32 1.442695, %v263_v3  ;;  %v265_v11 = vmul.f32 %v690_v48, %v238_v4  ;;  %v242_v12 = vmul.f32 0.6931472, %v557_v5 }
  0x2a   : > { %v561_v13 = vpop.eup %560  ;;  %578 = vpow2.f32 %v280_v6  ;;  %v284_v14 = vmul.f32 1.442695, %v264_v7  ;;  %v266_v15 = vmul.f32 %v690_v48, %v240_v8  ;;  %v244_v16 = vmul.f32 0.6931472, %v559_v9 }
  0x2b   : > { %v563_v17 = vpop.eup %562  ;;  %580 = vpow2.f32 %v282_v10  ;;  %v286_v18 = vmul.f32 1.442695, %v265_v11  ;;  %v267_v19 = vmul.f32 %v690_v48, %v242_v12  ;;  %v246_v20 = vmul.f32 0.6931472, %v561_v13 }
  0x2c   : > { %v565_v21 = vpop.eup %564  ;;  %582 = vpow2.f32 %v284_v14  ;;  %v288_v22 = vmul.f32 1.442695, %v266_v15  ;;  %v268_v23 = vmul.f32 %v690_v48, %v244_v16  ;;  %v248_v24 = vmul.f32 0.6931472, %v563_v17 }
  0x2d   : > { %v567_v25 = vpop.eup %566  ;;  %584 = vpow2.f32 %v286_v18  ;;  %v290_v26 = vmul.f32 1.442695, %v267_v19  ;;  %v269_v27 = vmul.f32 %v690_v48, %v246_v20  ;;  %v250_v28 = vmul.f32 0.6931472, %v565_v21 }
  0x2e   : > { %v569_v29 = vpop.eup %568  ;;  %586 = vpow2.f32 %v288_v22  ;;  %v292_v30 = vmul.f32 1.442695, %v268_v23  ;;  %v270_v31 = vmul.f32 %v690_v48, %v248_v24  ;;  %v252_v32 = vmul.f32 0.6931472, %v567_v25 }
  0x2f   : > { %v571_v33 = vpop.eup %570  ;;  %588 = vpow2.f32 %v290_v26  ;;  %v294_v34 = vmul.f32 1.442695, %v269_v27  ;;  %v271_v35 = vmul.f32 %v690_v48, %v250_v28  ;;  %v254_v36 = vmul.f32 0.6931472, %v569_v29 }
  0x30   : > { %v573_v37 = vpop.eup %572  ;;  %590 = vpow2.f32 %v292_v30  ;;  %v296_v38 = vmul.f32 1.442695, %v270_v31  ;;  %v272_v39 = vmul.f32 %v690_v48, %v252_v32  ;;  %v256_v40 = vmul.f32 0.6931472, %v571_v33 }
  0x31   : > { %592 = vpow2.f32 %v294_v34  ;;  %v298_v41 = vmul.f32 1.442695, %v271_v35  ;;  %v273_v42 = vmul.f32 %v690_v48, %v254_v36  ;;  %v258_v43 = vmul.f32 0.6931472, %v573_v37 }
  0x32   : > { %v575_v44 = vpop.eup %574  ;;  %594 = vpow2.f32 %v296_v38  ;;  %v300_v45 = vmul.f32 1.442695, %v272_v39  ;;  %v274_v46 = vmul.f32 %v690_v48, %v256_v40 }
  0x33   : > { %v577_v47 = vpop.eup %576  ;;  %596 = vpow2.f32 %v298_v41  ;;  %v302_v49 = vmul.f32 1.442695, %v273_v42  ;;  %v275_v50 = vmul.f32 %v690_v48, %v258_v43 }
  0x34   : > { %v579_v51 = vpop.eup %578  ;;  %v490_v52 = vpack.c.bf16 %v577_v47, %v575_v44  ;;  %598 = vpow2.f32 %v300_v45  ;;  %v304_v53 = vmul.f32 1.442695, %v274_v46 }
  0x35   : > { %v581_v54 = vpop.eup %580  ;;  %600 = vpow2.f32 %v302_v49  ;;  %v306_v55 = vmul.f32 1.442695, %v275_v50 }
  0x36   : > { %v583_v56 = vpop.eup %582  ;;  %491 = vst [vmem:[%s711_s26] sm:$0xff] %v490_v52   ;;  %v495_v57 = vpack.c.bf16 %v581_v54, %v579_v51  ;;  %602 = vpow2.f32 %v304_v53 }
  0x37   : > { %v585_v58 = vpop.eup %584  ;;  %604 = vpow2.f32 %v306_v55 }
  0x38   : > { %v587_v59 = vpop.eup %586  ;;  %527 = vst [vmem:[%s711_s26 + $0x8] sm:$0xff] %v495_v57   ;;  %v500_v48 = vpack.c.bf16 %v585_v58, %v583_v56 }
  0x39   : > { %v589_v60 = vpop.eup %588 }
  0x3a   : > { %v591_v61 = vpop.eup %590  ;;  %528 = vst [vmem:[%s711_s26 + $0x10] sm:$0xff] %v500_v48   ;;  %v505_v62 = vpack.c.bf16 %v589_v60, %v587_v59 }
  0x3b   : > { %v593_v63 = vpop.eup %592 }
  0x3c   : > { %v595_v0 = vpop.eup %594  ;;  %529 = vst [vmem:[%s711_s26 + $0x18] sm:$0xff] %v505_v62   ;;  %v510_v1 = vpack.c.bf16 %v593_v63, %v591_v61 }
  0x3d   : > { %v597_v2 = vpop.eup %596 }
  0x3e   : > { %v599_v3 = vpop.eup %598  ;;  %530 = vst [vmem:[%s711_s26 + $0x20] sm:$0xff] %v510_v1   ;;  %v515_v4 = vpack.c.bf16 %v597_v2, %v595_v0 }
  0x3f   : > { %v601_v5 = vpop.eup %600 }
  0x40   : > { %v603_v6 = vpop.eup %602  ;;  %531 = vst [vmem:[%s711_s26 + $0x28] sm:$0xff] %v515_v4   ;;  %v520_v7 = vpack.c.bf16 %v601_v5, %v599_v3 }
  0x41   : > { %v605_v8 = vpop.eup %604 }
  0x42   : > { %532 = vst [vmem:[%s711_s26 + $0x30] sm:$0xff] %v520_v7   ;;  %v525_v9 = vpack.c.bf16 %v605_v8, %v603_v6 }
  0x44   : > { %533 = vst [vmem:[%s711_s26 + $0x38] sm:$0xff] %v525_v9  }
  0x45 PF: > { %s15_s16 = sadd.s32 1, %s612_s16  }
  0x46   : > { %p12_p4 = scmp.ge.s32.totalorder %s15_s16, 4  }
  0x48   :  { %14 = sbr.rel (!%p12_p4) target bundleno = 3 (0x3), region = 62 }

// kernel: gat_conv_g.3
= control target key start
LH: loop header
LB: loop body
LE: loop exit
PB: predicated region body
PF: predicated region fallthrough
CT: control target
= control target key end

     0   :  { %13 = vsyncpa [#allocation3], 0  ;;  %s1357_s24 = smov 0   ;;  %s1595_s0 = inlined_call_operand.vmem [shape: bf16[256,16], index: 0, kind: input, shape index: {}]   ;;  %s1596_s1 = inlined_call_operand.vmem [shape: bf16[16,128], index: 1, kind: input, shape index: {}]   ;;  %s1597_s2 = inlined_call_operand.vmem [shape: f32[128,4], index: 2, kind: input, shape index: {}]   ;;  %s1598_s3 = inlined_call_operand.vmem [shape: f32[128,4], index: 3, kind: input, shape index: {}]   ;;  %s1599_s4 = inlined_call_operand.vmem [shape: f32[256,128], index: 4, kind: output, shape index: {0}]   ;;  %s1600_s5 = inlined_call_operand.vmem [shape: f32[4,256], index: 5, kind: output, shape index: {1}]   ;;  %s1601_s6 = inlined_call_operand.vmem [shape: f32[256,4], index: 6, kind: output, shape index: {2}]   ;;  %s1602_s7 = inlined_call_operand.hbm [shape: f32[1,1], index: 7, kind: output, shape index: {3}]  }
   0x1 LB: > { %s1363_s25 = sadd.s32 4294967295, %s1311_s24   ;;  %p992_p0 = scmp.ge.s32.totalorder %s1311_s24, 1  ;;  %s1311_s24 = sphi %s1357_s24, %s19_s24  }
   0x2   : > { %p241_p1 = scmp.lt.s32.totalorder %s1311_s24, 3 }
   0x4   : > { %p242_p2 = pnand %p992_p0, %p241_p1 }
   0x5   : > { %v1266_v0 = vld [vmem:[%s1596_s1] sm:$0xff] (!%p242_p2)   ;;  %s993_s28 = sshll.u32 (!%p242_p2), %s1363_s25, 4  ;;  %v508_v2 = vld [vmem:[%s1597_s2 + $0x8] sm:$0xff] (!%p242_p2)  ;;  %v628_v6 = vld [vmem:[%s1598_s3 + $0x10] sm:$0xff] (!%p242_p2)  ;;  %vm369_vm0 = vcmask (!%p242_p2), 130048   ;;  %v1313_v49 = vmov (!%p242_p2), 0.0|0.0  }
   0x6   : > { %245 = sbr.rel (%p242_p2) target bundleno = 545 (0x221), region = 36  ;;  %p283_p3 = scmp.lt.s32.totalorder (!%p242_p2), %s993_s28, 31  ;;  %v507_v1 = vld [vmem:[%s1597_s2] sm:$0xff] (!%p242_p2)  ;;  %1081 = vmatprep.subr.bf16.mxu0 (!%p242_p2), %v1266_v0  ;;  %v627_v4 = vld [vmem:[%s1598_s3 + $0x8] sm:$0xff] (!%p242_p2)  ;;  %v629_v7 = vld [vmem:[%s1598_s3 + $0x18] sm:$0xff] (!%p242_p2)  ;;  %1190 = vmatprep.subr.bf16.mxu1 (!%p242_p2), %v1313_v49  ;;  %vm1314_vm1 = vmmov (!%p242_p2), 0  }
   0x7   : > { %523 = vxpose.xlu0.b32.start [1/16] (narrow) (!%p242_p2), %v507_v1, 8  ;;  %1082 = vmatpush3.bf16.msra.mxu0 (!%p242_p2), %v1266_v0  ;;  %v626_v3 = vld [vmem:[%s1598_s3] sm:$0xff] (!%p242_p2)  ;;  %v509_v8 = vld [vmem:[%s1597_s2 + $0x10] sm:$0xff] (!%p242_p2)  ;;  %v631_v11 = vld [vmem:[%s1598_s3 + $0x28] sm:$0xff] (!%p242_p2)  ;;  %v1218_v13 = vpack.c.bf16 (!%p242_p2), %v629_v7, %v628_v6  ;;  %v1315_v50 = vmov (!%p242_p2), 0.0   ;;  %vm787_vm2 = vcmask (!%p242_p2), 31744  }
   0x8   : > { %v1214_v5 = vpack.c.bf16 (!%p242_p2), %v627_v4, %v626_v3  ;;  %v630_v10 = vld [vmem:[%s1598_s3 + $0x20] sm:$0xff] (!%p242_p2)  ;;  %v510_v15 = vld [vmem:[%s1597_s2 + $0x18] sm:$0xff] (!%p242_p2)  ;;  %v632_v20 = vld [vmem:[%s1598_s3 + $0x30] sm:$0xff] (!%p242_p2)  ;;  %1131 = vmatprep.mubr.msk.f32.mxu1 (!%p242_p2), %vm1314_vm1, %v1315_v50  ;;  %p294_p4 = scmp.lt.s32.totalorder (!%p242_p2), %s1363_s25, 1  ;;  %p1017_p5 = scmp.ne.s32.totalorder (!%p242_p2), %s1363_s25, 0 }
   0x9   : > { %v1222_v16 = vpack.c.bf16 (!%p242_p2), %v631_v11, %v630_v10  ;;  %v511_v17 = vld [vmem:[%s1597_s2 + $0x20] sm:$0xff] (!%p242_p2)  ;;  %v633_v21 = vld [vmem:[%s1598_s3 + $0x38] sm:$0xff] (!%p242_p2)  ;;  %v635_v24 = vld [vmem:[%s1598_s3 + $0x48] sm:$0xff] (!%p242_p2) }
   0xa   : > { %1215 = vmatprep.subr.bf16.mxu0 (!%p242_p2), %v1214_v5  ;;  %v1226_v22 = vpack.c.bf16 (!%p242_p2), %v633_v21, %v632_v20  ;;  %v634_v23 = vld [vmem:[%s1598_s3 + $0x40] sm:$0xff] (!%p242_p2)  ;;  %v512_v25 = vld [vmem:[%s1597_s2 + $0x28] sm:$0xff] (!%p242_p2)  ;;  %v636_v27 = vld [vmem:[%s1598_s3 + $0x50] sm:$0xff] (!%p242_p2) }
   0xb   : > { %524 = vxpose.xlu0.b32.cont [2/16] (narrow) (!%p242_p2), %v508_v2, 8  ;;  %v1230_v26 = vpack.c.bf16 (!%p242_p2), %v635_v24, %v634_v23  ;;  %v637_v28 = vld [vmem:[%s1598_s3 + $0x58] sm:$0xff] (!%p242_p2)  ;;  %v513_v31 = vld [vmem:[%s1597_s2 + $0x30] sm:$0xff] (!%p242_p2)  ;;  %v638_v33 = vld [vmem:[%s1598_s3 + $0x60] sm:$0xff] (!%p242_p2) }
   0xc   : > { %v1234_v32 = vpack.c.bf16 (!%p242_p2), %v637_v28, %v636_v27  ;;  %v639_v34 = vld [vmem:[%s1598_s3 + $0x68] sm:$0xff] (!%p242_p2)  ;;  %v514_v35 = vld [vmem:[%s1597_s2 + $0x38] sm:$0xff] (!%p242_p2)  ;;  %v515_v38 = vld [vmem:[%s1597_s2 + $0x40] sm:$0xff] (!%p242_p2) }
   0xd   : > { %s1604_s28 = smov (!%p283_p3, %s993_s28), 31  ;;  %v1238_v36 = vpack.c.bf16 %v639_v34, %v638_v33  ;;  %v516_v39 = vld [vmem:[%s1597_s2 + $0x48] sm:$0xff]  ;;  %v517_v40 = vld [vmem:[%s1597_s2 + $0x50] sm:$0xff]  ;;  %v518_v41 = vld [vmem:[%s1597_s2 + $0x58] sm:$0xff]  ;;  %vm833_vm3 = vcmask (!%p1017_p5), 0  }
   0xe   : > { %s994_s14 = sshll.u32 %s1604_s28, 2  ;;  %v519_v42 = vld [vmem:[%s1597_s2 + $0x60] sm:$0xff]  ;;  %v520_v43 = vld [vmem:[%s1597_s2 + $0x68] sm:$0xff]  ;;  %v521_v44 = vld [vmem:[%s1597_s2 + $0x70] sm:$0xff]  ;;  %s996_s15 = sshll.u32 %s1604_s28, 3 }
   0xf   : > { %s1395_s21 = scalar_lea.vmem %s1595_s0, %s994_s14  ;;  %525 = vxpose.xlu0.b32.cont [3/16] (narrow) %v509_v8, 8  ;;  %v522_v45 = vld [vmem:[%s1597_s2 + $0x78] sm:$0xff]  ;;  %v640_v46 = vld [vmem:[%s1598_s3 + $0x70] sm:$0xff]  ;;  %s1498_s18 = scalar_lea.vmem %s1599_s4, %s996_s15 }
  0x10   : > { %v1267_v9 = vld [vmem:[%s1395_s21] sm:$0xff]   ;;  %v1268_v12 = vld [vmem:[%s1395_s21 + $0x8] sm:$0xff]   ;;  %v1269_v14 = vld [vmem:[%s1395_s21 + $0x10] sm:$0xff]   ;;  %s295_s22 = scalar_select %p294_p4, %s1363_s25, 1 }
  0x11   : > { %1083 = vmatprep.mubr.msk.bf16.mxu0 %vm369_vm0, %v1267_v9  ;;  %v1270_v18 = vld [vmem:[%s1395_s21 + $0x18] sm:$0xff]   ;;  %v1271_v19 = vld [vmem:[%s1395_s21 + $0x20] sm:$0xff]   ;;  %v1272_v29 = vld [vmem:[%s1395_s21 + $0x28] sm:$0xff]  }
  0x12   : > { %1084 = vmatmul.mubr.msk.bf16.vlgmr.msra.gmra.mrb[0].mxu0 %vm369_vm0, %v1268_v12  ;;  %v1273_v30 = vld [vmem:[%s1395_s21 + $0x30] sm:$0xff]   ;;  %v1274_v37 = vld [vmem:[%s1395_s21 + $0x38] sm:$0xff]   ;;  %s1528_s21 = scalar_lea.vmem %s1601_s6, %s996_s15  ;;  %s997_s23 = sshll.u32 %s295_s22, 2 }
  0x13   : > { %1087 = vmatprep.mubr.msk.bf16.mxu0 %vm369_vm0, %v1269_v14  ;;  %1217 = vmatpush3.bf16.msra.mxu0 %v1214_v5  ;;  %v641_v47 = vld [vmem:[%s1598_s3 + $0x78] sm:$0xff]  ;;  %s297_s29 = scalar_lea.vmem %s1600_s5, %s997_s23 }
  0x14   : > { %1219 = vmatprep.subr.bf16.mxu0 %v1218_v13  ;;  %526 = vxpose.xlu0.b32.cont [4/16] (narrow) %v510_v15, 8  ;;  %v1242_v48 = vpack.c.bf16 %v641_v47, %v640_v46 }
  0x17   : > { %1221 = vmatpush3.bf16.msra.mxu0 %v1218_v13 }
  0x18   : > { %1223 = vmatprep.subr.bf16.mxu0 %v1222_v16  ;;  %527 = vxpose.xlu0.b32.cont [5/16] (narrow) %v511_v17, 8 }
  0x1a   : > { %1088 = vmatmul.mubr.msk.bf16.gmra.mrb[4].mxu0 %vm369_vm0, %v1270_v18 }
  0x1b   : > { %1091 = vmatprep.mubr.msk.bf16.mxu0 %vm369_vm0, %v1271_v19  ;;  %1225 = vmatpush3.bf16.msra.mxu0 %v1222_v16 }
  0x1c   : > { %1227 = vmatprep.subr.bf16.mxu0 %v1226_v22  ;;  %528 = vxpose.xlu0.b32.cont [6/16] (narrow) %v512_v25, 8 }
  0x1f   : > { %1229 = vmatpush3.bf16.msra.mxu0 %v1226_v22 }
  0x20   : > { %1231 = vmatprep.subr.bf16.mxu0 %v1230_v26  ;;  %529 = vxpose.xlu0.b32.cont [7/16] (narrow) %v513_v31, 8 }
  0x22   : > { %1092 = vmatmul.mubr.msk.bf16.gmra.mrb[8].mxu0 %vm369_vm0, %v1272_v29 }
  0x23   : > { %1095 = vmatprep.mubr.msk.bf16.mxu0 %vm369_vm0, %v1273_v30  ;;  %1233 = vmatpush3.bf16.msra.mxu0 %v1230_v26 }
  0x24   : > { %1235 = vmatprep.subr.bf16.mxu0 %v1234_v32  ;;  %530 = vxpose.xlu0.b32.cont [8/16] (narrow) %v514_v35, 8 }
  0x27   : > { %1237 = vmatpush3.bf16.msra.mxu0 %v1234_v32 }
  0x28   : > { %1239 = vmatprep.subr.bf16.mxu0 %v1238_v36  ;;  %531 = vxpose.xlu0.b32.cont [9/16] (narrow) %v515_v38, 8 }
  0x2a   : > { %1096 = vmatmul.mubr.msk.bf16.gmra.mrb[12].mxu0 %vm369_vm0, %v1274_v37 }
  0x2b   : > { %1241 = vmatpush3.bf16.msra.mxu0 %v1238_v36 }
  0x2c   : > { %532 = vxpose.xlu0.b32.cont [10/16] (narrow) %v516_v39, 8  ;;  %1243 = vmatprep.subr.bf16.mxu0 %v1242_v48 }
  0x2f   : > { %1245 = vmatpush3.bf16.msra.mxu0 %v1242_v48 }
  0x30   : > { %533 = vxpose.xlu0.b32.cont [11/16] (narrow) %v517_v40, 8 }
  0x34   : > { %534 = vxpose.xlu0.b32.cont [12/16] (narrow) %v518_v41, 8 }
  0x38   : > { %535 = vxpose.xlu0.b32.cont [13/16] (narrow) %v519_v42, 8 }
  0x3c   : > { %536 = vxpose.xlu0.b32.cont [14/16] (narrow) %v520_v43, 8 }
  0x40   : > { %537 = vxpose.xlu0.b32.cont [15/16] (narrow) %v521_v44, 8 }
  0x44   : > { %538 = vxpose.xlu0.b32.end [16/16] (narrow) %v522_v45, 8 }
  0x88   : > { %v539_v26 = vpop.trf.xlu0 }
  0xe5   : > { %v1085_v51 = vpop.f32.mrb[0].mxu0 }
  0xe6   : > { %493 = vst [vmem:[%s1498_s18 + $0x10] sm:$0xff] %v1085_v51  ;;  %v428_v52 = vpop.f32.mrb[1].mxu0 }
  0xe7   : > { %491 = vst [vmem:[%s1498_s18] sm:$0xff] %v428_v52  ;;  %v1086_v53 = vpop.f32.mrb[2].mxu0  ;;  %1166 = vmatprep.mubr.f32.mxu0 %v428_v52 }
  0xe8   : > { %494 = vst [vmem:[%s1498_s18 + $0x18] sm:$0xff] %v1086_v53  ;;  %v431_v54 = vpop.f32.mrb[3].mxu0  ;;  %v1194_v55 = vpack.c.bf16 %v1086_v53, %v1085_v51 }
  0xe9   : > { %492 = vst [vmem:[%s1498_s18 + $0x8] sm:$0xff] %v431_v54  ;;  %1167 = vmatmul.mubr.f32.vlgmr.msra.gmra.mrb[16].mxu0 %v431_v54  ;;  %v1191_v56 = vpack.c.bf16 %v431_v54, %v428_v52 }
  0xea   : > { %1169 = vmatprep.mubr.f32.mxu0 %v1085_v51 }
  0xeb   : > { %1192 = vmatpush3.bf16.xpose.msra.mxu1 %v1191_v56 }
  0xec   : > { %1193 = vmatprep.subr.bf16.mxu1 %v1313_v49 }
  0xed   : > { %v1089_v57 = vpop.f32.mrb[4].mxu0  ;;  %1170 = vmatmul.mubr.f32.gmra.mrb[18].mxu0 %v1086_v53 }
  0xee   : > { %497 = vst [vmem:[%s1498_s18 + $0x30] sm:$0xff] %v1089_v57  ;;  %v806_v58 = vmin.f32 %v1085_v51, %v1089_v57  ;;  %v444_v59 = vpop.f32.mrb[5].mxu0 }
  0xef   : > { %495 = vst [vmem:[%s1498_s18 + $0x20] sm:$0xff] %v444_v59  ;;  %v804_v60 = vmin.f32 %v428_v52, %v444_v59  ;;  %v1090_v61 = vpop.f32.mrb[6].mxu0  ;;  %1172 = vmatprep.mubr.f32.mxu0 %v444_v59 }
  0xf0   : > { %498 = vst [vmem:[%s1498_s18 + $0x38] sm:$0xff] %v1090_v61  ;;  %v807_v62 = vmin.f32 %v1086_v53, %v1090_v61  ;;  %v447_v63 = vpop.f32.mrb[7].mxu0  ;;  %v1200_v0 = vpack.c.bf16 %v1090_v61, %v1089_v57 }
  0xf1   : > { %496 = vst [vmem:[%s1498_s18 + $0x28] sm:$0xff] %v447_v63  ;;  %v805_v1 = vmin.f32 %v431_v54, %v447_v63  ;;  %1173 = vmatmul.mubr.f32.gmra.mrb[20].mxu0 %v447_v63  ;;  %v1197_v2 = vpack.c.bf16 %v447_v63, %v444_v59 }
  0xf2   : > { %1175 = vmatprep.mubr.f32.mxu0 %v1089_v57 }
  0xf3   : > { %1195 = vmatpush3.bf16.xpose.msra.mxu1 %v1194_v55 }
  0xf4   : > { %1196 = vmatprep.subr.bf16.mxu1 %v1313_v49 }
  0xf5   : > { %v1093_v3 = vpop.f32.mrb[8].mxu0  ;;  %1176 = vmatmul.mubr.f32.gmra.mrb[22].mxu0 %v1090_v61 }
  0xf6   : > { %501 = vst [vmem:[%s1498_s18 + $0x50] sm:$0xff] %v1093_v3  ;;  %v810_v4 = vmin.f32 %v806_v58, %v1093_v3  ;;  %v460_v5 = vpop.f32.mrb[9].mxu0 }
  0xf7   : > { %499 = vst [vmem:[%s1498_s18 + $0x40] sm:$0xff] %v460_v5  ;;  %v808_v6 = vmin.f32 %v804_v60, %v460_v5  ;;  %v1094_v7 = vpop.f32.mrb[10].mxu0  ;;  %1178 = vmatprep.mubr.f32.mxu0 %v460_v5 }
  0xf8   : > { %502 = vst [vmem:[%s1498_s18 + $0x58] sm:$0xff] %v1094_v7  ;;  %v811_v8 = vmin.f32 %v807_v62, %v1094_v7  ;;  %v463_v9 = vpop.f32.mrb[11].mxu0  ;;  %v1206_v10 = vpack.c.bf16 %v1094_v7, %v1093_v3 }
  0xf9   : > { %500 = vst [vmem:[%s1498_s18 + $0x48] sm:$0xff] %v463_v9  ;;  %v809_v11 = vmin.f32 %v805_v1, %v463_v9  ;;  %1179 = vmatmul.mubr.f32.gmra.mrb[24].mxu0 %v463_v9  ;;  %v1203_v12 = vpack.c.bf16 %v463_v9, %v460_v5 }
  0xfa   : > { %1181 = vmatprep.mubr.f32.mxu0 %v1093_v3 }
  0xfb   : > { %1198 = vmatpush3.bf16.xpose.msra.mxu1 %v1197_v2 }
  0xfc   : > { %1199 = vmatprep.subr.bf16.mxu1 %v1313_v49 }
  0xfd   : > { %v1097_v13 = vpop.f32.mrb[12].mxu0  ;;  %1182 = vmatmul.mubr.f32.gmra.mrb[26].mxu0 %v1094_v7 }
  0xfe   : > { %505 = vst [vmem:[%s1498_s18 + $0x70] sm:$0xff] %v1097_v13  ;;  %v476_v14 = vpop.f32.mrb[13].mxu0  ;;  %v814_v15 = vmin.f32 %v810_v4, %v1097_v13 }
  0xff   : > { %503 = vst [vmem:[%s1498_s18 + $0x60] sm:$0xff] %v476_v14  ;;  %v1098_v16 = vpop.f32.mrb[14].mxu0  ;;  %v812_v17 = vmin.f32 %v808_v6, %v476_v14  ;;  %1184 = vmatprep.mubr.f32.mxu0 %v476_v14 }
 0x100   : > { %506 = vst [vmem:[%s1498_s18 + $0x78] sm:$0xff] %v1098_v16  ;;  %v479_v18 = vpop.f32.mrb[15].mxu0  ;;  %v815_v19 = vmin.f32 %v811_v8, %v1098_v16  ;;  %v1212_v20 = vpack.c.bf16 %v1098_v16, %v1097_v13 }
 0x101   : > { %504 = vst [vmem:[%s1498_s18 + $0x68] sm:$0xff] %v479_v18  ;;  %v813_v21 = vmin.f32 %v809_v11, %v479_v18  ;;  %1185 = vmatmul.mubr.f32.gmra.mrb[28].mxu0 %v479_v18  ;;  %v1209_v22 = vpack.c.bf16 %v479_v18, %v476_v14 }
 0x102   : > { %v817_v23 = vmin.f32 %v814_v15, %v815_v19  ;;  %1187 = vmatprep.mubr.f32.mxu0 %v1097_v13 }
 0x103   : > { %1201 = vmatpush3.bf16.xpose.msra.mxu1 %v1200_v0  ;;  %v816_v24 = vmin.f32 %v812_v17, %v813_v21 }
 0x104   : > { %1202 = vmatprep.subr.bf16.mxu1 %v1313_v49 }
 0x105   : > { %v818_v25 = vmin.f32 %v816_v24, %v817_v23  ;;  %1188 = vmatmul.mubr.f32.gmra.mrb[30].mxu0 %v1098_v16 }
 0x107   : > { %819 = vmin.xlane.f32.xlu1 %v818_v25 }
 0x10b   : > { %1204 = vmatpush3.bf16.xpose.msra.mxu1 %v1203_v12 }
 0x10c   : > { %1205 = vmatprep.subr.bf16.mxu1 %v1313_v49 }
 0x113   : > { %1207 = vmatpush3.bf16.xpose.msra.mxu1 %v1206_v10 }
 0x114   : > { %1208 = vmatprep.subr.bf16.mxu1 %v1313_v49 }
 0x11b   : > { %1210 = vmatpush3.bf16.xpose.msra.mxu1 %v1209_v22 }
 0x11c   : > { %1211 = vmatprep.subr.bf16.mxu1 %v1313_v49 }
 0x123   : > { %1213 = vmatpush3.bf16.xpose.msra.mxu1 %v1212_v20 }
 0x12a   : > { %1132 = vmatmul.mubr.f32.vlgmr.msra.gmra.mrb[0].mxu1 %v539_v26 }
 0x194   : > { %v820_v27 = vpop.xlane.xlu1 %819 }
 0x195   : > { %v821_v28 = vrot.slane %v820_v27, 4 }
 0x197   : > { %v822_v29 = vmin.f32 %v820_v27, %v821_v28 }
 0x199   : > { %v823_v30 = vrot.slane %v822_v29, 2 }
 0x19b   : > { %v824_v31 = vmin.f32 %v822_v29, %v823_v30 }
 0x19d   : > { %v825_v32 = vrot.slane %v824_v31, 1 }
 0x19f   : > { %v826_v33 = vmin.f32 %v824_v31, %v825_v32 }
 0x1a1   : > { %1246 = vpush %v826_v33 }
 0x1bc   : > { %v1168_v34 = vpop.f32.mrb[16].mxu0 }
 0x1bd   : > { %789 = vst.msk [vmem:[%s1528_s21 + $0x8] sm:$0xff] %vm787_vm2, %v1168_v34  ;;  %v708_v35 = vpop.f32.mrb[17].mxu0 }
 0x1be   : > { %788 = vst.msk [vmem:[%s1528_s21] sm:$0xff] %vm787_vm2, %v708_v35 }
 0x1c0   : > { %v1171_v36 = vpop.f32.mrb[18].mxu0 }
 0x1c1   : > { %791 = vst.msk [vmem:[%s1528_s21 + $0x18] sm:$0xff] %vm787_vm2, %v1171_v36  ;;  %v718_v37 = vpop.f32.mrb[19].mxu0 }
 0x1c2   : > { %790 = vst.msk [vmem:[%s1528_s21 + $0x10] sm:$0xff] %vm787_vm2, %v718_v37 }
 0x1c4   : > { %v1174_v38 = vpop.f32.mrb[20].mxu0 }
 0x1c5   : > { %793 = vst.msk [vmem:[%s1528_s21 + $0x28] sm:$0xff] %vm787_vm2, %v1174_v38  ;;  %v728_v39 = vpop.f32.mrb[21].mxu0 }
 0x1c6   : > { %792 = vst.msk [vmem:[%s1528_s21 + $0x20] sm:$0xff] %vm787_vm2, %v728_v39 }
 0x1c8   : > { %v1177_v40 = vpop.f32.mrb[22].mxu0 }
 0x1c9   : > { %795 = vst.msk [vmem:[%s1528_s21 + $0x38] sm:$0xff] %vm787_vm2, %v1177_v40  ;;  %v738_v41 = vpop.f32.mrb[23].mxu0 }
 0x1ca   : > { %794 = vst.msk [vmem:[%s1528_s21 + $0x30] sm:$0xff] %vm787_vm2, %v738_v41 }
 0x1cc   : > { %v1180_v42 = vpop.f32.mrb[24].mxu0 }
 0x1cd   : > { %797 = vst.msk [vmem:[%s1528_s21 + $0x48] sm:$0xff] %vm787_vm2, %v1180_v42  ;;  %v748_v43 = vpop.f32.mrb[25].mxu0 }
 0x1ce   : > { %796 = vst.msk [vmem:[%s1528_s21 + $0x40] sm:$0xff] %vm787_vm2, %v748_v43 }
 0x1d0   : > { %v1183_v44 = vpop.f32.mrb[26].mxu0 }
 0x1d1   : > { %799 = vst.msk [vmem:[%s1528_s21 + $0x58] sm:$0xff] %vm787_vm2, %v1183_v44  ;;  %v758_v45 = vpop.f32.mrb[27].mxu0 }
 0x1d2   : > { %s1247_s28 = spop %1246  ;;  %798 = vst.msk [vmem:[%s1528_s21 + $0x50] sm:$0xff] %vm787_vm2, %v758_v45 }
 0x1d3   : > { %v828_v46 = vstv %s1247_s28 }
 0x1d4   : > { %v1186_v47 = vpop.f32.mrb[28].mxu0  ;;  %834 = vst.msk [vmem:[#allocation2] sm:$0x1] (!%p1017_p5), %vm833_vm3, %v828_v46 }
 0x1d5   : > { %801 = vst.msk [vmem:[%s1528_s21 + $0x68] sm:$0xff] %vm787_vm2, %v1186_v47  ;;  %v768_v48 = vpop.f32.mrb[29].mxu0 }
 0x1d6   : > { %800 = vst.msk [vmem:[%s1528_s21 + $0x60] sm:$0xff] %vm787_vm2, %v768_v48 }
 0x1d8   : > { %v1189_v49 = vpop.f32.mrb[30].mxu0 }
 0x1d9   : > { %803 = vst.msk [vmem:[%s1528_s21 + $0x78] sm:$0xff] %vm787_vm2, %v1189_v49  ;;  %v778_v50 = vpop.f32.mrb[31].mxu0 }
 0x1da   : > { %802 = vst.msk [vmem:[%s1528_s21 + $0x70] sm:$0xff] %vm787_vm2, %v778_v50 }
 0x1f8   : > { %832 = sbr.rel (%p1017_p5) target bundleno = 511 (0x1ff), region = 40 }
 0x1fd   : > { %v621_v51 = vpop.f32.mrb[0].mxu1 }
 0x1fe   : > { %625 = vst [vmem:[%s297_s29] sm:$0xf] %v621_v51  ;;  %v1133_v52 = vpop.f32.mrb[1].mxu1 }
 0x1ff PF: > { %p1018_p6 = scmp.le.s32.totalorder %s1363_s25, 0 }
 0x200   : > { %v839_v53 = vld [vmem:[#allocation2] sm:$0x1] (!%p1018_p6)  ;;  %vm841_vm4 = vcmask (!%p1018_p6), 0  }
 0x201   : > { %838 = sbr.rel (%p1018_p6) target bundleno = 520 (0x208), region = 44  ;;  %v840_v54 = vmin.f32 (!%p1018_p6), %v839_v53, %v828_v46 }
 0x203   : > { %842 = vst.msk [vmem:[#allocation2] sm:$0x1] (!%p1018_p6), %vm841_vm4, %v840_v54 }
 0x208 PF: > { %p1252_p7 = scmp.eq.s32.totalorder %s1363_s25, 1  ;;  %s1316_s30 = smov [#allocation2]  }
 0x209   : > { %s875_s8 = sshll.u32 %s1316_s30, 4  ;;  %s876_s8 = int_to_ptr.vmem [resolvable:$true] %s875_s8 }
 0x20a   : > { %s1275_s9 = scalar_lea.vmem %s876_s8, 16  ;;  %s1281_s10 = scalar_lea.vmem %s876_s8, 32 }
 0x20b   : > { %p1276_p8 = scmp.ne.s32.totalorder %s876_s8, %s1275_s9  ;;  %p1282_p11 = scmp.lt.s32.totalorder %s876_s8, %s876_s8 }
 0x20c   : > { %p1283_p12 = scmp.lt.s32.totalorder %s1281_s10, %s1275_s9 }
 0x20d   : > { %p1277_p9 = pnand %p1276_p8, %p1252_p7 }
 0x20e   : > { %p1284_p13 = por %p1283_p12, %p1282_p11 }
 0x20f   : > { %p1278_p10 = pneg %p1277_p9 }
 0x211   : > { %p1285_p0 = pnand %p1284_p13, %p1278_p10 }
 0x213   : > { %1288 = shalt.err (!%p1285_p0)
}
 0x214   : > { %s1289_s13 = scalar_lea.hbm %s1602_s7, 16 }
 0x215   : > { %p1290_p1 = scmp.ne.s32.totalorder %s1602_s7, %s1289_s13  ;;  %p1295_p4 = scmp.lt.u32.totalorder %s1289_s13, %s1602_s7 }
 0x217   : > { %p1291_p2 = pnand %p1290_p1, %p1252_p7 }
 0x219   : > { %p1292_p3 = pneg %p1291_p2 }
 0x21b   : > { %p1297_p5 = pnand %p1295_p4, %p1292_p3 }
 0x21d   : > { %1300 = shalt.err (!%p1297_p5)
}
 0x21e   : > { %1249 = dma.vmem_to_hbm [thread:$0]  (%p1252_p7), %s876_s8, 16, %s1602_s7, [#allocation3]  }
 0x21f   : > { %1306 = dma.done.wait (%p1252_p7), [#allocation3], 16  }
 0x220   : > { %1308 = vsyncadd (%p1252_p7), [#allocation3], 4294967280 }
 0x221 PF: > { %s19_s24 = sadd.s32 1, %s1311_s24  }
 0x222   : > { %p16_p6 = scmp.ge.s32.totalorder %s19_s24, 4  }
 0x224   :  { %18 = sbr.rel (!%p16_p6) target bundleno = 1 (0x1), region = 107 }
 0x22b   :  { %911 = vsyncpa [#allocation3], 1 }
 0x22c   :  { %913 = vsyncpa [#allocation3 + $0x1], 1 }

// kernel: gat_conv_g.5
= control target key start
LH: loop header
LB: loop body
LE: loop exit
PB: predicated region body
PF: predicated region fallthrough
CT: control target
= control target key end

     0   :  { %s8675_s0 = inlined_call_operand.<no memory space> [shape: f32[1,1], index: 0, kind: input, shape index: {}]   ;;  %s8676_s1 = inlined_call_operand.<no memory space> [shape: f32[1,1], index: 1, kind: input, shape index: {}]   ;;  %s8677_s2 = inlined_call_operand.vmem [shape: f32[4,256], index: 2, kind: input, shape index: {}]   ;;  %s8678_s3 = inlined_call_operand.vmem [shape: f32[256,4], index: 3, kind: input, shape index: {}]   ;;  %s8679_s4 = inlined_call_operand.vmem [shape: s8[256,256], index: 4, kind: input, shape index: {}]   ;;  %s8680_s5 = inlined_call_operand.vmem [shape: bf16[256,128], index: 5, kind: input, shape index: {}]   ;;  %s8681_s6 = inlined_call_operand.vmem [shape: f32[1,128], index: 6, kind: input, shape index: {}]   ;;  %s8682_s7 = inlined_call_operand.hbm [shape: f32[256,128], index: 7, kind: output, shape index: {}]  }
   0x1   :  { %12 = sst [smem:[#allocation2]] %s8675_s0 }
   0x2   :  { %13 = sst [smem:[#allocation3]] %s8676_s1 }
   0x3   :  { %14 = vsyncpa [#allocation5], 0 }
   0x4   :  { %16 = vsyncpa [#allocation5 + $0x1], 0  ;;  %s5586_s28 = smov 0   ;;  %s5588_s29 = smov 0  }
   0x5   :  { %s5590_s30 = smov 0   ;;  %s5592_s8 = smov 0  }
   0x6 LB: > { %s5607_s0 = sadd.s32 4294967295, %s5528_s8   ;;  %s4327_s1 = sadd.s32 4294967294, %s5528_s8   ;;  %s5528_s8 = sphi %s5592_s8, %s9334_s8   ;;  %s5524_s30 = sphi %s5590_s30, %s9333_s30   ;;  %s5520_s29 = sphi %s5588_s29, %s9332_s29   ;;  %s5516_s28 = sphi %s5586_s28, %s9331_s28  }
   0x7   : > { %s5611_s9 = sadd.s32 1, %s5528_s8   ;;  %s186_s10 = sadd.s32 1, %s5524_s30 }
   0x8   : > { %s183_s11 = ssub.s32 %s5528_s8, %s5611_s9  ;;  %p196_p0 = scmp.ne.s32.totalorder %s5524_s30, %s5520_s29 }
   0x9   : > { %p184_p1 = scmp.eq.s32.totalorder %s183_s11, 0  ;;  %p197_p2 = scmp.eq.s32.totalorder %s5607_s0, 1 }
   0xa   : > { %p202_p3 = scmp.ne.s32.totalorder %s5520_s29, %s5516_s28  ;;  %p203_p4 = scmp.eq.s32.totalorder %s4327_s1, 1 }
   0xb   : > { %s5622_s12 = scalar_select %p184_p1, %s5524_s30, %s186_s10  }
   0xc   : > { %p5624_p5 = por %p197_p2, %p196_p0  ;;  %p5628_p6 = por %p203_p4, %p202_p3 }
   0xd   : > { %p4330_p7 = scmp.ge.s32.totalorder %s5528_s8, 1  ;;  %p255_p8 = scmp.lt.s32.totalorder %s5528_s8, 3 }
   0xf   : > { %p256_p9 = pnand %p4330_p7, %p255_p8 }
  0x11   : > { %259 = sbr.rel (%p256_p9) target bundleno = 1735 (0x6c7), region = 48 }
  0x18   : > { %s4332_s15 = sshll.u32 %s5607_s0, 4  ;;  %v5530_v0 = vmov 0   ;;  %v5531_v17 = vmov 1   ;;  %s4334_s20 = sshll.u32 %s5607_s0, 2  ;;  %v426_v28 = vlaneseq }
  0x19   : > { %4720 = vset.pattern.permute.xlu1 %v5530_v0  ;;  %4719 = vset.pattern.permute.xlu0 %v5530_v0  ;;  %p294_p10 = scmp.lt.s32.totalorder %s4332_s15, 31  ;;  %p300_p11 = scmp.lt.s32.totalorder %s4334_s20, 7  ;;  %v344_v46 = vld [vmem:[%s8677_s2] ss:$4 sm:$0x3] }
  0x1a   : > { %v427_v35 = vshrl.u32 %v426_v28, 7  ;;  %s5534_s17 = smov 96   ;;  %s6961_s22 = sld [smem:[#allocation3]] }
  0x1b   : > { %s9336_s15 = smov (!%p294_p10, %s4332_s15), 31  ;;  %s9338_s20 = smov (!%p300_p11, %s4334_s20), 7 }
  0x1c   : > { %s4333_s16 = sshll.u32 %s9336_s15, 3  ;;  %s4413_s21 = sshll.u32 %s9338_s20, 4  ;;  %v5674_v44 = vsub.s32 0, %v427_v35  ;;  %v5676_v45 = vsub.s32 1, %v427_v35 }
  0x1d   : > { %s5640_s19 = scalar_lea.vmem %s8678_s3, %s4333_s16  ;;  %s5662_s24 = scalar_lea.vmem %s8679_s4, %s4413_s21 }
  0x1e   : > { %v330_v1 = vld [vmem:[%s5640_s19 + $0x10] sm:$0xff]  ;;  %v328_v2 = vld [vmem:[%s5640_s19] sm:$0xff]  ;;  %v331_v3 = vld [vmem:[%s5640_s19 + $0x18] sm:$0xff]  ;;  %8886 = vst [vmem:[#allocation7_spill] sm:$0xff] %v5674_v44  ;;  %v5684_v55 = vrot.slane %v344_v46, %v5674_v44  ;;  %v5687_v56 = vrot.slane %v344_v46, %v5676_v45  ;;  %s310_s21 = sld [smem:[#allocation2]]  ;;  %s5535_s15 = smov 64  }
  0x1f   : > { %357 = vperm.xlu1 %4720, %v330_v1   ;;  %347 = vperm.xlu0 %4719, %v328_v2   ;;  %v329_v4 = vld [vmem:[%s5640_s19 + $0x8] sm:$0xff]  ;;  %v332_v6 = vld [vmem:[%s5640_s19 + $0x20] sm:$0xff]  ;;  %v335_v7 = vld [vmem:[%s5640_s19 + $0x38] sm:$0xff]  ;;  %8887 = vst [vmem:[#allocation8_spill] sm:$0xff] %v5676_v45 }
  0x20   : > { %v333_v5 = vld [vmem:[%s5640_s19 + $0x28] sm:$0xff]  ;;  %v334_v8 = vld [vmem:[%s5640_s19 + $0x30] sm:$0xff]  ;;  %v336_v10 = vld [vmem:[%s5640_s19 + $0x40] sm:$0xff] }
  0x21   : > { %v337_v9 = vld [vmem:[%s5640_s19 + $0x48] sm:$0xff]  ;;  %v339_v11 = vld [vmem:[%s5640_s19 + $0x58] sm:$0xff]  ;;  %v338_v12 = vld [vmem:[%s5640_s19 + $0x50] sm:$0xff] }
  0x22   : > { %v341_v13 = vld [vmem:[%s5640_s19 + $0x68] sm:$0xff]  ;;  %v340_v14 = vld [vmem:[%s5640_s19 + $0x60] sm:$0xff]  ;;  %v343_v15 = vld [vmem:[%s5640_s19 + $0x78] sm:$0xff] }
  0x23   : > { %362 = vperm.xlu1 %4720, %v331_v3   ;;  %352 = vperm.xlu0 %4719, %v329_v4   ;;  %v342_v16 = vld [vmem:[%s5640_s19 + $0x70] sm:$0xff]  ;;  %v312_v18 = vld [vmem:[%s5662_s24] sm:$0xff]  ;;  %v313_v19 = vld [vmem:[%s5662_s24 + $0x8] sm:$0xff] }
  0x24   : > { %vm320_vm0 = vnez %v312_v18  ;;  %vm321_vm1 = vnez %v313_v19  ;;  %v314_v26 = vld [vmem:[%s5662_s24 + $0x10] sm:$0xff]  ;;  %v315_v27 = vld [vmem:[%s5662_s24 + $0x18] sm:$0xff]  ;;  %v316_v42 = vld [vmem:[%s5662_s24 + $0x20] sm:$0xff] }
  0x25   : > { %v564_v20 = vsel %vm320_vm0, 16843009, %v5530_v0  ;;  %v565_v21 = vsel %vm321_vm1, 16843009, %v5530_v0  ;;  %vm322_vm2 = vnez %v314_v26  ;;  %vm323_vm3 = vnez %v315_v27  ;;  %v317_v43 = vld [vmem:[%s5662_s24 + $0x28] sm:$0xff]  ;;  %v318_v51 = vld [vmem:[%s5662_s24 + $0x30] sm:$0xff] }
  0x26   : > { %v572_v22 = vunpack.c.0.s8 %v564_v20  ;;  %v573_v23 = vunpack.c.0.s8 %v565_v21  ;;  %v576_v24 = vunpack.c.2.s8 %v564_v20  ;;  %v577_v25 = vunpack.c.2.s8 %v565_v21  ;;  %v319_v52 = vld [vmem:[%s5662_s24 + $0x38] sm:$0xff]  ;;  %s5536_s24 = smov 32  }
  0x27   : > { %372 = vperm.xlu1 %4720, %v333_v5   ;;  %367 = vperm.xlu0 %4719, %v332_v6   ;;  %v574_v29 = vunpack.c.1.s8 %v564_v20  ;;  %v575_v30 = vunpack.c.1.s8 %v565_v21  ;;  %v578_v33 = vunpack.c.3.s8 %v564_v20  ;;  %v579_v34 = vunpack.c.3.s8 %v565_v21 }
  0x28   : > { %v604_v31 = vpack.c.b16 %v573_v23, %v572_v22  ;;  %v608_v32 = vpack.c.b16 %v577_v25, %v576_v24  ;;  %v566_v36 = vsel %vm322_vm2, 16843009, %v5530_v0  ;;  %v567_v37 = vsel %vm323_vm3, 16843009, %v5530_v0 }
  0x29   : > { %v606_v40 = vpack.c.b16 %v575_v30, %v574_v29  ;;  %v610_v41 = vpack.c.b16 %v579_v34, %v578_v33  ;;  %v580_v47 = vunpack.c.0.s8 %v566_v36  ;;  %v581_v48 = vunpack.c.0.s8 %v567_v37 }
  0x2a   : > { %v605_v38 = vpack.c.b8 %v604_v31, %v604_v31  ;;  %v609_v39 = vpack.c.b8 %v608_v32, %v608_v32  ;;  %v582_v49 = vunpack.c.1.s8 %v566_v36  ;;  %v583_v50 = vunpack.c.1.s8 %v567_v37 }
  0x2b   : > { %382 = vperm.xlu1 %4720, %v335_v7   ;;  %377 = vperm.xlu0 %4719, %v334_v8   ;;  %vm324_vm4 = vnez %v316_v42  ;;  %vm325_vm5 = vnez %v317_v43  ;;  %v607_v53 = vpack.c.b8 %v606_v40, %v606_v40  ;;  %v611_v54 = vpack.c.b8 %v610_v41, %v610_v41 }
  0x2c   : > { %vm636_vm6 = vnez %v605_v38  ;;  %vm638_vm7 = vnez %v609_v39  ;;  %v584_v57 = vunpack.c.2.s8 %v566_v36  ;;  %v585_v58 = vunpack.c.2.s8 %v567_v37 }
  0x2d   : > { %v568_v59 = vsel %vm324_vm4, 16843009, %v5530_v0  ;;  %v569_v60 = vsel %vm325_vm5, 16843009, %v5530_v0  ;;  %vm326_vm8 = vnez %v318_v51  ;;  %vm327_vm9 = vnez %v319_v52 }
  0x2e   : > { %v5692_v61 = vsel %vm636_vm6, 16843009, %v5530_v0  ;;  %v5695_v62 = vsel %vm638_vm7, 16843009, %v5530_v0  ;;  %v612_v63 = vpack.c.b16 %v581_v48, %v580_v47  ;;  %vm5697_vm10 = vnez %v607_v53 }
  0x2f   : > { %392 = vperm.xlu1 %4720, %v337_v9   ;;  %387 = vperm.xlu0 %4719, %v336_v10   ;;  %vm5701_vm11 = vnez %v611_v54  ;;  %v594_v18 = vunpack.c.3.s8 %v568_v59  ;;  %v595_v19 = vunpack.c.3.s8 %v569_v60  ;;  %v669_v22 = vunpack.c.1.s8 %v5692_v61 }
  0x30   : > { %v672_v23 = vunpack.c.0.s8 %v5695_v62  ;;  %v673_v30 = vunpack.c.1.s8 %v5695_v62  ;;  %v5722_v31 = vsel %vm5697_vm10, 16843009, %v5530_v0  ;;  %v5727_v32 = vsel %vm5701_vm11, 16843009, %v5530_v0 }
  0x31   : > { %v670_v42 = vunpack.c.0.s8 %v5722_v31  ;;  %v671_v47 = vunpack.c.1.s8 %v5722_v31  ;;  %v674_v48 = vunpack.c.0.s8 %v5727_v32  ;;  %vm5786_vm6 = vcmp.ne.s32.totalorder %v669_v22, 0 }
  0x32   : > { %vm5790_vm7 = vcmp.ne.s32.totalorder %v672_v23, 0  ;;  %v8923_v31 = vmov 0 }
  0x33   : > { %402 = vperm.xlu1 %4720, %v339_v11   ;;  %397 = vperm.xlu0 %4719, %v338_v12  }
  0x37   : > { %412 = vperm.xlu1 %4720, %v341_v13   ;;  %407 = vperm.xlu0 %4719, %v340_v14   ;;  %v591_v13 = vunpack.c.1.s8 %v569_v60 }
  0x3b   : > { %422 = vperm.xlu1 %4720, %v343_v15   ;;  %417 = vperm.xlu0 %4719, %v342_v16   ;;  %v592_v16 = vunpack.c.2.s8 %v568_v59 }
  0x3f   : > { %4721 = vset.pattern.permute.xlu1 %v5531_v17  ;;  %4722 = vset.pattern.permute.xlu0 %v5531_v17  ;;  %v593_v17 = vunpack.c.2.s8 %v569_v60 }
  0x40   : > { %1386 = vperm.xlu1 %4721, %v328_v2   ;;  %1390 = vperm.xlu0 %4722, %v329_v4   ;;  %v586_v4 = vunpack.c.3.s8 %v566_v36  ;;  %v626_v36 = vpack.c.b16 %v595_v19, %v594_v18 }
  0x41   : > { %v624_v33 = vpack.c.b16 %v593_v17, %v592_v16 }
  0x42   : > { %v627_v53 = vpack.c.b8 %v626_v36, %v626_v36 }
  0x44   : > { %1394 = vperm.xlu1 %4721, %v330_v1   ;;  %1426 = vperm.xlu0 %4722, %v338_v12   ;;  %v614_v1 = vpack.c.b16 %v583_v50, %v582_v49  ;;  %v590_v12 = vunpack.c.1.s8 %v568_v59  ;;  %v675_v49 = vunpack.c.1.s8 %v5727_v32  ;;  %v625_v50 = vpack.c.b8 %v624_v33, %v624_v33  ;;  %v4746_v32 = vld [vmem:[%s8680_s5 + $0x50] sm:$0xff]  }
  0x45   : > { %vm5765_vm3 = vnez %v627_v53 }
  0x46   : > { %v615_v15 = vpack.c.b8 %v614_v1, %v614_v1  ;;  %v622_v27 = vpack.c.b16 %v591_v13, %v590_v12  ;;  %vm646_vm2 = vnez %v625_v50  ;;  %v8900_v12 = vmov 0 }
  0x47   : > { %v8903_v13 = vmov 0  ;;  %v5796_v16 = vsel %vm646_vm2, 16843009, %v5530_v0  ;;  %v5807_v19 = vsel %vm5765_vm3, 16843009, %v5530_v0  ;;  %vm5874_vm2 = vcmp.ne.s32.totalorder %v675_v49, 0 }
  0x48   : > { %1398 = vperm.xlu1 %4721, %v331_v3   ;;  %1434 = vperm.xlu0 %4722, %v340_v14   ;;  %v613_v14 = vpack.c.b8 %v612_v63, %v612_v63  ;;  %vm5733_vm13 = vnez %v615_v15  ;;  %v623_v43 = vpack.c.b8 %v622_v27, %v622_v27  ;;  %v8904_v13 = vsel %vm5786_vm6, 4294967295, %v8903_v13 }
  0x49   : > { %v5751_v52 = vsel %vm5733_vm13, 16843009, %v5530_v0  ;;  %8905 = vst [vmem:[#allocation10_spill] sm:$0xff] %v8904_v13  ;;  %vm5856_vm13 = vcmp.ne.s32.totalorder %v670_v42, 0  ;;  %v8920_v42 = vmov 0  ;;  %v8924_v31 = vsel %vm5874_vm2, 4294967295, %v8923_v31 }
  0x4a   : > { %vm5729_vm12 = vnez %v613_v14  ;;  %vm645_vm1 = vnez %v623_v43  ;;  %v678_v2 = vunpack.c.0.s8 %v5751_v52  ;;  %v679_v3 = vunpack.c.1.s8 %v5751_v52  ;;  %v4743_v43 = vld [vmem:[%s8680_s5] sm:$0xff]   ;;  %8925 = vst [vmem:[#allocation16_spill] sm:$0xff] %v8924_v31 }
  0x4b   : > { %v5746_v51 = vsel %vm5729_vm12, 16843009, %v5530_v0  ;;  %v8906_v14 = vmov 0  ;;  %v8943_v52 = vmov 0 }
  0x4c   : > { %1402 = vperm.xlu1 %4721, %v332_v6   ;;  %v588_v6 = vunpack.c.0.s8 %v568_v59  ;;  %v676_v63 = vunpack.c.0.s8 %v5746_v51  ;;  %v677_v1 = vunpack.c.1.s8 %v5746_v51  ;;  %v8907_v14 = vsel %vm5790_vm7, 4294967295, %v8906_v14 }
  0x4d   : > { %8908 = vst [vmem:[#allocation11_spill] sm:$0xff] %v8907_v14 }
  0x50   : > { %1406 = vperm.xlu1 %4721, %v333_v5   ;;  %v587_v5 = vunpack.c.3.s8 %v567_v37 }
  0x52   : > { %v618_v24 = vpack.c.b16 %v587_v5, %v586_v4  ;;  %v8914_v5 = vmov 0 }
  0x53   : > { %v8915_v5 = vsel %vm5856_vm13, 4294967295, %v8914_v5 }
  0x54   : > { %1410 = vperm.xlu1 %4721, %v334_v8   ;;  %v5706_v8 = vsel %vm326_vm8, 16843009, %v5530_v0  ;;  %v619_v38 = vpack.c.b8 %v618_v24, %v618_v24  ;;  %8916 = vst [vmem:[#allocation13_spill] sm:$0xff] %v8915_v5 }
  0x55   : > { %v596_v20 = vunpack.c.0.s8 %v5706_v8  ;;  %v598_v28 = vunpack.c.1.s8 %v5706_v8  ;;  %v600_v40 = vunpack.c.2.s8 %v5706_v8 }
  0x56   : > { %vm643_vm15 = vnez %v619_v38 }
  0x57   : > { %v5763_v4 = vsel %vm643_vm15, 16843009, %v5530_v0 }
  0x58   : > { %1414 = vperm.xlu1 %4721, %v335_v7   ;;  %v589_v7 = vunpack.c.0.s8 %v569_v60  ;;  %v602_v60 = vunpack.c.3.s8 %v5706_v8  ;;  %v683_v18 = vunpack.c.1.s8 %v5763_v4 }
  0x5a   : > { %v620_v25 = vpack.c.b16 %v589_v7, %v588_v6  ;;  %v8917_v6 = vmov 0 }
  0x5c   : > { %1418 = vperm.xlu1 %4721, %v336_v10   ;;  %v668_v10 = vunpack.c.0.s8 %v5692_v61  ;;  %v621_v39 = vpack.c.b8 %v620_v25, %v620_v25  ;;  %v8909_v61 = vmov 0 }
  0x5e   : > { %vm644_vm0 = vnez %v621_v39  ;;  %vm5782_vm5 = vcmp.ne.s32.totalorder %v668_v10, 0  ;;  %v682_v10 = vunpack.c.0.s8 %v5763_v4 }
  0x5f   : > { %v5775_v8 = vsel %vm644_vm0, 16843009, %v5530_v0  ;;  %v8901_v12 = vsel %vm5782_vm5, 4294967295, %v8900_v12 }
  0x60   : > { %1422 = vperm.xlu1 %4721, %v337_v9   ;;  %v5709_v9 = vsel %vm327_vm9, 16843009, %v5530_v0  ;;  %8902 = vst [vmem:[#allocation9_spill] sm:$0xff] %v8901_v12  ;;  %vm5798_vm9 = vcmp.ne.s32.totalorder %v673_v30, 0  ;;  %v685_v22 = vunpack.c.1.s8 %v5775_v8 }
  0x61   : > { %v597_v21 = vunpack.c.0.s8 %v5709_v9  ;;  %v599_v29 = vunpack.c.1.s8 %v5709_v9  ;;  %v601_v41 = vunpack.c.2.s8 %v5709_v9  ;;  %v603_v62 = vunpack.c.3.s8 %v5709_v9 }
  0x62   : > { %v5778_v9 = vsel %vm645_vm1, 16843009, %v5530_v0  ;;  %v8910_v61 = vsel %vm5798_vm9, 4294967295, %v8909_v61  ;;  %vm5868_vm1 = vcmp.ne.s32.totalorder %v674_v48, 0 }
  0x63   : > { %v628_v37 = vpack.c.b16 %v597_v21, %v596_v20  ;;  %v630_v46 = vpack.c.b16 %v599_v29, %v598_v28  ;;  %v634_v17 = vpack.c.b16 %v603_v62, %v602_v60  ;;  %8911 = vst [vmem:[#allocation12_spill] sm:$0xff] %v8910_v61  ;;  %v684_v21 = vunpack.c.0.s8 %v5775_v8 }
  0x64   : > { %1430 = vperm.xlu1 %4721, %v339_v11   ;;  %v616_v11 = vpack.c.b16 %v585_v58, %v584_v57  ;;  %v632_v58 = vpack.c.b16 %v601_v41, %v600_v40  ;;  %v686_v23 = vunpack.c.0.s8 %v5778_v9  ;;  %v687_v24 = vunpack.c.1.s8 %v5778_v9  ;;  %v4742_v41 = vld [vmem:[%s8680_s5 + $0x40] sm:$0xff]  }
  0x65   : > { %v629_v54 = vpack.c.b8 %v628_v37, %v628_v37  ;;  %v631_v59 = vpack.c.b8 %v630_v46, %v630_v46  ;;  %v635_v36 = vpack.c.b8 %v634_v17, %v634_v17  ;;  %v4744_v46 = vld [vmem:[%s8680_s5 + $0x48] sm:$0xff]   ;;  %4415 = vmatprep.subr.bf16.mxu0 %v4742_v41  ;;  %v8921_v42 = vsel %vm5868_vm1, 4294967295, %v8920_v42 }
  0x66   : > { %v617_v26 = vpack.c.b8 %v616_v11, %v616_v11  ;;  %v633_v11 = vpack.c.b8 %v632_v58, %v632_v58  ;;  %8922 = vst [vmem:[#allocation15_spill] sm:$0xff] %v8921_v42  ;;  %4416 = vmatpush3.bf16.msra.mxu0 %v4743_v43  ;;  %v8979_v9 = vmov 0 }
  0x67   : > { %vm5769_vm4 = vnez %v629_v54  ;;  %vm649_vm8 = vnez %v631_v59  ;;  %v4745_v59 = vld [vmem:[%s8680_s5 + $0x8] sm:$0xff]   ;;  %vm5881_vm3 = vnez %v635_v36  ;;  %4417 = vmatprep.subr.bf16.mxu0 %v4744_v46 }
  0x68   : > { %vm642_vm14 = vnez %v617_v26  ;;  %v5812_v20 = vsel %vm5769_vm4, 16843009, %v5530_v0  ;;  %v5821_v27 = vsel %vm649_vm8, 16843009, %v5530_v0  ;;  %vm5823_vm10 = vnez %v633_v11 }
  0x69   : > { %v5754_v57 = vsel %vm642_vm14, 16843009, %v5530_v0  ;;  %v5849_v58 = vsel %vm5823_vm10, 16843009, %v5530_v0  ;;  %vm5862_vm14 = vcmp.ne.s32.totalorder %v671_v47, 0  ;;  %vm5905_vm4 = vcmp.ne.s32.totalorder %v676_v63, 0 }
  0x6a   : > { %v680_v7 = vunpack.c.0.s8 %v5754_v57  ;;  %v681_v15 = vunpack.c.1.s8 %v5754_v57  ;;  %v8918_v6 = vsel %vm5862_vm14, 4294967295, %v8917_v6  ;;  %vm5917_vm8 = vcmp.ne.s32.totalorder %v677_v1, 0  ;;  %4418 = vmatpush3.bf16.msra.mxu0 %v4745_v59 }
  0x6b   : > { %8919 = vst [vmem:[#allocation14_spill] sm:$0xff] %v8918_v6  ;;  %4419 = vmatprep.subr.bf16.mxu0 %v4746_v32  ;;  %v8937_v32 = vmov 0 }
  0x9e   : > { %v358_v29 = vpop.permute.xlu1 %357  ;;  %v348_v30 = vpop.permute.xlu0 %347 }
  0x9f   : > { %v440_v37 = vadd.f32 %v5684_v55, %v358_v29  ;;  %v441_v38 = vadd.f32 %v5687_v56, %v358_v29  ;;  %v436_v39 = vadd.f32 %v5684_v55, %v348_v30  ;;  %v437_v40 = vadd.f32 %v5687_v56, %v348_v30 }
  0xa1   : > { %vm468_vm11 = vcmp.gt.f32.partialorder %v436_v39, 0.0  ;;  %vm469_vm12 = vcmp.gt.f32.partialorder %v437_v40, 0.0  ;;  %v500_v60 = vmul.f32 0.2, %v436_v39  ;;  %v501_v62 = vmul.f32 0.2, %v437_v40 }
  0xa2   : > { %v363_v11 = vpop.permute.xlu1 %362  ;;  %v353_v17 = vpop.permute.xlu0 %352  ;;  %vm472_vm15 = vcmp.gt.f32.partialorder %v440_v37, 0.0  ;;  %vm473_vm0 = vcmp.gt.f32.partialorder %v441_v38, 0.0  ;;  %v504_v28 = vmul.f32 0.2, %v440_v37  ;;  %v505_v29 = vmul.f32 0.2, %v441_v38 }
  0xa3   : > { %v442_v47 = vadd.f32 %v5684_v55, %v363_v11  ;;  %v438_v30 = vadd.f32 %v5684_v55, %v353_v17  ;;  %v439_v41 = vadd.f32 %v5687_v56, %v353_v17  ;;  %v532_v48 = vsel %vm468_vm11, %v436_v39, %v500_v60 }
  0xa4   : > { %v533_v49 = vsel %vm469_vm12, %v437_v40, %v501_v62  ;;  %v536_v43 = vsel %vm472_vm15, %v440_v37, %v504_v28  ;;  %v537_v53 = vsel %vm473_vm0, %v441_v38, %v505_v29  ;;  %v443_v50 = vadd.f32 %v5687_v56, %v363_v11  ;;  %v4747_v28 = vld [vmem:[%s8680_s5 + $0x10] sm:$0xff]  }
  0xa5   : > { %v5893_v17 = vsel %vm5782_vm5, %v532_v48, -1e+30  ;;  %v5897_v36 = vsel %vm5786_vm6, %v533_v49, -1e+30  ;;  %v5901_v46 = vsel %vm5790_vm7, %v536_v43, -1e+30  ;;  %4420 = vmatpush3.bf16.msra.mxu0 %v4747_v28 }
  0xa6   : > { %v8928_v39 = vmov 0  ;;  %v373_v37 = vpop.permute.xlu1 %372  ;;  %v368_v38 = vpop.permute.xlu0 %367  ;;  %v764_v40 = vmax.f32 %v5893_v17, %v5897_v36  ;;  %v5913_v60 = vsel %vm5798_vm9, %v537_v53, -1e+30  ;;  %v8931_v62 = vmov 0 }
  0xa7   : > { %v8929_v39 = vsel %vm5905_vm4, 4294967295, %v8928_v39  ;;  %v8932_v62 = vsel %vm5917_vm8, 4294967295, %v8931_v62  ;;  %v5925_v11 = vsel %vm5881_vm3, 16843009, %v5530_v0  ;;  %v444_v53 = vadd.f32 %v5684_v55, %v368_v38 }
  0xa8   : > { %8930 = vst [vmem:[#allocation17_spill] sm:$0xff] %v8929_v39  ;;  %8933 = vst [vmem:[#allocation18_spill] sm:$0xff] %v8932_v62  ;;  %v445_v51 = vadd.f32 %v5687_v56, %v368_v38  ;;  %vm470_vm10 = vcmp.gt.f32.partialorder %v438_v30, 0.0  ;;  %vm471_vm11 = vcmp.gt.f32.partialorder %v439_v41, 0.0  ;;  %v446_v1 = vadd.f32 %v5684_v55, %v373_v37  ;;  %765 = vmax.xlane.f32.xlu0 %v764_v40 }
  0xa9   : > { %v770_v54 = vmax.f32 %v5901_v46, %v5913_v60  ;;  %v502_v0 = vmul.f32 0.2, %v438_v30  ;;  %v503_v29 = vmul.f32 0.2, %v439_v41  ;;  %v506_v59 = vmul.f32 0.2, %v442_v47 }
  0xaa   : > { %v507_v48 = vmul.f32 0.2, %v443_v50  ;;  %vm5937_vm0 = vcmp.ne.s32.totalorder %v678_v2, 0  ;;  %v8934_v49 = vmov 0  ;;  %vm5943_vm3 = vcmp.ne.s32.totalorder %v679_v3, 0  ;;  %v383_v38 = vpop.permute.xlu1 %382  ;;  %v378_v40 = vpop.permute.xlu0 %377 }
  0xab   : > { %v8935_v49 = vsel %vm5937_vm0, 4294967295, %v8934_v49  ;;  %v8938_v32 = vsel %vm5943_vm3, 4294967295, %v8937_v32  ;;  %v447_v43 = vadd.f32 %v5687_v56, %v373_v37  ;;  %v534_v63 = vsel %vm470_vm10, %v438_v30, %v502_v0 }
  0xac   : > { %8936 = vst [vmem:[#allocation19_spill] sm:$0xff] %v8935_v49  ;;  %8939 = vst [vmem:[#allocation20_spill] sm:$0xff] %v8938_v32  ;;  %v535_v35 = vsel %vm471_vm11, %v439_v41, %v503_v29  ;;  %v508_v34 = vmul.f32 0.2, %v444_v53  ;;  %vm5952_vm15 = vcmp.ne.s32.totalorder %v680_v7, 0  ;;  %v8940_v2 = vmov 0  ;;  %771 = vmax.xlane.f32.xlu0 %v770_v54 }
  0xad   : > { %v8941_v2 = vsel %vm5952_vm15, 4294967295, %v8940_v2  ;;  %vm5958_vm12 = vcmp.ne.s32.totalorder %v681_v15, 0  ;;  %v448_v3 = vadd.f32 %v5684_v55, %v378_v40  ;;  %v449_v30 = vadd.f32 %v5687_v56, %v378_v40 }
  0xae   : > { %8942 = vst [vmem:[#allocation21_spill] sm:$0xff] %v8941_v2  ;;  %v8944_v52 = vsel %vm5958_vm12, 4294967295, %v8943_v52  ;;  %vm476_vm10 = vcmp.gt.f32.partialorder %v444_v53, 0.0  ;;  %v5966_v7 = vsel %vm5856_vm13, %v534_v63, -1e+30  ;;  %vm8946_vm9 = vcmp.gt.f32.partialorder %v442_v47, 0.0  ;;  %v393_v0 = vpop.permute.xlu1 %392  ;;  %v388_v29 = vpop.permute.xlu0 %387 }
  0xaf   : > { %8945 = vst [vmem:[#allocation22_spill] sm:$0xff] %v8944_v52  ;;  %v5970_v41 = vsel %vm5862_vm14, %v535_v35, -1e+30  ;;  %v538_v57 = vsel %vm8946_vm9, %v442_v47, %v506_v59  ;;  %vm8947_vm7 = vcmp.gt.f32.partialorder %v443_v50, 0.0  ;;  %v509_v63 = vmul.f32 0.2, %v445_v51 }
  0xb0   : > { %v539_v15 = vsel %vm8947_vm7, %v443_v50, %v507_v48  ;;  %v767_v37 = vmax.f32 %v5966_v7, %v5970_v41  ;;  %v5978_v28 = vsel %vm5868_vm1, %v538_v57, -1e+30  ;;  %v540_v47 = vsel %vm476_vm10, %v444_v53, %v508_v34 }
  0xb1   : > { %v5982_v54 = vsel %vm5874_vm2, %v539_v15, -1e+30  ;;  %vm5988_vm7 = vcmp.ne.s32.totalorder %v682_v10, 0  ;;  %v8949_v50 = vmov 0  ;;  %vm5994_vm9 = vcmp.ne.s32.totalorder %v683_v18, 0 }
  0xb2   : > { %8948 = vst [vmem:[#allocation23_spill] sm:$0xff] %v5982_v54  ;;  %v773_v35 = vmax.f32 %v5978_v28, %v5982_v54  ;;  %v8950_v50 = vsel %vm5988_vm7, 4294967295, %v8949_v50  ;;  %v8952_v59 = vmov 0  ;;  %v450_v57 = vadd.f32 %v5684_v55, %v383_v38  ;;  %768 = vmax.xlane.f32.xlu1 %v767_v37  ;;  %v403_v37 = vpop.permute.xlu1 %402 }
  0xb3   : > { %8951 = vst [vmem:[#allocation24_spill] sm:$0xff] %v8950_v50  ;;  %v8953_v59 = vsel %vm5994_vm9, 4294967295, %v8952_v59  ;;  %v451_v34 = vadd.f32 %v5687_v56, %v383_v38  ;;  %vm478_vm10 = vcmp.gt.f32.partialorder %v446_v1, 0.0  ;;  %vm479_vm11 = vcmp.gt.f32.partialorder %v447_v43, 0.0 }
  0xb4   : > { %8954 = vst [vmem:[#allocation25_spill] sm:$0xff] %v8953_v59  ;;  %774 = vmax.xlane.f32.xlu0 %v773_v35  ;;  %vm8955_vm2 = vcmp.gt.f32.partialorder %v445_v51, 0.0  ;;  %v6005_v4 = vsel %vm5905_vm4, %v540_v47, -1e+30  ;;  %v510_v18 = vmul.f32 0.2, %v446_v1  ;;  %v6026_v33 = vadd.f32 %v5684_v55, %v393_v0 }
  0xb5   : > { %v541_v10 = vsel %vm8955_vm2, %v445_v51, %v509_v63  ;;  %8956 = vst [vmem:[#allocation26_spill] sm:$0xff] %v6005_v4  ;;  %v511_v53 = vmul.f32 0.2, %v447_v43  ;;  %vm480_vm1 = vcmp.gt.f32.partialorder %v448_v3, 0.0  ;;  %vm481_vm14 = vcmp.gt.f32.partialorder %v449_v30, 0.0  ;;  %v398_v63 = vpop.permute.xlu0 %397 }
  0xb6   : > { %v6009_v15 = vsel %vm5917_vm8, %v541_v10, -1e+30  ;;  %v512_v40 = vmul.f32 0.2, %v448_v3  ;;  %vm6013_vm13 = vcmp.ne.s32.totalorder %v684_v21, 0  ;;  %v8958_v38 = vmov 0 }
  0xb7   : > { %8957 = vst [vmem:[#allocation27_spill] sm:$0xff] %v6009_v15  ;;  %v8959_v38 = vsel %vm6013_vm13, 4294967295, %v8958_v38  ;;  %v776_v51 = vmax.f32 %v6005_v4, %v6009_v15  ;;  %v542_v35 = vsel %vm478_vm10, %v446_v1, %v510_v18  ;;  %v543_v47 = vsel %vm479_vm11, %v447_v43, %v511_v53 }
  0xb8   : > { %8960 = vst [vmem:[#allocation28_spill] sm:$0xff] %v8959_v38  ;;  %v513_v48 = vmul.f32 0.2, %v449_v30  ;;  %vm6021_vm2 = vcmp.ne.s32.totalorder %v685_v22, 0  ;;  %v8961_v10 = vmov 0  ;;  %v452_v21 = vadd.f32 %v5684_v55, %v388_v29 }
  0xb9   : > { %v8962_v10 = vsel %vm6021_vm2, 4294967295, %v8961_v10  ;;  %v453_v26 = vadd.f32 %v5687_v56, %v388_v29  ;;  %777 = vmax.xlane.f32.xlu1 %v776_v51  ;;  %v6033_v1 = vsel %vm5937_vm0, %v542_v35, -1e+30  ;;  %v6037_v8 = vsel %vm5943_vm3, %v543_v47, -1e+30 }
  0xba   : > { %8963 = vst [vmem:[#allocation29_spill] sm:$0xff] %v8962_v10  ;;  %8964 = vst [vmem:[#allocation30_spill] sm:$0xff] %v6033_v1  ;;  %v544_v22 = vsel %vm480_vm1, %v448_v3, %v512_v40  ;;  %v545_v43 = vsel %vm481_vm14, %v449_v30, %v513_v48  ;;  %vm6043_vm11 = vcmp.ne.s32.totalorder %v686_v23, 0  ;;  %v8966_v18 = vmov 0  ;;  %v413_v30 = vpop.permute.xlu1 %412 }
  0xbb   : > { %8965 = vst [vmem:[#allocation31_spill] sm:$0xff] %v6037_v8  ;;  %v8967_v18 = vsel %vm6043_vm11, 4294967295, %v8966_v18  ;;  %v779_v29 = vmax.f32 %v6033_v1, %v6037_v8  ;;  %v6051_v53 = vsel %vm5952_vm15, %v544_v22, -1e+30  ;;  %v6055_v51 = vsel %vm5958_vm12, %v545_v43, -1e+30 }
  0xbc   : > { %8968 = vst [vmem:[#allocation32_spill] sm:$0xff] %v8967_v18  ;;  %8969 = vst [vmem:[#allocation33_spill] sm:$0xff] %v6051_v53  ;;  %vm6059_vm14 = vcmp.ne.s32.totalorder %v687_v24, 0  ;;  %v8971_v3 = vmov 0  ;;  %v782_v23 = vmax.f32 %v6051_v53, %v6055_v51  ;;  %vm483_vm10 = vcmp.gt.f32.partialorder %v451_v34, 0.0 }
  0xbd   : > { %8970 = vst [vmem:[#allocation34_spill] sm:$0xff] %v6055_v51  ;;  %v8972_v3 = vsel %vm6059_vm14, 4294967295, %v8971_v3  ;;  %v514_v48 = vmul.f32 0.2, %v450_v57  ;;  %v515_v40 = vmul.f32 0.2, %v451_v34  ;;  %v8974_v35 = vunpack.c.0.s8 %v5796_v16  ;;  %780 = vmax.xlane.f32.xlu0 %v779_v29 }
  0xbe   : > { %8973 = vst [vmem:[#allocation35_spill] sm:$0xff] %v8972_v3  ;;  %v8975_v47 = vmov 0  ;;  %v8978_v22 = vunpack.c.1.s8 %v5796_v16  ;;  %v455_v24 = vadd.f32 %v5687_v56, %v393_v0  ;;  %v6079_v43 = vadd.f32 %v5684_v55, %v403_v37  ;;  %783 = vmax.xlane.f32.xlu1 %v782_v23 }
  0xbf   : > { %vm6067_vm3 = vcmp.ne.s32.totalorder %v8974_v35, 0  ;;  %v6082_v25 = vadd.f32 %v5687_v56, %v403_v37  ;;  %v456_v51 = vadd.f32 %v5684_v55, %v398_v63  ;;  %v408_v35 = vpop.permute.xlu0 %407  ;;  %vm8982_vm0 = vcmp.gt.f32.partialorder %v450_v57, 0.0 }
  0xc0   : > { %v8976_v47 = vsel %vm6067_vm3, 4294967295, %v8975_v47  ;;  %vm6073_vm1 = vcmp.ne.s32.totalorder %v8978_v22, 0  ;;  %v546_v53 = vsel %vm8982_vm0, %v450_v57, %v514_v48  ;;  %v547_v16 = vsel %vm483_vm10, %v451_v34, %v515_v40 }
  0xc1   : > { %8977 = vst [vmem:[#allocation36_spill] sm:$0xff] %v8976_v47  ;;  %v8980_v9 = vsel %vm6073_vm1, 4294967295, %v8979_v9  ;;  %vm484_vm12 = vcmp.gt.f32.partialorder %v452_v21, 0.0  ;;  %v457_v22 = vadd.f32 %v5687_v56, %v398_v63  ;;  %v6089_v0 = vsel %vm5988_vm7, %v546_v53, -1e+30 }
  0xc2   : > { %8981 = vst [vmem:[#allocation37_spill] sm:$0xff] %v8980_v9  ;;  %8983 = vst [vmem:[#allocation38_spill] sm:$0xff] %v6089_v0  ;;  %v6093_v37 = vsel %vm5994_vm9, %v547_v16, -1e+30  ;;  %v516_v8 = vmul.f32 0.2, %v452_v21  ;;  %v6096_v29 = vadd.f32 %v5684_v55, %v413_v30  ;;  %v6099_v23 = vadd.f32 %v5687_v56, %v413_v30 }
  0xc3   : > { %8984 = vst [vmem:[#allocation39_spill] sm:$0xff] %v6093_v37  ;;  %v785_v57 = vmax.f32 %v6089_v0, %v6093_v37  ;;  %v517_v34 = vmul.f32 0.2, %v453_v26  ;;  %v8985_v63 = vunpack.c.0.s8 %v5807_v19  ;;  %v8986_v53 = vmov 0 }
  0xc4   : > { %v8989_v48 = vunpack.c.1.s8 %v5807_v19  ;;  %v8990_v40 = vmov 0  ;;  %v460_v16 = vadd.f32 %v5684_v55, %v408_v35  ;;  %v461_v30 = vadd.f32 %v5687_v56, %v408_v35 }
  0xc5   : > { %vm6105_vm0 = vcmp.ne.s32.totalorder %v8985_v63, 0  ;;  %v548_v1 = vsel %vm484_vm12, %v452_v21, %v516_v8  ;;  %v8993_v37 = vunpack.c.0.s8 %v5812_v20  ;;  %v8994_v63 = vmov 0  ;;  %v4749_v21 = vld [vmem:[%s8680_s5 + $0x18] sm:$0xff]   ;;  %786 = vmax.xlane.f32.xlu0 %v785_v57 }
  0xc6   : > { %v8987_v53 = vsel %vm6105_vm0, 4294967295, %v8986_v53  ;;  %vm6111_vm10 = vcmp.ne.s32.totalorder %v8989_v48, 0  ;;  %v8997_v0 = vunpack.c.1.s8 %v5812_v20  ;;  %v8998_v19 = vmov 0  ;;  %v4748_v48 = vld [vmem:[%s8680_s5 + $0x58] sm:$0xff]   ;;  %v423_v20 = vpop.permute.xlu1 %422 }
  0xc7   : > { %8988 = vst [vmem:[#allocation40_spill] sm:$0xff] %v8987_v53  ;;  %v8991_v40 = vsel %vm6111_vm10, 4294967295, %v8990_v40  ;;  %vm6120_vm9 = vcmp.ne.s32.totalorder %v8993_v37, 0  ;;  %vm9001_vm12 = vcmp.gt.f32.partialorder %v453_v26, 0.0  ;;  %v6139_v35 = vsel %vm6013_vm13, %v548_v1, -1e+30  ;;  %4421 = vmatprep.subr.bf16.mxu0 %v4748_v48 }
  0xc8   : > { %8992 = vst [vmem:[#allocation41_spill] sm:$0xff] %v8991_v40  ;;  %v8995_v63 = vsel %vm6120_vm9, 4294967295, %v8994_v63  ;;  %vm6126_vm7 = vcmp.ne.s32.totalorder %v8997_v0, 0  ;;  %v549_v8 = vsel %vm9001_vm12, %v453_v26, %v517_v34  ;;  %9002 = vst [vmem:[#allocation44_spill] sm:$0xff] %v6139_v35  ;;  %vm487_vm15 = vcmp.gt.f32.partialorder %v455_v24, 0.0  ;;  %4422 = vmatpush3.bf16.msra.mxu0 %v4749_v21 }
  0xc9   : > { %8996 = vst [vmem:[#allocation42_spill] sm:$0xff] %v8995_v63  ;;  %v8999_v19 = vsel %vm6126_vm7, 4294967295, %v8998_v19  ;;  %v518_v0 = vmul.f32 0.2, %v6026_v33  ;;  %v6144_v37 = vsel %vm6021_vm2, %v549_v8, -1e+30  ;;  %v6152_v4 = vadd.f32 %v5684_v55, %v423_v20 }
  0xca   : > { %9000 = vst [vmem:[#allocation43_spill] sm:$0xff] %v8999_v19  ;;  %9003 = vst [vmem:[#allocation45_spill] sm:$0xff] %v6144_v37  ;;  %v519_v15 = vmul.f32 0.2, %v455_v24  ;;  %vm488_vm8 = vcmp.gt.f32.partialorder %v456_v51, 0.0  ;;  %v788_v57 = vmax.f32 %v6139_v35, %v6144_v37  ;;  %vm9004_vm12 = vcmp.gt.f32.partialorder %v6026_v33, 0.0 }
  0xcb   : > { %v550_v26 = vsel %vm9004_vm12, %v6026_v33, %v518_v0  ;;  %v520_v1 = vmul.f32 0.2, %v456_v51  ;;  %v521_v34 = vmul.f32 0.2, %v457_v22  ;;  %v6155_v8 = vadd.f32 %v5687_v56, %v423_v20  ;;  %v418_v20 = vpop.permute.xlu0 %417 }
  0xcc   : > { %v551_v54 = vsel %vm487_vm15, %v455_v24, %v519_v15  ;;  %v6159_v48 = vsel %vm6043_vm11, %v550_v26, -1e+30  ;;  %v9006_v37 = vunpack.c.0.s8 %v5821_v27  ;;  %v9007_v35 = vmov 0  ;;  %789 = vmax.xlane.f32.xlu1 %v788_v57 }
  0xcd   : > { %9005 = vst [vmem:[#allocation46_spill] sm:$0xff] %v6159_v48  ;;  %v9010_v33 = vunpack.c.1.s8 %v5821_v27  ;;  %v9011_v21 = vmov 0  ;;  %v6175_v15 = vsel %vm6059_vm14, %v551_v54, -1e+30  ;;  %v552_v24 = vsel %vm488_vm8, %v456_v51, %v520_v1 }
  0xce   : > { %vm6163_vm4 = vcmp.ne.s32.totalorder %v9006_v37, 0  ;;  %9014 = vst [vmem:[#allocation49_spill] sm:$0xff] %v6175_v15  ;;  %vm9015_vm15 = vcmp.gt.f32.partialorder %v457_v22, 0.0  ;;  %v9016_v37 = vunpack.c.0.s8 %v5849_v58  ;;  %v9017_v27 = vmov 0 }
  0xcf   : > { %v9008_v35 = vsel %vm6163_vm4, 4294967295, %v9007_v35  ;;  %vm6169_vm12 = vcmp.ne.s32.totalorder %v9010_v33, 0  ;;  %v553_v0 = vsel %vm9015_vm15, %v457_v22, %v521_v34  ;;  %v9020_v26 = vunpack.c.1.s8 %v5849_v58  ;;  %v4750_v33 = vld [vmem:[%s8680_s5 + $0x60] sm:$0xff]  }
  0xd0   : > { %9009 = vst [vmem:[#allocation47_spill] sm:$0xff] %v9008_v35  ;;  %v9012_v21 = vsel %vm6169_vm12, 4294967295, %v9011_v21  ;;  %vm6182_vm2 = vcmp.ne.s32.totalorder %v9016_v37, 0  ;;  %v9021_v57 = vmov 0  ;;  %v791_v54 = vmax.f32 %v6159_v48, %v6175_v15  ;;  %4423 = vmatprep.subr.bf16.mxu0 %v4750_v33  ;;  %v4753_v33 = vld [vmem:[%s8680_s5 + $0x28] sm:$0xff]  }
  0xd1   : > { %9013 = vst [vmem:[#allocation48_spill] sm:$0xff] %v9012_v21  ;;  %v9018_v27 = vsel %vm6182_vm2, 4294967295, %v9017_v27  ;;  %vm6188_vm13 = vcmp.ne.s32.totalorder %v9020_v26, 0  ;;  %v6196_v51 = vsel %vm6067_vm3, %v552_v24, -1e+30  ;;  %vm491_vm8 = vcmp.gt.f32.partialorder %v6082_v25, 0.0 }
  0xd2   : > { %9019 = vst [vmem:[#allocation50_spill] sm:$0xff] %v9018_v27  ;;  %v9022_v57 = vsel %vm6188_vm13, 4294967295, %v9021_v57  ;;  %9024 = vst [vmem:[#allocation52_spill] sm:$0xff] %v6196_v51  ;;  %v6200_v22 = vsel %vm6073_vm1, %v553_v0, -1e+30  ;;  %v464_v24 = vadd.f32 %v5684_v55, %v418_v20  ;;  %792 = vmax.xlane.f32.xlu0 %v791_v54  ;;  %vm493_vm11 = vcmp.gt.f32.partialorder %v461_v30, 0.0 }
  0xd3   : > { %9023 = vst [vmem:[#allocation51_spill] sm:$0xff] %v9022_v57  ;;  %9025 = vst [vmem:[#allocation53_spill] sm:$0xff] %v6200_v22  ;;  %v794_v58 = vmax.f32 %v6196_v51, %v6200_v22  ;;  %v522_v1 = vmul.f32 0.2, %v6079_v43  ;;  %v523_v34 = vmul.f32 0.2, %v6082_v25  ;;  %v465_v26 = vadd.f32 %v5687_v56, %v418_v20 }
  0xd4   : > { %v524_v0 = vmul.f32 0.2, %v460_v16  ;;  %v525_v37 = vmul.f32 0.2, %v461_v30  ;;  %vm9026_vm14 = vcmp.gt.f32.partialorder %v6079_v43, 0.0  ;;  %vm494_vm15 = vcmp.gt.f32.partialorder %v6096_v29, 0.0 }
  0xd5   : > { %795 = vmax.xlane.f32.xlu1 %v794_v58  ;;  %v554_v22 = vsel %vm9026_vm14, %v6079_v43, %v522_v1  ;;  %v555_v51 = vsel %vm491_vm8, %v6082_v25, %v523_v34  ;;  %v9027_v15 = vunpack.c.0.s8 %v5925_v11  ;;  %v9028_v48 = vmov 0  ;;  %v4751_v55 = vld [vmem:[%s8680_s5 + $0x20] sm:$0xff]   ;;  %v9081_v19 = vld [vmem:[#allocation45_spill] sm:$0xff] }
  0xd6   : > { %v6228_v56 = vsel %vm6105_vm0, %v554_v22, -1e+30  ;;  %v6232_v43 = vsel %vm6111_vm10, %v555_v51, -1e+30  ;;  %vm9031_vm14 = vcmp.gt.f32.partialorder %v460_v16, 0.0  ;;  %v557_v20 = vsel %vm493_vm11, %v461_v30, %v525_v37  ;;  %4424 = vmatpush3.bf16.msra.mxu0 %v4751_v55  ;;  %v4752_v22 = vld [vmem:[%s8680_s5 + $0x68] sm:$0xff]  }
  0xd7   : > { %vm6219_vm1 = vcmp.ne.s32.totalorder %v9027_v15, 0  ;;  %v556_v25 = vsel %vm9031_vm14, %v460_v16, %v524_v0  ;;  %v797_v15 = vmax.f32 %v6228_v56, %v6232_v43  ;;  %v6243_v58 = vsel %vm6126_vm7, %v557_v20, -1e+30  ;;  %4425 = vmatprep.subr.bf16.mxu0 %v4752_v22  ;;  %v4754_v22 = vld [vmem:[%s8680_s5 + $0x70] sm:$0xff]  }
  0xd8   : > { %v9029_v48 = vsel %vm6219_vm1, 4294967295, %v9028_v48  ;;  %v6239_v54 = vsel %vm6120_vm9, %v556_v25, -1e+30  ;;  %9033 = vst [vmem:[#allocation56_spill] sm:$0xff] %v6243_v58  ;;  %vm495_vm8 = vcmp.gt.f32.partialorder %v6099_v23, 0.0  ;;  %vm496_vm11 = vcmp.gt.f32.partialorder %v464_v24, 0.0 }
  0xd9   : > { %9030 = vst [vmem:[#allocation54_spill] sm:$0xff] %v9029_v48  ;;  %9032 = vst [vmem:[#allocation55_spill] sm:$0xff] %v6239_v54  ;;  %v800_v51 = vmax.f32 %v6239_v54, %v6243_v58  ;;  %v526_v16 = vmul.f32 0.2, %v6096_v29  ;;  %v527_v30 = vmul.f32 0.2, %v6099_v23  ;;  %798 = vmax.xlane.f32.xlu0 %v797_v15  ;;  %v9034_v55 = vunpack.c.1.s8 %v5925_v11 }
  0xda   : > { %vm497_vm14 = vcmp.gt.f32.partialorder %v465_v26, 0.0  ;;  %v528_v1 = vmul.f32 0.2, %v464_v24  ;;  %v529_v34 = vmul.f32 0.2, %v465_v26  ;;  %vm498_vm10 = vcmp.gt.f32.partialorder %v6152_v4, 0.0  ;;  %4426 = vmatpush3.bf16.msra.mxu0 %v4753_v33 }
  0xdb   : > { %801 = vmax.xlane.f32.xlu1 %v800_v51  ;;  %v558_v0 = vsel %vm494_vm15, %v6096_v29, %v526_v16  ;;  %v559_v37 = vsel %vm495_vm8, %v6099_v23, %v527_v30  ;;  %vm6263_vm0 = vcmp.ne.s32.totalorder %v9034_v55, 0  ;;  %v9035_v25 = vmov 0  ;;  %4427 = vmatprep.subr.bf16.mxu0 %v4754_v22  ;;  %v4354_v22 = vld [vmem:[%s8677_s2 + $0x1] ss:$4 sm:$0x3] }
  0xdc   : > { %v9036_v25 = vsel %vm6263_vm0, 4294967295, %v9035_v25  ;;  %v6269_v20 = vsel %vm6163_vm4, %v558_v0, -1e+30  ;;  %v6273_v15 = vsel %vm6169_vm12, %v559_v37, -1e+30  ;;  %v560_v29 = vsel %vm496_vm11, %v464_v24, %v528_v1  ;;  %v4755_v1 = vld [vmem:[%s8680_s5 + $0x30] sm:$0xff]  }
  0xdd   : > { %9037 = vst [vmem:[#allocation57_spill] sm:$0xff] %v9036_v25  ;;  %9038 = vst [vmem:[#allocation58_spill] sm:$0xff] %v6269_v20  ;;  %v561_v51 = vsel %vm497_vm14, %v465_v26, %v529_v34  ;;  %v803_v23 = vmax.f32 %v6269_v20, %v6273_v15  ;;  %v6279_v11 = vsel %vm6182_vm2, %v560_v29, -1e+30  ;;  %vm499_vm15 = vcmp.gt.f32.partialorder %v6155_v8, 0.0  ;;  %v1387_v29 = vpop.permute.xlu1 %1386 }
  0xde   : > { %9039 = vst [vmem:[#allocation59_spill] sm:$0xff] %v6273_v15  ;;  %9040 = vst [vmem:[#allocation60_spill] sm:$0xff] %v6279_v11  ;;  %v6283_v16 = vsel %vm6188_vm13, %v561_v51, -1e+30  ;;  %v530_v24 = vmul.f32 0.2, %v6152_v4  ;;  %4428 = vmatpush3.bf16.msra.mxu0 %v4755_v1 }
  0xdf   : > { %9041 = vst [vmem:[#allocation61_spill] sm:$0xff] %v6283_v16  ;;  %v806_v30 = vmax.f32 %v6279_v11, %v6283_v16  ;;  %v531_v26 = vmul.f32 0.2, %v6155_v8  ;;  %804 = vmax.xlane.f32.xlu0 %v803_v23  ;;  %v5448_v1 = vld [vmem:[%s5640_s19 + $0x70] sm:$0xff] }
  0xe0   : > { %v562_v34 = vsel %vm498_vm10, %v6152_v4, %v530_v24  ;;  %v4756_v4 = vld [vmem:[%s8680_s5 + $0x78] sm:$0xff]  }
  0xe1   : > { %807 = vmax.xlane.f32.xlu1 %v806_v30  ;;  %v563_v33 = vsel %vm499_vm15, %v6155_v8, %v531_v26  ;;  %v6302_v0 = vsel %vm6219_vm1, %v562_v34, -1e+30  ;;  %v4757_v8 = vld [vmem:[%s8680_s5 + $0x38] sm:$0xff]   ;;  %4429 = vmatprep.subr.bf16.mxu0 %v4756_v4  ;;  %v1395_v51 = vpop.permute.xlu1 %1394  ;;  %v5446_v30 = vld [vmem:[%s5640_s19 + $0x68] sm:$0xff]  ;;  %v6323_v34 = vrot.slane %v4354_v22, %v5674_v44  ;;  %v1391_v4 = vpop.permute.xlu0 %1390 }
  0xe2   : > { %9042 = vst [vmem:[#allocation62_spill] sm:$0xff] %v6302_v0  ;;  %v6306_v37 = vsel %vm6263_vm0, %v563_v33, -1e+30  ;;  %4430 = vmatpush3.bf16.msra.mxu0 %v4757_v8  ;;  %v5447_v24 = vld [vmem:[%s5640_s19 + $0x78] sm:$0xff]  ;;  %v6326_v33 = vrot.slane %v4354_v22, %v5676_v45 }
  0xe3   : > { %9043 = vst [vmem:[#allocation63_spill] sm:$0xff] %v6306_v37  ;;  %v809_v55 = vmax.f32 %v6302_v0, %v6306_v37  ;;  %v1460_v8 = vadd.f32 %v6323_v34, %v1387_v29  ;;  %v1464_v25 = vadd.f32 %v6323_v34, %v1395_v51 }
  0xe4   : > { %v1463_v57 = vadd.f32 %v6326_v33, %v1391_v4  ;;  %v1465_v44 = vadd.f32 %v6326_v33, %v1395_v51 }
  0xe5   : > { %810 = vmax.xlane.f32.xlu0 %v809_v55  ;;  %v1399_v23 = vpop.permute.xlu1 %1398  ;;  %vm1492_vm10 = vcmp.gt.f32.partialorder %v1460_v8, 0.0  ;;  %v1528_v37 = vmul.f32 0.2, %v1464_v25  ;;  %vm1496_vm15 = vcmp.gt.f32.partialorder %v1464_v25, 0.0 }
  0xe6   : > { %v1527_v45 = vmul.f32 0.2, %v1463_v57  ;;  %vm1495_vm14 = vcmp.gt.f32.partialorder %v1463_v57, 0.0  ;;  %v1529_v15 = vmul.f32 0.2, %v1465_v44  ;;  %v1466_v51 = vadd.f32 %v6323_v34, %v1399_v23 }
  0xe7   : > { %v1467_v20 = vadd.f32 %v6326_v33, %v1399_v23  ;;  %vm1497_vm13 = vcmp.gt.f32.partialorder %v1465_v44, 0.0  ;;  %v8772_v23 = vmov 2  }
  0xe8   : > { %v1559_v58 = vsel %vm1495_vm14, %v1463_v57, %v1527_v45  ;;  %v1560_v57 = vsel %vm1496_vm15, %v1464_v25, %v1528_v37  ;;  %vm9049_vm15 = vnez %v8907_v14 }
  0xe9   : > { %v1403_v26 = vpop.permute.xlu1 %1402  ;;  %v1531_v37 = vmul.f32 0.2, %v1467_v20 }
  0xea   : > { %v1468_v21 = vadd.f32 %v6323_v34, %v1403_v26 }
  0xed   : > { %v1407_v55 = vpop.permute.xlu1 %1406 }
  0xee   : > { %v6339_v54 = vadd.f32 %v6323_v34, %v1407_v55  ;;  %v1471_v12 = vadd.f32 %v6326_v33, %v1407_v55 }
  0xf1   : > { %v1411_v27 = vpop.permute.xlu1 %1410 }
  0xf2   : > { %1438 = vperm.xlu1 %4721, %v5446_v30   ;;  %v1461_v30 = vadd.f32 %v6326_v33, %v1387_v29  ;;  %v1469_v29 = vadd.f32 %v6326_v33, %v1403_v26 }
  0xf4   : > { %v1525_v48 = vmul.f32 0.2, %v1461_v30  ;;  %vm1493_vm8 = vcmp.gt.f32.partialorder %v1461_v30, 0.0  ;;  %vm1501_vm14 = vcmp.gt.f32.partialorder %v1469_v29, 0.0 }
  0xf5   : > { %v1415_v0 = vpop.permute.xlu1 %1414 }
  0xf6   : > { %1446 = vperm.xlu1 %4721, %v5447_v24   ;;  %v1462_v24 = vadd.f32 %v6323_v34, %v1391_v4  ;;  %v1427_v4 = vpop.permute.xlu0 %1426  ;;  %v1557_v16 = vsel %vm1493_vm8, %v1461_v30, %v1525_v48  ;;  %v1472_v48 = vadd.f32 %v6323_v34, %v1411_v27  ;;  %vm9047_vm8 = vnez %v8918_v6 }
  0xf7   : > { %v6351_v30 = vsel %vm5786_vm6, %v1557_v16, -1e+30  ;;  %v1473_v16 = vadd.f32 %v6326_v33, %v1411_v27  ;;  %vm1498_vm6 = vcmp.gt.f32.partialorder %v1466_v51, 0.0 }
  0xf8   : > { %v1526_v22 = vmul.f32 0.2, %v1462_v24  ;;  %vm1494_vm11 = vcmp.gt.f32.partialorder %v1462_v24, 0.0  ;;  %9045 = vst [vmem:[#allocation65_spill] sm:$0xff] %v6351_v30  ;;  %v1536_v6 = vmul.f32 0.2, %v1472_v48 }
  0xf9   : > { %v1419_v13 = vpop.permute.xlu1 %1418  ;;  %v1537_v14 = vmul.f32 0.2, %v1473_v16 }
  0xfa   : > { %v1558_v11 = vsel %vm1494_vm11, %v1462_v24, %v1526_v22  ;;  %4723 = vset.pattern.permute.xlu1 %v8772_v23  ;;  %v1561_v24 = vsel %vm1497_vm13, %v1465_v44, %v1529_v15  ;;  %v1533_v22 = vmul.f32 0.2, %v1469_v29  ;;  %vm1500_vm11 = vcmp.gt.f32.partialorder %v1468_v21, 0.0 }
  0xfb   : > { %1442 = vperm.xlu0 %4722, %v5448_v1   ;;  %v1524_v1 = vmul.f32 0.2, %v1460_v8  ;;  %v1530_v44 = vmul.f32 0.2, %v1466_v51  ;;  %vm9050_vm13 = vnez %v8910_v61 }
  0xfc   : > { %v6377_v27 = vsel %vm9050_vm13, %v1561_v24, -1e+30  ;;  %v1565_v23 = vsel %vm1501_vm14, %v1469_v29, %v1533_v22  ;;  %vm1505_vm13 = vcmp.gt.f32.partialorder %v1473_v16, 0.0  ;;  %vm9053_vm14 = vnez %v8932_v62 }
  0xfd   : > { %v1556_v35 = vsel %vm1492_vm10, %v1460_v8, %v1524_v1  ;;  %v6346_v8 = vadd.f32 %v6323_v34, %v1427_v4  ;;  %vm9046_vm10 = vnez %v8915_v5  ;;  %v1532_v1 = vmul.f32 0.2, %v1468_v21  ;;  %9051 = vst [vmem:[#allocation67_spill] sm:$0xff] %v6377_v27  ;;  %v1435_v5 = vpop.permute.xlu0 %1434  ;;  %v1423_v22 = vpop.permute.xlu1 %1422 }
  0xfe   : > { %v6343_v26 = vsel %vm5782_vm5, %v1556_v35, -1e+30  ;;  %v6355_v45 = vsel %vm9046_vm10, %v1558_v11, -1e+30  ;;  %v6360_v35 = vsel %vm9047_vm8, %v1559_v58, -1e+30  ;;  %v6371_v58 = vadd.f32 %v6326_v33, %v1427_v4 }
  0xff   : > { %9044 = vst [vmem:[#allocation64_spill] sm:$0xff] %v6343_v26  ;;  %9048 = vst [vmem:[#allocation66_spill] sm:$0xff] %v6360_v35  ;;  %v1620_v25 = vmax.f32 %v6343_v26, %v6351_v30  ;;  %v6368_v11 = vsel %vm9049_vm15, %v1560_v57, -1e+30  ;;  %v1623_v15 = vmax.f32 %v6355_v45, %v6360_v35  ;;  %v1564_v55 = vsel %vm1500_vm11, %v1468_v21, %v1532_v1 }
 0x100   : > { %vm1499_vm5 = vcmp.gt.f32.partialorder %v1467_v20, 0.0  ;;  %v6380_v57 = vadd.f32 %v6323_v34, %v1415_v0  ;;  %v6383_v4 = vadd.f32 %v6326_v33, %v1415_v0  ;;  %vm1504_vm15 = vcmp.gt.f32.partialorder %v1472_v48, 0.0 }
 0x101   : > { %v1476_v30 = vadd.f32 %v6323_v34, %v1419_v13  ;;  %v1626_v24 = vmax.f32 %v6368_v11, %v6377_v27  ;;  %v1562_v61 = vsel %vm1498_vm6, %v1466_v51, %v1530_v44  ;;  %v1477_v21 = vadd.f32 %v6326_v33, %v1419_v13 }
 0x102   : > { %vm9052_vm11 = vnez %v8929_v39  ;;  %v6395_v0 = vsel %vm9053_vm14, %v1565_v23, -1e+30  ;;  %v1563_v1 = vsel %vm1499_vm5, %v1467_v20, %v1531_v37  ;;  %v1568_v26 = vsel %vm1504_vm15, %v1472_v48, %v1536_v6 }
 0x103   : > { %v6391_v29 = vsel %vm9052_vm11, %v1564_v55, -1e+30  ;;  %v6398_v35 = vadd.f32 %v6323_v34, %v1435_v5  ;;  %v1534_v27 = vmul.f32 0.2, %v6339_v54  ;;  %vm9054_vm6 = vnez %v8921_v42  ;;  %v5464_v42 = vld [vmem:[%s5640_s19 + $0x70] sm:$0xff] }
 0x104   : > { %v6403_v51 = vsel %vm9054_vm6, %v1562_v61, -1e+30  ;;  %v1569_v13 = vsel %vm1505_vm13, %v1473_v16, %v1537_v14  ;;  %vm1502_vm11 = vcmp.gt.f32.partialorder %v6339_v54, 0.0  ;;  %v1535_v44 = vmul.f32 0.2, %v1471_v12 }
 0x105   : > { %v8788_v55 = vmov 3   ;;  %v1632_v20 = vmax.f32 %v6391_v29, %v6395_v0  ;;  %vm9055_vm5 = vnez %v8924_v31  ;;  %vm1503_vm15 = vcmp.gt.f32.partialorder %v1471_v12, 0.0 }
 0x106   : > { %4728 = vset.pattern.permute.xlu0 %v8788_v55  ;;  %v6411_v6 = vsel %vm9055_vm5, %v1563_v1, -1e+30  ;;  %v1540_v48 = vmul.f32 0.2, %v1476_v30  ;;  %vm9056_vm14 = vnez %v8941_v2  ;;  %v1485_v14 = vadd.f32 %v6326_v33, %v1435_v5 }
 0x107   : > { %v6415_v61 = vsel %vm9056_vm14, %v1568_v26, -1e+30  ;;  %vm1508_vm13 = vcmp.gt.f32.partialorder %v1476_v30, 0.0  ;;  %v1541_v23 = vmul.f32 0.2, %v1477_v21  ;;  %vm9057_vm6 = vnez %v8944_v52  ;;  %v1431_v52 = vpop.permute.xlu1 %1430 }
 0x108   : > { %v6420_v16 = vsel %vm9057_vm6, %v1569_v13, -1e+30  ;;  %v1566_v37 = vsel %vm1502_vm11, %v6339_v54, %v1534_v27  ;;  %vm1509_vm5 = vcmp.gt.f32.partialorder %v1477_v21, 0.0  ;;  %v1544_v1 = vmul.f32 0.2, %v6346_v8 }
 0x109   : > { %v1629_v55 = vmax.f32 %v6403_v51, %v6411_v6  ;;  %v1567_v26 = vsel %vm1503_vm15, %v1471_v12, %v1535_v44  ;;  %vm1512_vm14 = vcmp.gt.f32.partialorder %v6346_v8, 0.0  ;;  %v1545_v5 = vmul.f32 0.2, %v6371_v58 }
 0x10a   : > { %v1572_v13 = vsel %vm1508_vm13, %v1476_v30, %v1540_v48  ;;  %vm1513_vm6 = vcmp.gt.f32.partialorder %v6371_v58, 0.0  ;;  %v1638_v54 = vmax.f32 %v6415_v61, %v6420_v16  ;;  %vm9058_vm11 = vnez %v8935_v49  ;;  %v9100_v49 = vld [vmem:[#allocation51_spill] sm:$0xff] }
 0x10b   : > { %v6435_v27 = vsel %vm9058_vm11, %v1566_v37, -1e+30  ;;  %v1573_v12 = vsel %vm1509_vm5, %v1477_v21, %v1541_v23  ;;  %v1538_v44 = vmul.f32 0.2, %v6380_v57  ;;  %vm9059_vm15 = vnez %v8938_v32 }
 0x10c   : > { %v6440_v2 = vsel %vm9059_vm15, %v1567_v26, -1e+30  ;;  %vm1506_vm13 = vcmp.gt.f32.partialorder %v6380_v57, 0.0  ;;  %v1539_v30 = vmul.f32 0.2, %v6383_v4  ;;  %v1482_v48 = vadd.f32 %v6323_v34, %v1431_v52 }
 0x10d   : > { %vm9060_vm5 = vnez %v8959_v38  ;;  %vm1507_vm11 = vcmp.gt.f32.partialorder %v6383_v4, 0.0  ;;  %vm9061_vm15 = vnez %v8962_v10  ;;  %v1548_v37 = vmul.f32 0.2, %v6398_v35 }
 0x10e   : > { %v6450_v21 = vsel %vm9060_vm5, %v1572_v13, -1e+30  ;;  %v6457_v23 = vsel %vm9061_vm15, %v1573_v12, -1e+30  ;;  %v1549_v26 = vmul.f32 0.2, %v1485_v14 }
 0x10f   : > { %vm1517_vm5 = vcmp.gt.f32.partialorder %v1485_v14, 0.0  ;;  %v1644_v12 = vmax.f32 %v6450_v21, %v6457_v23  ;;  %v1546_v10 = vmul.f32 0.2, %v1482_v48 }
 0x11a   : > { %1621 = vmax.xlane.f32.xlu0 %v1620_v25  ;;  %1624 = vmax.xlane.f32.xlu1 %v1623_v15  ;;  %v1478_v25 = vadd.f32 %v6323_v34, %v1423_v22  ;;  %v1479_v15 = vadd.f32 %v6326_v33, %v1423_v22  ;;  %v1576_v22 = vsel %vm1512_vm14, %v6346_v8, %v1544_v1  ;;  %vm1516_vm14 = vcmp.gt.f32.partialorder %v6398_v35, 0.0 }
 0x11b   : > { %v1570_v8 = vsel %vm1506_vm13, %v6380_v57, %v1538_v44  ;;  %v6463_v1 = vsel %vm6067_vm3, %v1576_v22, -1e+30  ;;  %v1635_v57 = vmax.f32 %v6435_v27, %v6440_v2  ;;  %v1580_v44 = vsel %vm1516_vm14, %v6398_v35, %v1548_v37 }
 0x11c   : > { %v1543_v13 = vmul.f32 0.2, %v1479_v15  ;;  %vm1510_vm15 = vcmp.gt.f32.partialorder %v1478_v25, 0.0  ;;  %vm1511_vm8 = vcmp.gt.f32.partialorder %v1479_v15, 0.0  ;;  %vm9063_vm13 = vnez %v8950_v50 }
 0x11d   : > { %v6488_v35 = vsel %vm6120_vm9, %v1580_v44, -1e+30 }
 0x11e   : > { %1627 = vmax.xlane.f32.xlu0 %v1626_v24  ;;  %1633 = vmax.xlane.f32.xlu1 %v1632_v20  ;;  %v1577_v24 = vsel %vm1513_vm6, %v6371_v58, %v1545_v5  ;;  %v1483_v20 = vadd.f32 %v6326_v33, %v1431_v52  ;;  %v1571_v52 = vsel %vm1507_vm11, %v6383_v4, %v1539_v30  ;;  %v1542_v5 = vmul.f32 0.2, %v1478_v25 }
 0x11f   : > { %vm9062_vm6 = vnez %v8980_v9  ;;  %v6478_v4 = vsel %vm9063_vm13, %v1570_v8, -1e+30  ;;  %vm9064_vm11 = vnez %v8953_v59  ;;  %9065 = vst [vmem:[#allocation68_spill] sm:$0xff] %v6488_v35  ;;  %v9083_v9 = vld [vmem:[#allocation49_spill] sm:$0xff] }
 0x120   : > { %v6469_v58 = vsel %vm9062_vm6, %v1577_v24, -1e+30  ;;  %v1574_v22 = vsel %vm1510_vm15, %v1478_v25, %v1542_v5  ;;  %v1575_v24 = vsel %vm1511_vm8, %v1479_v15, %v1543_v13  ;;  %v1547_v38 = vmul.f32 0.2, %v1483_v20 }
 0x121   : > { %v1650_v30 = vmax.f32 %v6463_v1, %v6469_v58  ;;  %vm1515_vm14 = vcmp.gt.f32.partialorder %v1483_v20, 0.0  ;;  %vm9067_vm6 = vnez %v8967_v18  ;;  %vm9068_vm8 = vnez %v8972_v3 }
 0x122   : > { %1630 = vmax.xlane.f32.xlu0 %v1629_v55  ;;  %1639 = vmax.xlane.f32.xlu1 %v1638_v54  ;;  %v1581_v55 = vsel %vm1517_vm5, %v1485_v14, %v1549_v26  ;;  %v6482_v54 = vsel %vm9064_vm11, %v1571_v52, -1e+30  ;;  %vm1514_vm5 = vcmp.gt.f32.partialorder %v1482_v48, 0.0  ;;  %v6498_v26 = vsel %vm9067_vm6, %v1574_v22, -1e+30 }
 0x123   : > { %v6492_v14 = vsel %vm6126_vm7, %v1581_v55, -1e+30  ;;  %v1641_v37 = vmax.f32 %v6478_v4, %v6482_v54  ;;  %v6502_v25 = vsel %vm9068_vm8, %v1575_v24, -1e+30  ;;  %v1578_v8 = vsel %vm1514_vm5, %v1482_v48, %v1546_v10 }
 0x124   : > { %9066 = vst [vmem:[#allocation69_spill] sm:$0xff] %v6492_v14  ;;  %v1656_v15 = vmax.f32 %v6488_v35, %v6492_v14  ;;  %v1579_v52 = vsel %vm1515_vm14, %v1483_v20, %v1547_v38  ;;  %v1647_v5 = vmax.f32 %v6498_v26, %v6502_v25  ;;  %vm9069_vm15 = vnez %v8987_v53  ;;  %v9080_v53 = vld [vmem:[#allocation44_spill] sm:$0xff] }
 0x125   : > { %v6510_v13 = vsel %vm9069_vm15, %v1578_v8, -1e+30  ;;  %vm9070_vm7 = vnez %v8991_v40 }
 0x126   : > { %1636 = vmax.xlane.f32.xlu0 %v1635_v57  ;;  %1645 = vmax.xlane.f32.xlu1 %v1644_v12  ;;  %v6514_v57 = vsel %vm9070_vm7, %v1579_v52, -1e+30 }
 0x127   : > { %v1653_v12 = vmax.f32 %v6510_v13, %v6514_v57 }
 0x12a   : > { %1642 = vmax.xlane.f32.xlu0 %v1641_v37  ;;  %1651 = vmax.xlane.f32.xlu1 %v1650_v30 }
 0x12e   : > { %1648 = vmax.xlane.f32.xlu0 %v1647_v5  ;;  %1657 = vmax.xlane.f32.xlu1 %v1656_v15 }
 0x132   : > { %1654 = vmax.xlane.f32.xlu0 %v1653_v12 }
 0x135   : > { %v766_v44 = vpop.xlane.xlu0 %765 }
 0x136   : > { %v812_v38 = vsub.f32 %v5893_v17, %v766_v44  ;;  %v813_v10 = vsub.f32 %v5897_v36, %v766_v44  ;;  %v9071_v36 = vld [vmem:[#allocation23_spill] sm:$0xff] }
 0x138   : > { %v844_v48 = vmul.f32 1.442695, %v812_v38  ;;  %v846_v20 = vmul.f32 1.442695, %v813_v10 }
 0x139   : > { %v772_v55 = vpop.xlane.xlu0 %771 }
 0x13a   : > { %4806 = vpow2.f32 %v844_v48  ;;  %v816_v30 = vsub.f32 %v5901_v46, %v772_v55  ;;  %v817_v22 = vsub.f32 %v5913_v60, %v772_v55  ;;  %v9072_v48 = vld [vmem:[#allocation26_spill] sm:$0xff]  ;;  %v9073_v55 = vld [vmem:[#allocation27_spill] sm:$0xff] }
 0x13b   : > { %4808 = vpow2.f32 %v846_v20 }
 0x13c   : > { %v852_v37 = vmul.f32 1.442695, %v816_v30  ;;  %v854_v15 = vmul.f32 1.442695, %v817_v22 }
 0x13e   : > { %4810 = vpow2.f32 %v852_v37 }
 0x13f   : > { %v769_v24 = vpop.xlane.xlu1 %768  ;;  %4812 = vpow2.f32 %v854_v15  ;;  %v9075_v15 = vld [vmem:[#allocation31_spill] sm:$0xff] }
 0x140   : > { %v814_v8 = vsub.f32 %v5966_v7, %v769_v24  ;;  %v815_v52 = vsub.f32 %v5970_v41, %v769_v24 }
 0x141   : > { %v775_v5 = vpop.xlane.xlu0 %774 }
 0x142   : > { %v818_v17 = vsub.f32 %v5978_v28, %v775_v5  ;;  %v819_v12 = vsub.f32 %v9071_v36, %v775_v5  ;;  %v848_v44 = vmul.f32 1.442695, %v814_v8  ;;  %v850_v38 = vmul.f32 1.442695, %v815_v52  ;;  %v9074_v8 = vld [vmem:[#allocation30_spill] sm:$0xff] }
 0x144   : > { %v856_v46 = vmul.f32 1.442695, %v818_v17  ;;  %v858_v10 = vmul.f32 1.442695, %v819_v12  ;;  %4814 = vpow2.f32 %v848_v44  ;;  %v4807_v41 = vpop.eup %4806  ;;  %v9076_v17 = vld [vmem:[#allocation33_spill] sm:$0xff]  ;;  %v9077_v12 = vld [vmem:[#allocation34_spill] sm:$0xff] }
 0x145   : > { %4816 = vpow2.f32 %v850_v38  ;;  %v4809_v24 = vpop.eup %4808 }
 0x146   : > { %v778_v60 = vpop.xlane.xlu1 %777  ;;  %4818 = vpow2.f32 %v856_v46  ;;  %v6532_v38 = vadd.f32 %v4809_v24, %v4807_v41 }
 0x147   : > { %v820_v20 = vsub.f32 %v9072_v48, %v778_v60  ;;  %v821_v7 = vsub.f32 %v9073_v55, %v778_v60  ;;  %4820 = vpow2.f32 %v858_v10 }
 0x148   : > { %v6534_v60 = vpop.eup %4810 }
 0x149   : > { %v860_v30 = vmul.f32 1.442695, %v820_v20  ;;  %v862_v22 = vmul.f32 1.442695, %v821_v7  ;;  %v4813_v55 = vpop.eup %4812 }
 0x14a   : > { %v781_v28 = vpop.xlane.xlu0 %780 }
 0x14b   : > { %v784_v37 = vpop.xlane.xlu1 %783  ;;  %v822_v52 = vsub.f32 %v9074_v8, %v781_v28  ;;  %v823_v5 = vsub.f32 %v9075_v15, %v781_v28  ;;  %4822 = vpow2.f32 %v860_v30  ;;  %v9078_v8 = vld [vmem:[#allocation38_spill] sm:$0xff]  ;;  %v9079_v30 = vld [vmem:[#allocation39_spill] sm:$0xff] }
 0x14c   : > { %v824_v36 = vsub.f32 %v9076_v17, %v784_v37  ;;  %v825_v44 = vsub.f32 %v9077_v12, %v784_v37  ;;  %4824 = vpow2.f32 %v862_v22  ;;  %v6539_v17 = vadd.f32 %v4813_v55, %v6534_v60 }
 0x14d   : > { %v864_v46 = vmul.f32 1.442695, %v822_v52  ;;  %v866_v20 = vmul.f32 1.442695, %v823_v5 }
 0x14e   : > { %v868_v48 = vmul.f32 1.442695, %v824_v36  ;;  %v870_v10 = vmul.f32 1.442695, %v825_v44  ;;  %v4815_v37 = vpop.eup %4814 }
 0x14f   : > { %4826 = vpow2.f32 %v864_v46  ;;  %v4817_v22 = vpop.eup %4816  ;;  %v972_v36 = vpack.c.bf16 %v4815_v37, %v4807_v41 }
 0x150   : > { %4828 = vpow2.f32 %v868_v48  ;;  %v4819_v44 = vpop.eup %4818  ;;  %v973_v40 = vpack.c.bf16 %v4817_v22, %v4809_v24  ;;  %v6541_v46 = vadd.f32 %v4817_v22, %v4815_v37  ;;  %v9082_v22 = vld [vmem:[#allocation46_spill] sm:$0xff] }
 0x151   : > { %4830 = vpow2.f32 %v870_v10  ;;  %v4821_v48 = vpop.eup %4820 }
 0x152   : > { %v787_v7 = vpop.xlane.xlu0 %786  ;;  %4832 = vpow2.f32 %v866_v20  ;;  %1148 = vmatprep.mubr.bf16.mxu0 %v973_v40  ;;  %v6545_v10 = vadd.f32 %v4821_v48, %v4819_v44  ;;  %v9085_v40 = vld [vmem:[#allocation53_spill] sm:$0xff] }
 0x153   : > { %v826_v28 = vsub.f32 %v9078_v8, %v787_v7  ;;  %v827_v15 = vsub.f32 %v9079_v30, %v787_v7  ;;  %v975_v30 = vpack.c.bf16 %v4821_v48, %v4813_v55  ;;  %1149 = vmatmul.mubr.bf16.vlgmr.msra.gmra.mrb[0].mxu0 %v972_v36 }
 0x155   : > { %v872_v52 = vmul.f32 1.442695, %v826_v28  ;;  %v874_v12 = vmul.f32 1.442695, %v827_v15  ;;  %v6547_v20 = vpop.eup %4822  ;;  %1156 = vmatprep.mubr.bf16.mxu0 %v975_v30 }
 0x156   : > { %v4825_v24 = vpop.eup %4824 }
 0x157   : > { %4834 = vpow2.f32 %v872_v52 }
 0x158   : > { %4836 = vpow2.f32 %v874_v12  ;;  %v6554_v12 = vadd.f32 %v4825_v24, %v6547_v20 }
 0x159   : > { %v790_v5 = vpop.xlane.xlu1 %789 }
 0x15a   : > { %v828_v8 = vsub.f32 %v9080_v53, %v790_v5  ;;  %v829_v7 = vsub.f32 %v9081_v19, %v790_v5  ;;  %v9084_v19 = vld [vmem:[#allocation52_spill] sm:$0xff]  ;;  %v4827_v5 = vpop.eup %4826 }
 0x15c   : > { %v876_v28 = vmul.f32 1.442695, %v828_v8  ;;  %v878_v41 = vmul.f32 1.442695, %v829_v7  ;;  %v6556_v8 = vpop.eup %4828 }
 0x15d   : > { %v4831_v47 = vpop.eup %4830 }
 0x15e   : > { %4838 = vpow2.f32 %v876_v28  ;;  %v4833_v30 = vpop.eup %4832 }
 0x15f   : > { %v793_v15 = vpop.xlane.xlu0 %792  ;;  %4840 = vpow2.f32 %v878_v41 }
 0x160   : > { %v830_v63 = vsub.f32 %v9082_v22, %v793_v15  ;;  %v831_v53 = vsub.f32 %v9083_v9, %v793_v15  ;;  %v974_v9 = vpack.c.bf16 %v4819_v44, %v6534_v60  ;;  %v6568_v44 = vadd.f32 %v4833_v30, %v4827_v5 }
 0x162   : > { %v796_v37 = vpop.xlane.xlu1 %795  ;;  %v880_v48 = vmul.f32 1.442695, %v830_v63  ;;  %v882_v7 = vmul.f32 1.442695, %v831_v53  ;;  %v9086_v63 = vld [vmem:[#allocation55_spill] sm:$0xff]  ;;  %1157 = vmatmul.mubr.bf16.gmra.mrb[4].mxu0 %v974_v9 }
 0x163   : > { %v832_v52 = vsub.f32 %v9084_v19, %v796_v37  ;;  %v833_v55 = vsub.f32 %v9085_v40, %v796_v37  ;;  %v6562_v19 = vadd.f32 %v4831_v47, %v6556_v8  ;;  %v977_v40 = vpack.c.bf16 %v4833_v30, %v4825_v24  ;;  %v9090_v30 = vld [vmem:[#allocation60_spill] sm:$0xff] }
 0x164   : > { %4842 = vpow2.f32 %v880_v48 }
 0x165   : > { %v884_v36 = vmul.f32 1.442695, %v832_v52  ;;  %v886_v22 = vmul.f32 1.442695, %v833_v55  ;;  %v9087_v52 = vld [vmem:[#allocation56_spill] sm:$0xff]  ;;  %v6566_v55 = vpop.eup %4834  ;;  %1164 = vmatprep.mubr.bf16.mxu0 %v977_v40 }
 0x166   : > { %v799_v3 = vpop.xlane.xlu0 %798  ;;  %v4837_v48 = vpop.eup %4836 }
 0x167   : > { %v834_v15 = vsub.f32 %v6228_v56, %v799_v3  ;;  %v835_v37 = vsub.f32 %v6232_v43, %v799_v3  ;;  %4844 = vpow2.f32 %v884_v36 }
 0x168   : > { %v802_v28 = vpop.xlane.xlu1 %801  ;;  %4846 = vpow2.f32 %v882_v7  ;;  %v9089_v7 = vld [vmem:[#allocation59_spill] sm:$0xff]  ;;  %v6575_v9 = vpop.eup %4838 }
 0x169   : > { %v836_v41 = vsub.f32 %v9086_v63, %v802_v28  ;;  %v837_v53 = vsub.f32 %v9087_v52, %v802_v28  ;;  %v888_v60 = vmul.f32 1.442695, %v834_v15  ;;  %4848 = vpow2.f32 %v886_v22  ;;  %v9088_v28 = vld [vmem:[#allocation58_spill] sm:$0xff] }
 0x16a   : > { %v890_v43 = vmul.f32 1.442695, %v835_v37  ;;  %v6571_v63 = vadd.f32 %v4837_v48, %v6566_v55  ;;  %v6579_v37 = vpop.eup %4840 }
 0x16b   : > { %v892_v56 = vmul.f32 1.442695, %v836_v41  ;;  %v894_v3 = vmul.f32 1.442695, %v837_v53  ;;  %4850 = vpow2.f32 %v888_v60  ;;  %v9091_v41 = vld [vmem:[#allocation61_spill] sm:$0xff]  ;;  %v976_v60 = vpack.c.bf16 %v4827_v5, %v6547_v20 }
 0x16c   : > { %v805_v36 = vpop.xlane.xlu0 %804 }
 0x16d   : > { %4852 = vpow2.f32 %v892_v56  ;;  %v838_v52 = vsub.f32 %v9088_v28, %v805_v36  ;;  %v839_v15 = vsub.f32 %v9089_v7, %v805_v36  ;;  %v6584_v28 = vadd.f32 %v6579_v37, %v6575_v9  ;;  %1165 = vmatmul.mubr.bf16.gmra.mrb[8].mxu0 %v976_v60 }
 0x16e   : > { %v808_v24 = vpop.xlane.xlu1 %807  ;;  %4854 = vpow2.f32 %v894_v3  ;;  %v979_v7 = vpack.c.bf16 %v4837_v48, %v4831_v47 }
 0x16f   : > { %v840_v22 = vsub.f32 %v9090_v30, %v808_v24  ;;  %v841_v53 = vsub.f32 %v9091_v41, %v808_v24  ;;  %4856 = vpow2.f32 %v890_v43  ;;  %v896_v40 = vmul.f32 1.442695, %v838_v52  ;;  %v6586_v30 = vpop.eup %4842  ;;  %v9092_v52 = vld [vmem:[#allocation62_spill] sm:$0xff] }
 0x170   : > { %v898_v59 = vmul.f32 1.442695, %v839_v15  ;;  %v9093_v15 = vld [vmem:[#allocation63_spill] sm:$0xff]  ;;  %1172 = vmatprep.mubr.bf16.mxu0 %v979_v7  ;;  %v980_v14 = vpack.c.bf16 %v6586_v30, %v6575_v9 }
 0x171   : > { %v900_v18 = vmul.f32 1.442695, %v840_v22  ;;  %v902_v56 = vmul.f32 1.442695, %v841_v53  ;;  %4858 = vpow2.f32 %v896_v40  ;;  %v6591_v5 = vpop.eup %4844  ;;  %v4758_v9 = vld [vmem:[%s8680_s5 + $0x40] sm:$0xff]  }
 0x172   : > { %v1439_v36 = vpop.permute.xlu1 %1438  ;;  %v811_v3 = vpop.xlane.xlu0 %810 }
 0x173   : > { %4860 = vpow2.f32 %v900_v18  ;;  %v1486_v24 = vadd.f32 %v6323_v34, %v1439_v36  ;;  %v1487_v43 = vadd.f32 %v6326_v33, %v1439_v36  ;;  %v842_v20 = vsub.f32 %v9092_v52, %v811_v3  ;;  %v4847_v41 = vpop.eup %4846 }
 0x174   : > { %4862 = vpow2.f32 %v902_v56  ;;  %v843_v22 = vsub.f32 %v9093_v15, %v811_v3  ;;  %v4849_v47 = vpop.eup %4848  ;;  %v978_v36 = vpack.c.bf16 %v6566_v55, %v6556_v8  ;;  %v6599_v7 = vadd.f32 %v4847_v41, %v6586_v30 }
 0x175   : > { %4864 = vpow2.f32 %v898_v59  ;;  %v904_v53 = vmul.f32 1.442695, %v842_v20  ;;  %vm1518_vm5 = vcmp.gt.f32.partialorder %v1486_v24, 0.0  ;;  %vm1519_vm14 = vcmp.gt.f32.partialorder %v1487_v43, 0.0  ;;  %v4851_v60 = vpop.eup %4850 }
 0x176   : > { %v906_v18 = vmul.f32 1.442695, %v843_v22  ;;  %v1447_v48 = vpop.permute.xlu1 %1446  ;;  %v1550_v40 = vmul.f32 0.2, %v1486_v24  ;;  %v1551_v50 = vmul.f32 0.2, %v1487_v43  ;;  %v981_v15 = vpack.c.bf16 %v4847_v41, %v6579_v37  ;;  %1173 = vmatmul.mubr.bf16.gmra.mrb[12].mxu0 %v978_v36 }
 0x177   : > { %4866 = vpow2.f32 %v904_v53  ;;  %v1490_v56 = vadd.f32 %v6323_v34, %v1447_v48  ;;  %v1491_v3 = vadd.f32 %v6326_v33, %v1447_v48  ;;  %v4853_v59 = vpop.eup %4852  ;;  %v6613_v37 = vadd.f32 %v4849_v47, %v6591_v5 }
 0x178   : > { %4868 = vpow2.f32 %v906_v18  ;;  %v1582_v52 = vsel %vm1518_vm5, %v1486_v24, %v1550_v40  ;;  %v1583_v20 = vsel %vm1519_vm14, %v1487_v43, %v1551_v50  ;;  %v4855_v22 = vpop.eup %4854  ;;  %1180 = vmatprep.mubr.bf16.mxu0 %v981_v15 }
 0x179   : > { %v6604_v39 = vsel %vm6163_vm4, %v1582_v52, -1e+30  ;;  %v6608_v55 = vsel %vm6169_vm12, %v1583_v20, -1e+30  ;;  %vm1522_vm7 = vcmp.gt.f32.partialorder %v1490_v56, 0.0  ;;  %vm1523_vm15 = vcmp.gt.f32.partialorder %v1491_v3, 0.0  ;;  %v4857_v53 = vpop.eup %4856 }
 0x17a   : > { %v1443_v48 = vpop.permute.xlu0 %1442  ;;  %v1659_v18 = vmax.f32 %v6604_v39, %v6608_v55  ;;  %v1554_v24 = vmul.f32 0.2, %v1490_v56  ;;  %v1555_v50 = vmul.f32 0.2, %v1491_v3  ;;  %v6617_v40 = vadd.f32 %v4857_v53, %v4851_v60 }
 0x17b   : > { %v1488_v43 = vadd.f32 %v6323_v34, %v1443_v48  ;;  %v1489_v41 = vadd.f32 %v6326_v33, %v1443_v48  ;;  %v4859_v52 = vpop.eup %4858  ;;  %v6619_v62 = vadd.f32 %v4855_v22, %v4853_v59  ;;  %vm9151_vm12 = vcmask 261120  }
 0x17c   : > { %1660 = vmax.xlane.f32.xlu0 %v1659_v18  ;;  %v1586_v20 = vsel %vm1522_vm7, %v1490_v56, %v1554_v24  ;;  %v1587_v8 = vsel %vm1523_vm15, %v1491_v3, %v1555_v50  ;;  %vm9101_vm7 = vnez %v9100_v49  ;;  %vm8853_vm15 = vcmask 261120  }
 0x17d   : > { %v4861_v32 = vpop.eup %4860  ;;  %v6623_v31 = vsel %vm6219_vm1, %v1586_v20, -1e+30  ;;  %v6627_v34 = vsel %vm6263_vm0, %v1587_v8, -1e+30  ;;  %vm1520_vm5 = vcmp.gt.f32.partialorder %v1488_v43, 0.0  ;;  %vm1521_vm14 = vcmp.gt.f32.partialorder %v1489_v41, 0.0 }
 0x17e   : > { %9098 = vst [vmem:[#allocation23_spill] sm:$0xff] %v6627_v34  ;;  %v4863_v33 = vpop.eup %4862  ;;  %v1665_v36 = vmax.f32 %v6623_v31, %v6627_v34  ;;  %v1552_v56 = vmul.f32 0.2, %v1488_v43  ;;  %v1553_v3 = vmul.f32 0.2, %v1489_v41  ;;  %1181 = vmatmul.mubr.bf16.gmra.mrb[16].mxu0 %v980_v14  ;;  %v5449_v14 = vld [vmem:[%s5640_s19 + $0x8] sm:$0xff] }
 0x17f   : > { %v4865_v15 = vpop.eup %4864  ;;  %v6631_v48 = vadd.f32 %v4863_v33, %v4861_v32 }
 0x180   : > { %1666 = vmax.xlane.f32.xlu0 %v1665_v36  ;;  %v1584_v18 = vsel %vm1520_vm5, %v1488_v43, %v1552_v56  ;;  %v1585_v24 = vsel %vm1521_vm14, %v1489_v41, %v1553_v3  ;;  %v6633_v50 = vadd.f32 %v4865_v15, %v4859_v52  ;;  %v983_v41 = vpack.c.bf16 %v4857_v53, %v4849_v47  ;;  %v5451_v53 = vld [vmem:[%s5640_s19 + $0x10] sm:$0xff] }
 0x181   : > { %v4867_v20 = vpop.eup %4866  ;;  %v6637_v8 = vsel %vm6182_vm2, %v1584_v18, -1e+30  ;;  %v6641_v35 = vsel %vm9101_vm7, %v1585_v24, -1e+30  ;;  %v982_v56 = vpack.c.bf16 %v4851_v60, %v6591_v5  ;;  %v985_v3 = vpack.c.bf16 %v4865_v15, %v4855_v22  ;;  %v4759_v5 = vld [vmem:[%s8680_s5 + $0x48] sm:$0xff]   ;;  %v9104_v24 = vld [vmem:[#allocation66_spill] sm:$0xff] }
 0x182   : > { %v4869_v34 = vpop.eup %4868  ;;  %v1662_v43 = vmax.f32 %v6637_v8, %v6641_v35  ;;  %1188 = vmatprep.mubr.bf16.mxu0 %v983_v41  ;;  %v984_v18 = vpack.c.bf16 %v4859_v52, %v4853_v59  ;;  %v9102_v47 = vmov 3   ;;  %v986_v60 = vpack.c.bf16 %v4867_v20, %v4861_v32  ;;  %v6661_v59 = vld [vmem:[%s5640_s19] sm:$0xff]  ;;  %v5452_v52 = vld [vmem:[%s5640_s19 + $0x18] sm:$0xff]  ;;  %v9106_v41 = vld [vmem:[#allocation65_spill] sm:$0xff] }
 0x183   : > { %v6647_v36 = vadd.f32 %v4869_v34, %v4867_v20  ;;  %v987_v30 = vpack.c.bf16 %v4869_v34, %v4863_v33  ;;  %v9103_v22 = vmov 2   ;;  %v9105_v20 = vld [vmem:[#allocation64_spill] sm:$0xff] }
 0x184   : > { %1663 = vmax.xlane.f32.xlu1 %v1662_v43 }
 0x186   : > { %1189 = vmatmul.mubr.bf16.gmra.mrb[20].mxu0 %v982_v56 }
 0x187   : > { %1196 = vmatprep.mubr.bf16.mxu0 %v985_v3 }
 0x18e   : > { %1197 = vmatmul.mubr.bf16.gmra.mrb[24].mxu0 %v984_v18 }
 0x18f   : > { %1204 = vmatprep.mubr.bf16.mxu0 %v987_v30 }
 0x195   : > { %2342 = vperm.xlu1 %4723, %v5449_v14  }
 0x196   : > { %1972 = vrot.lane.b32.xlu0 %v4758_v9, %s5534_s17  ;;  %1205 = vmatmul.mubr.bf16.gmra.mrb[28].mxu0 %v986_v60 }
 0x199   : > { %4724 = vset.pattern.permute.xlu1 %v9102_v47 }
 0x19a   : > { %1974 = vrot.lane.b32.xlu0 %v4759_v5, %s5534_s17  ;;  %3290 = vperm.xlu1 %4724, %v6661_v59  }
 0x19e   : > { %3294 = vperm.xlu1 %4724, %v5449_v14  }
 0x1a2   : > { %4725 = vset.pattern.permute.xlu1 %v9103_v22 }
 0x1a3   : > { %2346 = vperm.xlu1 %4725, %v5451_v53  }
 0x1a7   : > { %2350 = vperm.xlu1 %4725, %v5452_v52   ;;  %v1625_v34 = vpop.xlane.xlu1 %1624  ;;  %v1622_v33 = vpop.xlane.xlu0 %1621 }
 0x1a8   : > { %v1670_v15 = vsub.f32 %v6355_v45, %v1625_v34  ;;  %v1671_v32 = vsub.f32 %v9104_v24, %v1625_v34  ;;  %v1668_v43 = vsub.f32 %v9105_v20, %v1622_v33  ;;  %v1669_v56 = vsub.f32 %v9106_v41, %v1622_v33  ;;  %v9107_v45 = vld [vmem:[#allocation67_spill] sm:$0xff] }
 0x1aa   : > { %v1704_v3 = vmul.f32 1.442695, %v1670_v15  ;;  %v1706_v18 = vmul.f32 1.442695, %v1671_v32  ;;  %v1700_v9 = vmul.f32 1.442695, %v1668_v43 }
 0x1ab   : > { %v1702_v30 = vmul.f32 1.442695, %v1669_v56  ;;  %4726 = vset.pattern.permute.xlu1 %v9102_v47  ;;  %v6672_v14 = vpop.xlane.xlu1 %1633  ;;  %v1628_v5 = vpop.xlane.xlu0 %1627 }
 0x1ac   : > { %4870 = vpow2.f32 %v1704_v3  ;;  %3298 = vperm.xlu1 %4726, %v5451_v53   ;;  %v1672_v60 = vsub.f32 %v6368_v11, %v1628_v5  ;;  %v1673_v34 = vsub.f32 %v9107_v45, %v1628_v5  ;;  %v4760_v11 = vld [vmem:[%s8680_s5] sm:$0xff]  }
 0x1ad   : > { %4872 = vpow2.f32 %v1706_v18 }
 0x1ae   : > { %4874 = vpow2.f32 %v1700_v9  ;;  %v1708_v24 = vmul.f32 1.442695, %v1672_v60  ;;  %v1710_v33 = vmul.f32 1.442695, %v1673_v34 }
 0x1af   : > { %4876 = vpow2.f32 %v1702_v30  ;;  %v1640_v15 = vpop.xlane.xlu1 %1639  ;;  %v1631_v32 = vpop.xlane.xlu0 %1630 }
 0x1b0   : > { %v1680_v20 = vsub.f32 %v6415_v61, %v1640_v15  ;;  %v1681_v43 = vsub.f32 %v6420_v16, %v1640_v15  ;;  %3302 = vperm.xlu1 %4726, %v5452_v52   ;;  %v1674_v41 = vsub.f32 %v6403_v51, %v1631_v32  ;;  %v1675_v53 = vsub.f32 %v6411_v6, %v1631_v32  ;;  %v4761_v6 = vld [vmem:[%s8680_s5 + $0x8] sm:$0xff]  }
 0x1b1   : > { %4878 = vpow2.f32 %v1708_v24 }
 0x1b2   : > { %v1724_v56 = vmul.f32 1.442695, %v1680_v20  ;;  %v1726_v3 = vmul.f32 1.442695, %v1681_v43  ;;  %v1712_v18 = vmul.f32 1.442695, %v1674_v41  ;;  %4880 = vpow2.f32 %v1710_v33 }
 0x1b3   : > { %v1714_v9 = vmul.f32 1.442695, %v1675_v53  ;;  %v1646_v30 = vpop.xlane.xlu1 %1645  ;;  %v1637_v5 = vpop.xlane.xlu0 %1636 }
 0x1b4   : > { %4882 = vpow2.f32 %v1724_v56  ;;  %v1684_v61 = vsub.f32 %v6450_v21, %v1646_v30  ;;  %v1685_v16 = vsub.f32 %v6457_v23, %v1646_v30  ;;  %1956 = vrot.lane.b32.xlu1 %v4760_v11, %s5534_s17  ;;  %v1678_v51 = vsub.f32 %v6435_v27, %v1637_v5 }
 0x1b5   : > { %4884 = vpow2.f32 %v1726_v3  ;;  %v1679_v52 = vsub.f32 %v6440_v2, %v1637_v5  ;;  %4727 = vset.pattern.permute.xlu1 %v9103_v22 }
 0x1b6   : > { %v6692_v60 = vpop.eup %4870  ;;  %4886 = vpow2.f32 %v1712_v18  ;;  %v1732_v45 = vmul.f32 1.442695, %v1684_v61  ;;  %v1734_v21 = vmul.f32 1.442695, %v1685_v16  ;;  %v1720_v34 = vmul.f32 1.442695, %v1678_v51 }
 0x1b7   : > { %v6694_v23 = vpop.eup %4872  ;;  %4888 = vpow2.f32 %v1714_v9  ;;  %v1722_v24 = vmul.f32 1.442695, %v1679_v52  ;;  %v1652_v27 = vpop.xlane.xlu1 %1651 }
 0x1b8   : > { %v1643_v33 = vpop.xlane.xlu0 %1642  ;;  %v6696_v15 = vpop.eup %4874  ;;  %4890 = vpow2.f32 %v1732_v45  ;;  %v1688_v32 = vsub.f32 %v6463_v1, %v1652_v27  ;;  %v1689_v2 = vsub.f32 %v6469_v58, %v1652_v27  ;;  %1958 = vrot.lane.b32.xlu1 %v4761_v6, %s5534_s17 }
 0x1b9   : > { %v1682_v20 = vsub.f32 %v6478_v4, %v1643_v33  ;;  %v6702_v43 = vpop.eup %4876  ;;  %4892 = vpow2.f32 %v1734_v21  ;;  %v1683_v41 = vsub.f32 %v6482_v54, %v1643_v33  ;;  %912 = vadd.xlane.f32.xlu0 %v6541_v46 }
 0x1ba   : > { %4894 = vpow2.f32 %v1720_v34  ;;  %v1740_v53 = vmul.f32 1.442695, %v1688_v32  ;;  %v1742_v56 = vmul.f32 1.442695, %v1689_v2  ;;  %v1829_v3 = vpack.c.bf16 %v6694_v23, %v6702_v43 }
 0x1bb   : > { %v1728_v1 = vmul.f32 1.442695, %v1682_v20  ;;  %4896 = vpow2.f32 %v1722_v24  ;;  %v1730_v58 = vmul.f32 1.442695, %v1683_v41  ;;  %v6710_v18 = vpop.eup %4878 }
 0x1bc   : > { %v1649_v4 = vpop.xlane.xlu0 %1648  ;;  %4898 = vpow2.f32 %v1740_v53  ;;  %v6713_v9 = vpop.eup %4880  ;;  %2036 = vmatprep.mubr.bf16.mxu1 %v1829_v3 }
 0x1bd   : > { %v1686_v54 = vsub.f32 %v6498_v26, %v1649_v4  ;;  %4900 = vpow2.f32 %v1742_v56  ;;  %v1687_v46 = vsub.f32 %v6502_v25, %v1649_v4  ;;  %918 = vadd.xlane.f32.xlu0 %v6545_v10 }
 0x1be   : > { %v6717_v30 = vpop.eup %4882  ;;  %4902 = vpow2.f32 %v1728_v1 }
 0x1bf   : > { %v1736_v5 = vmul.f32 1.442695, %v1686_v54  ;;  %v6719_v61 = vpop.eup %4884  ;;  %4904 = vpow2.f32 %v1730_v58  ;;  %v1738_v16 = vmul.f32 1.442695, %v1687_v46 }
 0x1c0   : > { %v1655_v51 = vpop.xlane.xlu0 %1654  ;;  %v6721_v6 = vpop.eup %4886  ;;  %v6727_v25 = vadd.f32 %v6719_v61, %v6717_v30 }
 0x1c1   : > { %v1690_v26 = vsub.f32 %v6510_v13, %v1655_v51  ;;  %v1691_v52 = vsub.f32 %v6514_v57, %v1655_v51  ;;  %v6729_v10 = vpop.eup %4888  ;;  %924 = vadd.xlane.f32.xlu0 %v6568_v44  ;;  %4906 = vpow2.f32 %v1736_v5  ;;  %v5461_v13 = vld [vmem:[%s5640_s19 + $0x48] sm:$0xff] }
 0x1c2   : > { %9108 = vst [vmem:[#allocation26_spill] sm:$0xff] %v6727_v25  ;;  %v6734_v21 = vpop.eup %4890  ;;  %4908 = vpow2.f32 %v1738_v16  ;;  %v1773_v46 = vadd.f32 %v6729_v10, %v6721_v6 }
 0x1c3   : > { %v1744_v34 = vmul.f32 1.442695, %v1690_v26  ;;  %v1746_v24 = vmul.f32 1.442695, %v1691_v52  ;;  %v6736_v27 = vpop.eup %4892  ;;  %v4767_v52 = vld [vmem:[%s8680_s5 + $0x38] sm:$0xff]  }
 0x1c4   : > { %v6740_v57 = vpop.eup %4894  ;;  %v6744_v44 = vadd.f32 %v6736_v27, %v6734_v21 }
 0x1c5   : > { %4910 = vpow2.f32 %v1744_v34  ;;  %v6746_v33 = vpop.eup %4896  ;;  %930 = vadd.xlane.f32.xlu0 %v6571_v63 }
 0x1c6   : > { %9109 = vst [vmem:[#allocation27_spill] sm:$0xff] %v6744_v44  ;;  %4912 = vpow2.f32 %v1746_v24  ;;  %v6749_v32 = vpop.eup %4898  ;;  %v6753_v2 = vadd.f32 %v6746_v33, %v6740_v57 }
 0x1c7   : > { %9110 = vst [vmem:[#allocation30_spill] sm:$0xff] %v6749_v32  ;;  %v6755_v20 = vpop.eup %4900 }
 0x1c8   : > { %9111 = vst [vmem:[#allocation31_spill] sm:$0xff] %v6753_v2  ;;  %v6757_v41 = vpop.eup %4902  ;;  %v6761_v53 = vadd.f32 %v6755_v20, %v6749_v32 }
 0x1c9   : > { %v6763_v56 = vpop.eup %4904  ;;  %936 = vadd.xlane.f32.xlu0 %v6599_v7 }
 0x1ca   : > { %9112 = vst [vmem:[#allocation33_spill] sm:$0xff] %v6761_v53  ;;  %v6768_v63 = vadd.f32 %v6763_v56, %v6757_v41 }
 0x1cb   : > { %v6770_v1 = vpop.eup %4906 }
 0x1cc   : > { %9113 = vst [vmem:[#allocation34_spill] sm:$0xff] %v6768_v63  ;;  %v6772_v58 = vpop.eup %4908 }
 0x1cd   : > { %942 = vadd.xlane.f32.xlu0 %v6617_v40  ;;  %v6779_v4 = vadd.f32 %v6772_v58, %v6770_v1  ;;  %v1767_v40 = vadd.f32 %v6694_v23, %v6692_v60 }
 0x1cf   : > { %v6775_v3 = vpop.eup %4910  ;;  %9115 = vst [vmem:[#allocation39_spill] sm:$0xff] %v6779_v4 }
 0x1d0   : > { %9114 = vst [vmem:[#allocation38_spill] sm:$0xff] %v6775_v3  ;;  %v6781_v54 = vpop.eup %4912 }
 0x1d1   : > { %v6785_v7 = vadd.f32 %v6781_v54, %v6775_v3  ;;  %948 = vadd.xlane.f32.xlu0 %v6633_v50  ;;  %v1676_v50 = vsub.f32 %v6391_v29, %v6672_v14  ;;  %v4763_v29 = vld [vmem:[%s8680_s5 + $0x18] sm:$0xff]  }
 0x1d3   : > { %9116 = vst [vmem:[#allocation44_spill] sm:$0xff] %v6785_v7  ;;  %v1716_v23 = vmul.f32 1.442695, %v1676_v50 }
 0x1d5   : > { %954 = vadd.xlane.f32.xlu0 %v6647_v36  ;;  %v1677_v36 = vsub.f32 %v6395_v0, %v6672_v14  ;;  %4914 = vpow2.f32 %v1716_v23  ;;  %v1764_v0 = vadd.f32 %v6702_v43, %v6696_v15  ;;  %v5454_v14 = vld [vmem:[%s5640_s19 + $0x40] sm:$0xff]  ;;  %v4766_v43 = vld [vmem:[%s8680_s5 + $0x30] sm:$0xff]  }
 0x1d7   : > { %v1718_v5 = vmul.f32 1.442695, %v1677_v36  ;;  %v9117_v36 = vld [vmem:[#allocation23_spill] sm:$0xff] }
 0x1d9   : > { %1768 = vadd.xlane.f32.xlu0 %v1767_v40  ;;  %4916 = vpow2.f32 %v1718_v5  ;;  %v6845_v40 = vpop.xlane.xlu1 %1657 }
 0x1dc   : > { %909 = vadd.xlane.f32.xlu1 %v6532_v38  ;;  %v6804_v38 = vld [vmem:[%s5640_s19 + $0x20] sm:$0xff] }
 0x1dd   : > { %1774 = vadd.xlane.f32.xlu0 %v1773_v46 }
 0x1e0   : > { %915 = vadd.xlane.f32.xlu1 %v6539_v17  ;;  %v4762_v17 = vld [vmem:[%s8680_s5 + $0x10] sm:$0xff]  }
 0x1e4   : > { %921 = vadd.xlane.f32.xlu1 %v6554_v12  ;;  %v4764_v12 = vld [vmem:[%s8680_s5 + $0x60] sm:$0xff]  }
 0x1e8   : > { %927 = vadd.xlane.f32.xlu1 %v6562_v19  ;;  %v1770_v19 = vadd.f32 %v6713_v9, %v6710_v18 }
 0x1ec   : > { %933 = vadd.xlane.f32.xlu1 %v6584_v28 }
 0x1f0   : > { %939 = vadd.xlane.f32.xlu1 %v6613_v37  ;;  %v4765_v37 = vld [vmem:[%s8680_s5 + $0x68] sm:$0xff]  }
 0x1f3   : > { %3306 = vperm.xlu0 %4728, %v6804_v38  }
 0x1f4   : > { %945 = vadd.xlane.f32.xlu1 %v6619_v62  ;;  %v6822_v62 = vpop.eup %4914 }
 0x1f5   : > { %v6826_v28 = vpop.eup %4916 }
 0x1f7   : > { %1960 = vrot.lane.b32.xlu0 %v4762_v17, %s5534_s17 }
 0x1f8   : > { %951 = vadd.xlane.f32.xlu1 %v6631_v48  ;;  %v1776_v48 = vadd.f32 %v6826_v28, %v6822_v62 }
 0x1fb   : > { %1962 = vrot.lane.b32.xlu0 %v4763_v29, %s5534_s17 }
 0x1fc   : > { %1765 = vadd.xlane.f32.xlu1 %v1764_v0 }
 0x1ff   : > { %1980 = vrot.lane.b32.xlu0 %v4764_v12, %s5534_s17  ;;  %v5455_v12 = vld [vmem:[%s5640_s19 + $0x60] sm:$0xff] }
 0x200   : > { %1771 = vadd.xlane.f32.xlu1 %v1770_v19 }
 0x203   : > { %1982 = vrot.lane.b32.xlu0 %v4765_v37, %s5534_s17  ;;  %v5456_v37 = vld [vmem:[%s5640_s19 + $0x28] sm:$0xff] }
 0x204   : > { %1777 = vadd.xlane.f32.xlu1 %v1776_v48 }
 0x207   : > { %3322 = vperm.xlu0 %4728, %v5454_v14  }
 0x209   : > { %v1661_v16 = vpop.xlane.xlu0 %1660 }
 0x20a   : > { %v1694_v51 = vsub.f32 %v6604_v39, %v1661_v16  ;;  %v1695_v26 = vsub.f32 %v6608_v55, %v1661_v16  ;;  %v4768_v16 = vld [vmem:[%s8680_s5 + $0x50] sm:$0xff]  }
 0x20b   : > { %1968 = vrot.lane.b32.xlu0 %v4766_v43, %s5534_s17 }
 0x20c   : > { %v1752_v34 = vmul.f32 1.442695, %v1694_v51  ;;  %v1754_v24 = vmul.f32 1.442695, %v1695_v26 }
 0x20d   : > { %v1667_v46 = vpop.xlane.xlu0 %1666 }
 0x20e   : > { %4918 = vpow2.f32 %v1752_v34  ;;  %v1698_v50 = vsub.f32 %v6623_v31, %v1667_v46  ;;  %v1699_v23 = vsub.f32 %v9117_v36, %v1667_v46  ;;  %v4769_v34 = vld [vmem:[%s8680_s5 + $0x58] sm:$0xff]  }
 0x20f   : > { %4920 = vpow2.f32 %v1754_v24  ;;  %1970 = vrot.lane.b32.xlu0 %v4767_v52, %s5534_s17 }
 0x210   : > { %v1760_v39 = vmul.f32 1.442695, %v1698_v50  ;;  %v1762_v55 = vmul.f32 1.442695, %v1699_v23 }
 0x211   : > { %v1664_v5 = vpop.xlane.xlu1 %1663  ;;  %v1973_v17 = vpop.permute.xlu0 %1972 }
 0x212   : > { %4922 = vpow2.f32 %v1760_v39  ;;  %v1696_v29 = vsub.f32 %v6637_v8, %v1664_v5  ;;  %v1697_v0 = vsub.f32 %v6641_v35, %v1664_v5  ;;  %4479 = vmatprep.subr.bf16.mxu1 %v1973_v17  ;;  %v5458_v39 = vld [vmem:[%s5640_s19 + $0x30] sm:$0xff]  ;;  %v6904_v5 = vld [vmem:[%s5640_s19 + $0x58] sm:$0xff] }
 0x213   : > { %4924 = vpow2.f32 %v1762_v55  ;;  %3338 = vperm.xlu0 %4728, %v5455_v12  }
 0x214   : > { %v1756_v31 = vmul.f32 1.442695, %v1696_v29  ;;  %v1758_v19 = vmul.f32 1.442695, %v1697_v0  ;;  %v6916_v0 = vld [vmem:[%s5640_s19 + $0x78] sm:$0xff] }
 0x215   : > { %2358 = vperm.xlu1 %4727, %v5456_v37   ;;  %v6854_v48 = vpop.permute.xlu1 %2342 }
 0x216   : > { %4926 = vpow2.f32 %v1756_v31 }
 0x217   : > { %4928 = vpow2.f32 %v1758_v19  ;;  %4737 = vset.pattern.permute.xlu0 %v9103_v22  ;;  %v4771_v19 = vld [vmem:[%s8680_s5 + $0x28] sm:$0xff]  }
 0x218   : > { %v6857_v43 = vpop.eup %4918  ;;  %2338 = vperm.xlu0 %4737, %v6661_v59  }
 0x219   : > { %9118 = vst [vmem:[#allocation45_spill] sm:$0xff] %v6857_v43  ;;  %v6860_v35 = vpop.eup %4920  ;;  %4729 = vset.pattern.permute.xlu1 %v9102_v47  ;;  %v6863_v8 = vpop.permute.xlu1 %3290 }
 0x21a   : > { %9119 = vst [vmem:[#allocation46_spill] sm:$0xff] %v6860_v35  ;;  %3310 = vperm.xlu1 %4729, %v5456_v37   ;;  %v6870_v51 = vadd.f32 %v6860_v35, %v6857_v43 }
 0x21c   : > { %9120 = vst [vmem:[#allocation49_spill] sm:$0xff] %v6870_v51  ;;  %v6872_v26 = vpop.eup %4922  ;;  %2354 = vperm.xlu0 %4737, %v6804_v38   ;;  %v5457_v38 = vld [vmem:[%s5640_s19 + $0x38] sm:$0xff] }
 0x21d   : > { %9121 = vst [vmem:[#allocation52_spill] sm:$0xff] %v6872_v26  ;;  %v6875_v59 = vpop.eup %4924  ;;  %v6877_v52 = vpop.permute.xlu1 %3294 }
 0x21e   : > { %9122 = vst [vmem:[#allocation53_spill] sm:$0xff] %v6875_v59  ;;  %1976 = vrot.lane.b32.xlu1 %v4768_v16, %s5534_s17  ;;  %v6886_v24 = vadd.f32 %v6875_v59, %v6872_v26 }
 0x21f   : > { %4730 = vset.pattern.permute.xlu1 %v9103_v22 }
 0x220   : > { %9123 = vst [vmem:[#allocation55_spill] sm:$0xff] %v6886_v24  ;;  %v6888_v46 = vpop.eup %4926  ;;  %2366 = vperm.xlu0 %4737, %v5457_v38  }
 0x221   : > { %9124 = vst [vmem:[#allocation56_spill] sm:$0xff] %v6888_v46  ;;  %v6891_v50 = vpop.eup %4928 }
 0x222   : > { %9125 = vst [vmem:[#allocation58_spill] sm:$0xff] %v6891_v50  ;;  %1978 = vrot.lane.b32.xlu1 %v4769_v34, %s5534_s17  ;;  %v6894_v36 = vpop.permute.xlu1 %2346  ;;  %v6898_v23 = vadd.f32 %v6891_v50, %v6888_v46 }
 0x223   : > { %9126 = vst [vmem:[#allocation59_spill] sm:$0xff] %v6894_v36 }
 0x224   : > { %9127 = vst [vmem:[#allocation60_spill] sm:$0xff] %v6898_v23  ;;  %2370 = vperm.xlu0 %4737, %v5454_v14   ;;  %v4770_v14 = vld [vmem:[%s8680_s5 + $0x20] sm:$0xff]  }
 0x226   : > { %2362 = vperm.xlu1 %4730, %v5458_v39   ;;  %v6901_v55 = vpop.permute.xlu1 %2350  ;;  %v4431_v37 = vpop.f32.mrb[0].mxu0 }
 0x227   : > { %9128 = vst [vmem:[#allocation61_spill] sm:$0xff] %v6901_v55  ;;  %v4432_v34 = vpop.f32.mrb[1].mxu0 }
 0x228   : > { %2382 = vperm.xlu0 %4737, %v6904_v5  }
 0x22a   : > { %4731 = vset.pattern.permute.xlu1 %v9102_v47 }
 0x22b   : > { %v6908_v17 = vpop.permute.xlu1 %3298  ;;  %3314 = vperm.xlu1 %4731, %v5458_v39   ;;  %v4434_v39 = vpop.f32.mrb[2].mxu0 }
 0x22c   : > { %9129 = vst [vmem:[#allocation62_spill] sm:$0xff] %v6908_v17  ;;  %2386 = vperm.xlu0 %4737, %v5455_v12   ;;  %v1975_v12 = vpop.permute.xlu0 %1974 }
 0x22f   : > { %v6910_v29 = vpop.permute.xlu1 %3302  ;;  %3318 = vperm.xlu1 %4731, %v5457_v38   ;;  %v6926_v38 = vadd.f32 %v4432_v34, %v4431_v37  ;;  %v4773_v34 = vld [vmem:[%s8680_s5 + $0x78] sm:$0xff]  }
 0x230   : > { %9130 = vst [vmem:[#allocation63_spill] sm:$0xff] %v6910_v29  ;;  %2398 = vperm.xlu0 %4737, %v6916_v0  }
 0x233   : > { %v1957_v31 = vpop.permute.xlu1 %1956  ;;  %1964 = vrot.lane.b32.xlu1 %v4770_v14, %s5534_s17  ;;  %v4435_v14 = vpop.f32.mrb[3].mxu0 }
 0x234   : > { %4480 = vmatpush3.bf16.msra.mxu1 %v1957_v31  ;;  %4732 = vset.pattern.permute.xlu1 %v9103_v22  ;;  %v4436_v45 = vadd.f32 %v4435_v14, %v4434_v39 }
 0x235   : > { %4481 = vmatprep.subr.bf16.mxu1 %v1975_v12  ;;  %4741 = vset.pattern.permute.xlu0 %v9102_v47  ;;  %v4437_v11 = vpop.f32.mrb[4].mxu0  ;;  %v4772_v12 = vld [vmem:[%s8680_s5 + $0x70] sm:$0xff]  }
 0x236   : > { %v4438_v31 = vpop.f32.mrb[5].mxu0 }
 0x237   : > { %1966 = vrot.lane.b32.xlu1 %v4771_v19, %s5534_s17  ;;  %v1959_v16 = vpop.permute.xlu1 %1958  ;;  %v6933_v19 = vadd.f32 %v4438_v31, %v4437_v11  ;;  %v4440_v23 = vpop.f32.mrb[6].mxu0 }
 0x238   : > { %4482 = vmatpush3.bf16.msra.mxu1 %v1959_v16  ;;  %v4441_v37 = vpop.f32.mrb[7].mxu0 }
 0x239   : > { %v4442_v16 = vadd.f32 %v4441_v37, %v4440_v23 }
 0x23b   : > { %2374 = vperm.xlu1 %4732, %v5461_v13  }
 0x23f   : > { %4733 = vset.pattern.permute.xlu1 %v9102_v47 }
 0x240   : > { %3326 = vperm.xlu1 %4733, %v5461_v13   ;;  %v4443_v13 = vpop.f32.mrb[8].mxu0 }
 0x241   : > { %v4444_v14 = vpop.f32.mrb[9].mxu0 }
 0x242   : > { %v6941_v11 = vadd.f32 %v4444_v14, %v4443_v13  ;;  %v4446_v31 = vpop.f32.mrb[10].mxu0 }
 0x243   : > { %v4447_v53 = vpop.f32.mrb[11].mxu0 }
 0x244   : > { %1984 = vrot.lane.b32.xlu1 %v4772_v12, %s5534_s17  ;;  %v4448_v23 = vadd.f32 %v4447_v53, %v4446_v31  ;;  %v5462_v12 = vld [vmem:[%s5640_s19 + $0x50] sm:$0xff] }
 0x245   : > { %4734 = vset.pattern.permute.xlu1 %v9103_v22 }
 0x246   : > { %v913_v39 = vpop.xlane.xlu0 %912 }
 0x247   : > { %4930 = vrcp.f32 %v913_v39 }
 0x248   : > { %1986 = vrot.lane.b32.xlu1 %v4773_v34, %s5534_s17 }
 0x249   : > { %v4449_v25 = vpop.f32.mrb[12].mxu0 }
 0x24a   : > { %v919_v44 = vpop.xlane.xlu0 %918  ;;  %v4450_v24 = vpop.f32.mrb[13].mxu0 }
 0x24b   : > { %4932 = vrcp.f32 %v919_v44  ;;  %v6945_v51 = vadd.f32 %v4450_v24, %v4449_v25  ;;  %v4452_v39 = vpop.f32.mrb[14].mxu0 }
 0x24c   : > { %2378 = vperm.xlu1 %4734, %v5462_v12   ;;  %v4453_v34 = vpop.f32.mrb[15].mxu0 }
 0x24d   : > { %v4454_v4 = vadd.f32 %v4453_v34, %v4452_v39  ;;  %v5463_v34 = vld [vmem:[%s5640_s19 + $0x68] sm:$0xff]  ;;  %s290_s19 = sand.u32 1, %s5520_s29  }
 0x24e   : > { %v925_v37 = vpop.xlane.xlu0 %924  ;;  %s4331_s25 = sshll.u32 %s290_s19, 7 }
 0x24f   : > { %4934 = vrcp.f32 %v925_v37  ;;  %s6997_s26 = scalar_lea.vmem [#allocation4], %s4331_s25 }
 0x250   : > { %4735 = vset.pattern.permute.xlu1 %v9102_v47 }
 0x251   : > { %v4931_v7 = vpop.eup %4930  ;;  %3330 = vperm.xlu1 %4735, %v5462_v12   ;;  %v4455_v63 = vpop.f32.mrb[16].mxu0 }
 0x252   : > { %v1214_v13 = vmul.f32 %v4931_v7, %v4436_v45  ;;  %v931_v14 = vpop.xlane.xlu0 %930  ;;  %v4456_v25 = vpop.f32.mrb[17].mxu0 }
 0x253   : > { %4936 = vrcp.f32 %v931_v14  ;;  %v6948_v2 = vadd.f32 %v4456_v25, %v4455_v63  ;;  %v4458_v12 = vpop.f32.mrb[18].mxu0  ;;  %v6953_v25 = vstv %s310_s21  ;;  %s5537_s21 = smov [#allocation4]  }
 0x254   : > { %v1230_v53 = vadd.f32 1e-06, %v1214_v13  ;;  %v4459_v7 = vpop.f32.mrb[19].mxu0  ;;  %9131 = vst [vmem:[#allocation66_spill] sm:$0xff] %v6953_v25 }
 0x255   : > { %v4933_v44 = vpop.eup %4932  ;;  %3334 = vperm.xlu1 %4735, %v6904_v5   ;;  %v4460_v13 = vadd.f32 %v4459_v7, %v4458_v12 }
 0x256   : > { %4938 = vlog2.f32 %v1230_v53  ;;  %v1216_v31 = vmul.f32 %v4933_v44, %v4442_v16  ;;  %v937_v37 = vpop.xlane.xlu0 %936 }
 0x257   : > { %4940 = vrcp.f32 %v937_v37 }
 0x258   : > { %v1232_v24 = vadd.f32 1e-06, %v1216_v31 }
 0x259   : > { %v4935_v45 = vpop.eup %4934  ;;  %4736 = vset.pattern.permute.xlu1 %v9103_v22  ;;  %v4461_v44 = vpop.f32.mrb[20].mxu0 }
 0x25a   : > { %4942 = vlog2.f32 %v1232_v24  ;;  %v1218_v39 = vmul.f32 %v4935_v45, %v4448_v23  ;;  %2390 = vperm.xlu1 %4736, %v5463_v34   ;;  %v943_v5 = vpop.xlane.xlu0 %942  ;;  %v4462_v31 = vpop.f32.mrb[21].mxu0 }
 0x25b   : > { %4944 = vrcp.f32 %v943_v5  ;;  %v6955_v24 = vadd.f32 %v4462_v31, %v4461_v44  ;;  %v4464_v45 = vpop.f32.mrb[22].mxu0 }
 0x25c   : > { %v1234_v16 = vadd.f32 1e-06, %v1218_v39  ;;  %v4465_v39 = vpop.f32.mrb[23].mxu0 }
 0x25d   : > { %v4937_v14 = vpop.eup %4936 }
 0x25e   : > { %4946 = vlog2.f32 %v1234_v16  ;;  %v1220_v53 = vmul.f32 %v4937_v14, %v4454_v4  ;;  %4738 = vset.pattern.permute.xlu1 %v9102_v47  ;;  %v949_v63 = vpop.xlane.xlu0 %948  ;;  %v4466_v16 = vadd.f32 %v4465_v39, %v4464_v45 }
 0x25f   : > { %3342 = vperm.xlu1 %4738, %v5463_v34   ;;  %4948 = vrcp.f32 %v949_v63 }
 0x260   : > { %v4939_v37 = vpop.eup %4938  ;;  %v1236_v23 = vadd.f32 1e-06, %v1220_v53 }
 0x261   : > { %v4941_v12 = vpop.eup %4940  ;;  %v1248_v7 = vmul.f32 0.6931472, %v4939_v37  ;;  %v4467_v37 = vpop.f32.mrb[24].mxu0 }
 0x262   : > { %4950 = vlog2.f32 %v1236_v23  ;;  %v1222_v4 = vmul.f32 %v4941_v12, %v4460_v13  ;;  %v955_v5 = vpop.xlane.xlu0 %954  ;;  %v4468_v13 = vpop.f32.mrb[25].mxu0 }
 0x263   : > { %v1279_v14 = vmul.f32 %v6953_v25, %v1248_v7  ;;  %4739 = vset.pattern.permute.xlu1 %v9103_v22  ;;  %v6966_v12 = vadd.f32 %v4468_v13, %v4467_v37  ;;  %v4470_v7 = vpop.f32.mrb[26].mxu0 }
 0x264   : > { %v4943_v34 = vpop.eup %4942  ;;  %v1238_v49 = vadd.f32 1e-06, %v1222_v4  ;;  %2394 = vperm.xlu1 %4739, %v5464_v42  }
 0x265   : > { %v4945_v53 = vpop.eup %4944  ;;  %v1296_v44 = vmul.f32 1.442695, %v1279_v14  ;;  %v1252_v31 = vmul.f32 0.6931472, %v4943_v34 }
 0x266   : > { %4952 = vlog2.f32 %v1238_v49  ;;  %v1224_v17 = vmul.f32 %v4945_v53, %v4466_v16  ;;  %v6963_v45 = vpop.xlane.xlu0 %1768  ;;  %v4471_v16 = vpop.f32.mrb[27].mxu0 }
 0x267   : > { %4954 = vpow2.f32 %v1296_v44  ;;  %v1281_v63 = vmul.f32 %v6953_v25, %v1252_v31  ;;  %9132 = vst [vmem:[#allocation64_spill] sm:$0xff] %v6963_v45  ;;  %v4472_v14 = vadd.f32 %v4471_v16, %v4470_v7 }
 0x268   : > { %v4947_v23 = vpop.eup %4946  ;;  %v1240_v22 = vadd.f32 1e-06, %v1224_v17  ;;  %4740 = vset.pattern.permute.xlu1 %v9102_v47  ;;  %4956 = vrcp.f32 %v955_v5 }
 0x269   : > { %v1300_v39 = vmul.f32 1.442695, %v1281_v63  ;;  %v1256_v4 = vmul.f32 0.6931472, %v4947_v23  ;;  %v6968_v49 = vpop.xlane.xlu1 %909  ;;  %3346 = vperm.xlu1 %4740, %v5464_v42   ;;  %v4949_v34 = vpop.eup %4948 }
 0x26a   : > { %4958 = vlog2.f32 %v1240_v22  ;;  %v1226_v47 = vmul.f32 %v4949_v34, %v4472_v14  ;;  %v6975_v5 = vpop.xlane.xlu0 %1774  ;;  %v4473_v63 = vpop.f32.mrb[28].mxu0  ;;  %v6979_v22 = vstv %s6961_s22  ;;  %s5470_s22 = sshll.u32 %s5537_s21, 4  ;;  %s5471_s22 = int_to_ptr.vmem [resolvable:$false] %s5470_s22 }
 0x26b   : > { %4960 = vpow2.f32 %v1300_v39  ;;  %v1283_v17 = vmul.f32 %v6953_v25, %v1256_v4  ;;  %9133 = vst [vmem:[#allocation65_spill] sm:$0xff] %v6975_v5  ;;  %v4474_v23 = vpop.f32.mrb[29].mxu0  ;;  %9134 = vst [vmem:[#allocation67_spill] sm:$0xff] %v6979_v22  ;;  %s5472_s23 = scalar_lea.vmem %s5471_s22, 4096 }
 0x26c   : > { %v4951_v53 = vpop.eup %4950  ;;  %v1242_v42 = vadd.f32 1e-06, %v1226_v47  ;;  %v6981_v39 = vadd.f32 %v4474_v23, %v4473_v63  ;;  %v4476_v4 = vpop.f32.mrb[30].mxu0 }
 0x26d   : > { %v1304_v44 = vmul.f32 1.442695, %v1283_v17  ;;  %v1260_v31 = vmul.f32 0.6931472, %v4951_v53  ;;  %v6971_v37 = vpop.xlane.xlu1 %915  ;;  %3350 = vperm.xlu1 %4740, %v6916_v0   ;;  %v6986_v0 = vld [vmem:[%s8681_s6] ss:$0 sm:$0xff] }
 0x26e   : > { %v4477_v53 = vpop.f32.mrb[31].mxu0 }
 0x26f   : > { %4962 = vpow2.f32 %v1304_v44  ;;  %v1285_v13 = vmul.f32 %v6953_v25, %v1260_v31  ;;  %v4478_v44 = vadd.f32 %v4477_v53, %v4476_v4 }
 0x270   : > { %v4953_v7 = vpop.eup %4952  ;;  %4964 = vlog2.f32 %v1242_v42 }
 0x271   : > { %v4955_v16 = vpop.eup %4954  ;;  %v1308_v14 = vmul.f32 1.442695, %v1285_v13  ;;  %v1264_v34 = vmul.f32 0.6931472, %v4953_v7  ;;  %v922_v17 = vpop.xlane.xlu1 %921 }
 0x272   : > { %v6990_v47 = vpop.permute.xlu0 %3306  ;;  %v1328_v31 = vadd.f32 %v4955_v16, %v6979_v22  ;;  %v4957_v42 = vpop.eup %4956 }
 0x273   : > { %9135 = vst [vmem:[#allocation23_spill] sm:$0xff] %v6990_v47  ;;  %4966 = vpow2.f32 %v1308_v14  ;;  %v1287_v63 = vmul.f32 %v6953_v25, %v1264_v34  ;;  %v1228_v5 = vmul.f32 %v4957_v42, %v4478_v44 }
 0x274   : > { %v4959_v23 = vpop.eup %4958  ;;  %v1351_v45 = vadd.f32 %v6986_v0, %v1328_v31 }
 0x275   : > { %v4961_v29 = vpop.eup %4960  ;;  %v1312_v36 = vmul.f32 1.442695, %v1287_v63  ;;  %v1268_v13 = vmul.f32 0.6931472, %v4959_v23  ;;  %v928_v7 = vpop.xlane.xlu1 %927  ;;  %v1244_v46 = vadd.f32 1e-06, %v1228_v5 }
 0x276   : > { %v6995_v26 = vpop.permute.xlu0 %1960  ;;  %1368 = vst.msk [vmem:[%s6997_s26 + $0x8] sm:$0xff] %vm8853_vm15, %v1351_v45  ;;  %v1330_v16 = vadd.f32 %v4961_v29, %v6979_v22  ;;  %v4372_v5 = vld [vmem:[%s8677_s2 + $0x2] ss:$4 sm:$0x3] }
 0x277   : > { %4968 = vpow2.f32 %v1312_v36  ;;  %v1289_v4 = vmul.f32 %v6953_v25, %v1268_v13  ;;  %v9136_v63 = vld [vmem:[#allocation7_spill] sm:$0xff]  ;;  %v9137_v13 = vld [vmem:[#allocation8_spill] sm:$0xff] }
 0x278   : > { %4970 = vlog2.f32 %v1244_v46  ;;  %v1353_v42 = vadd.f32 %v6986_v0, %v1330_v16  ;;  %v7014_v23 = vrot.slane %v4372_v5, %v9136_v63 }
 0x279   : > { %v4963_v14 = vpop.eup %4962  ;;  %v1316_v34 = vmul.f32 1.442695, %v1289_v4  ;;  %v934_v53 = vpop.xlane.xlu1 %933  ;;  %v7017_v4 = vrot.slane %v4372_v5, %v9137_v13 }
 0x27a   : > { %v4965_v44 = vpop.eup %4964  ;;  %v7006_v31 = vpop.permute.xlu0 %1962  ;;  %v1332_v36 = vadd.f32 %v4963_v14, %v6979_v22  ;;  %1370 = vst.msk [vmem:[%s6997_s26 + $0x18] sm:$0xff] %vm8853_vm15, %v1353_v42  ;;  %v2414_v5 = vadd.f32 %v7014_v23, %v6854_v48 }
 0x27b   : > { %4972 = vpow2.f32 %v1316_v34  ;;  %v1272_v45 = vmul.f32 0.6931472, %v4965_v44 }
 0x27c   : > { %v1355_v46 = vadd.f32 %v6986_v0, %v1332_v36  ;;  %4974 = vrcp.f32 %v6968_v49  ;;  %v2415_v36 = vadd.f32 %v7017_v4, %v6854_v48  ;;  %v2478_v43 = vmul.f32 0.2, %v2414_v5 }
 0x27d   : > { %v4967_v29 = vpop.eup %4966  ;;  %v1291_v47 = vmul.f32 %v6953_v25, %v1272_v45  ;;  %v940_v59 = vpop.xlane.xlu1 %939  ;;  %vm2446_vm5 = vcmp.gt.f32.partialorder %v2414_v5, 0.0 }
 0x27e   : > { %v7020_v16 = vpop.permute.xlu0 %1980  ;;  %1372 = vst.msk [vmem:[%s6997_s26 + $0x28] sm:$0xff] %vm8853_vm15, %v1355_v46  ;;  %v1334_v14 = vadd.f32 %v4967_v29, %v6979_v22  ;;  %v2479_v48 = vmul.f32 0.2, %v2415_v36  ;;  %vm2447_vm14 = vcmp.gt.f32.partialorder %v2415_v36, 0.0 }
 0x27f   : > { %v1320_v34 = vmul.f32 1.442695, %v1291_v47 }
 0x280   : > { %v1357_v44 = vadd.f32 %v6986_v0, %v1334_v14 }
 0x281   : > { %v4969_v42 = vpop.eup %4968  ;;  %4976 = vpow2.f32 %v1320_v34  ;;  %v946_v45 = vpop.xlane.xlu1 %945 }
 0x282   : > { %v4971_v50 = vpop.eup %4970  ;;  %4978 = vrcp.f32 %v6971_v37  ;;  %v7032_v46 = vpop.permute.xlu0 %1982  ;;  %1374 = vst.msk [vmem:[%s6997_s26 + $0x38] sm:$0xff] %vm8853_vm15, %v1357_v44  ;;  %v1336_v49 = vadd.f32 %v4969_v42, %v6979_v22  ;;  %v2511_v42 = vsel %vm2447_vm14, %v2415_v36, %v2479_v48 }
 0x283   : > { %4980 = vrcp.f32 %v922_v17  ;;  %v1276_v47 = vmul.f32 0.6931472, %v4971_v50 }
 0x284   : > { %4982 = vrcp.f32 %v928_v7  ;;  %v1359_v29 = vadd.f32 %v6986_v0, %v1336_v49 }
 0x285   : > { %v4973_v14 = vpop.eup %4972  ;;  %v1293_v34 = vmul.f32 %v6953_v25, %v1276_v47  ;;  %4984 = vrcp.f32 %v934_v53  ;;  %v952_v35 = vpop.xlane.xlu1 %951  ;;  %v2510_v53 = vsel %vm2446_vm5, %v2414_v5, %v2478_v43 }
 0x286   : > { %4986 = vrcp.f32 %v940_v59  ;;  %v7039_v37 = vpop.permute.xlu0 %3322  ;;  %1376 = vst.msk [vmem:[%s6997_s26 + $0x48] sm:$0xff] %vm8853_vm15, %v1359_v29  ;;  %v1338_v50 = vadd.f32 %v4973_v14, %v6979_v22  ;;  %v4975_v49 = vpop.eup %4974  ;;  %v7053_v14 = vsel %vm9046_vm10, %v2510_v53, -1e+30 }
 0x287   : > { %9138 = vst [vmem:[#allocation7_spill] sm:$0xff] %v7039_v37  ;;  %v1324_v17 = vmul.f32 1.442695, %v1293_v34  ;;  %4988 = vrcp.f32 %v946_v45  ;;  %9141 = vst [vmem:[#allocation13_spill] sm:$0xff] %v7053_v14  ;;  %v1213_v48 = vmul.f32 %v4975_v49, %v6926_v38 }
 0x288   : > { %4990 = vrcp.f32 %v952_v35  ;;  %v1361_v7 = vadd.f32 %v6986_v0, %v1338_v50  ;;  %v9142_v35 = vld [vmem:[#allocation14_spill] sm:$0xff] }
 0x289   : > { %4992 = vpow2.f32 %v1324_v17  ;;  %v7045_v44 = vpop.xlane.xlu1 %1765  ;;  %vm9143_vm0 = vnez %v9142_v35  ;;  %v1229_v49 = vadd.f32 1e-06, %v1213_v48 }
 0x28a   : > { %9139 = vst [vmem:[#allocation8_spill] sm:$0xff] %v7045_v44  ;;  %v7047_v47 = vpop.permute.xlu0 %1968  ;;  %1378 = vst.msk [vmem:[%s6997_s26 + $0x58] sm:$0xff] %vm8853_vm15, %v1361_v7  ;;  %v7057_v45 = vsel %vm9143_vm0, %v2511_v42, -1e+30 }
 0x28b   : > { %v4977_v59 = vpop.eup %4976  ;;  %9144 = vst [vmem:[#allocation14_spill] sm:$0xff] %v7057_v45  ;;  %v2575_v53 = vmax.f32 %v7053_v14, %v7057_v45  ;;  %4994 = vlog2.f32 %v1229_v49  ;;  %v9149_v49 = vld [vmem:[#allocation10_spill] sm:$0xff] }
 0x28c   : > { %v4979_v29 = vpop.eup %4978  ;;  %v1340_v34 = vadd.f32 %v4977_v59, %v6979_v22  ;;  %vm9150_vm1 = vnez %v9149_v49 }
 0x28d   : > { %v4981_v43 = vpop.eup %4980  ;;  %v7060_v5 = vpop.xlane.xlu1 %1771  ;;  %v1215_v42 = vmul.f32 %v4979_v29, %v6933_v19 }
 0x28e   : > { %9145 = vst [vmem:[#allocation70_spill] sm:$0xff] %v7060_v5  ;;  %v4983_v36 = vpop.eup %4982  ;;  %v7063_v50 = vpop.permute.xlu0 %1970  ;;  %v1363_v17 = vadd.f32 %v6986_v0, %v1340_v34  ;;  %v1217_v55 = vmul.f32 %v4981_v43, %v6941_v11 }
 0x28f   : > { %v4985_v7 = vpop.eup %4984  ;;  %v1219_v3 = vmul.f32 %v4983_v36, %v6945_v51  ;;  %v1231_v45 = vadd.f32 1e-06, %v1215_v42 }
 0x290   : > { %v4987_v44 = vpop.eup %4986  ;;  %1380 = vst.msk [vmem:[%s6997_s26 + $0x68] sm:$0xff] %vm8853_vm15, %v1363_v17  ;;  %v1221_v14 = vmul.f32 %v4985_v7, %v6948_v2  ;;  %v1233_v17 = vadd.f32 1e-06, %v1217_v55  ;;  %v4774_v7 = vld [vmem:[%s8680_s5] sm:$0xff]  }
 0x291   : > { %v4989_v59 = vpop.eup %4988  ;;  %2576 = vmax.xlane.f32.xlu1 %v2575_v53  ;;  %v7072_v5 = vpop.xlane.xlu1 %1777  ;;  %v1223_v19 = vmul.f32 %v4987_v44, %v6955_v24  ;;  %v1235_v48 = vadd.f32 1e-06, %v1219_v3  ;;  %4996 = vlog2.f32 %v1231_v45 }
 0x292   : > { %9146 = vst [vmem:[#allocation71_spill] sm:$0xff] %v7072_v5  ;;  %v4991_v38 = vpop.eup %4990  ;;  %v7075_v34 = vpop.permute.xlu0 %3338  ;;  %v1225_v11 = vmul.f32 %v4989_v59, %v6966_v12  ;;  %v1237_v36 = vadd.f32 1e-06, %v1221_v14  ;;  %4998 = vlog2.f32 %v1233_v17  ;;  %v9147_v59 = vld [vmem:[#allocation9_spill] sm:$0xff] }
 0x293   : > { %v4993_v32 = vpop.eup %4992  ;;  %v1227_v51 = vmul.f32 %v4991_v38, %v6981_v39  ;;  %v1239_v2 = vadd.f32 1e-06, %v1223_v19  ;;  %5000 = vlog2.f32 %v1235_v48 }
 0x294   : > { %v1342_v29 = vadd.f32 %v4993_v32, %v6979_v22  ;;  %v1241_v55 = vadd.f32 1e-06, %v1225_v11  ;;  %5002 = vlog2.f32 %v1237_v36 }
 0x295   : > { %v7081_v43 = vpop.permute.xlu1 %2358  ;;  %v1243_v3 = vadd.f32 1e-06, %v1227_v51  ;;  %5004 = vlog2.f32 %v1239_v2  ;;  %v4995_v42 = vpop.eup %4994 }
 0x296   : > { %v1365_v5 = vadd.f32 %v6986_v0, %v1342_v29  ;;  %5006 = vlog2.f32 %v1241_v55  ;;  %v1246_v48 = vmul.f32 0.6931472, %v4995_v42 }
 0x297   : > { %v2339_v53 = vpop.permute.xlu0 %2338  ;;  %5008 = vlog2.f32 %v1243_v3 }
 0x298   : > { %v2412_v24 = vadd.f32 %v7014_v23, %v2339_v53  ;;  %v2413_v32 = vadd.f32 %v7017_v4, %v2339_v53  ;;  %1382 = vst.msk [vmem:[%s6997_s26 + $0x78] sm:$0xff] %vm8853_vm15, %v1365_v5  ;;  %vm9148_vm15 = vnez %v9147_v59  ;;  %v1278_v3 = vmul.f32 %v6953_v25, %v1246_v48  ;;  %v9161_v59 = vld [vmem:[#allocation69_spill] sm:$0xff] }
 0x299   : > { %v7087_v44 = vpop.permute.xlu1 %3310  ;;  %v1693_v49 = vsub.f32 %v9161_v59, %v6845_v40 }
 0x29a   : > { %v2476_v12 = vmul.f32 0.2, %v2412_v24  ;;  %vm2444_vm5 = vcmp.gt.f32.partialorder %v2412_v24, 0.0  ;;  %v2477_v39 = vmul.f32 0.2, %v2413_v32  ;;  %vm2445_vm14 = vcmp.gt.f32.partialorder %v2413_v32, 0.0 }
 0x29b   : > { %v4997_v17 = vpop.eup %4996  ;;  %v1294_v42 = vmul.f32 1.442695, %v1278_v3 }
 0x29c   : > { %v2508_v45 = vsel %vm2444_vm5, %v2412_v24, %v2476_v12  ;;  %v2509_v5 = vsel %vm2445_vm14, %v2413_v32, %v2477_v39  ;;  %v4999_v11 = vpop.eup %4998  ;;  %v1250_v53 = vmul.f32 0.6931472, %v4997_v17 }
 0x29d   : > { %v1977_v14 = vpop.permute.xlu1 %1976  ;;  %v7097_v38 = vsel %vm9148_vm15, %v2508_v45, -1e+30  ;;  %v7101_v19 = vsel %vm9150_vm1, %v2509_v5, -1e+30  ;;  %v5001_v51 = vpop.eup %5000  ;;  %v1254_v32 = vmul.f32 0.6931472, %v4999_v11  ;;  %5010 = vpow2.f32 %v1294_v42 }
 0x29e   : > { %4483 = vmatprep.subr.bf16.mxu1 %v1977_v14  ;;  %v5003_v36 = vpop.eup %5002  ;;  %v1258_v12 = vmul.f32 0.6931472, %v5001_v51  ;;  %v1280_v45 = vmul.f32 %v6953_v25, %v1250_v53  ;;  %v4390_v51 = vld [vmem:[%s8677_s2 + $0x3] ss:$4 sm:$0x3] }
 0x29f   : > { %4484 = vmatpush3.bf16.msra.mxu1 %v6995_v26  ;;  %v2572_v26 = vmax.f32 %v7097_v38, %v7101_v19  ;;  %v5005_v24 = vpop.eup %5004  ;;  %v1262_v14 = vmul.f32 0.6931472, %v5003_v36 }
 0x2a0   : > { %v5007_v55 = vpop.eup %5006 }
 0x2a1   : > { %v1979_v29 = vpop.permute.xlu1 %1978  ;;  %2573 = vmax.xlane.f32.xlu0 %v2572_v26  ;;  %v5009_v39 = vpop.eup %5008  ;;  %v1270_v5 = vmul.f32 0.6931472, %v5007_v55  ;;  %v1286_v11 = vmul.f32 %v6953_v25, %v1262_v14  ;;  %v1298_v26 = vmul.f32 1.442695, %v1280_v45  ;;  %v7129_v14 = vrot.slane %v4390_v51, %v9137_v13  ;;  %v4775_v13 = vld [vmem:[%s8680_s5 + $0x40] sm:$0xff]  }
 0x2a2   : > { %2908 = vrot.lane.b32.xlu1 %v4774_v7, %s5535_s15  ;;  %4485 = vmatprep.subr.bf16.mxu1 %v1979_v29  ;;  %v1266_v7 = vmul.f32 0.6931472, %v5005_v24  ;;  %v1284_v29 = vmul.f32 %v6953_v25, %v1258_v12  ;;  %v1274_v17 = vmul.f32 0.6931472, %v5009_v39  ;;  %v7126_v12 = vrot.slane %v4390_v51, %v9136_v63 }
 0x2a3   : > { %4486 = vmatpush3.bf16.msra.mxu1 %v7006_v31  ;;  %v1282_v31 = vmul.f32 %v6953_v25, %v1254_v32  ;;  %v1290_v53 = vmul.f32 %v6953_v25, %v1270_v5  ;;  %v1310_v3 = vmul.f32 1.442695, %v1286_v11  ;;  %5012 = vpow2.f32 %v1298_v26 }
 0x2a4   : > { %4487 = vmatprep.subr.bf16.mxu1 %v7020_v16  ;;  %v1288_v48 = vmul.f32 %v6953_v25, %v1266_v7  ;;  %v1306_v32 = vmul.f32 1.442695, %v1284_v29  ;;  %v1292_v55 = vmul.f32 %v6953_v25, %v1274_v17  ;;  %v3366_v5 = vadd.f32 %v7126_v12, %v6877_v52 }
 0x2a5   : > { %v7108_v2 = vpop.permute.xlu1 %2362  ;;  %v1302_v36 = vmul.f32 1.442695, %v1282_v31  ;;  %v1318_v45 = vmul.f32 1.442695, %v1290_v53  ;;  %v3367_v63 = vadd.f32 %v7129_v14, %v6877_v52 }
 0x2a6   : > { %v1314_v39 = vmul.f32 1.442695, %v1288_v48  ;;  %v1322_v31 = vmul.f32 1.442695, %v1292_v55  ;;  %v3430_v17 = vmul.f32 0.2, %v3366_v5 }
 0x2a7   : > { %5014 = vpow2.f32 %v1302_v36  ;;  %v5011_v29 = vpop.eup %5010  ;;  %vm3398_vm5 = vcmp.gt.f32.partialorder %v3366_v5, 0.0  ;;  %v3431_v11 = vmul.f32 0.2, %v3367_v63  ;;  %vm3399_vm14 = vcmp.gt.f32.partialorder %v3367_v63, 0.0 }
 0x2a8   : > { %5016 = vpow2.f32 %v1306_v32  ;;  %v1327_v48 = vadd.f32 %v5011_v29, %v6979_v22  ;;  %v3462_v36 = vsel %vm3398_vm5, %v3366_v5, %v3430_v17  ;;  %vm9152_vm5 = vmmov %vm9151_vm12 }
 0x2a9   : > { %5018 = vpow2.f32 %v1310_v3  ;;  %v3463_v32 = vsel %vm3399_vm14, %v3367_v63, %v3431_v11 }
 0x2aa   : > { %v7113_v16 = vpop.permute.xlu1 %3314  ;;  %5020 = vpow2.f32 %v1314_v39  ;;  %v1350_v55 = vadd.f32 %v6986_v0, %v1327_v48  ;;  %v7155_v5 = vsel %vm9143_vm0, %v3463_v32, -1e+30  ;;  %vm9153_vm0 = vmmov %vm9152_vm5 }
 0x2ab   : > { %5022 = vpow2.f32 %v1318_v45  ;;  %vm9156_vm14 = vmmov %vm9153_vm0 }
 0x2ac   : > { %5024 = vpow2.f32 %v1322_v31  ;;  %v7149_v31 = vsel %vm9046_vm10, %v3462_v36, -1e+30  ;;  %1367 = vst.msk [vmem:[%s6997_s26] sm:$0xff] %vm9151_vm12, %v1350_v55  ;;  %vm9154_vm12 = vmmov %vm9153_vm0 }
 0x2ad   : > { %v5013_v26 = vpop.eup %5012  ;;  %vm9155_vm10 = vmmov %vm9153_vm0 }
 0x2ae   : > { %v7122_v24 = vpop.permute.xlu1 %3318  ;;  %v1329_v45 = vadd.f32 %v5013_v26, %v6979_v22 }
 0x2b0   : > { %v1352_v63 = vadd.f32 %v6986_v0, %v1329_v45  ;;  %v3365_v45 = vadd.f32 %v7129_v14, %v6863_v8 }
 0x2b1   : > { %v5015_v52 = vpop.eup %5014 }
 0x2b2   : > { %v1965_v7 = vpop.permute.xlu1 %1964  ;;  %v5017_v51 = vpop.eup %5016  ;;  %1369 = vst.msk [vmem:[%s6997_s26 + $0x10] sm:$0xff] %vm9152_vm5, %v1352_v63  ;;  %vm9157_vm5 = vmmov %vm9153_vm0  ;;  %v3429_v63 = vmul.f32 0.2, %v3365_v45 }
 0x2b3   : > { %4488 = vmatpush3.bf16.msra.mxu1 %v1965_v7  ;;  %v5019_v53 = vpop.eup %5018  ;;  %v1333_v29 = vadd.f32 %v5017_v51, %v6979_v22 }
 0x2b4   : > { %4489 = vmatprep.subr.bf16.mxu1 %v7032_v46  ;;  %v5021_v3 = vpop.eup %5020  ;;  %v1335_v35 = vadd.f32 %v5019_v53, %v6979_v22 }
 0x2b5   : > { %v5023_v7 = vpop.eup %5022  ;;  %v1356_v11 = vadd.f32 %v6986_v0, %v1333_v29  ;;  %v1337_v26 = vadd.f32 %v5021_v3, %v6979_v22  ;;  %v1833_v29 = vpack.c.bf16 %v6746_v33, %v6826_v28  ;;  %v1835_v33 = vpack.c.bf16 %v6763_v56, %v6719_v61  ;;  %v4778_v28 = vld [vmem:[%s8680_s5 + $0x8] sm:$0xff]  }
 0x2b6   : > { %v1967_v42 = vpop.permute.xlu1 %1966  ;;  %v1339_v48 = vadd.f32 %v5023_v7, %v6979_v22  ;;  %v1358_v36 = vadd.f32 %v6986_v0, %v1335_v35  ;;  %v9159_v7 = vpack.c.bf16 %v6729_v10, %v6713_v9  ;;  %v4777_v10 = vld [vmem:[%s8680_s5 + $0x8] sm:$0xff]   ;;  %v1839_v35 = vpack.c.bf16 %v6781_v54, %v6755_v20 }
 0x2b7   : > { %4490 = vmatpush3.bf16.msra.mxu1 %v1967_v42  ;;  %2924 = vrot.lane.b32.xlu0 %v4775_v13, %s5535_s15  ;;  %v5025_v42 = vpop.eup %5024  ;;  %v1331_v13 = vadd.f32 %v5015_v52, %v6979_v22  ;;  %v3527_v52 = vmax.f32 %v7149_v31, %v7155_v5  ;;  %1373 = vst.msk [vmem:[%s6997_s26 + $0x30] sm:$0xff] %vm9154_vm12, %v1356_v11  ;;  %v9162_v61 = vld [vmem:[#allocation68_spill] sm:$0xff] }
 0x2b8   : > { %v1341_v51 = vadd.f32 %v5025_v42, %v6979_v22  ;;  %v1360_v53 = vadd.f32 %v6986_v0, %v1337_v26  ;;  %v1362_v32 = vadd.f32 %v6986_v0, %v1339_v48  ;;  %1375 = vst.msk [vmem:[%s6997_s26 + $0x40] sm:$0xff] %vm9155_vm10, %v1358_v36  ;;  %vm3397_vm10 = vcmp.gt.f32.partialorder %v3365_v45, 0.0  ;;  %v9166_v26 = vld [vmem:[#allocation46_spill] sm:$0xff]  ;;  %v4781_v48 = vld [vmem:[%s8680_s5 + $0x48] sm:$0xff]  }
 0x2b9   : > { %v1354_v37 = vadd.f32 %v6986_v0, %v1331_v13  ;;  %v1692_v56 = vsub.f32 %v9162_v61, %v6845_v40  ;;  %v9165_v40 = vld [vmem:[#allocation61_spill] sm:$0xff] }
 0x2ba   : > { %v7139_v46 = vpop.permute.xlu1 %2374  ;;  %v1364_v55 = vadd.f32 %v6986_v0, %v1341_v51  ;;  %1377 = vst.msk [vmem:[%s6997_s26 + $0x50] sm:$0xff] %vm9156_vm14, %v1360_v53  ;;  %v9158_v0 = vpack.c.bf16 %v6692_v60, %v6696_v15  ;;  %v9160_v60 = vpack.c.bf16 %v6721_v6, %v6710_v18  ;;  %v1832_v6 = vpack.c.bf16 %v6740_v57, %v6822_v62 }
 0x2bb   : > { %1371 = vst.msk [vmem:[%s6997_s26 + $0x20] sm:$0xff] %vm9153_vm0, %v1354_v37  ;;  %v1837_v57 = vpack.c.bf16 %v6772_v58, %v6736_v27  ;;  %v1750_v62 = vmul.f32 1.442695, %v1693_v49  ;;  %v1836_v37 = vpack.c.bf16 %v6770_v1, %v6734_v21  ;;  %v1748_v11 = vmul.f32 1.442695, %v1692_v56  ;;  %v4780_v27 = vld [vmem:[%s8680_s5 + $0x48] sm:$0xff]   ;;  %v7291_v56 = vpop.permute.xlu0 %2354 }
 0x2bc   : > { %1379 = vst.msk [vmem:[%s6997_s26 + $0x60] sm:$0xff] %vm9157_vm5, %v1362_v32  ;;  %v9163_v21 = vld [vmem:[#allocation30_spill] sm:$0xff]  ;;  %v2418_v20 = vadd.f32 %v7014_v23, %v9165_v40  ;;  %v2419_v54 = vadd.f32 %v7017_v4, %v9165_v40  ;;  %v9167_v32 = vld [vmem:[#allocation45_spill] sm:$0xff] }
 0x2bd   : > { %1381 = vst.msk [vmem:[%s6997_s26 + $0x70] sm:$0xff] %vm9153_vm0, %v1364_v55  ;;  %5026 = vpow2.f32 %v1750_v62  ;;  %v9164_v1 = vld [vmem:[#allocation38_spill] sm:$0xff] }
 0x2be   : > { %5028 = vpow2.f32 %v1748_v11  ;;  %v1838_v58 = vpack.c.bf16 %v9164_v1, %v9163_v21  ;;  %v2482_v51 = vmul.f32 0.2, %v2418_v20  ;;  %v2483_v36 = vmul.f32 0.2, %v2419_v54  ;;  %v4782_v11 = vld [vmem:[%s8680_s5 + $0x10] sm:$0xff]  }
 0x2bf   : > { %v7144_v39 = vpop.permute.xlu1 %3326 }
 0x2c3   : > { %v1985_v17 = vpop.permute.xlu1 %1984 }
 0x2c4   : > { %4491 = vmatprep.subr.bf16.mxu1 %v1985_v17  ;;  %v1834_v17 = vpack.c.bf16 %v6757_v41, %v6717_v30  ;;  %v4779_v30 = vld [vmem:[%s8680_s5 + $0x40] sm:$0xff]  }
 0x2c5   : > { %4492 = vmatpush3.bf16.msra.mxu1 %v7047_v47  ;;  %v3364_v47 = vadd.f32 %v7126_v12, %v6863_v8  ;;  %v4776_v8 = vld [vmem:[%s8680_s5] sm:$0xff]  }
 0x2c6   : > { %3528 = vmax.xlane.f32.xlu1 %v3527_v52 }
 0x2c7   : > { %v1987_v3 = vpop.permute.xlu1 %1986  ;;  %v3428_v42 = vmul.f32 0.2, %v3364_v47  ;;  %vm3396_vm12 = vcmp.gt.f32.partialorder %v3364_v47, 0.0  ;;  %v7248_v41 = vpop.eup %5026 }
 0x2c8   : > { %4493 = vmatprep.subr.bf16.mxu1 %v1987_v3  ;;  %v1841_v52 = vpack.c.bf16 %v9166_v26, %v7248_v41  ;;  %v7263_v53 = vpop.eup %5028  ;;  %v9168_v3 = vld [vmem:[#allocation58_spill] sm:$0xff] }
 0x2c9   : > { %4494 = vmatpush3.bf16.msra.mxu1 %v7063_v50  ;;  %v3460_v13 = vsel %vm3396_vm12, %v3364_v47, %v3428_v42  ;;  %v3461_v50 = vsel %vm3397_vm10, %v3365_v45, %v3429_v63  ;;  %v1840_v55 = vpack.c.bf16 %v9167_v32, %v7263_v53  ;;  %v9169_v47 = vld [vmem:[#allocation53_spill] sm:$0xff]  ;;  %v9170_v42 = vld [vmem:[#allocation15_spill] sm:$0xff] }
 0x2ca   : > { %v7208_v15 = vsel %vm9148_vm15, %v3460_v13, -1e+30  ;;  %v7212_v9 = vsel %vm9150_vm1, %v3461_v50, -1e+30  ;;  %vm2450_vm1 = vcmp.gt.f32.partialorder %v2418_v20, 0.0  ;;  %vm2451_vm15 = vcmp.gt.f32.partialorder %v2419_v54, 0.0 }
 0x2cb   : > { %v3524_v18 = vmax.f32 %v7208_v15, %v7212_v9  ;;  %v1843_v45 = vpack.c.bf16 %v9169_v47, %v9168_v3  ;;  %vm9171_vm14 = vnez %v9170_v42  ;;  %v9172_v13 = vld [vmem:[#allocation16_spill] sm:$0xff]  ;;  %v4783_v3 = vld [vmem:[%s8680_s5 + $0x50] sm:$0xff]  }
 0x2cc   : > { %2037 = vmatmul.mubr.bf16.vlgmr.msra.gmra.mrb[0].mxu1 %v9158_v0  ;;  %v2514_v0 = vsel %vm2450_vm1, %v2418_v20, %v2482_v51  ;;  %vm9173_vm5 = vnez %v9172_v13 }
 0x2cd   : > { %2044 = vmatprep.mubr.bf16.mxu1 %v9159_v7  ;;  %v2515_v7 = vsel %vm2451_vm15, %v2419_v54, %v2483_v36  ;;  %v7271_v63 = vsel %vm9171_vm14, %v2514_v0, -1e+30 }
 0x2ce   : > { %v7275_v50 = vsel %vm9173_vm5, %v2515_v7, -1e+30 }
 0x2d4   : > { %2045 = vmatmul.mubr.bf16.gmra.mrb[4].mxu1 %v9160_v60  ;;  %v9174_v60 = vld [vmem:[#allocation56_spill] sm:$0xff] }
 0x2d5   : > { %2052 = vmatprep.mubr.bf16.mxu1 %v1833_v29  ;;  %v7277_v29 = vpop.permute.xlu1 %2378 }
 0x2d6   : > { %3525 = vmax.xlane.f32.xlu0 %v3524_v18 }
 0x2d7   : > { %3860 = vrot.lane.b32.xlu1 %v4776_v8, %s5536_s24  ;;  %v2581_v8 = vmax.f32 %v7271_v63, %v7275_v50 }
 0x2db   : > { %2910 = vrot.lane.b32.xlu1 %v4777_v10, %s5535_s15  ;;  %v9175_v10 = vld [vmem:[#allocation52_spill] sm:$0xff] }
 0x2dc   : > { %2053 = vmatmul.mubr.bf16.gmra.mrb[8].mxu1 %v1832_v6  ;;  %v1842_v18 = vpack.c.bf16 %v9175_v10, %v9174_v60  ;;  %v7283_v6 = vpop.permute.xlu1 %3330 }
 0x2dd   : > { %2060 = vmatprep.mubr.bf16.mxu1 %v1835_v33  ;;  %v9176_v33 = vld [vmem:[#allocation59_spill] sm:$0xff] }
 0x2de   : > { %v2417_v59 = vadd.f32 %v7017_v4, %v9176_v33 }
 0x2df   : > { %3862 = vrot.lane.b32.xlu1 %v4778_v28, %s5536_s24  ;;  %v2416_v28 = vadd.f32 %v7014_v23, %v9176_v33 }
 0x2e0   : > { %vm2449_vm12 = vcmp.gt.f32.partialorder %v2417_v59, 0.0 }
 0x2e1   : > { %v2480_v49 = vmul.f32 0.2, %v2416_v28  ;;  %vm2448_vm0 = vcmp.gt.f32.partialorder %v2416_v28, 0.0 }
 0x2e3   : > { %v2512_v62 = vsel %vm2448_vm0, %v2416_v28, %v2480_v49 }
 0x2e4   : > { %2061 = vmatmul.mubr.bf16.gmra.mrb[12].mxu1 %v1834_v17  ;;  %v2481_v17 = vmul.f32 0.2, %v2417_v59 }
 0x2e5   : > { %2068 = vmatprep.mubr.bf16.mxu1 %v1837_v57  ;;  %v7289_v57 = vpop.permute.xlu1 %3334 }
 0x2e6   : > { %v2513_v61 = vsel %vm2449_vm12, %v2417_v59, %v2481_v17 }
 0x2ec   : > { %2069 = vmatmul.mubr.bf16.gmra.mrb[16].mxu1 %v1836_v37  ;;  %3876 = vrot.lane.b32.xlu0 %v4779_v30, %s5536_s24  ;;  %v7293_v37 = vpop.permute.xlu1 %2390 }
 0x2ed   : > { %2076 = vmatprep.mubr.bf16.mxu1 %v1839_v35  ;;  %v9177_v35 = vld [vmem:[#allocation11_spill] sm:$0xff] }
 0x2ee   : > { %vm9178_vm10 = vnez %v9177_v35  ;;  %v4786_v35 = vld [vmem:[%s8680_s5 + $0x18] sm:$0xff]  }
 0x2ef   : > { %v7300_v30 = vsel %vm9178_vm10, %v2512_v62, -1e+30 }
 0x2f0   : > { %2926 = vrot.lane.b32.xlu0 %v4780_v27, %s5535_s15  ;;  %v9179_v27 = vld [vmem:[#allocation12_spill] sm:$0xff]  ;;  %v7311_v40 = vpop.permute.xlu1 %3342 }
 0x2f1   : > { %vm9180_vm1 = vnez %v9179_v27 }
 0x2f2   : > { %v7304_v21 = vsel %vm9180_vm1, %v2513_v61, -1e+30 }
 0x2f3   : > { %v2578_v1 = vmax.f32 %v7300_v30, %v7304_v21 }
 0x2f4   : > { %2077 = vmatmul.mubr.bf16.gmra.mrb[20].mxu1 %v1838_v58  ;;  %3878 = vrot.lane.b32.xlu0 %v4781_v48, %s5536_s24  ;;  %v7309_v58 = vpop.permute.xlu0 %2366  ;;  %v7315_v54 = vpop.permute.xlu1 %2394  ;;  %v9181_v48 = vld [vmem:[#allocation63_spill] sm:$0xff] }
 0x2f5   : > { %2084 = vmatprep.mubr.bf16.mxu1 %v1841_v52  ;;  %v3370_v51 = vadd.f32 %v7126_v12, %v9181_v48  ;;  %v3371_v36 = vadd.f32 %v7129_v14, %v9181_v48 }
 0x2f7   : > { %v3434_v47 = vmul.f32 0.2, %v3370_v51  ;;  %vm3402_vm15 = vcmp.gt.f32.partialorder %v3370_v51, 0.0  ;;  %vm3403_vm0 = vcmp.gt.f32.partialorder %v3371_v36, 0.0 }
 0x2f8   : > { %v7313_v20 = vpop.permute.xlu0 %2370  ;;  %v7319_v52 = vpop.permute.xlu1 %3346 }
 0x2f9   : > { %v3466_v10 = vsel %vm3402_vm15, %v3370_v51, %v3434_v47 }
 0x2fa   : > { %v7345_v49 = vsel %vm9171_vm14, %v3466_v10, -1e+30 }
 0x2fc   : > { %2085 = vmatmul.mubr.bf16.gmra.mrb[24].mxu1 %v1840_v55  ;;  %v7317_v26 = vpop.permute.xlu0 %2382  ;;  %v7327_v55 = vpop.permute.xlu1 %3350 }
 0x2fd   : > { %2092 = vmatprep.mubr.bf16.mxu1 %v1843_v45  ;;  %v3435_v45 = vmul.f32 0.2, %v3371_v36 }
 0x300   : > { %v7325_v32 = vpop.permute.xlu0 %2386 }
 0x303   : > { %2582 = vmax.xlane.f32.xlu1 %v2581_v8  ;;  %v9182_v8 = vld [vmem:[#allocation14_spill] sm:$0xff] }
 0x304   : > { %2093 = vmatmul.mubr.bf16.gmra.mrb[28].mxu1 %v1842_v18  ;;  %v7335_v7 = vpop.permute.xlu0 %2398  ;;  %v3467_v18 = vsel %vm3403_vm0, %v3371_v36, %v3435_v45 }
 0x305   : > { %v7349_v17 = vsel %vm9173_vm5, %v3467_v18, -1e+30 }
 0x313   : > { %2579 = vmax.xlane.f32.xlu0 %v2578_v1 }
 0x314   : > { %2912 = vrot.lane.b32.xlu1 %v4782_v11, %s5535_s15  ;;  %v3533_v11 = vmax.f32 %v7345_v49, %v7349_v17 }
 0x31e   : > { %v7332_v0 = vpop.xlane.xlu1 %2576 }
 0x31f   : > { %v2623_v60 = vsub.f32 %v9182_v8, %v7332_v0 }
 0x321   : > { %v2658_v28 = vmul.f32 1.442695, %v2623_v60  ;;  %v4784_v60 = vld [vmem:[%s8680_s5 + $0x10] sm:$0xff]  }
 0x322   : > { %v2909_v1 = vpop.permute.xlu1 %2908 }
 0x323   : > { %5030 = vpow2.f32 %v2658_v28  ;;  %v4785_v28 = vld [vmem:[%s8680_s5 + $0x18] sm:$0xff]  }
 0x329   : > { %2928 = vrot.lane.b32.xlu0 %v4783_v3, %s5535_s15 }
 0x32d   : > { %v7357_v36 = vpop.eup %5030 }
 0x32e   : > { %v7339_v33 = vpop.xlane.xlu0 %2573 }
 0x32f   : > { %v2621_v59 = vsub.f32 %v7101_v19, %v7339_v33  ;;  %v9183_v19 = vld [vmem:[#allocation62_spill] sm:$0xff] }
 0x330   : > { %v3368_v42 = vadd.f32 %v7126_v12, %v9183_v19  ;;  %v3369_v48 = vadd.f32 %v7129_v14, %v9183_v19  ;;  %v4787_v19 = vld [vmem:[%s8680_s5 + $0x50] sm:$0xff]  }
 0x331   : > { %v2654_v62 = vmul.f32 1.442695, %v2621_v59 }
 0x332   : > { %v2925_v61 = vpop.permute.xlu0 %2924  ;;  %v3432_v13 = vmul.f32 0.2, %v3368_v42  ;;  %v3433_v51 = vmul.f32 0.2, %v3369_v48  ;;  %vm3400_vm14 = vcmp.gt.f32.partialorder %v3368_v42, 0.0  ;;  %vm3401_vm5 = vcmp.gt.f32.partialorder %v3369_v48, 0.0 }
 0x333   : > { %4543 = vmatprep.subr.bf16.mxu0 %v2925_v61  ;;  %5032 = vpow2.f32 %v2654_v62 }
 0x334   : > { %4544 = vmatpush3.bf16.msra.mxu0 %v2909_v1  ;;  %v3464_v45 = vsel %vm3400_vm14, %v3368_v42, %v3432_v13  ;;  %v3465_v8 = vsel %vm3401_vm5, %v3369_v48, %v3433_v51  ;;  %v4788_v48 = vld [vmem:[%s8680_s5 + $0x58] sm:$0xff]   ;;  %v2423_v51 = vadd.f32 %v7017_v4, %v7081_v43 }
 0x335   : > { %v7368_v10 = vsel %vm9178_vm10, %v3464_v45, -1e+30  ;;  %v7372_v18 = vsel %vm9180_vm1, %v3465_v8, -1e+30 }
 0x336   : > { %v3530_v59 = vmax.f32 %v7368_v10, %v7372_v18  ;;  %vm2455_vm10 = vcmp.gt.f32.partialorder %v2423_v51, 0.0 }
 0x338   : > { %3534 = vmax.xlane.f32.xlu1 %v3533_v11 }
 0x33d   : > { %v7359_v3 = vpop.eup %5032 }
 0x33e   : > { %v2781_v47 = vpack.c.bf16 %v7357_v36, %v7359_v3 }
 0x340   : > { %2988 = vmatprep.mubr.bf16.mxu0 %v2781_v47  ;;  %v4789_v47 = vld [vmem:[%s8680_s5 + $0x58] sm:$0xff]  }
 0x348   : > { %3531 = vmax.xlane.f32.xlu0 %v3530_v59 }
 0x349   : > { %3864 = vrot.lane.b32.xlu1 %v4784_v60, %s5536_s24 }
 0x34d   : > { %2914 = vrot.lane.b32.xlu1 %v4785_v28, %s5535_s15 }
 0x351   : > { %3866 = vrot.lane.b32.xlu1 %v4786_v35, %s5536_s24  ;;  %v2487_v35 = vmul.f32 0.2, %v2423_v51 }
 0x353   : > { %v3529_v27 = vpop.xlane.xlu1 %3528 }
 0x354   : > { %v3574_v62 = vsub.f32 %v7149_v31, %v3529_v27  ;;  %v3575_v61 = vsub.f32 %v7155_v5, %v3529_v27  ;;  %v2422_v5 = vadd.f32 %v7014_v23, %v7081_v43 }
 0x356   : > { %v3608_v11 = vmul.f32 1.442695, %v3574_v62  ;;  %v3610_v1 = vmul.f32 1.442695, %v3575_v61  ;;  %v2486_v59 = vmul.f32 0.2, %v2422_v5 }
 0x357   : > { %v3861_v8 = vpop.permute.xlu1 %3860  ;;  %vm2454_vm12 = vcmp.gt.f32.partialorder %v2422_v5, 0.0 }
 0x358   : > { %5034 = vpow2.f32 %v3608_v11  ;;  %v2518_v61 = vsel %vm2454_vm12, %v2422_v5, %v2486_v59  ;;  %v2519_v11 = vsel %vm2455_vm10, %v2423_v51, %v2487_v35  ;;  %v2420_v35 = vadd.f32 %v7014_v23, %v7291_v56 }
 0x359   : > { %5036 = vpow2.f32 %v3610_v1 }
 0x35a   : > { %vm2452_vm0 = vcmp.gt.f32.partialorder %v2420_v35, 0.0 }
 0x35b   : > { %v2911_v1 = vpop.permute.xlu1 %2910 }
 0x35e   : > { %3880 = vrot.lane.b32.xlu0 %v4787_v19, %s5536_s24 }
 0x362   : > { %v7390_v42 = vpop.eup %5034  ;;  %2930 = vrot.lane.b32.xlu0 %v4788_v48, %s5535_s15  ;;  %v9188_v48 = vld [vmem:[#allocation20_spill] sm:$0xff] }
 0x363   : > { %9184 = vst [vmem:[#allocation9_spill] sm:$0xff] %v7390_v42  ;;  %v5037_v13 = vpop.eup %5036  ;;  %v3526_v45 = vpop.xlane.xlu0 %3525  ;;  %vm9189_vm15 = vnez %v9188_v48 }
 0x364   : > { %v7397_v31 = vadd.f32 %v5037_v13, %v7390_v42  ;;  %v3572_v60 = vsub.f32 %v7208_v15, %v3526_v45  ;;  %v3573_v28 = vsub.f32 %v7212_v9, %v3526_v45  ;;  %v9186_v15 = vld [vmem:[#allocation19_spill] sm:$0xff]  ;;  %v7416_v45 = vsel %vm9189_vm15, %v2519_v11, -1e+30 }
 0x365   : > { %vm9187_vm1 = vnez %v9186_v15 }
 0x366   : > { %9185 = vst [vmem:[#allocation10_spill] sm:$0xff] %v7397_v31  ;;  %v3604_v27 = vmul.f32 1.442695, %v3572_v60  ;;  %v3606_v62 = vmul.f32 1.442695, %v3573_v28  ;;  %3882 = vrot.lane.b32.xlu0 %v4789_v47, %s5536_s24  ;;  %v3863_v28 = vpop.permute.xlu1 %3862 }
 0x367   : > { %v3877_v43 = vpop.permute.xlu0 %3876  ;;  %v7412_v9 = vsel %vm9187_vm1, %v2518_v61, -1e+30 }
 0x368   : > { %5038 = vpow2.f32 %v3604_v27  ;;  %4607 = vmatprep.subr.bf16.mxu1 %v3877_v43  ;;  %v2587_v60 = vmax.f32 %v7412_v9, %v7416_v45  ;;  %v2421_v27 = vadd.f32 %v7017_v4, %v7291_v56 }
 0x369   : > { %5040 = vpow2.f32 %v3606_v62  ;;  %4608 = vmatpush3.bf16.msra.mxu1 %v3861_v8  ;;  %v2484_v62 = vmul.f32 0.2, %v2420_v35 }
 0x36a   : > { %v2485_v43 = vmul.f32 0.2, %v2421_v27  ;;  %vm2453_vm14 = vcmp.gt.f32.partialorder %v2421_v27, 0.0 }
 0x36b   : > { %v2927_v19 = vpop.permute.xlu0 %2926  ;;  %v2516_v61 = vsel %vm2452_vm0, %v2420_v35, %v2484_v62 }
 0x36c   : > { %4545 = vmatprep.subr.bf16.mxu0 %v2927_v19  ;;  %v2517_v11 = vsel %vm2453_vm14, %v2421_v27, %v2485_v43 }
 0x36d   : > { %4546 = vmatpush3.bf16.msra.mxu0 %v2911_v1  ;;  %v9192_v1 = vld [vmem:[#allocation17_spill] sm:$0xff] }
 0x36e   : > { %vm9193_vm5 = vnez %v9192_v1 }
 0x36f   : > { %v3879_v47 = vpop.permute.xlu0 %3878  ;;  %v7434_v19 = vsel %vm9193_vm5, %v2516_v61, -1e+30 }
 0x370   : > { %4609 = vmatprep.subr.bf16.mxu1 %v3879_v47  ;;  %v9194_v47 = vld [vmem:[#allocation18_spill] sm:$0xff] }
 0x371   : > { %4610 = vmatpush3.bf16.msra.mxu1 %v3863_v28  ;;  %vm9195_vm12 = vnez %v9194_v47  ;;  %v3374_v28 = vadd.f32 %v7126_v12, %v7087_v44  ;;  %v4794_v47 = vld [vmem:[%s8680_s5 + $0x28] sm:$0xff]  }
 0x372   : > { %v7420_v5 = vpop.eup %5038 }
 0x373   : > { %9190 = vst [vmem:[#allocation69_spill] sm:$0xff] %v7420_v5  ;;  %v5041_v51 = vpop.eup %5040  ;;  %v3438_v35 = vmul.f32 0.2, %v3374_v28  ;;  %vm3406_vm10 = vcmp.gt.f32.partialorder %v3374_v28, 0.0 }
 0x374   : > { %v3733_v8 = vpack.c.bf16 %v5037_v13, %v5041_v51  ;;  %v7423_v59 = vadd.f32 %v5041_v51, %v7420_v5  ;;  %v4790_v13 = vld [vmem:[%s8680_s5 + $0x20] sm:$0xff]   ;;  %v3375_v51 = vadd.f32 %v7129_v14, %v7087_v44 }
 0x375   : > { %2588 = vmax.xlane.f32.xlu1 %v2587_v60  ;;  %v7438_v60 = vsel %vm9195_vm12, %v2517_v11, -1e+30 }
 0x376   : > { %9191 = vst [vmem:[#allocation68_spill] sm:$0xff] %v7423_v59  ;;  %3940 = vmatprep.mubr.bf16.mxu1 %v3733_v8  ;;  %v2584_v56 = vmax.f32 %v7434_v19, %v7438_v60  ;;  %v4791_v8 = vld [vmem:[%s8680_s5 + $0x60] sm:$0xff]   ;;  %v3439_v27 = vmul.f32 0.2, %v3375_v51  ;;  %vm3407_vm0 = vcmp.gt.f32.partialorder %v3375_v51, 0.0 }
 0x378   : > { %v3471_v22 = vsel %vm3407_vm0, %v3375_v51, %v3439_v27 }
 0x385   : > { %2585 = vmax.xlane.f32.xlu0 %v2584_v56  ;;  %v3470_v56 = vsel %vm3406_vm10, %v3374_v28, %v3438_v35 }
 0x386   : > { %2916 = vrot.lane.b32.xlu1 %v4790_v13, %s5535_s15  ;;  %v7461_v59 = vsel %vm9187_vm1, %v3470_v56, -1e+30  ;;  %v9200_v56 = vld [vmem:[#allocation23_spill] sm:$0xff] }
 0x387   : > { %v3373_v48 = vadd.f32 %v7129_v14, %v9200_v56 }
 0x390   : > { %v7457_v31 = vpop.xlane.xlu1 %2582 }
 0x394   : > { %v2913_v51 = vpop.permute.xlu1 %2912 }
 0x39b   : > { %2932 = vrot.lane.b32.xlu0 %v4791_v8, %s5535_s15  ;;  %v7465_v8 = vsel %vm9189_vm15, %v3471_v22, -1e+30  ;;  %v3372_v22 = vadd.f32 %v7126_v12, %v9200_v56  ;;  %vm3405_vm15 = vcmp.gt.f32.partialorder %v3373_v48, 0.0 }
 0x39c   : > { %v3539_v28 = vmax.f32 %v7461_v59, %v7465_v8 }
 0x39d   : > { %v3436_v5 = vmul.f32 0.2, %v3372_v22  ;;  %vm3404_vm1 = vcmp.gt.f32.partialorder %v3372_v22, 0.0 }
 0x39f   : > { %v4495_v62 = vpop.f32.mrb[0].mxu1 }
 0x3a0   : > { %v4496_v43 = vpop.f32.mrb[1].mxu1  ;;  %v7455_v44 = vpop.xlane.xlu0 %2579 }
 0x3a1   : > { %v7451_v61 = vadd.f32 %v4496_v43, %v4495_v62  ;;  %v4498_v11 = vpop.f32.mrb[2].mxu1 }
 0x3a2   : > { %v4499_v13 = vpop.f32.mrb[3].mxu1 }
 0x3a3   : > { %9196 = vst [vmem:[#allocation30_spill] sm:$0xff] %v7451_v61  ;;  %v7453_v25 = vadd.f32 %v4499_v13, %v4498_v11 }
 0x3a4   : > { %v2929_v62 = vpop.permute.xlu0 %2928 }
 0x3a5   : > { %9197 = vst [vmem:[#allocation38_spill] sm:$0xff] %v7453_v25  ;;  %4547 = vmatprep.subr.bf16.mxu0 %v2929_v62 }
 0x3a6   : > { %4548 = vmatpush3.bf16.msra.mxu0 %v2913_v51  ;;  %v3437_v51 = vmul.f32 0.2, %v3373_v48 }
 0x3a7   : > { %v4501_v43 = vpop.f32.mrb[4].mxu1 }
 0x3a8   : > { %v4502_v35 = vpop.f32.mrb[5].mxu1 }
 0x3a9   : > { %v7469_v27 = vadd.f32 %v4502_v35, %v4501_v43  ;;  %v4504_v11 = vpop.f32.mrb[6].mxu1  ;;  %v3468_v35 = vsel %vm3404_vm1, %v3372_v22, %v3436_v5  ;;  %v4793_v22 = vld [vmem:[%s8680_s5 + $0x28] sm:$0xff]  }
 0x3aa   : > { %3540 = vmax.xlane.f32.xlu1 %v3539_v28  ;;  %v4505_v15 = vpop.f32.mrb[7].mxu1 }
 0x3ab   : > { %9198 = vst [vmem:[#allocation61_spill] sm:$0xff] %v7469_v27  ;;  %v7471_v13 = vadd.f32 %v4505_v15, %v4504_v11  ;;  %v3469_v11 = vsel %vm3405_vm15, %v3373_v48, %v3437_v51 }
 0x3ad   : > { %9199 = vst [vmem:[#allocation46_spill] sm:$0xff] %v7471_v13  ;;  %v4792_v13 = vld [vmem:[%s8680_s5 + $0x20] sm:$0xff]  }
 0x3af   : > { %v4507_v25 = vpop.f32.mrb[8].mxu1 }
 0x3b0   : > { %v4508_v61 = vpop.f32.mrb[9].mxu1 }
 0x3b1   : > { %v7477_v42 = vadd.f32 %v4508_v61, %v4507_v25  ;;  %v4510_v62 = vpop.f32.mrb[10].mxu1  ;;  %v7488_v61 = vsel %vm9193_vm5, %v3468_v35, -1e+30 }
 0x3b2   : > { %v4511_v43 = vpop.f32.mrb[11].mxu1 }
 0x3b3   : > { %9201 = vst [vmem:[#allocation45_spill] sm:$0xff] %v7477_v42  ;;  %v7479_v28 = vadd.f32 %v4511_v43, %v4510_v62  ;;  %v7492_v42 = vsel %vm9195_vm12, %v3469_v11, -1e+30 }
 0x3b4   : > { %v3536_v48 = vmax.f32 %v7488_v61, %v7492_v42 }
 0x3b5   : > { %9202 = vst [vmem:[#allocation58_spill] sm:$0xff] %v7479_v28 }
 0x3b7   : > { %v4513_v15 = vpop.f32.mrb[12].mxu1 }
 0x3b8   : > { %v4514_v56 = vpop.f32.mrb[13].mxu1 }
 0x3b9   : > { %v7484_v27 = vadd.f32 %v4514_v56, %v4513_v15  ;;  %v4516_v25 = vpop.f32.mrb[14].mxu1 }
 0x3ba   : > { %v4517_v62 = vpop.f32.mrb[15].mxu1  ;;  %3537 = vmax.xlane.f32.xlu0 %v3536_v48 }
 0x3bb   : > { %9203 = vst [vmem:[#allocation53_spill] sm:$0xff] %v7484_v27  ;;  %v7494_v5 = vadd.f32 %v4517_v62, %v4516_v25  ;;  %3868 = vrot.lane.b32.xlu1 %v4792_v13, %s5536_s24 }
 0x3bd   : > { %9204 = vst [vmem:[#allocation15_spill] sm:$0xff] %v7494_v5 }
 0x3bf   : > { %2918 = vrot.lane.b32.xlu1 %v4793_v22, %s5535_s15  ;;  %v4519_v1 = vpop.f32.mrb[16].mxu1 }
 0x3c0   : > { %v4520_v51 = vpop.f32.mrb[17].mxu1 }
 0x3c1   : > { %v7506_v43 = vadd.f32 %v4520_v51, %v4519_v1  ;;  %v4522_v35 = vpop.f32.mrb[18].mxu1 }
 0x3c2   : > { %v4523_v13 = vpop.f32.mrb[19].mxu1 }
 0x3c3   : > { %9205 = vst [vmem:[#allocation16_spill] sm:$0xff] %v7506_v43  ;;  %v7508_v11 = vadd.f32 %v4523_v13, %v4522_v35  ;;  %3870 = vrot.lane.b32.xlu1 %v4794_v47, %s5536_s24  ;;  %v4795_v47 = vld [vmem:[%s8680_s5 + $0x60] sm:$0xff]  }
 0x3c5   : > { %9206 = vst [vmem:[#allocation56_spill] sm:$0xff] %v7508_v11  ;;  %v3535_v15 = vpop.xlane.xlu1 %3534 }
 0x3c6   : > { %v3578_v56 = vsub.f32 %v7345_v49, %v3535_v15  ;;  %v3579_v25 = vsub.f32 %v7349_v17, %v3535_v15 }
 0x3c7   : > { %v4525_v62 = vpop.f32.mrb[20].mxu1 }
 0x3c8   : > { %v3616_v22 = vmul.f32 1.442695, %v3578_v56  ;;  %v3618_v48 = vmul.f32 1.442695, %v3579_v25  ;;  %v4526_v27 = vpop.f32.mrb[21].mxu1 }
 0x3c9   : > { %v7513_v5 = vadd.f32 %v4526_v27, %v4525_v62  ;;  %v4528_v28 = vpop.f32.mrb[22].mxu1 }
 0x3ca   : > { %5042 = vpow2.f32 %v3616_v22  ;;  %v4529_v1 = vpop.f32.mrb[23].mxu1  ;;  %v2426_v22 = vadd.f32 %v7014_v23, %v7309_v58 }
 0x3cb   : > { %9207 = vst [vmem:[#allocation52_spill] sm:$0xff] %v7513_v5  ;;  %5044 = vpow2.f32 %v3618_v48  ;;  %v7515_v51 = vadd.f32 %v4529_v1, %v4528_v28  ;;  %v4796_v28 = vld [vmem:[%s8680_s5 + $0x68] sm:$0xff]   ;;  %v2427_v48 = vadd.f32 %v7017_v4, %v7309_v58 }
 0x3cc   : > { %vm2458_vm14 = vcmp.gt.f32.partialorder %v2426_v22, 0.0 }
 0x3cd   : > { %9208 = vst [vmem:[#allocation59_spill] sm:$0xff] %v7515_v51  ;;  %v2490_v51 = vmul.f32 0.2, %v2426_v22  ;;  %v2491_v58 = vmul.f32 0.2, %v2427_v48  ;;  %vm2459_vm5 = vcmp.gt.f32.partialorder %v2427_v48, 0.0 }
 0x3cf   : > { %v4531_v35 = vpop.f32.mrb[24].mxu1 }
 0x3d0   : > { %v4532_v49 = vpop.f32.mrb[25].mxu1  ;;  %3884 = vrot.lane.b32.xlu0 %v4795_v47, %s5536_s24 }
 0x3d1   : > { %v7520_v13 = vadd.f32 %v4532_v49, %v4531_v35  ;;  %v4534_v17 = vpop.f32.mrb[26].mxu1  ;;  %v4797_v35 = vld [vmem:[%s8680_s5 + $0x68] sm:$0xff]  }
 0x3d2   : > { %v4535_v15 = vpop.f32.mrb[27].mxu1 }
 0x3d3   : > { %9209 = vst [vmem:[#allocation11_spill] sm:$0xff] %v7520_v13  ;;  %v7522_v56 = vadd.f32 %v4535_v15, %v4534_v17  ;;  %v3865_v13 = vpop.permute.xlu1 %3864 }
 0x3d4   : > { %v7524_v27 = vpop.eup %5042  ;;  %2934 = vrot.lane.b32.xlu0 %v4796_v28, %s5535_s15 }
 0x3d5   : > { %9210 = vst [vmem:[#allocation12_spill] sm:$0xff] %v7522_v56  ;;  %9211 = vst [vmem:[#allocation63_spill] sm:$0xff] %v7524_v27  ;;  %v7530_v25 = vpop.eup %5044  ;;  %v3532_v49 = vpop.xlane.xlu0 %3531 }
 0x3d6   : > { %9212 = vst [vmem:[#allocation14_spill] sm:$0xff] %v7530_v25  ;;  %v7534_v62 = vadd.f32 %v7530_v25, %v7524_v27  ;;  %v3576_v5 = vsub.f32 %v7368_v10, %v3532_v49  ;;  %v3577_v43 = vsub.f32 %v7372_v18, %v3532_v49  ;;  %v2523_v10 = vsel %vm2459_vm5, %v2427_v48, %v2491_v58 }
 0x3d7   : > { %v4537_v1 = vpop.f32.mrb[28].mxu1  ;;  %v2424_v48 = vadd.f32 %v7014_v23, %v7108_v2  ;;  %v3377_v49 = vadd.f32 %v7129_v14, %v7113_v16 }
 0x3d8   : > { %9213 = vst [vmem:[#allocation62_spill] sm:$0xff] %v7534_v62  ;;  %v4538_v47 = vpop.f32.mrb[29].mxu1  ;;  %v3612_v28 = vmul.f32 1.442695, %v3576_v5  ;;  %v3614_v62 = vmul.f32 1.442695, %v3577_v43  ;;  %3886 = vrot.lane.b32.xlu0 %v4797_v35, %s5536_s24  ;;  %v2425_v35 = vadd.f32 %v7017_v4, %v7108_v2 }
 0x3d9   : > { %v7544_v17 = vadd.f32 %v4538_v47, %v4537_v1  ;;  %v4540_v15 = vpop.f32.mrb[30].mxu1  ;;  %v3881_v27 = vpop.permute.xlu0 %3880  ;;  %v2522_v1 = vsel %vm2458_vm14, %v2426_v22, %v2490_v51  ;;  %v7557_v5 = vsel %vm9064_vm11, %v2523_v10, -1e+30  ;;  %v2488_v58 = vmul.f32 0.2, %v2424_v48 }
 0x3da   : > { %v4541_v56 = vpop.f32.mrb[31].mxu1  ;;  %5046 = vpow2.f32 %v3612_v28  ;;  %4611 = vmatprep.subr.bf16.mxu1 %v3881_v27  ;;  %v2915_v47 = vpop.permute.xlu1 %2914  ;;  %v2489_v28 = vmul.f32 0.2, %v2425_v35  ;;  %vm2456_vm12 = vcmp.gt.f32.partialorder %v2424_v48, 0.0  ;;  %vm2457_vm10 = vcmp.gt.f32.partialorder %v2425_v35, 0.0 }
 0x3db   : > { %9214 = vst [vmem:[#allocation19_spill] sm:$0xff] %v7544_v17  ;;  %v7548_v11 = vadd.f32 %v4541_v56, %v4540_v15  ;;  %5048 = vpow2.f32 %v3614_v62  ;;  %4612 = vmatpush3.bf16.msra.mxu1 %v3865_v13  ;;  %v7553_v56 = vsel %vm9063_vm13, %v2522_v1, -1e+30  ;;  %v2520_v1 = vsel %vm2456_vm12, %v2424_v48, %v2488_v58  ;;  %v4799_v58 = vld [vmem:[%s8680_s5 + $0x70] sm:$0xff]  }
 0x3dc   : > { %v2593_v27 = vmax.f32 %v7553_v56, %v7557_v5  ;;  %v2521_v10 = vsel %vm2457_vm10, %v2425_v35, %v2489_v28  ;;  %v3378_v48 = vadd.f32 %v7126_v12, %v7122_v24  ;;  %v3379_v35 = vadd.f32 %v7129_v14, %v7122_v24 }
 0x3dd   : > { %9215 = vst [vmem:[#allocation20_spill] sm:$0xff] %v7548_v11  ;;  %v2931_v18 = vpop.permute.xlu0 %2930  ;;  %vm3409_vm5 = vcmp.gt.f32.partialorder %v3377_v49, 0.0 }
 0x3de   : > { %4549 = vmatprep.subr.bf16.mxu0 %v2931_v18  ;;  %v3867_v62 = vpop.permute.xlu1 %3866  ;;  %v9221_v18 = vld [vmem:[#allocation21_spill] sm:$0xff]  ;;  %v3442_v28 = vmul.f32 0.2, %v3378_v48  ;;  %vm3410_vm15 = vcmp.gt.f32.partialorder %v3378_v48, 0.0  ;;  %vm3411_vm14 = vcmp.gt.f32.partialorder %v3379_v35, 0.0 }
 0x3df   : > { %4550 = vmatpush3.bf16.msra.mxu0 %v2915_v47  ;;  %v4798_v47 = vld [vmem:[%s8680_s5 + $0x30] sm:$0xff]   ;;  %vm9222_vm0 = vnez %v9221_v18  ;;  %v4802_v18 = vld [vmem:[%s8680_s5 + $0x38] sm:$0xff]  }
 0x3e1   : > { %v3883_v43 = vpop.permute.xlu0 %3882 }
 0x3e2   : > { %4613 = vmatprep.subr.bf16.mxu1 %v3883_v43  ;;  %v7578_v43 = vsel %vm9222_vm0, %v2520_v1, -1e+30  ;;  %v3443_v1 = vmul.f32 0.2, %v3379_v35 }
 0x3e3   : > { %4614 = vmatpush3.bf16.msra.mxu1 %v3867_v62 }
 0x3e4   : > { %v7561_v51 = vpop.eup %5046 }
 0x3e5   : > { %9218 = vst [vmem:[#allocation17_spill] sm:$0xff] %v7561_v51  ;;  %v7563_v13 = vpop.eup %5048 }
 0x3e6   : > { %9219 = vst [vmem:[#allocation18_spill] sm:$0xff] %v7563_v13  ;;  %v7567_v22 = vadd.f32 %v7563_v13, %v7561_v51 }
 0x3e7   : > { %2594 = vmax.xlane.f32.xlu1 %v2593_v27  ;;  %v9223_v27 = vld [vmem:[#allocation22_spill] sm:$0xff] }
 0x3e8   : > { %9220 = vst [vmem:[#allocation23_spill] sm:$0xff] %v7567_v22  ;;  %vm9224_vm1 = vnez %v9223_v27 }
 0x3e9   : > { %v7582_v62 = vsel %vm9224_vm1, %v2521_v10, -1e+30  ;;  %v3474_v10 = vsel %vm3410_vm15, %v3378_v48, %v3442_v28  ;;  %v3376_v48 = vadd.f32 %v7126_v12, %v7113_v16  ;;  %v4801_v16 = vld [vmem:[%s8680_s5 + $0x38] sm:$0xff]  }
 0x3ea   : > { %v2590_v2 = vmax.f32 %v7578_v43, %v7582_v62  ;;  %v7601_v11 = vsel %vm9063_vm13, %v3474_v10, -1e+30 }
 0x3eb   : > { %9225 = vst [vmem:[#allocation24_spill] sm:$0xff] %v7601_v11  ;;  %vm3408_vm13 = vcmp.gt.f32.partialorder %v3376_v48, 0.0 }
 0x3f7   : > { %2591 = vmax.xlane.f32.xlu0 %v2590_v2 }
 0x3f8   : > { %2920 = vrot.lane.b32.xlu1 %v4798_v47, %s5535_s15  ;;  %v3475_v47 = vsel %vm3411_vm14, %v3379_v35, %v3443_v1  ;;  %v3440_v35 = vmul.f32 0.2, %v3376_v48  ;;  %v4800_v1 = vld [vmem:[%s8680_s5 + $0x30] sm:$0xff]  }
 0x3f9   : > { %v7605_v24 = vsel %vm9064_vm11, %v3475_v47, -1e+30 }
 0x3fa   : > { %9226 = vst [vmem:[#allocation25_spill] sm:$0xff] %v7605_v24  ;;  %v3545_v51 = vmax.f32 %v7601_v11, %v7605_v24  ;;  %v3472_v15 = vsel %vm3408_vm13, %v3376_v48, %v3440_v35  ;;  %v4803_v35 = vld [vmem:[%s8680_s5 + $0x70] sm:$0xff]  }
 0x402   : > { %v7597_v2 = vpop.xlane.xlu1 %2588 }
 0x406   : > { %v2917_v25 = vpop.permute.xlu1 %2916 }
 0x40d   : > { %2936 = vrot.lane.b32.xlu0 %v4799_v58, %s5535_s15  ;;  %v3441_v58 = vmul.f32 0.2, %v3377_v49 }
 0x40f   : > { %v3473_v28 = vsel %vm3409_vm5, %v3377_v49, %v3441_v58 }
 0x412   : > { %v7595_v17 = vpop.xlane.xlu0 %2585 }
 0x416   : > { %v2933_v22 = vpop.permute.xlu0 %2932 }
 0x417   : > { %4551 = vmatprep.subr.bf16.mxu0 %v2933_v22 }
 0x418   : > { %4552 = vmatpush3.bf16.msra.mxu0 %v2917_v25  ;;  %v7618_v25 = vsel %vm9222_vm0, %v3472_v15, -1e+30  ;;  %v4804_v15 = vld [vmem:[%s8680_s5 + $0x78] sm:$0xff]  }
 0x419   : > { %9227 = vst [vmem:[#allocation21_spill] sm:$0xff] %v7618_v25 }
 0x41c   : > { %3546 = vmax.xlane.f32.xlu1 %v3545_v51  ;;  %v7622_v51 = vsel %vm9224_vm1, %v3473_v28, -1e+30 }
 0x41d   : > { %9228 = vst [vmem:[#allocation22_spill] sm:$0xff] %v7622_v51  ;;  %v3542_v22 = vmax.f32 %v7618_v25, %v7622_v51 }
 0x42c   : > { %3543 = vmax.xlane.f32.xlu0 %v3542_v22 }
 0x42d   : > { %3872 = vrot.lane.b32.xlu1 %v4800_v1, %s5536_s24 }
 0x431   : > { %2922 = vrot.lane.b32.xlu1 %v4801_v16, %s5535_s15  ;;  %v4805_v16 = vld [vmem:[%s8680_s5 + $0x78] sm:$0xff]  }
 0x435   : > { %3874 = vrot.lane.b32.xlu1 %v4802_v18, %s5536_s24 }
 0x437   : > { %v3541_v27 = vpop.xlane.xlu1 %3540 }
 0x438   : > { %v3582_v10 = vsub.f32 %v7461_v59, %v3541_v27  ;;  %v3583_v47 = vsub.f32 %v7465_v8, %v3541_v27  ;;  %v2430_v59 = vadd.f32 %v7014_v23, %v7139_v46  ;;  %v2431_v8 = vadd.f32 %v7017_v4, %v7139_v46 }
 0x43a   : > { %v3624_v48 = vmul.f32 1.442695, %v3582_v10  ;;  %v3626_v49 = vmul.f32 1.442695, %v3583_v47  ;;  %v2494_v22 = vmul.f32 0.2, %v2430_v59  ;;  %v2432_v10 = vadd.f32 %v7014_v23, %v7277_v29 }
 0x43b   : > { %v2495_v27 = vmul.f32 0.2, %v2431_v8  ;;  %v3869_v47 = vpop.permute.xlu1 %3868  ;;  %vm2462_vm11 = vcmp.gt.f32.partialorder %v2430_v59, 0.0  ;;  %vm2463_vm12 = vcmp.gt.f32.partialorder %v2431_v8, 0.0 }
 0x43c   : > { %5050 = vpow2.f32 %v3624_v48  ;;  %vm2464_vm10 = vcmp.gt.f32.partialorder %v2432_v10, 0.0 }
 0x43d   : > { %5052 = vpow2.f32 %v3626_v49  ;;  %v2433_v49 = vadd.f32 %v7017_v4, %v7277_v29  ;;  %v2527_v13 = vsel %vm2463_vm12, %v2431_v8, %v2495_v27 }
 0x43f   : > { %v2497_v51 = vmul.f32 0.2, %v2433_v49  ;;  %vm2465_vm0 = vcmp.gt.f32.partialorder %v2433_v49, 0.0  ;;  %v2919_v29 = vpop.permute.xlu1 %2918 }
 0x442   : > { %3888 = vrot.lane.b32.xlu0 %v4803_v35, %s5536_s24 }
 0x443   : > { %v3871_v25 = vpop.permute.xlu1 %3870 }
 0x446   : > { %v7640_v58 = vpop.eup %5050  ;;  %2938 = vrot.lane.b32.xlu0 %v4804_v15, %s5535_s15 }
 0x447   : > { %9229 = vst [vmem:[#allocation72_spill] sm:$0xff] %v7640_v58  ;;  %v7646_v28 = vpop.eup %5052  ;;  %v3538_v18 = vpop.xlane.xlu0 %3537 }
 0x448   : > { %9230 = vst [vmem:[#allocation73_spill] sm:$0xff] %v7646_v28  ;;  %v7654_v1 = vadd.f32 %v7646_v28, %v7640_v58  ;;  %v3580_v48 = vsub.f32 %v7488_v61, %v3538_v18  ;;  %v3581_v46 = vsub.f32 %v7492_v42, %v3538_v18  ;;  %v2496_v58 = vmul.f32 0.2, %v2432_v10 }
 0x449   : > { %v2526_v28 = vsel %vm2462_vm11, %v2430_v59, %v2494_v22  ;;  %v3384_v61 = vadd.f32 %v7126_v12, %v7283_v6  ;;  %v3385_v42 = vadd.f32 %v7129_v14, %v7283_v6  ;;  %v2437_v59 = vadd.f32 %v7017_v4, %v7325_v32 }
 0x44a   : > { %9231 = vst [vmem:[#allocation74_spill] sm:$0xff] %v7654_v1  ;;  %v3620_v35 = vmul.f32 1.442695, %v3580_v48  ;;  %v3622_v15 = vmul.f32 1.442695, %v3581_v46  ;;  %3890 = vrot.lane.b32.xlu0 %v4805_v16, %s5536_s24  ;;  %v2436_v16 = vadd.f32 %v7014_v23, %v7325_v32  ;;  %v2528_v48 = vsel %vm2464_vm10, %v2432_v10, %v2496_v58  ;;  %v9239_v10 = vld [vmem:[#allocation37_spill] sm:$0xff] }
 0x44b   : > { %v3885_v1 = vpop.permute.xlu0 %3884  ;;  %v7681_v6 = vsel %vm9068_vm8, %v2527_v13, -1e+30  ;;  %v3448_v27 = vmul.f32 0.2, %v3384_v61  ;;  %v2529_v46 = vsel %vm2465_vm0, %v2433_v49, %v2497_v51  ;;  %vm3416_vm1 = vcmp.gt.f32.partialorder %v3384_v61, 0.0 }
 0x44c   : > { %5054 = vpow2.f32 %v3620_v35  ;;  %4615 = vmatprep.subr.bf16.mxu1 %v3885_v1  ;;  %v7677_v1 = vsel %vm9067_vm6, %v2526_v28, -1e+30  ;;  %9235 = vst [vmem:[#allocation35_spill] sm:$0xff] %v7681_v6  ;;  %v3388_v35 = vadd.f32 %v7126_v12, %v7075_v34  ;;  %vm3417_vm15 = vcmp.gt.f32.partialorder %v3385_v42, 0.0 }
 0x44d   : > { %5056 = vpow2.f32 %v3622_v15  ;;  %4616 = vmatpush3.bf16.msra.mxu1 %v3869_v47  ;;  %9233 = vst [vmem:[#allocation32_spill] sm:$0xff] %v7677_v1  ;;  %v3449_v47 = vmul.f32 0.2, %v3385_v42  ;;  %v3389_v32 = vadd.f32 %v7129_v14, %v7075_v34  ;;  %v2599_v28 = vmax.f32 %v7677_v1, %v7681_v6 }
 0x44e   : > { %v7695_v51 = vsel %vm6067_vm3, %v2528_v48, -1e+30  ;;  %vm9240_vm14 = vnez %v9239_v10  ;;  %v2501_v34 = vmul.f32 0.2, %v2437_v59  ;;  %v3480_v24 = vsel %vm3416_vm1, %v3384_v61, %v3448_v27 }
 0x44f   : > { %v2935_v18 = vpop.permute.xlu0 %2934  ;;  %v7699_v49 = vsel %vm9240_vm14, %v2529_v46, -1e+30  ;;  %v3481_v6 = vsel %vm3417_vm15, %v3385_v42, %v3449_v47  ;;  %vm3420_vm13 = vcmp.gt.f32.partialorder %v3388_v35, 0.0  ;;  %v3452_v11 = vmul.f32 0.2, %v3388_v35 }
 0x450   : > { %4553 = vmatprep.subr.bf16.mxu0 %v2935_v18  ;;  %v9236_v18 = vld [vmem:[#allocation7_spill] sm:$0xff]  ;;  %9241 = vst [vmem:[#allocation36_spill] sm:$0xff] %v7699_v49  ;;  %vm2468_vm5 = vcmp.gt.f32.partialorder %v2436_v16, 0.0  ;;  %vm2469_vm11 = vcmp.gt.f32.partialorder %v2437_v59, 0.0  ;;  %vm3421_vm12 = vcmp.gt.f32.partialorder %v3389_v32, 0.0  ;;  %v2428_v48 = vadd.f32 %v7014_v23, %v7313_v20 }
 0x451   : > { %4554 = vmatpush3.bf16.msra.mxu0 %v2919_v29  ;;  %v7691_v13 = vadd.f32 %v7126_v12, %v9236_v18  ;;  %9238 = vst [vmem:[#allocation7_spill] sm:$0xff] %v7695_v51  ;;  %v2500_v29 = vmul.f32 0.2, %v2436_v16  ;;  %v2429_v46 = vadd.f32 %v7017_v4, %v7313_v20  ;;  %v3453_v61 = vmul.f32 0.2, %v3389_v32 }
 0x452   : > { %v7713_v42 = vsel %vm6067_vm3, %v3480_v24, -1e+30  ;;  %v7717_v27 = vsel %vm9240_vm14, %v3481_v6, -1e+30  ;;  %v2441_v20 = vadd.f32 %v7017_v4, %v7315_v54  ;;  %v3381_v24 = vadd.f32 %v7129_v14, %v9236_v18 }
 0x453   : > { %v3887_v15 = vpop.permute.xlu0 %3886  ;;  %9244 = vst [vmem:[#allocation76_spill] sm:$0xff] %v7713_v42  ;;  %9245 = vst [vmem:[#allocation77_spill] sm:$0xff] %v7717_v27  ;;  %vm3412_vm3 = vcmp.gt.f32.partialorder %v7691_v13, 0.0  ;;  %v3484_v6 = vsel %vm3420_vm13, %v3388_v35, %v3452_v11  ;;  %vm2460_vm10 = vcmp.gt.f32.partialorder %v2428_v48, 0.0  ;;  %v2492_v58 = vmul.f32 0.2, %v2428_v48 }
 0x454   : > { %4617 = vmatprep.subr.bf16.mxu1 %v3887_v15  ;;  %v2493_v10 = vmul.f32 0.2, %v2429_v46  ;;  %vm2461_vm0 = vcmp.gt.f32.partialorder %v2429_v46, 0.0  ;;  %v3485_v18 = vsel %vm3421_vm12, %v3389_v32, %v3453_v61  ;;  %v3392_v11 = vadd.f32 %v7126_v12, %v7319_v52 }
 0x455   : > { %4618 = vmatpush3.bf16.msra.mxu1 %v3871_v25  ;;  %v2602_v25 = vmax.f32 %v7695_v51, %v7699_v49  ;;  %v2532_v49 = vsel %vm2468_vm5, %v2436_v16, %v2500_v29  ;;  %v2533_v51 = vsel %vm2469_vm11, %v2437_v59, %v2501_v34  ;;  %v9248_v16 = vld [vmem:[#allocation43_spill] sm:$0xff]  ;;  %v2505_v34 = vmul.f32 0.2, %v2441_v20 }
 0x456   : > { %v7701_v1 = vpop.eup %5054  ;;  %vm9249_vm1 = vnez %v9248_v16  ;;  %v3393_v35 = vadd.f32 %v7129_v14, %v7319_v52  ;;  %vm3413_vm15 = vcmp.gt.f32.partialorder %v3381_v24, 0.0  ;;  %vm2473_vm13 = vcmp.gt.f32.partialorder %v2441_v20, 0.0 }
 0x457   : > { %9242 = vst [vmem:[#allocation37_spill] sm:$0xff] %v7701_v1  ;;  %v7703_v15 = vpop.eup %5056  ;;  %v7739_v59 = vsel %vm9249_vm1, %v2533_v51, -1e+30  ;;  %v2524_v32 = vsel %vm2460_vm10, %v2428_v48, %v2492_v58  ;;  %v2525_v61 = vsel %vm2461_vm0, %v2429_v46, %v2493_v10  ;;  %v3383_v52 = vadd.f32 %v7129_v14, %v7144_v39 }
 0x458   : > { %9243 = vst [vmem:[#allocation75_spill] sm:$0xff] %v7703_v15  ;;  %v7721_v47 = vadd.f32 %v7703_v15, %v7701_v1  ;;  %9250 = vst [vmem:[#allocation42_spill] sm:$0xff] %v7739_v59  ;;  %v3456_v15 = vmul.f32 0.2, %v3392_v11  ;;  %v2537_v58 = vsel %vm2473_vm13, %v2441_v20, %v2505_v34  ;;  %vm3424_vm5 = vcmp.gt.f32.partialorder %v3392_v11, 0.0  ;;  %v9252_v1 = vld [vmem:[#allocation28_spill] sm:$0xff] }
 0x459   : > { %2600 = vmax.xlane.f32.xlu1 %v2599_v28  ;;  %v2440_v28 = vadd.f32 %v7014_v23, %v7315_v54  ;;  %v7735_v54 = vsel %vm6120_vm9, %v2532_v49, -1e+30  ;;  %v3445_v49 = vmul.f32 0.2, %v3381_v24  ;;  %vm3425_vm11 = vcmp.gt.f32.partialorder %v3393_v35, 0.0  ;;  %v9254_v20 = vld [vmem:[#allocation29_spill] sm:$0xff] }
 0x45a   : > { %9246 = vst [vmem:[#allocation78_spill] sm:$0xff] %v7721_v47  ;;  %v3554_v47 = vmax.f32 %v7713_v42, %v7717_v27  ;;  %v2608_v51 = vmax.f32 %v7735_v54, %v7739_v59  ;;  %v3382_v27 = vadd.f32 %v7126_v12, %v7144_v39  ;;  %v7761_v42 = vsel %vm9249_vm1, %v3485_v18, -1e+30 }
 0x45b   : > { %v2504_v29 = vmul.f32 0.2, %v2440_v28  ;;  %vm2472_vm14 = vcmp.gt.f32.partialorder %v2440_v28, 0.0  ;;  %9251 = vst [vmem:[#allocation43_spill] sm:$0xff] %v7761_v42  ;;  %v3457_v59 = vmul.f32 0.2, %v3393_v35  ;;  %v2434_v39 = vadd.f32 %v7014_v23, %v7317_v26 }
 0x45c   : > { %v3477_v16 = vsel %vm3413_vm15, %v3381_v24, %v3445_v49  ;;  %vm9255_vm12 = vnez %v9254_v20  ;;  %vm3415_vm10 = vcmp.gt.f32.partialorder %v3383_v52, 0.0  ;;  %v3390_v22 = vadd.f32 %v7126_v12, %v7311_v40 }
 0x45d   : > { %2603 = vmax.xlane.f32.xlu1 %v2602_v25  ;;  %v3444_v25 = vmul.f32 0.2, %v7691_v13  ;;  %v2536_v48 = vsel %vm2472_vm14, %v2440_v28, %v2504_v29  ;;  %v2435_v28 = vadd.f32 %v7017_v4, %v7317_v26  ;;  %v7779_v18 = vsel %vm9255_vm12, %v2525_v61, -1e+30 }
 0x45e   : > { %v7783_v29 = vsel %vm6182_vm2, %v2536_v48, -1e+30  ;;  %v3489_v24 = vsel %vm3425_vm11, %v3393_v35, %v3457_v59  ;;  %v7795_v49 = vsel %vm9255_vm12, %v3477_v16, -1e+30  ;;  %vm2466_vm0 = vcmp.gt.f32.partialorder %v2434_v39, 0.0 }
 0x45f   : > { %v3476_v46 = vsel %vm3412_vm3, %v7691_v13, %v3444_v25  ;;  %v7787_v25 = vsel %vm9101_vm7, %v2537_v58, -1e+30  ;;  %vm3414_vm3 = vcmp.gt.f32.partialorder %v3382_v27, 0.0  ;;  %v2498_v61 = vmul.f32 0.2, %v2434_v39 }
 0x460   : > { %v2614_v58 = vmax.f32 %v7783_v29, %v7787_v25  ;;  %v3386_v59 = vadd.f32 %v7126_v12, %v7289_v57  ;;  %v7809_v35 = vsel %vm9101_vm7, %v3489_v24, -1e+30  ;;  %vm2467_vm1 = vcmp.gt.f32.partialorder %v2435_v28, 0.0  ;;  %v9260_v24 = vld [vmem:[#allocation41_spill] sm:$0xff] }
 0x461   : > { %3555 = vmax.xlane.f32.xlu1 %v3554_v47  ;;  %v7757_v47 = vsel %vm6120_vm9, %v3484_v6, -1e+30  ;;  %vm9253_vm9 = vnez %v9252_v1  ;;  %v2530_v20 = vsel %vm2466_vm0, %v2434_v39, %v2498_v61  ;;  %v9258_v39 = vld [vmem:[#allocation40_spill] sm:$0xff]  ;;  %vm3422_vm13 = vcmp.gt.f32.partialorder %v3390_v22, 0.0 }
 0x462   : > { %v7770_v6 = vsel %vm9253_vm9, %v2524_v32, -1e+30  ;;  %v3560_v10 = vmax.f32 %v7757_v47, %v7761_v42  ;;  %v3447_v32 = vmul.f32 0.2, %v3383_v52  ;;  %v3488_v42 = vsel %vm3424_vm5, %v3392_v11, %v3456_v15 }
 0x463   : > { %v7791_v26 = vsel %vm9253_vm9, %v3476_v46, -1e+30  ;;  %v2596_v48 = vmax.f32 %v7770_v6, %v7779_v18  ;;  %v2499_v15 = vmul.f32 0.2, %v2435_v28  ;;  %v7805_v11 = vsel %vm6182_vm2, %v3488_v42, -1e+30 }
 0x464   : > { %v3387_v46 = vadd.f32 %v7129_v14, %v7289_v57  ;;  %v3548_v16 = vmax.f32 %v7791_v26, %v7795_v49  ;;  %v3566_v42 = vmax.f32 %v7805_v11, %v7809_v35  ;;  %v3450_v13 = vmul.f32 0.2, %v3386_v59 }
 0x465   : > { %2609 = vmax.xlane.f32.xlu1 %v2608_v51  ;;  %v3446_v51 = vmul.f32 0.2, %v3382_v27  ;;  %vm3418_vm2 = vcmp.gt.f32.partialorder %v3386_v59, 0.0 }
 0x466   : > { %vm3419_vm7 = vcmp.gt.f32.partialorder %v3387_v46, 0.0 }
 0x467   : > { %v3478_v1 = vsel %vm3414_vm3, %v3382_v27, %v3446_v51  ;;  %v2531_v27 = vsel %vm2467_vm1, %v2435_v28, %v2499_v15  ;;  %v2438_v51 = vadd.f32 %v7014_v23, %v7293_v37  ;;  %v3391_v15 = vadd.f32 %v7129_v14, %v7311_v40 }
 0x468   : > { %v7822_v34 = vsel %vm9067_vm6, %v3478_v1, -1e+30  ;;  %vm9259_vm6 = vnez %v9258_v39  ;;  %v9262_v1 = vld [vmem:[#allocation31_spill] sm:$0xff]  ;;  %v2627_v39 = vsub.f32 %v7275_v50, %v7457_v31  ;;  %v3395_v50 = vadd.f32 %v7129_v14, %v7327_v55 }
 0x469   : > { %3561 = vmax.xlane.f32.xlu1 %v3560_v10  ;;  %2597 = vmax.xlane.f32.xlu0 %v2596_v48  ;;  %v3479_v10 = vsel %vm3415_vm10, %v3383_v52, %v3447_v32  ;;  %v3451_v52 = vmul.f32 0.2, %v3387_v46  ;;  %v2439_v32 = vadd.f32 %v7017_v4, %v7293_v37  ;;  %v7838_v28 = vsel %vm9259_vm6, %v2530_v20, -1e+30 }
 0x46a   : > { %v7826_v57 = vsel %vm9068_vm8, %v3479_v10, -1e+30  ;;  %vm9261_vm8 = vnez %v9260_v24  ;;  %v3482_v48 = vsel %vm3418_vm2, %v3386_v59, %v3450_v13  ;;  %vm2470_vm15 = vcmp.gt.f32.partialorder %v2438_v51, 0.0 }
 0x46b   : > { %v3551_v8 = vmax.f32 %v7822_v34, %v7826_v57  ;;  %v7842_v61 = vsel %vm9261_vm8, %v2531_v27, -1e+30  ;;  %v2503_v37 = vmul.f32 0.2, %v2439_v32  ;;  %v3483_v10 = vsel %vm3419_vm7, %v3387_v46, %v3451_v52  ;;  %v9264_v52 = vld [vmem:[#allocation34_spill] sm:$0xff] }
 0x46c   : > { %vm2471_vm14 = vcmp.gt.f32.partialorder %v2439_v32, 0.0  ;;  %v2605_v59 = vmax.f32 %v7838_v28, %v7842_v61  ;;  %v2443_v13 = vadd.f32 %v7017_v4, %v7335_v7  ;;  %v3454_v27 = vmul.f32 0.2, %v3390_v22 }
 0x46d   : > { %2615 = vmax.xlane.f32.xlu1 %v2614_v58  ;;  %3549 = vmax.xlane.f32.xlu0 %v3548_v16  ;;  %v2502_v58 = vmul.f32 0.2, %v2438_v51  ;;  %v2442_v16 = vadd.f32 %v7014_v23, %v7335_v7  ;;  %v7857_v40 = vsel %vm9259_vm6, %v3482_v48, -1e+30  ;;  %v7861_v46 = vsel %vm9261_vm8, %v3483_v10, -1e+30 }
 0x46e   : > { %v3455_v23 = vmul.f32 0.2, %v3391_v15  ;;  %vm3423_vm5 = vcmp.gt.f32.partialorder %v3391_v15, 0.0  ;;  %v2626_v4 = vsub.f32 %v7271_v63, %v7457_v31  ;;  %v3557_v24 = vmax.f32 %v7857_v40, %v7861_v46  ;;  %v9268_v31 = vld [vmem:[#allocation39_spill] sm:$0xff] }
 0x46f   : > { %vm2474_vm11 = vcmp.gt.f32.partialorder %v2442_v16, 0.0  ;;  %v2506_v48 = vmul.f32 0.2, %v2442_v16  ;;  %v3394_v63 = vadd.f32 %v7126_v12, %v7327_v55  ;;  %vm2475_vm12 = vcmp.gt.f32.partialorder %v2443_v13, 0.0 }
 0x470   : > { %vm3427_vm10 = vcmp.gt.f32.partialorder %v3395_v50, 0.0  ;;  %vm2318_vm1 = vcmask 523520   ;;  %vm3270_vm2 = vcmask 785920   ;;  %vm4222_vm7 = vcmask 1048320  }
 0x471   : > { %3567 = vmax.xlane.f32.xlu1 %v3566_v42  ;;  %3552 = vmax.xlane.f32.xlu0 %v3551_v8  ;;  %v9263_v42 = vld [vmem:[#allocation13_spill] sm:$0xff]  ;;  %v2535_v8 = vsel %vm2471_vm14, %v2439_v32, %v2503_v37  ;;  %v3486_v32 = vsel %vm3422_vm13, %v3390_v22, %v3454_v27  ;;  %v3487_v37 = vsel %vm3423_vm5, %v3391_v15, %v3455_v23  ;;  %vm3426_vm3 = vcmp.gt.f32.partialorder %v3394_v63, 0.0 }
 0x472   : > { %v2622_v20 = vsub.f32 %v9263_v42, %v7332_v0  ;;  %v2534_v0 = vsel %vm2470_vm15, %v2438_v51, %v2502_v58  ;;  %v9266_v42 = vld [vmem:[#allocation48_spill] sm:$0xff]  ;;  %v2507_v58 = vmul.f32 0.2, %v2443_v13  ;;  %v2631_v22 = vsub.f32 %v7416_v45, %v7597_v2 }
 0x473   : > { %v7872_v10 = vsel %vm6163_vm4, %v2534_v0, -1e+30  ;;  %vm9267_vm9 = vnez %v9266_v42  ;;  %v7891_v14 = vsel %vm6163_vm4, %v3486_v32, -1e+30  ;;  %v2538_v15 = vsel %vm2474_vm11, %v2442_v16, %v2506_v48  ;;  %v9269_v0 = vld [vmem:[#allocation44_spill] sm:$0xff]  ;;  %v9272_v48 = vld [vmem:[#allocation57_spill] sm:$0xff] }
 0x474   : > { %v2656_v7 = vmul.f32 1.442695, %v2622_v20  ;;  %v7876_v51 = vsel %vm9267_vm9, %v2535_v8, -1e+30  ;;  %v2664_v20 = vmul.f32 1.442695, %v2626_v4  ;;  %v2595_v27 = vpop.xlane.xlu1 %2594  ;;  %v2539_v45 = vsel %vm2475_vm12, %v2443_v13, %v2507_v58 }
 0x475   : > { %1780 = vadd.xlane.f32.xlu1 %v9262_v1  ;;  %2606 = vmax.xlane.f32.xlu0 %v2605_v59  ;;  %v2630_v59 = vsub.f32 %v7412_v9, %v7597_v2  ;;  %v2611_v12 = vmax.f32 %v7872_v10, %v7876_v51  ;;  %v7895_v55 = vsel %vm9267_vm9, %v3487_v37, -1e+30  ;;  %v3458_v9 = vmul.f32 0.2, %v3394_v63  ;;  %v9274_v13 = vld [vmem:[#allocation49_spill] sm:$0xff] }
 0x476   : > { %5058 = vpow2.f32 %v2656_v7  ;;  %v3459_v23 = vmul.f32 0.2, %v3395_v50  ;;  %v2634_v8 = vsub.f32 %v7553_v56, %v2595_v27  ;;  %v2674_v4 = vmul.f32 1.442695, %v2631_v22 }
 0x477   : > { %5060 = vpow2.f32 %v2664_v20  ;;  %v2672_v2 = vmul.f32 1.442695, %v2630_v59  ;;  %v2635_v7 = vsub.f32 %v7557_v5, %v2595_v27  ;;  %v3563_v16 = vmax.f32 %v7891_v14, %v7895_v55 }
 0x478   : > { %vm9273_vm0 = vnez %v9272_v48  ;;  %v3490_v56 = vsel %vm3426_vm3, %v3394_v63, %v3458_v9  ;;  %v3491_v42 = vsel %vm3427_vm10, %v3395_v50, %v3459_v23  ;;  %v2680_v32 = vmul.f32 1.442695, %v2634_v8  ;;  %v9275_v63 = vld [vmem:[#allocation55_spill] sm:$0xff] }
 0x479   : > { %1786 = vadd.xlane.f32.xlu1 %v9264_v52  ;;  %3558 = vmax.xlane.f32.xlu0 %v3557_v24  ;;  %v2666_v52 = vmul.f32 1.442695, %v2627_v39  ;;  %v9270_v39 = vld [vmem:[#allocation54_spill] sm:$0xff]  ;;  %v7910_v1 = vsel %vm9273_vm0, %v2539_v45, -1e+30  ;;  %v2620_v9 = vsub.f32 %v7097_v38, %v7339_v33  ;;  %v9277_v48 = vld [vmem:[#allocation27_spill] sm:$0xff] }
 0x47a   : > { %vm9271_vm4 = vnez %v9270_v39  ;;  %v2682_v5 = vmul.f32 1.442695, %v2635_v7  ;;  %v7922_v20 = vsel %vm9273_vm0, %v3491_v42, -1e+30  ;;  %v2628_v39 = vsub.f32 %v7434_v19, %v7595_v17  ;;  %v9278_v42 = vld [vmem:[#allocation33_spill] sm:$0xff] }
 0x47b   : > { %5062 = vpow2.f32 %v2666_v52  ;;  %v7906_v24 = vsel %vm9271_vm4, %v2538_v15, -1e+30  ;;  %v7918_v37 = vsel %vm9271_vm4, %v3490_v56, -1e+30  ;;  %v2921_v15 = vpop.permute.xlu1 %2920  ;;  %v2652_v8 = vmul.f32 1.442695, %v2620_v9 }
 0x47c   : > { %5064 = vpow2.f32 %v2672_v2  ;;  %v2617_v58 = vmax.f32 %v7906_v24, %v7910_v1  ;;  %v3569_v50 = vmax.f32 %v7918_v37, %v7922_v20  ;;  %v9276_v2 = vld [vmem:[#allocation26_spill] sm:$0xff]  ;;  %v9281_v9 = vld [vmem:[#allocation25_spill] sm:$0xff] }
 0x47d   : > { %1792 = vadd.xlane.f32.xlu1 %v9268_v31  ;;  %2612 = vmax.xlane.f32.xlu0 %v2611_v12  ;;  %5066 = vpow2.f32 %v2674_v4  ;;  %v2625_v4 = vsub.f32 %v7304_v21, %v7455_v44 }
 0x47e   : > { %5068 = vpow2.f32 %v2680_v32 }
 0x47f   : > { %5070 = vpow2.f32 %v2682_v5  ;;  %v1800_v5 = vadd.f32 %v7263_v53, %v7248_v41  ;;  %v9280_v53 = vld [vmem:[#allocation24_spill] sm:$0xff] }
 0x480   : > { %v7924_v59 = vpop.eup %5058  ;;  %5072 = vpow2.f32 %v2652_v8 }
 0x481   : > { %1798 = vadd.xlane.f32.xlu1 %v9269_v0  ;;  %3564 = vmax.xlane.f32.xlu0 %v3563_v16  ;;  %v7929_v52 = vpop.eup %5060  ;;  %v2719_v27 = vadd.f32 %v7924_v59, %v7357_v36  ;;  %v2624_v36 = vsub.f32 %v7300_v30, %v7455_v44  ;;  %v2662_v30 = vmul.f32 1.442695, %v2625_v4  ;;  %v2668_v44 = vmul.f32 1.442695, %v2628_v39 }
 0x483   : > { %v2660_v16 = vmul.f32 1.442695, %v2624_v36 }
 0x484   : > { %v2592_v31 = vpop.xlane.xlu0 %2591 }
 0x485   : > { %1804 = vadd.xlane.f32.xlu1 %v9274_v13  ;;  %2618 = vmax.xlane.f32.xlu0 %v2617_v58  ;;  %v7933_v12 = vpop.eup %5062  ;;  %v2629_v13 = vsub.f32 %v7438_v60, %v7595_v17  ;;  %5074 = vpow2.f32 %v2660_v16  ;;  %v2632_v56 = vsub.f32 %v7578_v43, %v2592_v31  ;;  %v2633_v19 = vsub.f32 %v7582_v62, %v2592_v31 }
 0x486   : > { %v7937_v23 = vpop.eup %5064  ;;  %v2725_v0 = vadd.f32 %v7933_v12, %v7929_v52  ;;  %5076 = vpow2.f32 %v2662_v30 }
 0x487   : > { %v7941_v45 = vpop.eup %5066  ;;  %v2670_v32 = vmul.f32 1.442695, %v2629_v13  ;;  %5078 = vpow2.f32 %v2668_v44  ;;  %v2676_v60 = vmul.f32 1.442695, %v2632_v56  ;;  %v2678_v17 = vmul.f32 1.442695, %v2633_v19 }
 0x488   : > { %v2937_v22 = vpop.permute.xlu0 %2936  ;;  %v7948_v38 = vpop.eup %5068  ;;  %v2731_v33 = vadd.f32 %v7941_v45, %v7937_v23  ;;  %v9283_v56 = vld [vmem:[#allocation22_spill] sm:$0xff] }
 0x489   : > { %1810 = vadd.xlane.f32.xlu1 %v9275_v63  ;;  %3570 = vmax.xlane.f32.xlu0 %v3569_v50  ;;  %v7952_v7 = vpop.eup %5070  ;;  %5080 = vpow2.f32 %v2670_v32  ;;  %v9279_v63 = vld [vmem:[#allocation60_spill] sm:$0xff] }
 0x48a   : > { %4555 = vmatprep.subr.bf16.mxu0 %v2937_v22  ;;  %v2737_v21 = vadd.f32 %v7952_v7, %v7948_v38  ;;  %v5073_v58 = vpop.eup %5072  ;;  %5082 = vpow2.f32 %v2676_v60 }
 0x48b   : > { %4556 = vmatpush3.bf16.msra.mxu0 %v2921_v15  ;;  %5084 = vpow2.f32 %v2678_v17  ;;  %v2716_v50 = vadd.f32 %v5073_v58, %v7359_v3 }
 0x48d   : > { %2720 = vadd.xlane.f32.xlu1 %v2719_v27  ;;  %1783 = vadd.xlane.f32.xlu0 %v9276_v2 }
 0x48f   : > { %v5075_v43 = vpop.eup %5074 }
 0x490   : > { %v5077_v22 = vpop.eup %5076 }
 0x491   : > { %2726 = vadd.xlane.f32.xlu1 %v2725_v0  ;;  %1789 = vadd.xlane.f32.xlu0 %v9277_v48  ;;  %v5079_v62 = vpop.eup %5078  ;;  %v2722_v31 = vadd.f32 %v5077_v22, %v5075_v43 }
 0x493   : > { %v5081_v27 = vpop.eup %5080 }
 0x494   : > { %v5083_v36 = vpop.eup %5082  ;;  %v2728_v2 = vadd.f32 %v5081_v27, %v5079_v62 }
 0x495   : > { %2732 = vadd.xlane.f32.xlu1 %v2731_v33  ;;  %1795 = vadd.xlane.f32.xlu0 %v9278_v42  ;;  %v5085_v8 = vpop.eup %5084 }
 0x496   : > { %v2734_v3 = vadd.f32 %v5085_v8, %v5083_v36 }
 0x499   : > { %2738 = vadd.xlane.f32.xlu1 %v2737_v21  ;;  %1801 = vadd.xlane.f32.xlu0 %v1800_v5  ;;  %v9282_v21 = vld [vmem:[#allocation21_spill] sm:$0xff] }
 0x49d   : > { %1807 = vadd.xlane.f32.xlu0 %v9279_v63  ;;  %v2780_v63 = vpack.c.bf16 %v7924_v59, %v5073_v58  ;;  %v2782_v59 = vpack.c.bf16 %v7929_v52, %v5075_v43  ;;  %v9288_v58 = vld [vmem:[#allocation17_spill] sm:$0xff]  ;;  %v9293_v52 = vld [vmem:[#allocation72_spill] sm:$0xff] }
 0x4a1   : > { %2717 = vadd.xlane.f32.xlu0 %v2716_v50 }
 0x4a5   : > { %2723 = vadd.xlane.f32.xlu0 %v2722_v31  ;;  %v2783_v31 = vpack.c.bf16 %v7933_v12, %v5077_v22  ;;  %v2785_v12 = vpack.c.bf16 %v7941_v45, %v5081_v27  ;;  %v9289_v22 = vld [vmem:[#allocation63_spill] sm:$0xff]  ;;  %v2786_v27 = vpack.c.bf16 %v7948_v38, %v5083_v36 }
 0x4a9   : > { %v3547_v41 = vpop.xlane.xlu1 %3546  ;;  %2729 = vadd.xlane.f32.xlu0 %v2728_v2 }
 0x4aa   : > { %v3586_v15 = vsub.f32 %v9280_v53, %v3547_v41  ;;  %v3587_v0 = vsub.f32 %v9281_v9, %v3547_v41  ;;  %v9285_v9 = vld [vmem:[#allocation9_spill] sm:$0xff] }
 0x4ac   : > { %v3632_v4 = vmul.f32 1.442695, %v3586_v15  ;;  %v3634_v33 = vmul.f32 1.442695, %v3587_v0  ;;  %v9284_v15 = vld [vmem:[#allocation69_spill] sm:$0xff] }
 0x4ad   : > { %2735 = vadd.xlane.f32.xlu0 %v2734_v3  ;;  %v3873_v13 = vpop.permute.xlu1 %3872  ;;  %v3732_v0 = vpack.c.bf16 %v9285_v9, %v9284_v15  ;;  %v9297_v9 = vld [vmem:[#allocation36_spill] sm:$0xff] }
 0x4ae   : > { %5086 = vpow2.f32 %v3632_v4  ;;  %v9286_v4 = vld [vmem:[#allocation18_spill] sm:$0xff] }
 0x4af   : > { %5088 = vpow2.f32 %v3634_v33  ;;  %v9287_v33 = vld [vmem:[#allocation14_spill] sm:$0xff] }
 0x4b0   : > { %v3735_v3 = vpack.c.bf16 %v9287_v33, %v9286_v4 }
 0x4b1   : > { %v2923_v60 = vpop.permute.xlu1 %2922 }
 0x4b5   : > { %v3875_v41 = vpop.permute.xlu1 %3874 }
 0x4b8   : > { %v5087_v16 = vpop.eup %5086 }
 0x4b9   : > { %v5089_v39 = vpop.eup %5088  ;;  %v3544_v30 = vpop.xlane.xlu0 %3543 }
 0x4ba   : > { %v7970_v48 = vadd.f32 %v5089_v39, %v5087_v16  ;;  %v3584_v44 = vsub.f32 %v9282_v21, %v3544_v30  ;;  %v3585_v42 = vsub.f32 %v9283_v56, %v3544_v30  ;;  %v9290_v21 = vld [vmem:[#allocation75_spill] sm:$0xff] }
 0x4bc   : > { %v3628_v32 = vmul.f32 1.442695, %v3584_v44  ;;  %v3630_v19 = vmul.f32 1.442695, %v3585_v42  ;;  %v9291_v44 = vld [vmem:[#allocation73_spill] sm:$0xff]  ;;  %v2784_v42 = vpack.c.bf16 %v7937_v23, %v5079_v62 }
 0x4bd   : > { %v3889_v5 = vpop.permute.xlu0 %3888  ;;  %v3737_v56 = vpack.c.bf16 %v9291_v44, %v9290_v21 }
 0x4be   : > { %5090 = vpow2.f32 %v3628_v32  ;;  %4619 = vmatprep.subr.bf16.mxu1 %v3889_v5  ;;  %v2787_v32 = vpack.c.bf16 %v7952_v7, %v5085_v8 }
 0x4bf   : > { %5092 = vpow2.f32 %v3630_v19  ;;  %4620 = vmatpush3.bf16.msra.mxu1 %v3873_v13  ;;  %v3734_v13 = vpack.c.bf16 %v9289_v22, %v9288_v58  ;;  %v9292_v19 = vld [vmem:[#allocation37_spill] sm:$0xff] }
 0x4c0   : > { %v3736_v43 = vpack.c.bf16 %v9293_v52, %v9292_v19 }
 0x4c1   : > { %v2939_v17 = vpop.permute.xlu0 %2938 }
 0x4c2   : > { %4557 = vmatprep.subr.bf16.mxu0 %v2939_v17  ;;  %v9294_v17 = vld [vmem:[#allocation32_spill] sm:$0xff] }
 0x4c3   : > { %4558 = vmatpush3.bf16.msra.mxu0 %v2923_v60 }
 0x4c5   : > { %v3891_v50 = vpop.permute.xlu0 %3890 }
 0x4c6   : > { %2989 = vmatmul.mubr.bf16.vlgmr.msra.gmra.mrb[32].mxu0 %v2780_v63  ;;  %4621 = vmatprep.subr.bf16.mxu1 %v3891_v50  ;;  %v9295_v50 = vld [vmem:[#allocation35_spill] sm:$0xff] }
 0x4c7   : > { %2996 = vmatprep.mubr.bf16.mxu0 %v2783_v31  ;;  %4622 = vmatpush3.bf16.msra.mxu1 %v3875_v41 }
 0x4c8   : > { %v5091_v53 = vpop.eup %5090 }
 0x4c9   : > { %v5093_v2 = vpop.eup %5092  ;;  %v3738_v5 = vpack.c.bf16 %v5087_v16, %v5091_v53  ;;  %v9296_v16 = vld [vmem:[#allocation7_spill] sm:$0xff] }
 0x4ca   : > { %3941 = vmatmul.mubr.bf16.vlgmr.msra.gmra.mrb[32].mxu1 %v3732_v0  ;;  %v7980_v30 = vadd.f32 %v5093_v2, %v5091_v53  ;;  %v3739_v45 = vpack.c.bf16 %v5089_v39, %v5093_v2 }
 0x4cb   : > { %3948 = vmatprep.mubr.bf16.mxu1 %v3735_v3 }
 0x4ce   : > { %2997 = vmatmul.mubr.bf16.gmra.mrb[36].mxu0 %v2782_v59  ;;  %v9298_v59 = vld [vmem:[#allocation42_spill] sm:$0xff] }
 0x4cf   : > { %3004 = vmatprep.mubr.bf16.mxu0 %v2785_v12 }
 0x4d2   : > { %3949 = vmatmul.mubr.bf16.gmra.mrb[36].mxu1 %v3734_v13 }
 0x4d3   : > { %3956 = vmatprep.mubr.bf16.mxu1 %v3737_v56 }
 0x4d6   : > { %3005 = vmatmul.mubr.bf16.gmra.mrb[40].mxu0 %v2784_v42 }
 0x4d7   : > { %3012 = vmatprep.mubr.bf16.mxu0 %v2787_v32 }
 0x4da   : > { %3957 = vmatmul.mubr.bf16.gmra.mrb[40].mxu1 %v3736_v43 }
 0x4db   : > { %3964 = vmatprep.mubr.bf16.mxu1 %v3739_v45 }
 0x4de   : > { %3013 = vmatmul.mubr.bf16.gmra.mrb[44].mxu0 %v2786_v27 }
 0x4e2   : > { %3965 = vmatmul.mubr.bf16.gmra.mrb[44].mxu1 %v3738_v5 }
 0x4e6   : > { %v2601_v60 = vpop.xlane.xlu1 %2600 }
 0x4e7   : > { %v2638_v63 = vsub.f32 %v9294_v17, %v2601_v60  ;;  %v2639_v23 = vsub.f32 %v9295_v50, %v2601_v60  ;;  %v9299_v60 = vld [vmem:[#allocation76_spill] sm:$0xff]  ;;  %v9300_v50 = vld [vmem:[#allocation77_spill] sm:$0xff] }
 0x4e9   : > { %v2688_v62 = vmul.f32 1.442695, %v2638_v63  ;;  %v2690_v7 = vmul.f32 1.442695, %v2639_v23 }
 0x4ea   : > { %v2604_v8 = vpop.xlane.xlu1 %2603 }
 0x4eb   : > { %5094 = vpow2.f32 %v2688_v62  ;;  %v2640_v53 = vsub.f32 %v9296_v16, %v2604_v8  ;;  %v2641_v0 = vsub.f32 %v9297_v9, %v2604_v8 }
 0x4ec   : > { %5096 = vpow2.f32 %v2690_v7 }
 0x4ed   : > { %v2692_v58 = vmul.f32 1.442695, %v2640_v53  ;;  %v2694_v21 = vmul.f32 1.442695, %v2641_v0 }
 0x4ee   : > { %v3556_v31 = vpop.xlane.xlu1 %3555 }
 0x4ef   : > { %v3593_v23 = vsub.f32 %v9300_v50, %v3556_v31 }
 0x4f1   : > { %v3646_v16 = vmul.f32 1.442695, %v3593_v23 }
 0x4f2   : > { %v2610_v41 = vpop.xlane.xlu1 %2609 }
 0x4f3   : > { %v2644_v4 = vsub.f32 %v7735_v54, %v2610_v41  ;;  %v2645_v12 = vsub.f32 %v9298_v59, %v2610_v41 }
 0x4f5   : > { %v7995_v39 = vpop.eup %5094  ;;  %v2700_v42 = vmul.f32 1.442695, %v2644_v4  ;;  %v2702_v52 = vmul.f32 1.442695, %v2645_v12 }
 0x4f6   : > { %v7997_v15 = vpop.eup %5096  ;;  %v8001_v36 = vpop.xlane.xlu1 %3561 }
 0x4f7   : > { %v2743_v38 = vadd.f32 %v7997_v15, %v7995_v39  ;;  %v2598_v2 = vpop.xlane.xlu0 %2597 }
 0x4f8   : > { %v2636_v33 = vsub.f32 %v7770_v6, %v2598_v2  ;;  %v2637_v3 = vsub.f32 %v7779_v18, %v2598_v2 }
 0x4f9   : > { %2744 = vadd.xlane.f32.xlu1 %v2743_v38 }
 0x4fa   : > { %v2684_v22 = vmul.f32 1.442695, %v2636_v33  ;;  %v2686_v13 = vmul.f32 1.442695, %v2637_v3  ;;  %v2616_v56 = vpop.xlane.xlu1 %2615 }
 0x4fb   : > { %v3550_v44 = vpop.xlane.xlu0 %3549  ;;  %v2648_v6 = vsub.f32 %v7783_v29, %v2616_v56  ;;  %v2649_v43 = vsub.f32 %v7787_v25, %v2616_v56 }
 0x4fc   : > { %5098 = vpow2.f32 %v2684_v22  ;;  %v3588_v32 = vsub.f32 %v7791_v26, %v3550_v44  ;;  %v3589_v19 = vsub.f32 %v7795_v49, %v3550_v44  ;;  %v3592_v26 = vsub.f32 %v9299_v60, %v3556_v31 }
 0x4fd   : > { %5100 = vpow2.f32 %v2686_v13  ;;  %v2708_v49 = vmul.f32 1.442695, %v2648_v6  ;;  %v2710_v29 = vmul.f32 1.442695, %v2649_v43 }
 0x4fe   : > { %5102 = vpow2.f32 %v2692_v58  ;;  %v3636_v54 = vmul.f32 1.442695, %v3588_v32  ;;  %v3638_v18 = vmul.f32 1.442695, %v3589_v19 }
 0x4ff   : > { %5104 = vpow2.f32 %v2694_v21  ;;  %v3553_v45 = vpop.xlane.xlu0 %3552 }
 0x500   : > { %5106 = vpow2.f32 %v2700_v42  ;;  %v3590_v27 = vsub.f32 %v7822_v34, %v3553_v45  ;;  %v3591_v5 = vsub.f32 %v7826_v57, %v3553_v45  ;;  %v3644_v57 = vmul.f32 1.442695, %v3592_v26 }
 0x501   : > { %5108 = vpow2.f32 %v2702_v52 }
 0x502   : > { %5110 = vpow2.f32 %v3636_v54  ;;  %v3640_v17 = vmul.f32 1.442695, %v3590_v27  ;;  %v3642_v63 = vmul.f32 1.442695, %v3591_v5  ;;  %v3568_v54 = vpop.xlane.xlu1 %3567 }
 0x503   : > { %5112 = vpow2.f32 %v3638_v18  ;;  %v2607_v62 = vpop.xlane.xlu0 %2606 }
 0x504   : > { %5114 = vpow2.f32 %v3640_v17  ;;  %v2642_v25 = vsub.f32 %v7838_v28, %v2607_v62  ;;  %v2643_v7 = vsub.f32 %v7842_v61, %v2607_v62  ;;  %v3601_v62 = vsub.f32 %v7809_v35, %v3568_v54 }
 0x505   : > { %5116 = vpow2.f32 %v3642_v63 }
 0x506   : > { %v5099_v34 = vpop.eup %5098  ;;  %5118 = vpow2.f32 %v2708_v49  ;;  %v2696_v8 = vmul.f32 1.442695, %v2642_v25  ;;  %v2698_v41 = vmul.f32 1.442695, %v2643_v7  ;;  %v3600_v49 = vsub.f32 %v7805_v11, %v3568_v54 }
 0x507   : > { %v5101_v38 = vpop.eup %5100  ;;  %5120 = vpow2.f32 %v2710_v29  ;;  %v3559_v53 = vpop.xlane.xlu0 %3558  ;;  %v2788_v31 = vpack.c.bf16 %v7995_v39, %v5099_v34 }
 0x508   : > { %v8020_v9 = vpop.eup %5102  ;;  %5122 = vpow2.f32 %v2696_v8  ;;  %v3594_v0 = vsub.f32 %v7857_v40, %v3559_v53  ;;  %v3595_v28 = vsub.f32 %v7861_v46, %v3559_v53  ;;  %v2789_v61 = vpack.c.bf16 %v7997_v15, %v5101_v38 }
 0x509   : > { %v8025_v2 = vpop.eup %5104  ;;  %5124 = vpow2.f32 %v2698_v41  ;;  %v2740_v4 = vadd.f32 %v5101_v38, %v5099_v34  ;;  %v3596_v40 = vsub.f32 %v7757_v47, %v8001_v36  ;;  %v9301_v47 = vld [vmem:[#allocation43_spill] sm:$0xff] }
 0x50a   : > { %v8027_v33 = vpop.eup %5106  ;;  %5126 = vpow2.f32 %v3644_v57  ;;  %v3648_v3 = vmul.f32 1.442695, %v3594_v0  ;;  %v3650_v59 = vmul.f32 1.442695, %v3595_v28  ;;  %3020 = vmatprep.mubr.bf16.mxu0 %v2789_v61  ;;  %v2746_v13 = vadd.f32 %v8025_v2, %v8020_v9 }
 0x50b   : > { %v8029_v39 = vpop.eup %5108  ;;  %5128 = vpow2.f32 %v3646_v16  ;;  %2741 = vadd.xlane.f32.xlu0 %v2740_v4  ;;  %3021 = vmatmul.mubr.bf16.gmra.mrb[48].mxu0 %v2788_v31  ;;  %v2613_v46 = vpop.xlane.xlu0 %2612  ;;  %v3597_v44 = vsub.f32 %v9301_v47, %v8001_v36  ;;  %v3652_v19 = vmul.f32 1.442695, %v3596_v40  ;;  %v3662_v31 = vmul.f32 1.442695, %v3601_v62  ;;  %v9303_v40 = vld [vmem:[#allocation23_spill] sm:$0xff]  ;;  %v9309_v62 = vld [vmem:[#allocation30_spill] sm:$0xff] }
 0x50c   : > { %v8033_v15 = vpop.eup %5110  ;;  %5130 = vpow2.f32 %v3648_v3  ;;  %v2646_v12 = vsub.f32 %v7872_v10, %v2613_v46  ;;  %v2647_v58 = vsub.f32 %v7876_v51, %v2613_v46  ;;  %v2752_v45 = vadd.f32 %v8029_v39, %v8027_v33 }
 0x50d   : > { %v8037_v22 = vpop.eup %5112  ;;  %5132 = vpow2.f32 %v3650_v59  ;;  %v3654_v5 = vmul.f32 1.442695, %v3597_v44  ;;  %v9304_v44 = vld [vmem:[#allocation78_spill] sm:$0xff] }
 0x50e   : > { %v8041_v21 = vpop.eup %5114  ;;  %v2704_v56 = vmul.f32 1.442695, %v2646_v12  ;;  %v2706_v42 = vmul.f32 1.442695, %v2647_v58 }
 0x50f   : > { %v8045_v32 = vpop.eup %5116  ;;  %2747 = vadd.xlane.f32.xlu0 %v2746_v13  ;;  %v3565_v10 = vpop.xlane.xlu0 %3564  ;;  %v3740_v51 = vpack.c.bf16 %v8041_v21, %v8033_v15 }
 0x510   : > { %v8049_v52 = vpop.eup %5118  ;;  %5134 = vpow2.f32 %v2704_v56  ;;  %v3598_v6 = vsub.f32 %v7891_v14, %v3565_v10  ;;  %v3599_v18 = vsub.f32 %v7895_v55, %v3565_v10  ;;  %v3741_v36 = vpack.c.bf16 %v8045_v32, %v8037_v22 }
 0x511   : > { %v8055_v43 = vpop.eup %5120  ;;  %5136 = vpow2.f32 %v2706_v42 }
 0x512   : > { %v5123_v27 = vpop.eup %5122  ;;  %v3656_v60 = vmul.f32 1.442695, %v3598_v6  ;;  %3972 = vmatprep.mubr.bf16.mxu1 %v3741_v36  ;;  %5138 = vpow2.f32 %v3652_v19  ;;  %v3658_v14 = vmul.f32 1.442695, %v3599_v18  ;;  %v2758_v11 = vadd.f32 %v8055_v43, %v8049_v52 }
 0x513   : > { %v5125_v26 = vpop.eup %5124  ;;  %2753 = vadd.xlane.f32.xlu0 %v2752_v45  ;;  %3973 = vmatmul.mubr.bf16.gmra.mrb[48].mxu1 %v3740_v51  ;;  %v2619_v55 = vpop.xlane.xlu0 %2618  ;;  %v2790_v23 = vpack.c.bf16 %v5123_v27, %v8020_v9  ;;  %v3692_v6 = vadd.f32 %v8037_v22, %v8033_v15  ;;  %v9306_v45 = vld [vmem:[#allocation62_spill] sm:$0xff]  ;;  %v3695_v15 = vadd.f32 %v8045_v32, %v8041_v21 }
 0x514   : > { %v8060_v17 = vpop.eup %5126  ;;  %5140 = vpow2.f32 %v3656_v60  ;;  %v2650_v63 = vsub.f32 %v7906_v24, %v2619_v55  ;;  %v2651_v50 = vsub.f32 %v7910_v1, %v2619_v55  ;;  %v2791_v25 = vpack.c.bf16 %v5125_v26, %v8025_v2  ;;  %v9302_v2 = vld [vmem:[#allocation68_spill] sm:$0xff]  ;;  %v1781_v32 = vpop.xlane.xlu1 %1780 }
 0x515   : > { %v8065_v29 = vpop.eup %5128  ;;  %v2749_v7 = vadd.f32 %v5125_v26, %v5123_v27  ;;  %5142 = vpow2.f32 %v3654_v5  ;;  %v3660_v1 = vmul.f32 1.442695, %v3600_v49  ;;  %v9307_v27 = vld [vmem:[#allocation74_spill] sm:$0xff]  ;;  %v5465_v49 = vld [vmem:[%s8681_s6] ss:$0 sm:$0xff]  ;;  %v9308_v55 = vld [vmem:[#allocation8_spill] sm:$0xff] }
 0x516   : > { %v8071_v34 = vpop.eup %5130  ;;  %v2712_v57 = vmul.f32 1.442695, %v2650_v63  ;;  %v2714_v8 = vmul.f32 1.442695, %v2651_v50  ;;  %5144 = vpow2.f32 %v3658_v14  ;;  %3028 = vmatprep.mubr.bf16.mxu0 %v2791_v25 }
 0x517   : > { %v8073_v24 = vpop.eup %5132  ;;  %2759 = vadd.xlane.f32.xlu0 %v2758_v11  ;;  %v3571_v41 = vpop.xlane.xlu0 %3570  ;;  %v3742_v35 = vpack.c.bf16 %v8071_v34, %v8060_v17  ;;  %2750 = vadd.xlane.f32.xlu1 %v2749_v7 }
 0x518   : > { %5146 = vpow2.f32 %v2712_v57  ;;  %3029 = vmatmul.mubr.bf16.gmra.mrb[52].mxu0 %v2790_v23  ;;  %v3602_v38 = vsub.f32 %v7918_v37, %v3571_v41  ;;  %v3603_v16 = vsub.f32 %v7922_v20, %v3571_v41  ;;  %v3743_v53 = vpack.c.bf16 %v8073_v24, %v8065_v29  ;;  %v9310_v57 = vld [vmem:[#allocation64_spill] sm:$0xff] }
 0x519   : > { %5148 = vpow2.f32 %v2714_v8  ;;  %v3701_v22 = vadd.f32 %v8073_v24, %v8071_v34  ;;  %v9311_v8 = vld [vmem:[#allocation70_spill] sm:$0xff] }
 0x51a   : > { %v5135_v9 = vpop.eup %5134  ;;  %v3664_v0 = vmul.f32 1.442695, %v3602_v38  ;;  %v3666_v28 = vmul.f32 1.442695, %v3603_v16  ;;  %3980 = vmatprep.mubr.bf16.mxu1 %v3743_v53  ;;  %5150 = vpow2.f32 %v3660_v1  ;;  %v9312_v1 = vld [vmem:[#allocation65_spill] sm:$0xff] }
 0x51b   : > { %v5137_v61 = vpop.eup %5136  ;;  %3669 = vadd.xlane.f32.xlu0 %v9302_v2  ;;  %3981 = vmatmul.mubr.bf16.gmra.mrb[52].mxu1 %v3742_v35  ;;  %v2792_v20 = vpack.c.bf16 %v5135_v9, %v8027_v33  ;;  %v9313_v35 = vld [vmem:[#allocation71_spill] sm:$0xff] }
 0x51c   : > { %5152 = vpow2.f32 %v3664_v0  ;;  %v2793_v4 = vpack.c.bf16 %v5137_v61, %v8029_v39  ;;  %v2755_v37 = vadd.f32 %v5137_v61, %v5135_v9  ;;  %v5139_v3 = vpop.eup %5138  ;;  %v9314_v0 = vld [vmem:[#allocation38_spill] sm:$0xff]  ;;  %v9315_v61 = vld [vmem:[#allocation61_spill] sm:$0xff] }
 0x51d   : > { %5154 = vpow2.f32 %v3662_v31 }
 0x51e   : > { %v5141_v59 = vpop.eup %5140  ;;  %5156 = vpow2.f32 %v3666_v28  ;;  %3036 = vmatprep.mubr.bf16.mxu0 %v2793_v4  ;;  %2756 = vadd.xlane.f32.xlu1 %v2755_v37 }
 0x51f   : > { %3675 = vadd.xlane.f32.xlu0 %v9303_v40  ;;  %v5143_v46 = vpop.eup %5142  ;;  %v3744_v58 = vpack.c.bf16 %v5141_v59, %v5139_v3  ;;  %5158 = vrcp.f32 %v9308_v55 }
 0x520   : > { %3037 = vmatmul.mubr.bf16.gmra.mrb[56].mxu0 %v2792_v20  ;;  %v5145_v12 = vpop.eup %5144  ;;  %5160 = vrcp.f32 %v9310_v57 }
 0x521   : > { %v3745_v47 = vpack.c.bf16 %v5145_v12, %v5143_v46  ;;  %v3707_v60 = vadd.f32 %v5145_v12, %v5141_v59  ;;  %5162 = vrcp.f32 %v9311_v8  ;;  %v9317_v12 = vld [vmem:[#allocation45_spill] sm:$0xff] }
 0x522   : > { %v5147_v13 = vpop.eup %5146 }
 0x523   : > { %3681 = vadd.xlane.f32.xlu0 %v9304_v44  ;;  %v5149_v39 = vpop.eup %5148  ;;  %3988 = vmatprep.mubr.bf16.mxu1 %v3745_v47  ;;  %v2794_v33 = vpack.c.bf16 %v5147_v13, %v8049_v52  ;;  %v9305_v52 = vld [vmem:[#allocation10_spill] sm:$0xff] }
 0x524   : > { %v5151_v56 = vpop.eup %5150  ;;  %3989 = vmatmul.mubr.bf16.gmra.mrb[56].mxu1 %v3744_v58  ;;  %v2795_v42 = vpack.c.bf16 %v5149_v39, %v8055_v43  ;;  %v2761_v19 = vadd.f32 %v5149_v39, %v5147_v13  ;;  %v3698_v43 = vadd.f32 %v8065_v29, %v8060_v17  ;;  %v1787_v17 = vpop.xlane.xlu1 %1786 }
 0x526   : > { %v5153_v10 = vpop.eup %5152  ;;  %3044 = vmatprep.mubr.bf16.mxu0 %v2795_v42  ;;  %2762 = vadd.xlane.f32.xlu1 %v2761_v19 }
 0x527   : > { %v5155_v51 = vpop.eup %5154  ;;  %3687 = vadd.xlane.f32.xlu0 %v7980_v30  ;;  %v3746_v36 = vpack.c.bf16 %v5153_v10, %v5151_v56  ;;  %v3704_v30 = vadd.f32 %v5143_v46, %v5139_v3  ;;  %v9316_v3 = vld [vmem:[#allocation46_spill] sm:$0xff] }
 0x528   : > { %v5157_v54 = vpop.eup %5156  ;;  %3045 = vmatmul.mubr.bf16.gmra.mrb[60].mxu0 %v2794_v33  ;;  %v3710_v5 = vadd.f32 %v5155_v51, %v5151_v56  ;;  %v1793_v50 = vpop.xlane.xlu1 %1792  ;;  %v9318_v33 = vld [vmem:[#allocation66_spill] sm:$0xff] }
 0x529   : > { %v3747_v18 = vpack.c.bf16 %v5157_v54, %v5155_v51  ;;  %v3713_v26 = vadd.f32 %v5157_v54, %v5153_v10  ;;  %v5159_v29 = vpop.eup %5158  ;;  %v9319_v54 = vld [vmem:[#allocation58_spill] sm:$0xff] }
 0x52a   : > { %3672 = vadd.xlane.f32.xlu1 %v9305_v52  ;;  %v2101_v11 = vmul.f32 %v5159_v29, %v9309_v62  ;;  %v5161_v16 = vpop.eup %5160  ;;  %v9320_v52 = vld [vmem:[#allocation15_spill] sm:$0xff]  ;;  %v9323_v62 = vld [vmem:[#allocation12_spill] sm:$0xff] }
 0x52b   : > { %3693 = vadd.xlane.f32.xlu0 %v3692_v6  ;;  %3996 = vmatprep.mubr.bf16.mxu1 %v3747_v18  ;;  %v5163_v31 = vpop.eup %5162  ;;  %v2102_v28 = vmul.f32 %v5161_v16, %v9314_v0 }
 0x52c   : > { %3997 = vmatmul.mubr.bf16.gmra.mrb[60].mxu1 %v3746_v36  ;;  %v1799_v25 = vpop.xlane.xlu1 %1798  ;;  %v2117_v7 = vadd.f32 1e-06, %v2101_v11  ;;  %v2103_v2 = vmul.f32 %v5163_v31, %v9315_v61 }
 0x52d   : > { %v2118_v46 = vadd.f32 1e-06, %v2102_v28 }
 0x52e   : > { %3678 = vadd.xlane.f32.xlu1 %v9306_v45  ;;  %5164 = vlog2.f32 %v2117_v7  ;;  %v2119_v47 = vadd.f32 1e-06, %v2103_v2  ;;  %v9324_v2 = vld [vmem:[#allocation53_spill] sm:$0xff] }
 0x52f   : > { %3699 = vadd.xlane.f32.xlu0 %v3698_v43  ;;  %5166 = vrcp.f32 %v9312_v1 }
 0x530   : > { %v1805_v24 = vpop.xlane.xlu1 %1804  ;;  %5168 = vrcp.f32 %v9313_v35 }
 0x531   : > { %5170 = vrcp.f32 %v1781_v32  ;;  %v9322_v32 = vld [vmem:[#allocation59_spill] sm:$0xff] }
 0x532   : > { %3684 = vadd.xlane.f32.xlu1 %v9307_v27  ;;  %5172 = vrcp.f32 %v1787_v17 }
 0x533   : > { %3705 = vadd.xlane.f32.xlu0 %v3704_v30  ;;  %5174 = vrcp.f32 %v1793_v50 }
 0x534   : > { %v1811_v38 = vpop.xlane.xlu1 %1810  ;;  %5176 = vrcp.f32 %v1799_v25 }
 0x535   : > { %5178 = vrcp.f32 %v1805_v24 }
 0x536   : > { %3690 = vadd.xlane.f32.xlu1 %v7970_v48  ;;  %v1784_v48 = vpop.xlane.xlu0 %1783 }
 0x537   : > { %3711 = vadd.xlane.f32.xlu0 %v3710_v5  ;;  %5180 = vrcp.f32 %v1784_v48 }
 0x538   : > { %v5165_v9 = vpop.eup %5164  ;;  %v8128_v40 = vpop.xlane.xlu1 %2720  ;;  %5182 = vlog2.f32 %v2118_v46 }
 0x539   : > { %v5167_v4 = vpop.eup %5166  ;;  %v2134_v20 = vmul.f32 0.6931472, %v5165_v9  ;;  %5184 = vlog2.f32 %v2119_v47 }
 0x53a   : > { %3696 = vadd.xlane.f32.xlu1 %v3695_v15  ;;  %v1790_v21 = vpop.xlane.xlu0 %1789  ;;  %v5169_v37 = vpop.eup %5168  ;;  %v2104_v59 = vmul.f32 %v5167_v4, %v9316_v3  ;;  %v9321_v15 = vld [vmem:[#allocation56_spill] sm:$0xff] }
 0x53b   : > { %v2105_v58 = vmul.f32 %v5169_v37, %v9317_v12  ;;  %v5171_v44 = vpop.eup %5170  ;;  %v2165_v56 = vmul.f32 %v2134_v20, %v9318_v33  ;;  %5186 = vrcp.f32 %v1790_v21 }
 0x53c   : > { %v5173_v39 = vpop.eup %5172  ;;  %v2120_v42 = vadd.f32 1e-06, %v2104_v59  ;;  %v2106_v6 = vmul.f32 %v5171_v44, %v9319_v54  ;;  %v2727_v18 = vpop.xlane.xlu1 %2726 }
 0x53d   : > { %v2121_v19 = vadd.f32 1e-06, %v2105_v58  ;;  %v5175_v51 = vpop.eup %5174  ;;  %v2108_v43 = vmul.f32 %v5173_v39, %v9320_v52  ;;  %v2181_v30 = vmul.f32 1.442695, %v2165_v56  ;;  %v9325_v39 = vld [vmem:[#allocation16_spill] sm:$0xff] }
 0x53e   : > { %3702 = vadd.xlane.f32.xlu1 %v3701_v22  ;;  %v8107_v14 = vpop.xlane.xlu0 %1795  ;;  %v5177_v36 = vpop.eup %5176  ;;  %5188 = vlog2.f32 %v2120_v42  ;;  %v2110_v22 = vmul.f32 %v5175_v51, %v9321_v15  ;;  %v2122_v48 = vadd.f32 1e-06, %v2106_v6 }
 0x53f   : > { %v5179_v5 = vpop.eup %5178  ;;  %5190 = vlog2.f32 %v2121_v19  ;;  %v2112_v55 = vmul.f32 %v5177_v36, %v9322_v32  ;;  %v2124_v50 = vadd.f32 1e-06, %v2108_v43 }
 0x540   : > { %5192 = vrcp.f32 %v1811_v38  ;;  %v2114_v11 = vmul.f32 %v5179_v5, %v9323_v62  ;;  %v2733_v25 = vpop.xlane.xlu1 %2732  ;;  %v2126_v57 = vadd.f32 1e-06, %v2110_v22 }
 0x541   : > { %5194 = vrcp.f32 %v8107_v14  ;;  %v5181_v35 = vpop.eup %5180  ;;  %v2128_v38 = vadd.f32 1e-06, %v2112_v55 }
 0x542   : > { %3708 = vadd.xlane.f32.xlu1 %v3707_v60  ;;  %v8110_v63 = vpop.xlane.xlu0 %1801  ;;  %5196 = vpow2.f32 %v2181_v30  ;;  %v5183_v16 = vpop.eup %5182  ;;  %v2130_v28 = vadd.f32 1e-06, %v2114_v11  ;;  %v2107_v4 = vmul.f32 %v5181_v35, %v9324_v2  ;;  %v9326_v30 = vld [vmem:[#allocation20_spill] sm:$0xff] }
 0x543   : > { %5198 = vrcp.f32 %v8110_v63  ;;  %v5185_v0 = vpop.eup %5184  ;;  %v2136_v11 = vmul.f32 0.6931472, %v5183_v16 }
 0x544   : > { %5200 = vlog2.f32 %v2122_v48  ;;  %v2739_v46 = vpop.xlane.xlu1 %2738  ;;  %v2123_v51 = vadd.f32 1e-06, %v2107_v4 }
 0x545   : > { %5202 = vlog2.f32 %v2124_v50  ;;  %v5187_v63 = vpop.eup %5186 }
 0x546   : > { %3714 = vadd.xlane.f32.xlu1 %v3713_v26  ;;  %v8112_v23 = vpop.xlane.xlu0 %1807  ;;  %v2109_v56 = vmul.f32 %v5187_v63, %v9325_v39 }
 0x547   : > { %5204 = vrcp.f32 %v8112_v23 }
 0x548   : > { %5206 = vlog2.f32 %v2126_v57  ;;  %v5189_v59 = vpop.eup %5188 }
 0x549   : > { %5208 = vlog2.f32 %v2128_v38  ;;  %v5191_v58 = vpop.eup %5190  ;;  %v2138_v38 = vmul.f32 0.6931472, %v5185_v0  ;;  %v2140_v63 = vmul.f32 0.6931472, %v5189_v59 }
 0x54a   : > { %v8115_v34 = vpop.xlane.xlu0 %2717  ;;  %5210 = vrcp.f32 %v8128_v40  ;;  %v5193_v44 = vpop.eup %5192  ;;  %v2142_v39 = vmul.f32 0.6931472, %v5191_v58 }
 0x54b   : > { %5212 = vlog2.f32 %v2130_v28  ;;  %v5195_v19 = vpop.eup %5194 }
 0x54c   : > { %5214 = vrcp.f32 %v2727_v18  ;;  %v8167_v52 = vpop.eup %5196  ;;  %v9327_v18 = vld [vmem:[#allocation52_spill] sm:$0xff] }
 0x54d   : > { %2235 = vrot.lane.b32.xlu0 %v5465_v49, %s5534_s17  ;;  %v2111_v48 = vmul.f32 %v5195_v19, %v9327_v18 }
 0x54e   : > { %v8120_v41 = vpop.xlane.xlu0 %2723 }
 0x54f   : > { %v2127_v2 = vadd.f32 1e-06, %v2111_v48 }
 0x552   : > { %v8123_v53 = vpop.xlane.xlu0 %2729 }
 0x556   : > { %v8131_v13 = vpop.xlane.xlu0 %2735 }
 0x557   : > { %3187 = vrot.lane.b32.xlu1 %v5465_v49, %s5535_s15 }
 0x55b   : > { %4139 = vrot.lane.b32.xlu1 %v5465_v49, %s5536_s24 }
 0x586   : > { %v8169_v43 = vpop.xlane.xlu1 %2744 }
 0x598   : > { %v8134_v10 = vpop.xlane.xlu0 %2741 }
 0x599   : > { %v4559_v45 = vpop.f32.mrb[32].mxu0 }
 0x59a   : > { %v4560_v27 = vpop.f32.mrb[33].mxu0 }
 0x59b   : > { %v8141_v26 = vadd.f32 %v4560_v27, %v4559_v45  ;;  %v4562_v49 = vpop.f32.mrb[34].mxu0  ;;  %v5199_v45 = vpop.eup %5198  ;;  %v2116_v27 = vmul.f32 %v5193_v44, %v9326_v30  ;;  %v2166_v44 = vmul.f32 %v2136_v11, %v9318_v33 }
 0x59c   : > { %v8139_v60 = vpop.xlane.xlu0 %2747  ;;  %v4563_v17 = vpop.f32.mrb[35].mxu0 }
 0x59d   : > { %v8145_v21 = vadd.f32 %v4563_v17, %v4562_v49  ;;  %v4623_v29 = vpop.f32.mrb[32].mxu1  ;;  %v5201_v22 = vpop.eup %5200  ;;  %v2125_v49 = vadd.f32 1e-06, %v2109_v56 }
 0x59e   : > { %v4624_v7 = vpop.f32.mrb[33].mxu1  ;;  %v5203_v55 = vpop.eup %5202 }
 0x59f   : > { %v8151_v24 = vadd.f32 %v4624_v7, %v4623_v29  ;;  %v4626_v1 = vpop.f32.mrb[34].mxu1  ;;  %v5205_v62 = vpop.eup %5204  ;;  %v9328_v7 = vld [vmem:[#allocation11_spill] sm:$0xff]  ;;  %v2148_v30 = vmul.f32 0.6931472, %v5203_v55 }
 0x5a0   : > { %v8149_v8 = vpop.xlane.xlu0 %2753  ;;  %v4627_v14 = vpop.f32.mrb[35].mxu1  ;;  %v2113_v57 = vmul.f32 %v5199_v45, %v9328_v7  ;;  %v2168_v45 = vmul.f32 %v2140_v63, %v9318_v33 }
 0x5a1   : > { %v8153_v31 = vadd.f32 %v4627_v14, %v4626_v1  ;;  %v4565_v9 = vpop.f32.mrb[36].mxu0  ;;  %v5207_v35 = vpop.eup %5206  ;;  %v2132_v14 = vadd.f32 1e-06, %v2116_v27 }
 0x5a2   : > { %v4566_v61 = vpop.f32.mrb[37].mxu0  ;;  %v2129_v56 = vadd.f32 1e-06, %v2113_v57 }
 0x5a3   : > { %v8159_v20 = vadd.f32 %v4566_v61, %v4565_v9  ;;  %v4568_v3 = vpop.f32.mrb[38].mxu0  ;;  %v8183_v61 = vpop.eup %5208 }
 0x5a4   : > { %v8157_v37 = vpop.xlane.xlu0 %2759  ;;  %v4569_v12 = vpop.f32.mrb[39].mxu0 }
 0x5a5   : > { %v8162_v47 = vadd.f32 %v4569_v12, %v4568_v3  ;;  %v4629_v23 = vpop.f32.mrb[36].mxu1  ;;  %v8185_v4 = vpop.eup %5210  ;;  %v9329_v3 = vld [vmem:[#allocation19_spill] sm:$0xff] }
 0x5a6   : > { %v4630_v42 = vpop.f32.mrb[37].mxu1 }
 0x5a7   : > { %v8165_v6 = vadd.f32 %v4630_v42, %v4629_v23  ;;  %v4632_v36 = vpop.f32.mrb[38].mxu1  ;;  %v8191_v23 = vpop.eup %5212 }
 0x5a8   : > { %v3670_v54 = vpop.xlane.xlu0 %3669  ;;  %v4633_v40 = vpop.f32.mrb[39].mxu1 }
 0x5a9   : > { %5216 = vrcp.f32 %v3670_v54  ;;  %v8172_v5 = vadd.f32 %v4633_v40, %v4632_v36  ;;  %v4571_v15 = vpop.f32.mrb[40].mxu0  ;;  %v8196_v19 = vpop.eup %5214  ;;  %v2167_v40 = vmul.f32 %v2138_v38, %v9318_v33  ;;  %v2172_v38 = vmul.f32 %v2148_v30, %v9318_v33 }
 0x5aa   : > { %5218 = vrcp.f32 %v2733_v25  ;;  %v4572_v32 = vpop.f32.mrb[41].mxu0  ;;  %v8179_v25 = vpop.xlane.xlu1 %2750 }
 0x5ab   : > { %5220 = vrcp.f32 %v2739_v46  ;;  %v8175_v50 = vadd.f32 %v4572_v32, %v4571_v15  ;;  %v4574_v29 = vpop.f32.mrb[42].mxu0 }
 0x5ac   : > { %5222 = vlog2.f32 %v2123_v51  ;;  %v3676_v17 = vpop.xlane.xlu0 %3675  ;;  %v4575_v1 = vpop.f32.mrb[43].mxu0  ;;  %v2144_v51 = vmul.f32 0.6931472, %v5201_v22 }
 0x5ad   : > { %5224 = vrcp.f32 %v8115_v34  ;;  %v8181_v9 = vadd.f32 %v4575_v1, %v4574_v29  ;;  %v4635_v28 = vpop.f32.mrb[40].mxu1  ;;  %v2115_v34 = vmul.f32 %v5205_v62, %v9329_v3  ;;  %v2169_v29 = vmul.f32 %v2142_v39, %v9318_v33 }
 0x5ae   : > { %5226 = vrcp.f32 %v3676_v17  ;;  %v4636_v16 = vpop.f32.mrb[41].mxu1  ;;  %v8194_v59 = vpop.xlane.xlu1 %2756  ;;  %v2183_v17 = vmul.f32 1.442695, %v2166_v44  ;;  %v2170_v7 = vmul.f32 %v2144_v51, %v9318_v33  ;;  %v2185_v1 = vmul.f32 1.442695, %v2167_v40 }
 0x5af   : > { %5228 = vlog2.f32 %v2125_v49  ;;  %v8189_v12 = vadd.f32 %v4636_v16, %v4635_v28  ;;  %v4638_v0 = vpop.f32.mrb[42].mxu1  ;;  %v2131_v15 = vadd.f32 1e-06, %v2115_v34 }
 0x5b0   : > { %5230 = vrcp.f32 %v8120_v41  ;;  %v3682_v46 = vpop.xlane.xlu0 %3681  ;;  %v4639_v42 = vpop.f32.mrb[43].mxu1 }
 0x5b1   : > { %5232 = vrcp.f32 %v3682_v46  ;;  %v8198_v54 = vadd.f32 %v4639_v42, %v4638_v0  ;;  %v4577_v41 = vpop.f32.mrb[44].mxu0  ;;  %v2191_v42 = vmul.f32 1.442695, %v2170_v7 }
 0x5b2   : > { %5234 = vlog2.f32 %v2132_v14  ;;  %v4578_v58 = vpop.f32.mrb[45].mxu0  ;;  %v2152_v14 = vmul.f32 0.6931472, %v5207_v35 }
 0x5b3   : > { %v5217_v36 = vpop.eup %5216  ;;  %5236 = vlog2.f32 %v2127_v2  ;;  %v8208_v18 = vadd.f32 %v4578_v58, %v4577_v41  ;;  %v4580_v48 = vpop.f32.mrb[46].mxu0  ;;  %v2187_v2 = vmul.f32 1.442695, %v2168_v45  ;;  %v3054_v41 = vmul.f32 %v8185_v4, %v8145_v21 }
 0x5b4   : > { %v8202_v27 = vpop.eup %5218  ;;  %5238 = vrcp.f32 %v8123_v53  ;;  %v8206_v49 = vmul.f32 %v5217_v36, %v8151_v24  ;;  %v3688_v22 = vpop.xlane.xlu0 %3687  ;;  %v2195_v45 = vmul.f32 1.442695, %v2172_v38  ;;  %v2174_v30 = vmul.f32 %v2152_v14, %v9318_v33 }
 0x5b5   : > { %v8210_v32 = vpop.eup %5220  ;;  %5240 = vlog2.f32 %v2129_v56  ;;  %v8213_v55 = vpop.xlane.xlu1 %2762  ;;  %v3056_v4 = vmul.f32 %v8196_v19, %v8162_v47  ;;  %v3058_v47 = vmul.f32 %v8202_v27, %v8181_v9 }
 0x5b6   : > { %v4581_v62 = vpop.f32.mrb[47].mxu0  ;;  %v5223_v11 = vpop.eup %5222  ;;  %5242 = vrcp.f32 %v8131_v13  ;;  %v2189_v13 = vmul.f32 1.442695, %v2169_v29 }
 0x5b7   : > { %v8217_v53 = vadd.f32 %v4581_v62, %v4580_v48  ;;  %v4641_v24 = vpop.f32.mrb[44].mxu1  ;;  %v5225_v57 = vpop.eup %5224  ;;  %5244 = vrcp.f32 %v3688_v22  ;;  %v2146_v51 = vmul.f32 0.6931472, %v5223_v11  ;;  %v3070_v11 = vadd.f32 1e-06, %v3054_v41 }
 0x5b8   : > { %v4642_v28 = vpop.f32.mrb[45].mxu1  ;;  %v5227_v63 = vpop.eup %5226  ;;  %5246 = vlog2.f32 %v2131_v15  ;;  %v3053_v0 = vmul.f32 %v5225_v57, %v8141_v26  ;;  %v2156_v57 = vmul.f32 0.6931472, %v8183_v61 }
 0x5b9   : > { %v8220_v16 = vpop.xlane.xlu0 %3693  ;;  %v4643_v3 = vadd.f32 %v4642_v28, %v4641_v24  ;;  %v4644_v34 = vpop.f32.mrb[46].mxu1  ;;  %5248 = vpow2.f32 %v2183_v17  ;;  %v8224_v44 = vmul.f32 %v5227_v63, %v8165_v6  ;;  %v2171_v62 = vmul.f32 %v2146_v51, %v9318_v33 }
 0x5ba   : > { %v5229_v46 = vpop.eup %5228  ;;  %v8226_v39 = vpop.xlane.xlu1 %3672  ;;  %5250 = vpow2.f32 %v2185_v1  ;;  %v3069_v21 = vadd.f32 1e-06, %v3053_v0  ;;  %v2160_v1 = vmul.f32 0.6931472, %v8191_v23  ;;  %v3060_v9 = vmul.f32 %v8210_v32, %v8217_v53 }
 0x5bb   : > { %v4645_v35 = vpop.f32.mrb[47].mxu1  ;;  %v5231_v56 = vpop.eup %5230  ;;  %5252 = vpow2.f32 %v2187_v2  ;;  %v2150_v48 = vmul.f32 0.6931472, %v5229_v46  ;;  %v3072_v2 = vadd.f32 1e-06, %v3056_v4 }
 0x5bc   : > { %v8230_v36 = vadd.f32 %v4645_v35, %v4644_v34  ;;  %v5233_v40 = vpop.eup %5232  ;;  %v3055_v6 = vmul.f32 %v5231_v56, %v8159_v20  ;;  %5254 = vpow2.f32 %v2189_v13  ;;  %v2193_v46 = vmul.f32 1.442695, %v2171_v62 }
 0x5bd   : > { %v5235_v26 = vpop.eup %5234  ;;  %v8235_v58 = vmul.f32 %v5233_v40, %v8189_v12  ;;  %v8237_v15 = vpop.xlane.xlu0 %3699  ;;  %5256 = vpow2.f32 %v2191_v42  ;;  %v2199_v12 = vmul.f32 1.442695, %v2174_v30  ;;  %v2173_v63 = vmul.f32 %v2150_v48, %v9318_v33 }
 0x5be   : > { %v5237_v22 = vpop.eup %5236  ;;  %v8241_v17 = vpop.xlane.xlu1 %3678  ;;  %5258 = vpow2.f32 %v2195_v45  ;;  %v3071_v38 = vadd.f32 1e-06, %v3055_v6  ;;  %v2164_v28 = vmul.f32 0.6931472, %v5235_v26  ;;  %v2176_v35 = vmul.f32 %v2156_v57, %v9318_v33 }
 0x5bf   : > { %v5239_v29 = vpop.eup %5238  ;;  %5260 = vlog2.f32 %v3069_v21  ;;  %v2154_v13 = vmul.f32 0.6931472, %v5237_v22  ;;  %v3074_v42 = vadd.f32 1e-06, %v3058_v47  ;;  %v3076_v6 = vadd.f32 1e-06, %v3060_v9 }
 0x5c0   : > { %v5241_v20 = vpop.eup %5240  ;;  %v3057_v7 = vmul.f32 %v5239_v29, %v8175_v50  ;;  %5262 = vlog2.f32 %v3070_v11  ;;  %v2180_v30 = vmul.f32 %v2164_v28, %v9318_v33  ;;  %v9330_v22 = vld [vmem:[#allocation67_spill] sm:$0xff]  ;;  %v2203_v4 = vmul.f32 1.442695, %v2176_v35 }
 0x5c1   : > { %v5243_v24 = vpop.eup %5242  ;;  %v8249_v19 = vpop.xlane.xlu0 %3705  ;;  %5264 = vpow2.f32 %v2199_v12  ;;  %v2158_v56 = vmul.f32 0.6931472, %v5241_v20  ;;  %v2175_v26 = vmul.f32 %v2154_v13, %v9318_v33  ;;  %v2213_v48 = vadd.f32 %v8167_v52, %v9330_v22 }
 0x5c2   : > { %v5245_v14 = vpop.eup %5244  ;;  %v3059_v50 = vmul.f32 %v5243_v24, %v8208_v18  ;;  %v3073_v0 = vadd.f32 1e-06, %v3057_v7  ;;  %v8257_v27 = vpop.xlane.xlu1 %3684  ;;  %5266 = vlog2.f32 %v3071_v38  ;;  %v2178_v18 = vmul.f32 %v2160_v1, %v9318_v33 }
 0x5c3   : > { %v5247_v34 = vpop.eup %5246  ;;  %v8253_v61 = vmul.f32 %v5245_v14, %v4643_v3  ;;  %v2197_v3 = vmul.f32 1.442695, %v2173_v63  ;;  %5268 = vlog2.f32 %v3072_v2  ;;  %v2177_v29 = vmul.f32 %v2158_v56, %v9318_v33 }
 0x5c4   : > { %v5249_v23 = vpop.eup %5248  ;;  %v2162_v40 = vmul.f32 0.6931472, %v5247_v34  ;;  %5270 = vpow2.f32 %v2193_v46  ;;  %v3075_v32 = vadd.f32 1e-06, %v3059_v50  ;;  %v2207_v12 = vmul.f32 1.442695, %v2178_v18 }
 0x5c5   : > { %v8260_v51 = vpop.xlane.xlu0 %3711  ;;  %v5251_v41 = vpop.eup %5250  ;;  %5272 = vlog2.f32 %v3073_v0  ;;  %v2214_v11 = vadd.f32 %v5249_v23, %v9330_v22  ;;  %v2211_v57 = vmul.f32 1.442695, %v2180_v30  ;;  %v2201_v47 = vmul.f32 1.442695, %v2175_v26 }
 0x5c6   : > { %v5253_v45 = vpop.eup %5252  ;;  %5274 = vlog2.f32 %v3074_v42  ;;  %v2179_v7 = vmul.f32 %v2162_v40, %v9318_v33  ;;  %v8272_v24 = vpop.xlane.xlu1 %3690  ;;  %v2205_v28 = vmul.f32 1.442695, %v2177_v29  ;;  %v2215_v2 = vadd.f32 %v5251_v41, %v9330_v22 }
 0x5c7   : > { %v5255_v53 = vpop.eup %5254  ;;  %5276 = vpow2.f32 %v2197_v3  ;;  %v2216_v63 = vadd.f32 %v5253_v45, %v9330_v22 }
 0x5c8   : > { %v5257_v21 = vpop.eup %5256  ;;  %5278 = vlog2.f32 %v3075_v32  ;;  %v2209_v46 = vmul.f32 1.442695, %v2179_v7  ;;  %v2217_v18 = vadd.f32 %v5255_v53, %v9330_v22 }
 0x5c9   : > { %v8268_v62 = vpop.permute.xlu0 %2235  ;;  %v5259_v20 = vpop.eup %5258  ;;  %5280 = vlog2.f32 %v3076_v6  ;;  %v2218_v41 = vadd.f32 %v5257_v21, %v9330_v22 }
 0x5ca   : > { %v2239_v52 = vadd.f32 %v8268_v62, %v2214_v11  ;;  %v2238_v1 = vadd.f32 %v8268_v62, %v2213_v48  ;;  %v5261_v38 = vpop.eup %5260  ;;  %5282 = vpow2.f32 %v2203_v4  ;;  %v2241_v13 = vadd.f32 %v8268_v62, %v2216_v63  ;;  %v8282_v56 = vpop.xlane.xlu1 %3696 }
 0x5cb   : > { %v5263_v14 = vpop.eup %5262  ;;  %5284 = vpow2.f32 %v2207_v12  ;;  %v3086_v23 = vmul.f32 0.6931472, %v5261_v38  ;;  %v2240_v0 = vadd.f32 %v8268_v62, %v2215_v2  ;;  %v2243_v26 = vadd.f32 %v8268_v62, %v2218_v41 }
 0x5cc   : > { %2272 = vrot.lane.b32.xlu1 %v2239_v52, %s5536_s24  ;;  %2270 = vrot.lane.b32.xlu0 %v2238_v1, %s5536_s24  ;;  %v5265_v34 = vpop.eup %5264  ;;  %5286 = vpow2.f32 %v2211_v57  ;;  %v3088_v35 = vmul.f32 0.6931472, %v5263_v14  ;;  %v2242_v6 = vadd.f32 %v8268_v62, %v2217_v18  ;;  %v2220_v21 = vadd.f32 %v5259_v20, %v9330_v22 }
 0x5cd   : > { %v5267_v50 = vpop.eup %5266  ;;  %5288 = vpow2.f32 %v2201_v47  ;;  %v3117_v30 = vmul.f32 %v3086_v23, %v9318_v33 }
 0x5ce   : > { %v5269_v9 = vpop.eup %5268  ;;  %5290 = vpow2.f32 %v2205_v28  ;;  %v3090_v40 = vmul.f32 0.6931472, %v5267_v50  ;;  %v3118_v4 = vmul.f32 %v3088_v35, %v9318_v33  ;;  %v8300_v57 = vpop.xlane.xlu1 %3702  ;;  %v2245_v38 = vadd.f32 %v8268_v62, %v2220_v21 }
 0x5cf   : > { %v5271_v42 = vpop.eup %5270  ;;  %5292 = vpow2.f32 %v2209_v46  ;;  %v3092_v32 = vmul.f32 0.6931472, %v5269_v9  ;;  %v3133_v1 = vmul.f32 1.442695, %v3117_v30 }
 0x5d0   : > { %2276 = vrot.lane.b32.xlu1 %v2241_v13, %s5536_s24  ;;  %2274 = vrot.lane.b32.xlu0 %v2240_v0, %s5536_s24  ;;  %v5273_v3 = vpop.eup %5272  ;;  %5294 = vrcp.f32 %v8169_v43  ;;  %v2219_v11 = vadd.f32 %v5271_v42, %v9330_v22  ;;  %v3119_v7 = vmul.f32 %v3090_v40, %v9318_v33  ;;  %v3135_v20 = vmul.f32 1.442695, %v3118_v4 }
 0x5d1   : > { %v5275_v45 = vpop.eup %5274  ;;  %5296 = vrcp.f32 %v8134_v10  ;;  %v3094_v53 = vmul.f32 0.6931472, %v5273_v3  ;;  %v3120_v10 = vmul.f32 %v3092_v32, %v9318_v33 }
 0x5d2   : > { %v5277_v48 = vpop.eup %5276  ;;  %5298 = vrcp.f32 %v8139_v60  ;;  %v3096_v43 = vmul.f32 0.6931472, %v5275_v45  ;;  %v2244_v47 = vadd.f32 %v8268_v62, %v2219_v11  ;;  %v2222_v60 = vadd.f32 %v5265_v34, %v9330_v22  ;;  %v8317_v41 = vpop.xlane.xlu1 %3708 }
 0x5d3   : > { %v5279_v29 = vpop.eup %5278  ;;  %5300 = vrcp.f32 %v8149_v8  ;;  %v3121_v2 = vmul.f32 %v3094_v53, %v9318_v33  ;;  %v2221_v50 = vadd.f32 %v5277_v48, %v9330_v22  ;;  %v3137_v13 = vmul.f32 1.442695, %v3119_v7 }
 0x5d4   : > { %2280 = vrot.lane.b32.xlu1 %v2243_v26, %s5536_s24  ;;  %2278 = vrot.lane.b32.xlu0 %v2242_v6, %s5536_s24  ;;  %v5281_v12 = vpop.eup %5280  ;;  %v3098_v28 = vmul.f32 0.6931472, %v5279_v29  ;;  %5302 = vrcp.f32 %v8157_v37  ;;  %v3122_v8 = vmul.f32 %v3096_v43, %v9318_v33  ;;  %v3139_v34 = vmul.f32 1.442695, %v3120_v10 }
 0x5d5   : > { %v5283_v52 = vpop.eup %5282  ;;  %v3100_v46 = vmul.f32 0.6931472, %v5281_v12  ;;  %5304 = vrcp.f32 %v8179_v25  ;;  %v2247_v37 = vadd.f32 %v8268_v62, %v2222_v60  ;;  %v2246_v9 = vadd.f32 %v8268_v62, %v2221_v50 }
 0x5d6   : > { %v5285_v14 = vpop.eup %5284  ;;  %5306 = vpow2.f32 %v3133_v1  ;;  %v3123_v42 = vmul.f32 %v3098_v28, %v9318_v33  ;;  %v2224_v18 = vadd.f32 %v5283_v52, %v9330_v22  ;;  %v3141_v3 = vmul.f32 1.442695, %v3121_v2  ;;  %v8336_v52 = vpop.xlane.xlu1 %3714 }
 0x5d7   : > { %v5287_v63 = vpop.eup %5286  ;;  %5308 = vpow2.f32 %v3135_v20  ;;  %v3124_v25 = vmul.f32 %v3100_v46, %v9318_v33  ;;  %v3143_v30 = vmul.f32 1.442695, %v3122_v8  ;;  %v2226_v53 = vadd.f32 %v5285_v14, %v9330_v22 }
 0x5d8   : > { %2284 = vrot.lane.b32.xlu1 %v2245_v38, %s5536_s24  ;;  %2282 = vrot.lane.b32.xlu0 %v2244_v47, %s5536_s24  ;;  %v5289_v23 = vpop.eup %5288  ;;  %5310 = vrcp.f32 %v8220_v16  ;;  %v2249_v6 = vadd.f32 %v8268_v62, %v2224_v18  ;;  %v3145_v29 = vmul.f32 1.442695, %v3123_v42  ;;  %v2228_v28 = vadd.f32 %v5287_v63, %v9330_v22 }
 0x5d9   : > { %v5291_v0 = vpop.eup %5290  ;;  %v2223_v40 = vadd.f32 %v5289_v23, %v9330_v22  ;;  %5312 = vpow2.f32 %v3137_v13  ;;  %v3147_v21 = vmul.f32 1.442695, %v3124_v25  ;;  %v2251_v47 = vadd.f32 %v8268_v62, %v2226_v53 }
 0x5da   : > { %v5293_v35 = vpop.eup %5292  ;;  %5314 = vpow2.f32 %v3139_v34  ;;  %v2225_v7 = vadd.f32 %v5291_v0, %v9330_v22  ;;  %v2253_v34 = vadd.f32 %v8268_v62, %v2228_v28 }
 0x5db   : > { %v5295_v45 = vpop.eup %5294  ;;  %v2248_v48 = vadd.f32 %v8268_v62, %v2223_v40  ;;  %5316 = vrcp.f32 %v8226_v39  ;;  %v2227_v50 = vadd.f32 %v5293_v35, %v9330_v22 }
 0x5dc   : > { %2288 = vrot.lane.b32.xlu1 %v2247_v37, %s5536_s24  ;;  %2286 = vrot.lane.b32.xlu0 %v2246_v9, %s5536_s24  ;;  %v5297_v32 = vpop.eup %5296  ;;  %5318 = vpow2.f32 %v3141_v3  ;;  %v2250_v14 = vadd.f32 %v8268_v62, %v2225_v7  ;;  %v8352_v9 = vpop.permute.xlu1 %3187 }
 0x5dd   : > { %v8327_v4 = vpop.eup %5298  ;;  %5320 = vpow2.f32 %v3143_v30  ;;  %v2252_v63 = vadd.f32 %v8268_v62, %v2227_v50  ;;  %v4021_v62 = vadd.f32 1e-06, %v8206_v49 }
 0x5de   : > { %v4583_v26 = vpop.f32.mrb[48].mxu0  ;;  %v8334_v43 = vpop.eup %5300  ;;  %5322 = vpow2.f32 %v3145_v29 }
 0x5df   : > { %v4584_v16 = vpop.f32.mrb[49].mxu0  ;;  %v8338_v39 = vpop.eup %5302  ;;  %5324 = vpow2.f32 %v3147_v21 }
 0x5e0   : > { %2292 = vrot.lane.b32.xlu1 %v2249_v6, %s5536_s24  ;;  %2290 = vrot.lane.b32.xlu0 %v2248_v48, %s5536_s24  ;;  %v4585_v11 = vadd.f32 %v4584_v16, %v4583_v26  ;;  %v4586_v12 = vpop.f32.mrb[50].mxu0  ;;  %v8342_v20 = vpop.eup %5304  ;;  %5326 = vrcp.f32 %v8194_v59 }
 0x5e1   : > { %v4587_v1 = vpop.f32.mrb[51].mxu0  ;;  %v5307_v60 = vpop.eup %5306 }
 0x5e2   : > { %v3061_v10 = vmul.f32 %v5297_v32, %v4585_v11  ;;  %v4588_v38 = vadd.f32 %v4587_v1, %v4586_v12  ;;  %v5309_v23 = vpop.eup %5308  ;;  %v3165_v25 = vadd.f32 %v5307_v60, %v9330_v22 }
 0x5e3   : > { %v5311_v13 = vpop.eup %5310  ;;  %v3166_v3 = vadd.f32 %v5309_v23, %v9330_v22 }
 0x5e4   : > { %v3077_v2 = vadd.f32 1e-06, %v3061_v10  ;;  %v3062_v46 = vmul.f32 %v5295_v45, %v4588_v38  ;;  %2296 = vrot.lane.b32.xlu1 %v2251_v47, %s5536_s24  ;;  %2294 = vrot.lane.b32.xlu0 %v2250_v14, %s5536_s24  ;;  %v5313_v37 = vpop.eup %5312  ;;  %v3190_v48 = vadd.f32 %v8352_v9, %v3165_v25 }
 0x5e5   : > { %v5315_v18 = vpop.eup %5314  ;;  %v3191_v6 = vadd.f32 %v8352_v9, %v3166_v3 }
 0x5e6   : > { %5328 = vlog2.f32 %v3077_v2  ;;  %v3078_v8 = vadd.f32 1e-06, %v3062_v46  ;;  %v4647_v0 = vpop.f32.mrb[48].mxu1  ;;  %v5317_v40 = vpop.eup %5316 }
 0x5e7   : > { %5330 = vrcp.f32 %v8237_v15  ;;  %v4648_v42 = vpop.f32.mrb[49].mxu1  ;;  %v4023_v15 = vadd.f32 1e-06, %v8224_v44  ;;  %v5319_v30 = vpop.eup %5318  ;;  %v3168_v44 = vadd.f32 %v5315_v18, %v9330_v22  ;;  %v4006_v38 = vmul.f32 %v5317_v40, %v8153_v31 }
 0x5e8   : > { %5332 = vlog2.f32 %v3078_v8  ;;  %2300 = vrot.lane.b32.xlu1 %v2253_v34, %s5536_s24  ;;  %2298 = vrot.lane.b32.xlu0 %v2252_v63, %s5536_s24  ;;  %v4649_v59 = vadd.f32 %v4648_v42, %v4647_v0  ;;  %v4650_v35 = vpop.f32.mrb[50].mxu1  ;;  %v5321_v29 = vpop.eup %5320  ;;  %v3169_v23 = vadd.f32 %v5319_v30, %v9330_v22 }
 0x5e9   : > { %5334 = vrcp.f32 %v8241_v17  ;;  %v4651_v45 = vpop.f32.mrb[51].mxu1  ;;  %v3167_v17 = vadd.f32 %v5313_v37, %v9330_v22  ;;  %v5323_v53 = vpop.eup %5322  ;;  %v3193_v1 = vadd.f32 %v8352_v9, %v3168_v44  ;;  %v3170_v60 = vadd.f32 %v5321_v29, %v9330_v22 }
 0x5ea   : > { %v8361_v32 = vmul.f32 %v5311_v13, %v4649_v59  ;;  %v8363_v26 = vadd.f32 %v4651_v45, %v4650_v35  ;;  %5336 = vrcp.f32 %v8257_v27  ;;  %v5325_v12 = vpop.eup %5324  ;;  %v3171_v13 = vadd.f32 %v5323_v53, %v9330_v22 }
 0x5eb   : > { %v4589_v16 = vpop.f32.mrb[52].mxu0  ;;  %5338 = vrcp.f32 %v8213_v55  ;;  %v3192_v55 = vadd.f32 %v8352_v9, %v3167_v17  ;;  %v5327_v10 = vpop.eup %5326  ;;  %v3172_v63 = vadd.f32 %v5325_v12, %v9330_v22  ;;  %v3195_v18 = vadd.f32 %v8352_v9, %v3170_v60 }
 0x5ec   : > { %3224 = vrot.lane.b32.xlu1 %v3191_v6, %s5535_s15  ;;  %3222 = vrot.lane.b32.xlu0 %v3190_v48, %s5535_s15  ;;  %v4590_v49 = vpop.f32.mrb[53].mxu0  ;;  %5340 = vlog2.f32 %v4021_v62  ;;  %v3194_v59 = vadd.f32 %v8352_v9, %v3169_v23  ;;  %v3196_v17 = vadd.f32 %v8352_v9, %v3171_v13 }
 0x5ed   : > { %v4591_v21 = vadd.f32 %v4590_v49, %v4589_v16  ;;  %v4592_v11 = vpop.f32.mrb[54].mxu0  ;;  %5342 = vlog2.f32 %v4023_v15 }
 0x5ee   : > { %v4593_v7 = vpop.f32.mrb[55].mxu0  ;;  %v4653_v27 = vpop.f32.mrb[52].mxu1  ;;  %5344 = vrcp.f32 %v8249_v19 }
 0x5ef   : > { %v3063_v47 = vmul.f32 %v8327_v4, %v4591_v21  ;;  %v4594_v14 = vadd.f32 %v4593_v7, %v4592_v11  ;;  %v4654_v28 = vpop.f32.mrb[53].mxu1 }
 0x5f0   : > { %v5329_v2 = vpop.eup %5328  ;;  %3228 = vrot.lane.b32.xlu1 %v3193_v1, %s5535_s15  ;;  %3226 = vrot.lane.b32.xlu0 %v3192_v55, %s5535_s15  ;;  %v4655_v46 = vadd.f32 %v4654_v28, %v4653_v27  ;;  %v4656_v50 = vpop.f32.mrb[54].mxu1 }
 0x5f1   : > { %v5331_v31 = vpop.eup %5330  ;;  %v3102_v8 = vmul.f32 0.6931472, %v5329_v2  ;;  %v3079_v4 = vadd.f32 1e-06, %v3063_v47  ;;  %v3064_v0 = vmul.f32 %v8342_v20, %v4594_v14  ;;  %v4657_v34 = vpop.f32.mrb[55].mxu1 }
 0x5f2   : > { %v5333_v37 = vpop.eup %5332  ;;  %v8385_v19 = vmul.f32 %v5331_v31, %v4655_v46  ;;  %v8387_v42 = vadd.f32 %v4657_v34, %v4656_v50  ;;  %v4022_v20 = vadd.f32 1e-06, %v4006_v38  ;;  %v4025_v47 = vadd.f32 1e-06, %v8235_v58 }
 0x5f3   : > { %v5335_v35 = vpop.eup %5334  ;;  %v3125_v3 = vmul.f32 %v3102_v8, %v9318_v33  ;;  %v3104_v25 = vmul.f32 0.6931472, %v5333_v37  ;;  %5346 = vlog2.f32 %v3079_v4  ;;  %v3080_v40 = vadd.f32 1e-06, %v3064_v0  ;;  %v4595_v62 = vpop.f32.mrb[56].mxu0 }
 0x5f4   : > { %5348 = vrcp.f32 %v8272_v24  ;;  %3232 = vrot.lane.b32.xlu1 %v3195_v18, %s5535_s15  ;;  %3230 = vrot.lane.b32.xlu0 %v3194_v59, %s5535_s15  ;;  %v4596_v15 = vpop.f32.mrb[57].mxu0  ;;  %v5337_v45 = vpop.eup %5336  ;;  %v4008_v49 = vmul.f32 %v5335_v35, %v8172_v5  ;;  %v3197_v24 = vadd.f32 %v8352_v9, %v3172_v63  ;;  %v4027_v59 = vadd.f32 1e-06, %v8253_v61 }
 0x5f5   : > { %v3149_v30 = vmul.f32 1.442695, %v3125_v3  ;;  %v3126_v6 = vmul.f32 %v3104_v25, %v9318_v33  ;;  %5350 = vlog2.f32 %v3080_v40  ;;  %v4597_v48 = vadd.f32 %v4596_v15, %v4595_v62  ;;  %v4598_v29 = vpop.f32.mrb[58].mxu0  ;;  %v5339_v16 = vpop.eup %5338 }
 0x5f6   : > { %5352 = vrcp.f32 %v8260_v51  ;;  %v4599_v44 = vpop.f32.mrb[59].mxu0  ;;  %v5341_v53 = vpop.eup %5340  ;;  %v4010_v27 = vmul.f32 %v5337_v45, %v8198_v54  ;;  %v4024_v28 = vadd.f32 1e-06, %v4008_v49 }
 0x5f7   : > { %5354 = vrcp.f32 %v8282_v56  ;;  %v3151_v21 = vmul.f32 1.442695, %v3126_v6  ;;  %v3065_v11 = vmul.f32 %v8334_v43, %v4597_v48  ;;  %v4600_v12 = vadd.f32 %v4599_v44, %v4598_v29  ;;  %v8402_v7 = vpop.eup %5342  ;;  %v4659_v5 = vpop.f32.mrb[56].mxu1 }
 0x5f8   : > { %5356 = vpow2.f32 %v3149_v30  ;;  %3236 = vrot.lane.b32.xlu1 %v3197_v24, %s5535_s15  ;;  %3234 = vrot.lane.b32.xlu0 %v3196_v17, %s5535_s15  ;;  %v4660_v55 = vpop.f32.mrb[57].mxu1  ;;  %v5345_v38 = vpop.eup %5344  ;;  %v4038_v56 = vmul.f32 0.6931472, %v5341_v53  ;;  %v4026_v46 = vadd.f32 1e-06, %v4010_v27 }
 0x5f9   : > { %5358 = vlog2.f32 %v4022_v20  ;;  %v3081_v51 = vadd.f32 1e-06, %v3065_v11  ;;  %v3066_v1 = vmul.f32 %v5327_v10, %v4600_v12  ;;  %v4661_v43 = vadd.f32 %v4660_v55, %v4659_v5  ;;  %v4662_v14 = vpop.f32.mrb[58].mxu1 }
 0x5fa   : > { %5360 = vpow2.f32 %v3151_v21  ;;  %v4663_v60 = vpop.f32.mrb[59].mxu1  ;;  %v4069_v63 = vmul.f32 %v4038_v56, %v9318_v33 }
 0x5fb   : > { %5362 = vlog2.f32 %v3081_v51  ;;  %v3082_v54 = vadd.f32 1e-06, %v3066_v1  ;;  %v4601_v2 = vpop.f32.mrb[60].mxu0  ;;  %v8409_v50 = vmul.f32 %v5345_v38, %v4661_v43  ;;  %v8411_v23 = vadd.f32 %v4663_v60, %v4662_v14 }
 0x5fc   : > { %5364 = vrcp.f32 %v8300_v57  ;;  %v4602_v10 = vpop.f32.mrb[61].mxu0  ;;  %v4085_v49 = vmul.f32 1.442695, %v4069_v63  ;;  %v4029_v1 = vadd.f32 1e-06, %v8361_v32 }
 0x5fd   : > { %v5347_v13 = vpop.eup %5346  ;;  %5366 = vlog2.f32 %v3082_v54  ;;  %v4603_v31 = vadd.f32 %v4602_v10, %v4601_v2  ;;  %v4604_v58 = vpop.f32.mrb[62].mxu0  ;;  %v4042_v32 = vmul.f32 0.6931472, %v8402_v7 }
 0x5fe   : > { %v5349_v8 = vpop.eup %5348  ;;  %5368 = vlog2.f32 %v4025_v47  ;;  %v3106_v4 = vmul.f32 0.6931472, %v5347_v13  ;;  %v4605_v0 = vpop.f32.mrb[63].mxu0 }
 0x5ff   : > { %v5351_v34 = vpop.eup %5350  ;;  %5370 = vlog2.f32 %v4024_v28  ;;  %v3067_v37 = vmul.f32 %v8338_v39, %v4603_v31  ;;  %v4606_v57 = vadd.f32 %v4605_v0, %v4604_v58  ;;  %v4665_v25 = vpop.f32.mrb[60].mxu1  ;;  %v4012_v62 = vmul.f32 %v5349_v8, %v8230_v36 }
 0x600   : > { %v5353_v18 = vpop.eup %5352  ;;  %5372 = vlog2.f32 %v4026_v46  ;;  %v3127_v35 = vmul.f32 %v3106_v4, %v9318_v33  ;;  %v3108_v3 = vmul.f32 0.6931472, %v5351_v34  ;;  %v4666_v45 = vpop.f32.mrb[61].mxu1  ;;  %v4071_v63 = vmul.f32 %v4042_v32, %v9318_v33 }
 0x601   : > { %v5355_v40 = vpop.eup %5354  ;;  %5374 = vrcp.f32 %v8317_v41  ;;  %v3083_v20 = vadd.f32 1e-06, %v3067_v37  ;;  %v3068_v15 = vmul.f32 %v5339_v16, %v4606_v57  ;;  %v4667_v61 = vadd.f32 %v4666_v45, %v4665_v25  ;;  %v4668_v48 = vpop.f32.mrb[62].mxu1 }
 0x602   : > { %v5357_v30 = vpop.eup %5356  ;;  %5376 = vrcp.f32 %v8336_v52  ;;  %v3153_v39 = vmul.f32 1.442695, %v3127_v35  ;;  %v3128_v6 = vmul.f32 %v3108_v3, %v9318_v33  ;;  %v4669_v24 = vpop.f32.mrb[63].mxu1  ;;  %v4028_v21 = vadd.f32 1e-06, %v4012_v62 }
 0x603   : > { %v5359_v29 = vpop.eup %5358  ;;  %5378 = vlog2.f32 %v3083_v20  ;;  %v3084_v44 = vadd.f32 1e-06, %v3068_v15  ;;  %v8421_v41 = vmul.f32 %v5353_v18, %v4667_v61  ;;  %v4670_v16 = vadd.f32 %v4669_v24, %v4668_v48 }
 0x604   : > { %v5361_v17 = vpop.eup %5360  ;;  %5380 = vpow2.f32 %v3153_v39  ;;  %v3155_v36 = vmul.f32 1.442695, %v3128_v6  ;;  %v4014_v52 = vmul.f32 %v5355_v40, %v8363_v26  ;;  %v3173_v11 = vadd.f32 %v5357_v30, %v9330_v22 }
 0x605   : > { %v5363_v53 = vpop.eup %5362  ;;  %5382 = vlog2.f32 %v3084_v44  ;;  %v4040_v27 = vmul.f32 0.6931472, %v5359_v29  ;;  %v3174_v38 = vadd.f32 %v5361_v17, %v9330_v22  ;;  %v4089_v29 = vmul.f32 1.442695, %v4071_v63 }
 0x606   : > { %v5365_v12 = vpop.eup %5364  ;;  %5384 = vpow2.f32 %v3155_v36  ;;  %v3110_v5 = vmul.f32 0.6931472, %v5363_v53  ;;  %v3198_v55 = vadd.f32 %v8352_v9, %v3173_v11  ;;  %v4030_v28 = vadd.f32 1e-06, %v4014_v52 }
 0x607   : > { %v5367_v51 = vpop.eup %5366  ;;  %5386 = vlog2.f32 %v4027_v59  ;;  %v4016_v47 = vmul.f32 %v5365_v12, %v8387_v42  ;;  %v3199_v54 = vadd.f32 %v8352_v9, %v3174_v38  ;;  %v4070_v2 = vmul.f32 %v4040_v27, %v9318_v33 }
 0x608   : > { %v5369_v56 = vpop.eup %5368  ;;  %5388 = vpow2.f32 %v4085_v49  ;;  %v3129_v26 = vmul.f32 %v3110_v5, %v9318_v33  ;;  %v3112_v43 = vmul.f32 0.6931472, %v5367_v51  ;;  %3238 = vrot.lane.b32.xlu0 %v3198_v55, %s5535_s15  ;;  %v4031_v42 = vadd.f32 1e-06, %v8385_v19 }
 0x609   : > { %v5371_v14 = vpop.eup %5370  ;;  %5390 = vlog2.f32 %v4028_v21  ;;  %3240 = vrot.lane.b32.xlu1 %v3199_v54, %s5535_s15  ;;  %v4032_v8 = vadd.f32 1e-06, %v4016_v47  ;;  %v4087_v37 = vmul.f32 1.442695, %v4070_v2  ;;  %v4046_v59 = vmul.f32 0.6931472, %v5369_v56 }
 0x60a   : > { %v5373_v60 = vpop.eup %5372  ;;  %v3157_v46 = vmul.f32 1.442695, %v3129_v26  ;;  %v3130_v10 = vmul.f32 %v3112_v43, %v9318_v33  ;;  %5392 = vlog2.f32 %v4029_v1  ;;  %v4044_v58 = vmul.f32 0.6931472, %v5371_v14 }
 0x60b   : > { %v5375_v13 = vpop.eup %5374  ;;  %v4033_v19 = vadd.f32 1e-06, %v8409_v50  ;;  %v4048_v50 = vmul.f32 0.6931472, %v5373_v60  ;;  %v4035_v49 = vadd.f32 1e-06, %v8421_v41  ;;  %v4073_v24 = vmul.f32 %v4046_v59, %v9318_v33 }
 0x60c   : > { %v5377_v31 = vpop.eup %5376  ;;  %5394 = vpow2.f32 %v3157_v46  ;;  %v3159_v4 = vmul.f32 1.442695, %v3130_v10  ;;  %v4018_v7 = vmul.f32 %v5375_v13, %v8411_v23  ;;  %v4072_v25 = vmul.f32 %v4044_v58, %v9318_v33 }
 0x60d   : > { %v5379_v0 = vpop.eup %5378  ;;  %5396 = vlog2.f32 %v4030_v28  ;;  %v4020_v15 = vmul.f32 %v5377_v31, %v4670_v16  ;;  %v4074_v11 = vmul.f32 %v4048_v50, %v9318_v33  ;;  %v4093_v51 = vmul.f32 1.442695, %v4073_v24 }
 0x60e   : > { %v5381_v34 = vpop.eup %5380  ;;  %5398 = vpow2.f32 %v3159_v4  ;;  %v3114_v57 = vmul.f32 0.6931472, %v5379_v0  ;;  %v4034_v20 = vadd.f32 1e-06, %v4018_v7  ;;  %v4091_v52 = vmul.f32 1.442695, %v4072_v25 }
 0x60f   : > { %v5383_v18 = vpop.eup %5382  ;;  %5400 = vlog2.f32 %v4031_v42  ;;  %v3175_v35 = vadd.f32 %v5381_v34, %v9330_v22  ;;  %v4036_v53 = vadd.f32 1e-06, %v4020_v15  ;;  %v4095_v43 = vmul.f32 1.442695, %v4074_v11 }
 0x610   : > { %v5385_v3 = vpop.eup %5384  ;;  %5402 = vlog2.f32 %v4032_v8  ;;  %v3131_v40 = vmul.f32 %v3114_v57, %v9318_v33  ;;  %v3116_v23 = vmul.f32 0.6931472, %v5383_v18 }
 0x611   : > { %v5387_v62 = vpop.eup %5386  ;;  %v3200_v45 = vadd.f32 %v8352_v9, %v3175_v35  ;;  %v3176_v30 = vadd.f32 %v5385_v3, %v9330_v22  ;;  %5404 = vpow2.f32 %v4087_v37 }
 0x612   : > { %v8445_v39 = vpop.eup %5388  ;;  %v3161_v6 = vmul.f32 1.442695, %v3131_v40  ;;  %v3132_v61 = vmul.f32 %v3116_v23, %v9318_v33  ;;  %5406 = vlog2.f32 %v4033_v19  ;;  %v4050_v17 = vmul.f32 0.6931472, %v5387_v62  ;;  %v8468_v19 = vpop.permute.xlu1 %4139 }
 0x613   : > { %v5391_v48 = vpop.eup %5390  ;;  %3242 = vrot.lane.b32.xlu0 %v3200_v45, %s5535_s15  ;;  %v3201_v44 = vadd.f32 %v8352_v9, %v3176_v30  ;;  %v4117_v62 = vadd.f32 %v8445_v39, %v9330_v22 }
 0x614   : > { %5408 = vpow2.f32 %v3161_v6  ;;  %v3163_v36 = vmul.f32 1.442695, %v3132_v61  ;;  %v5393_v16 = vpop.eup %5392  ;;  %v4052_v12 = vmul.f32 0.6931472, %v5391_v48  ;;  %v4075_v1 = vmul.f32 %v4050_v17, %v9318_v33 }
 0x615   : > { %5410 = vlog2.f32 %v4034_v20  ;;  %3244 = vrot.lane.b32.xlu1 %v3201_v44, %s5535_s15  ;;  %v4054_v55 = vmul.f32 0.6931472, %v5393_v16  ;;  %v4142_v6 = vadd.f32 %v8468_v19, %v4117_v62 }
 0x616   : > { %v5395_v21 = vpop.eup %5394  ;;  %5412 = vpow2.f32 %v3163_v36  ;;  %v4076_v14 = vmul.f32 %v4052_v12, %v9318_v33  ;;  %v4097_v32 = vmul.f32 1.442695, %v4075_v1 }
 0x617   : > { %v5397_v41 = vpop.eup %5396  ;;  %5414 = vlog2.f32 %v4035_v49  ;;  %v3177_v27 = vadd.f32 %v5395_v21, %v9330_v22  ;;  %v4077_v2 = vmul.f32 %v4054_v55, %v9318_v33 }
 0x618   : > { %v5399_v5 = vpop.eup %5398  ;;  %5416 = vpow2.f32 %v4089_v29  ;;  %v4056_v28 = vmul.f32 0.6931472, %v5397_v41  ;;  %v4099_v42 = vmul.f32 1.442695, %v4076_v14 }
 0x619   : > { %v5401_v38 = vpop.eup %5400  ;;  %5418 = vlog2.f32 %v4036_v53  ;;  %v3202_v56 = vadd.f32 %v8352_v9, %v3177_v27  ;;  %v3178_v47 = vadd.f32 %v5399_v5, %v9330_v22  ;;  %v4101_v7 = vmul.f32 1.442695, %v4077_v2 }
 0x61a   : > { %v5403_v26 = vpop.eup %5402  ;;  %5420 = vpow2.f32 %v4091_v52  ;;  %v4058_v46 = vmul.f32 0.6931472, %v5401_v38  ;;  %v4078_v31 = vmul.f32 %v4056_v28, %v9318_v33 }
 0x61b   : > { %3246 = vrot.lane.b32.xlu0 %v3202_v56, %s5535_s15  ;;  %v3203_v54 = vadd.f32 %v8352_v9, %v3178_v47  ;;  %v5405_v60 = vpop.eup %5404  ;;  %5422 = vpow2.f32 %v4093_v51  ;;  %v4060_v58 = vmul.f32 0.6931472, %v5403_v26 }
 0x61c   : > { %v5407_v10 = vpop.eup %5406  ;;  %5424 = vpow2.f32 %v4095_v43  ;;  %v4079_v34 = vmul.f32 %v4058_v46, %v9318_v33  ;;  %v4103_v35 = vmul.f32 1.442695, %v4078_v31  ;;  %v4118_v20 = vadd.f32 %v5405_v60, %v9330_v22 }
 0x61d   : > { %3248 = vrot.lane.b32.xlu1 %v3203_v54, %s5535_s15  ;;  %5426 = vpow2.f32 %v4097_v32  ;;  %v4062_v63 = vmul.f32 0.6931472, %v5407_v10  ;;  %v4080_v3 = vmul.f32 %v4060_v58, %v9318_v33 }
 0x61e   : > { %v5409_v13 = vpop.eup %5408  ;;  %5428 = vpow2.f32 %v4099_v42  ;;  %v4105_v45 = vmul.f32 1.442695, %v4079_v34  ;;  %v4143_v39 = vadd.f32 %v8468_v19, %v4118_v20 }
 0x61f   : > { %v5411_v8 = vpop.eup %5410  ;;  %v3179_v4 = vadd.f32 %v5409_v13, %v9330_v22  ;;  %5430 = vpow2.f32 %v4101_v7  ;;  %v4081_v30 = vmul.f32 %v4062_v63, %v9318_v33  ;;  %v4107_v48 = vmul.f32 1.442695, %v4080_v3 }
 0x620   : > { %v5413_v0 = vpop.eup %5412  ;;  %v4064_v25 = vmul.f32 0.6931472, %v5411_v8  ;;  %5432 = vpow2.f32 %v4103_v35 }
 0x621   : > { %v5415_v37 = vpop.eup %5414  ;;  %v3204_v57 = vadd.f32 %v8352_v9, %v3179_v4  ;;  %v3180_v18 = vadd.f32 %v5413_v0, %v9330_v22  ;;  %5434 = vpow2.f32 %v4105_v45  ;;  %v4109_v17 = vmul.f32 1.442695, %v4081_v30 }
 0x622   : > { %v5417_v59 = vpop.eup %5416  ;;  %v4066_v50 = vmul.f32 0.6931472, %v5415_v37  ;;  %5436 = vpow2.f32 %v4107_v48 }
 0x623   : > { %v5419_v40 = vpop.eup %5418  ;;  %3250 = vrot.lane.b32.xlu0 %v3204_v57, %s5535_s15  ;;  %v3205_v23 = vadd.f32 %v8352_v9, %v3180_v18  ;;  %v4082_v9 = vmul.f32 %v4064_v25, %v9318_v33  ;;  %v4119_v49 = vadd.f32 %v5417_v59, %v9330_v22  ;;  %5438 = vpow2.f32 %v4109_v17 }
 0x624   : > { %v5421_v15 = vpop.eup %5420  ;;  %v4068_v29 = vmul.f32 0.6931472, %v5419_v40  ;;  %v4083_v36 = vmul.f32 %v4066_v50, %v9318_v33 }
 0x625   : > { %3252 = vrot.lane.b32.xlu1 %v3205_v23, %s5535_s15  ;;  %v5423_v61 = vpop.eup %5422  ;;  %v4120_v44 = vadd.f32 %v5421_v15, %v9330_v22  ;;  %v4144_v16 = vadd.f32 %v8468_v19, %v4119_v49  ;;  %v4111_v52 = vmul.f32 1.442695, %v4082_v9  ;;  %s4253_s15 = sshll.u32 %s6997_s26, 4  ;;  %s8626_s15 = int_to_ptr.vmem [resolvable:$true] %s4253_s15 }
 0x626   : > { %v5425_v24 = vpop.eup %5424  ;;  %v4121_v53 = vadd.f32 %v5423_v61, %v9330_v22  ;;  %v4084_v11 = vmul.f32 %v4068_v29, %v9318_v33  ;;  %v4113_v5 = vmul.f32 1.442695, %v4083_v36  ;;  %s5466_s20 = scalar_lea.vmem %s8626_s15, 2048  ;;  %p5473_p1 = scmp.lt.s32.totalorder %s8626_s15, %s5471_s22 }
 0x627   : > { %4174 = vrot.lane.b32.xlu0 %v4142_v6, %s5534_s17  ;;  %v5427_v21 = vpop.eup %5426  ;;  %v4145_v12 = vadd.f32 %v8468_v19, %v4120_v44  ;;  %v4122_v41 = vadd.f32 %v5425_v24, %v9330_v22  ;;  %5440 = vpow2.f32 %v4111_v52  ;;  %p5467_p12 = scmp.ne.s32.totalorder %s8626_s15, %s5466_s20  ;;  %p5474_p2 = scmp.lt.s32.totalorder %s5472_s23, %s5466_s20 }
 0x628   : > { %v5429_v27 = vpop.eup %5428  ;;  %v4146_v51 = vadd.f32 %v8468_v19, %v4121_v53  ;;  %v4123_v1 = vadd.f32 %v5427_v21, %v9330_v22  ;;  %v4115_v38 = vmul.f32 1.442695, %v4084_v11  ;;  %5442 = vpow2.f32 %v4113_v5 }
 0x629   : > { %4176 = vrot.lane.b32.xlu1 %v4143_v39, %s5534_s17  ;;  %v5431_v55 = vpop.eup %5430  ;;  %v4147_v33 = vadd.f32 %v8468_v19, %v4122_v41  ;;  %v4124_v56 = vadd.f32 %v5429_v27, %v9330_v22  ;;  %p5468_p13 = pnand %p5467_p12, %p5624_p5  ;;  %p5475_p3 = por %p5474_p2, %p5473_p1 }
 0x62a   : > { %v5433_v47 = vpop.eup %5432  ;;  %v4148_v26 = vadd.f32 %v8468_v19, %v4123_v1  ;;  %v4125_v43 = vadd.f32 %v5431_v55, %v9330_v22  ;;  %5444 = vpow2.f32 %v4115_v38 }
 0x62b   : > { %4178 = vrot.lane.b32.xlu0 %v4144_v16, %s5534_s17  ;;  %v5435_v14 = vpop.eup %5434  ;;  %v4149_v28 = vadd.f32 %v8468_v19, %v4124_v56  ;;  %v4126_v54 = vadd.f32 %v5433_v47, %v9330_v22  ;;  %p5469_p0 = pneg %p5468_p13 }
 0x62c   : > { %v5437_v60 = vpop.eup %5436  ;;  %v4150_v32 = vadd.f32 %v8468_v19, %v4125_v43  ;;  %v4127_v2 = vadd.f32 %v5435_v14, %v9330_v22 }
 0x62d   : > { %4180 = vrot.lane.b32.xlu1 %v4145_v12, %s5534_s17  ;;  %v5439_v46 = vpop.eup %5438  ;;  %v4151_v10 = vadd.f32 %v8468_v19, %v4126_v54  ;;  %v4128_v13 = vadd.f32 %v5437_v60, %v9330_v22  ;;  %p5476_p4 = pnand %p5475_p3, %p5469_p0 }
 0x62e   : > { %v4152_v31 = vadd.f32 %v8468_v19, %v4127_v2  ;;  %v4129_v58 = vadd.f32 %v5439_v46, %v9330_v22 }
 0x62f   : > { %4182 = vrot.lane.b32.xlu0 %v4146_v51, %s5534_s17  ;;  %v4153_v4 = vadd.f32 %v8468_v19, %v4128_v13 }
 0x630   : > { %v4154_v34 = vadd.f32 %v8468_v19, %v4129_v58 }
 0x631   : > { %4184 = vrot.lane.b32.xlu1 %v4147_v33, %s5534_s17  ;;  %v5441_v42 = vpop.eup %5440 }
 0x632   : > { %v5443_v8 = vpop.eup %5442  ;;  %v4130_v0 = vadd.f32 %v5441_v42, %v9330_v22 }
 0x633   : > { %4186 = vrot.lane.b32.xlu0 %v4148_v26, %s5534_s17  ;;  %v4131_v63 = vadd.f32 %v5443_v8, %v9330_v22 }
 0x634   : > { %v5445_v7 = vpop.eup %5444  ;;  %v4155_v18 = vadd.f32 %v8468_v19, %v4130_v0 }
 0x635   : > { %4188 = vrot.lane.b32.xlu1 %v4149_v28, %s5534_s17  ;;  %v4132_v59 = vadd.f32 %v5445_v7, %v9330_v22  ;;  %v4156_v35 = vadd.f32 %v8468_v19, %v4131_v63 }
 0x637   : > { %4190 = vrot.lane.b32.xlu0 %v4150_v32, %s5534_s17  ;;  %v4157_v40 = vadd.f32 %v8468_v19, %v4132_v59 }
 0x639   : > { %4192 = vrot.lane.b32.xlu1 %v4151_v10, %s5534_s17 }
 0x63b   : > { %4194 = vrot.lane.b32.xlu0 %v4152_v31, %s5534_s17 }
 0x63d   : > { %4196 = vrot.lane.b32.xlu1 %v4153_v4, %s5534_s17 }
 0x63e   : > { %v2273_v37 = vpop.permute.xlu1 %2272  ;;  %v2271_v57 = vpop.permute.xlu0 %2270 }
 0x63f   : > { %2320 = vst.msk [vmem:[%s6997_s26 + $0x8] sm:$0xff] %vm2318_vm1, %v2273_v37  ;;  %2319 = vst.msk [vmem:[%s6997_s26] sm:$0xff] %vm2318_vm1, %v2271_v57  ;;  %4198 = vrot.lane.b32.xlu0 %v4154_v34, %s5534_s17 }
 0x641   : > { %4200 = vrot.lane.b32.xlu1 %v4155_v18, %s5534_s17 }
 0x642   : > { %v2277_v3 = vpop.permute.xlu1 %2276  ;;  %v2275_v25 = vpop.permute.xlu0 %2274 }
 0x643   : > { %2322 = vst.msk [vmem:[%s6997_s26 + $0x18] sm:$0xff] %vm2318_vm1, %v2277_v3  ;;  %2321 = vst.msk [vmem:[%s6997_s26 + $0x10] sm:$0xff] %vm2318_vm1, %v2275_v25  ;;  %4202 = vrot.lane.b32.xlu0 %v4156_v35, %s5534_s17 }
 0x645   : > { %4204 = vrot.lane.b32.xlu1 %v4157_v40, %s5534_s17  ;;  %s4414_s17 = sshll.u32 %s5607_s0, 11  ;;  %s8634_s0 = scalar_lea.sflag [#allocation5], %s290_s19 }
 0x646   : > { %v2281_v22 = vpop.permute.xlu1 %2280  ;;  %v2279_v23 = vpop.permute.xlu0 %2278  ;;  %s8624_s18 = scalar_lea.hbm %s8682_s7, %s4414_s17 }
 0x647   : > { %2324 = vst.msk [vmem:[%s6997_s26 + $0x28] sm:$0xff] %vm2318_vm1, %v2281_v22  ;;  %2323 = vst.msk [vmem:[%s6997_s26 + $0x20] sm:$0xff] %vm2318_vm1, %v2279_v23 }
 0x64a   : > { %v2285_v62 = vpop.permute.xlu1 %2284  ;;  %v2283_v20 = vpop.permute.xlu0 %2282 }
 0x64b   : > { %2326 = vst.msk [vmem:[%s6997_s26 + $0x38] sm:$0xff] %vm2318_vm1, %v2285_v62  ;;  %2325 = vst.msk [vmem:[%s6997_s26 + $0x30] sm:$0xff] %vm2318_vm1, %v2283_v20 }
 0x64e   : > { %v2289_v19 = vpop.permute.xlu1 %2288  ;;  %v2287_v15 = vpop.permute.xlu0 %2286 }
 0x64f   : > { %2328 = vst.msk [vmem:[%s6997_s26 + $0x48] sm:$0xff] %vm2318_vm1, %v2289_v19  ;;  %2327 = vst.msk [vmem:[%s6997_s26 + $0x40] sm:$0xff] %vm2318_vm1, %v2287_v15 }
 0x652   : > { %v2293_v45 = vpop.permute.xlu1 %2292  ;;  %v2291_v30 = vpop.permute.xlu0 %2290 }
 0x653   : > { %2330 = vst.msk [vmem:[%s6997_s26 + $0x58] sm:$0xff] %vm2318_vm1, %v2293_v45  ;;  %2329 = vst.msk [vmem:[%s6997_s26 + $0x50] sm:$0xff] %vm2318_vm1, %v2291_v30 }
 0x656   : > { %v2297_v50 = vpop.permute.xlu1 %2296  ;;  %v2295_v6 = vpop.permute.xlu0 %2294 }
 0x657   : > { %2332 = vst.msk [vmem:[%s6997_s26 + $0x68] sm:$0xff] %vm2318_vm1, %v2297_v50  ;;  %2331 = vst.msk [vmem:[%s6997_s26 + $0x60] sm:$0xff] %vm2318_vm1, %v2295_v6 }
 0x65a   : > { %v2301_v61 = vpop.permute.xlu1 %2300  ;;  %v2299_v48 = vpop.permute.xlu0 %2298 }
 0x65b   : > { %2334 = vst.msk [vmem:[%s6997_s26 + $0x78] sm:$0xff] %vm2318_vm1, %v2301_v61  ;;  %2333 = vst.msk [vmem:[%s6997_s26 + $0x70] sm:$0xff] %vm2318_vm1, %v2299_v48 }
 0x65e   : > { %v3225_v9 = vpop.permute.xlu1 %3224  ;;  %v3223_v29 = vpop.permute.xlu0 %3222 }
 0x65f   : > { %3272 = vst.msk [vmem:[%s6997_s26 + $0x8] sm:$0xff] %vm3270_vm2, %v3225_v9  ;;  %3271 = vst.msk [vmem:[%s6997_s26] sm:$0xff] %vm3270_vm2, %v3223_v29 }
 0x662   : > { %v3229_v39 = vpop.permute.xlu1 %3228  ;;  %v3227_v49 = vpop.permute.xlu0 %3226 }
 0x663   : > { %3274 = vst.msk [vmem:[%s6997_s26 + $0x18] sm:$0xff] %vm3270_vm2, %v3229_v39  ;;  %3273 = vst.msk [vmem:[%s6997_s26 + $0x10] sm:$0xff] %vm3270_vm2, %v3227_v49 }
 0x666   : > { %v3233_v44 = vpop.permute.xlu1 %3232  ;;  %v3231_v24 = vpop.permute.xlu0 %3230 }
 0x667   : > { %3276 = vst.msk [vmem:[%s6997_s26 + $0x28] sm:$0xff] %vm3270_vm2, %v3233_v44  ;;  %3275 = vst.msk [vmem:[%s6997_s26 + $0x20] sm:$0xff] %vm3270_vm2, %v3231_v24 }
 0x66a   : > { %v3237_v17 = vpop.permute.xlu1 %3236  ;;  %v3235_v36 = vpop.permute.xlu0 %3234 }
 0x66b   : > { %3278 = vst.msk [vmem:[%s6997_s26 + $0x38] sm:$0xff] %vm3270_vm2, %v3237_v17  ;;  %3277 = vst.msk [vmem:[%s6997_s26 + $0x30] sm:$0xff] %vm3270_vm2, %v3235_v36 }
 0x67a   : > { %v3239_v16 = vpop.permute.xlu0 %3238 }
 0x67b   : > { %3279 = vst.msk [vmem:[%s6997_s26 + $0x40] sm:$0xff] %vm3270_vm2, %v3239_v16  ;;  %v3241_v53 = vpop.permute.xlu1 %3240 }
 0x67c   : > { %3280 = vst.msk [vmem:[%s6997_s26 + $0x48] sm:$0xff] %vm3270_vm2, %v3241_v53 }
 0x685   : > { %v3243_v21 = vpop.permute.xlu0 %3242 }
 0x686   : > { %3281 = vst.msk [vmem:[%s6997_s26 + $0x50] sm:$0xff] %vm3270_vm2, %v3243_v21 }
 0x687   : > { %v3245_v52 = vpop.permute.xlu1 %3244 }
 0x688   : > { %3282 = vst.msk [vmem:[%s6997_s26 + $0x58] sm:$0xff] %vm3270_vm2, %v3245_v52 }
 0x68d   : > { %v3247_v11 = vpop.permute.xlu0 %3246 }
 0x68e   : > { %3283 = vst.msk [vmem:[%s6997_s26 + $0x60] sm:$0xff] %vm3270_vm2, %v3247_v11 }
 0x68f   : > { %v3249_v12 = vpop.permute.xlu1 %3248 }
 0x690   : > { %3284 = vst.msk [vmem:[%s6997_s26 + $0x68] sm:$0xff] %vm3270_vm2, %v3249_v12 }
 0x695   : > { %v3251_v41 = vpop.permute.xlu0 %3250 }
 0x696   : > { %3285 = vst.msk [vmem:[%s6997_s26 + $0x70] sm:$0xff] %vm3270_vm2, %v3251_v41 }
 0x697   : > { %v3253_v27 = vpop.permute.xlu1 %3252 }
 0x698   : > { %3286 = vst.msk [vmem:[%s6997_s26 + $0x78] sm:$0xff] %vm3270_vm2, %v3253_v27 }
 0x699   : > { %v4175_v5 = vpop.permute.xlu0 %4174 }
 0x69a   : > { %4223 = vst.msk [vmem:[%s6997_s26] sm:$0xff] %vm4222_vm7, %v4175_v5 }
 0x69b   : > { %v4177_v51 = vpop.permute.xlu1 %4176 }
 0x69c   : > { %4224 = vst.msk [vmem:[%s6997_s26 + $0x8] sm:$0xff] %vm4222_vm7, %v4177_v51 }
 0x69d   : > { %v4179_v1 = vpop.permute.xlu0 %4178 }
 0x69e   : > { %4225 = vst.msk [vmem:[%s6997_s26 + $0x10] sm:$0xff] %vm4222_vm7, %v4179_v1 }
 0x69f   : > { %v4181_v55 = vpop.permute.xlu1 %4180 }
 0x6a0   : > { %4226 = vst.msk [vmem:[%s6997_s26 + $0x18] sm:$0xff] %vm4222_vm7, %v4181_v55 }
 0x6a1   : > { %v4183_v38 = vpop.permute.xlu0 %4182 }
 0x6a2   : > { %4227 = vst.msk [vmem:[%s6997_s26 + $0x20] sm:$0xff] %vm4222_vm7, %v4183_v38 }
 0x6a3   : > { %v4185_v33 = vpop.permute.xlu1 %4184 }
 0x6a4   : > { %4228 = vst.msk [vmem:[%s6997_s26 + $0x28] sm:$0xff] %vm4222_vm7, %v4185_v33 }
 0x6a5   : > { %v4187_v56 = vpop.permute.xlu0 %4186 }
 0x6a6   : > { %4229 = vst.msk [vmem:[%s6997_s26 + $0x30] sm:$0xff] %vm4222_vm7, %v4187_v56 }
 0x6a7   : > { %v4189_v47 = vpop.permute.xlu1 %4188 }
 0x6a8   : > { %4230 = vst.msk [vmem:[%s6997_s26 + $0x38] sm:$0xff] %vm4222_vm7, %v4189_v47 }
 0x6a9   : > { %v4191_v26 = vpop.permute.xlu0 %4190 }
 0x6aa   : > { %4231 = vst.msk [vmem:[%s6997_s26 + $0x40] sm:$0xff] %vm4222_vm7, %v4191_v26 }
 0x6ab   : > { %v4193_v43 = vpop.permute.xlu1 %4192 }
 0x6ac   : > { %4232 = vst.msk [vmem:[%s6997_s26 + $0x48] sm:$0xff] %vm4222_vm7, %v4193_v43 }
 0x6ad   : > { %v4195_v14 = vpop.permute.xlu0 %4194 }
 0x6ae   : > { %4233 = vst.msk [vmem:[%s6997_s26 + $0x50] sm:$0xff] %vm4222_vm7, %v4195_v14 }
 0x6af   : > { %v4197_v28 = vpop.permute.xlu1 %4196 }
 0x6b0   : > { %4234 = vst.msk [vmem:[%s6997_s26 + $0x58] sm:$0xff] %vm4222_vm7, %v4197_v28 }
 0x6b1   : > { %v4199_v54 = vpop.permute.xlu0 %4198 }
 0x6b2   : > { %4235 = vst.msk [vmem:[%s6997_s26 + $0x60] sm:$0xff] %vm4222_vm7, %v4199_v54 }
 0x6b3   : > { %v4201_v60 = vpop.permute.xlu1 %4200 }
 0x6b4   : > { %4236 = vst.msk [vmem:[%s6997_s26 + $0x68] sm:$0xff] %vm4222_vm7, %v4201_v60 }
 0x6b5   : > { %v4203_v32 = vpop.permute.xlu0 %4202 }
 0x6b6   : > { %4237 = vst.msk [vmem:[%s6997_s26 + $0x70] sm:$0xff] %vm4222_vm7, %v4203_v32 }
 0x6b7   : > { %v4205_v2 = vpop.permute.xlu1 %4204 }
 0x6b8   : > { %4238 = vst.msk [vmem:[%s6997_s26 + $0x78] sm:$0xff] %vm4222_vm7, %v4205_v2 }
 0x6b9   : > { %5479 = shalt.err (!%p5476_p4)
}
 0x6ba   : > { %s5480_s19 = scalar_lea.hbm %s8624_s18, 2048  ;;  %s5484_s27 = scalar_lea.hbm %s8682_s7, 4096 }
 0x6bb   : > { %p5481_p7 = scmp.ne.s32.totalorder %s8624_s18, %s5480_s19  ;;  %p5485_p10 = scmp.lt.u32.totalorder %s8624_s18, %s8682_s7 }
 0x6bc   : > { %p5486_p11 = scmp.lt.u32.totalorder %s5484_s27, %s5480_s19  ;;  %p5488_p13 = scmp.lt.u32.totalorder %s5480_s19, %s8624_s18 }
 0x6bd   : > { %p5482_p8 = pnand %p5481_p7, %p5624_p5 }
 0x6be   : > { %p5487_p12 = por %p5486_p11, %p5485_p10 }
 0x6bf   : > { %p5483_p9 = pneg %p5482_p8 }
 0x6c0   : > { %p5489_p0 = por %p5488_p13, %p5487_p12 }
 0x6c2   : > { %p5490_p1 = pnand %p5489_p0, %p5483_p9 }
 0x6c4   : > { %5493 = shalt.err (!%p5490_p1)
}
 0x6c5   : > { %s5538_s11 = smov 128   ;;  %s5539_s17 = smov 8  }
 0x6c6   : > { %4671 = dma.vmem_to_hbm [thread:$0]  (%p5624_p5), %s8626_s15, 2048, %s8624_s18, %s8634_s0, %s5538_s11, %s5538_s11, %s5539_s17  }
 0x6c7 PF: > { %p4677_p2 = scmp.ge.s32.totalorder %s5528_s8, 2  ;;  %s4268_s24 = sand.u32 1, %s5516_s28  }
 0x6c8   : > { %s4269_s16 = scalar_lea.sflag [#allocation5], %s4268_s24 }
 0x6c9   : > { %p4674_p3 = pnand %p4677_p2, %p5628_p6 }
 0x6cb   : > { %5511 = dma.done.wait (!%p4674_p3), %s4269_s16, 2048  }
 0x6cc   : > { %5513 = vsyncadd (!%p4674_p3), %s4269_s16, 4294965248  ;;  %p19_p4 = scmp.ge.s32.totalorder %s5611_s9, 4   ;;  %s9331_s28 = smov %s5520_s29 }
 0x6cd   : > { %s9332_s29 = smov %s5524_s30  ;;  %s9333_s30 = smov %s5622_s12 }
 0x6ce   : > { %s9334_s8 = smov %s5611_s9  ;;  %21 = sbr.rel (!%p19_p4) target bundleno = 6 (0x6), region = 89 }
 0x6d5   :  { %4274 = vsyncpa [#allocation5], 1 }
 0x6d6   :  { %4276 = vsyncpa [#allocation5 + $0x1], 1 }

</bundles_post_ra>
